<compile_context>
chip_gen: v6e
topology: v6e:2x2x1
jax: 0.10.0
libtpu: 0.0.40
codegen_flags: <defaults>
</compile_context>

<pallas_src>
import functools

import numpy as np

import jax
import jax.numpy as jnp
from jax.experimental import pallas as pl
from jax.experimental.pallas import tpu as pltpu


# ---------------- fused Pallas kernel ----------------

def _conv_block_kernel(*refs, n_layers, offsets, guard, relu_last):
    """Fused MaxPool3d(2) + [Conv3d(k, 'same', zeros) + bias (+ReLU)] * n_layers.

    refs (all full arrays in VMEM, single invocation):
      win_ref : (8, Cp, M)     pool-window elems on leading axis, channels-first
                               (padded to Cp sublanes), batch folded into the
                               zero-padded flat spatial lane axis M = N*Pp.
      mask_ref: (Cp, M)        1.0 at interior (valid conv output) lanes.
      w_refs  : (Cp, T*Cp)     per layer, column = tap*Cp + c_in (zero-padded).
      b_refs  : (Cp, 1)        per layer (zero-padded).
      out_ref : (Cp, M)        channels-first, padded-flat, whole batch.
      a_ref   : (Cp, M + 2*G)  zero-guarded activation buffer (shared by layers).
      x_ref   : (T*Cp, M)      im2col matrix (shared by layers).
    """
    L = n_layers
    win_ref, mask_ref = refs[0], refs[1]
    w_refs = refs[2:2 + L]
    b_refs = refs[2 + L:2 + 2 * L]
    out_ref = refs[2 + 2 * L]
    a_ref, x_ref = refs[3 + 2 * L], refs[4 + 2 * L]

    M = out_ref.shape[-1]
    G = guard
    C = a_ref.shape[0]                                     # padded channel count

    # ---- MaxPool3d(2): balanced max tree over the 8 window elements (VPU) ----
    def _tree_max(lo, hi):
        if hi - lo == 1:
            return win_ref[lo]
        mid = (lo + hi) // 2
        return jnp.maximum(_tree_max(lo, mid), _tree_max(mid, hi))

    act = _tree_max(0, win_ref.shape[0])                   # (Cp, M)

    # Zero only the guard lanes once: the interior is fully overwritten every
    # layer, and the guards supply zeros for boundary-shifted reads.
    a_ref[:, :G] = jnp.zeros((C, G), jnp.float32)
    a_ref[:, G + M:G + M + G] = jnp.zeros((C, G), jnp.float32)

    mask = mask_ref[...]                                   # (Cp, M)

    for l in range(L):
        a_ref[:, G:G + M] = act
        # im2col with the taps folded into the contraction dim (row = t*Cp + c):
        # every store is a full 8-sublane, lane-dense (Cp, M) vst; loads are
        # lane-shifted windows of the zero-guarded flat activation buffer.
        for t, off in enumerate(offsets):
            x_ref[t * C:(t + 1) * C, :] = a_ref[:, G + off:G + off + M]
        # ONE MXU matmul per conv layer for the whole batch; bias + ReLU fused.
        h = jnp.dot(w_refs[l][...], x_ref[...],
                    preferred_element_type=jnp.float32)    # (Cp, M)
        h = h + b_refs[l][...]
        if relu_last or l < L - 1:
            h = jnp.maximum(h, 0.0)
        if l < L - 1:
            # Pad positions become the next conv's zero padding.
            h = h * mask
        act = h
    out_ref[...] = act                                     # lane-dense store


# ---------------- wrapper (layout plumbing only) ----------------

def conv_block_3d_down(x, params, relu_last=True):
    """ConvBlock3D forward, block_type='down', padding_mode='zeros'.

    x: (N, C0, D, H, W) float32 (PyTorch NCDHW).
    params: list of (w (Cout, Cin, k, k, k), b (Cout,)) torch-Conv3d-layout weights.
    """
    N, C0, D, H, W = (int(s) for s in x.shape)
    k = int(params[0][0].shape[-1])
    p = (k - 1) // 2
    T = k ** 3
    L = len(params)

    chans = [C0] + [int(w.shape[0]) for w, _ in params]
    Cp = max(-(-c // 8) * 8 for c in chans)        # channels padded to 8-sublane mult

    # geometry after MaxPool3d(2), 'same' zero padding, and 128-lane padding
    D2, H2, W2 = D // 2, H // 2, W // 2
    Dp, Hp, Wp = D2 + 2 * p, H2 + 2 * p, W2 + 2 * p
    P = Dp * Hp * Wp                                # per-sample padded flat spatial
    Pp = -(-P // 128) * 128                         # lane-dense per-sample segment
    M = N * Pp                                      # batch folded into the lane axis

    # Pool-window elems -> leading axis, channels-first (padded to Cp), batch
    # folded into the zero-padded flat spatial lane axis.
    # TODO(synk): fold this transpose/pad into the kernel at real volume sizes.
    xw = x.reshape(N, C0, D2, 2, H2, 2, W2, 2)
    xw = xw.transpose(3, 5, 7, 1, 0, 2, 4, 6)       # (2,2,2, C0, N, D2, H2, W2)
    xw = xw.reshape(8, C0, N, D2, H2, W2)
    xw = jnp.pad(xw, ((0, 0), (0, Cp - C0), (0, 0), (p, p), (p, p), (p, p)))
    xw = xw.reshape(8, Cp, N, P)
    xw = jnp.pad(xw, ((0, 0), (0, 0), (0, 0), (0, Pp - P)))
    xw = xw.reshape(8, Cp, M).astype(jnp.float32)

    # torch Conv3d weights (Cout, Cin, k,k,k) -> (Cp, T*Cp), col = t*Cp + ci,
    # zero-padded on both channel axes (padded rows/cols contribute exactly 0).
    wts, bs = [], []
    for w, b in params:
        co, ci = int(w.shape[0]), int(w.shape[1])
        wm = w.astype(jnp.float32).reshape(co, ci, T).transpose(0, 2, 1)   # (co,T,ci)
        wm = jnp.pad(wm, ((0, Cp - co), (0, 0), (0, Cp - ci)))             # (Cp,T,Cp)
        wts.append(wm.reshape(Cp, T * Cp))
        bs.append(jnp.pad(b.astype(jnp.float32), (0, Cp - co)).reshape(Cp, 1))

    # Tap offsets in padded-flat sample-local coordinates + interior-lane mask.
    offs = tuple((kd - p) * Hp * Wp + (kh - p) * Wp + (kw - p)
                 for kd in range(k) for kh in range(k) for kw in range(k))
    G = -(-max(abs(o) for o in offs) // 8) * 8      # guard; no 128-alignment needed
    assert G >= max(abs(o) for o in offs)

    mi = np.zeros((Dp, Hp, Wp), np.float32)
    mi[p:Dp - p, p:Hp - p, p:Wp - p] = 1.0
    m = np.zeros((N, Pp), np.float32)
    m[:, :P] = mi.reshape(1, P)                     # pad lanes [P, Pp) stay zero
    mask = jnp.asarray(np.broadcast_to(m.reshape(1, M), (Cp, M)))

    kernel = functools.partial(_conv_block_kernel, n_layers=L, offsets=offs,
                               guard=G, relu_last=relu_last)

    out = pl.pallas_call(
        kernel,
        out_shape=jax.ShapeDtypeStruct((Cp, M), jnp.float32),
        scratch_shapes=[pltpu.VMEM((Cp, M + 2 * G), jnp.float32),
                        pltpu.VMEM((T * Cp, M), jnp.float32)],
    )(xw, mask, *wts, *bs)

    # Strip channel / lane / conv padding; restore NCDHW.
    # TODO(synk): emit interior-only rows from the kernel at volume sizes to avoid
    # the padded-output HBM inflation and this extra XLA slice/transpose.
    out = out[:chans[-1]].reshape(chans[-1], N, Pp)[:, :, :P]
    out = out.reshape(chans[-1], N, Dp, Hp, Wp).transpose(1, 0, 2, 3, 4)
    return out[:, :, p:Dp - p, p:Hp - p, p:Wp - p]

# TODO(synk): nn.Upsample ('up'/'bottom' blocks) and the no-final-ReLU 'out' block
# are not exercised by this config (resize/gather glue, not a Pallas hot path).


# ---------------- pure-JAX reference (for verification) ----------------

def _ref_forward(x_ncdhw, params):
    neg_inf = jnp.array(-jnp.inf, x_ncdhw.dtype)
    x = jax.lax.reduce_window(x_ncdhw, neg_inf, jax.lax.max,
                              (1, 1, 2, 2, 2), (1, 1, 2, 2, 2), 'VALID')
    for w, b in params:
        x = jax.lax.conv_general_dilated(
            x, w, window_strides=(1, 1, 1),
            padding=((1, 1), (1, 1), (1, 1)),
            dimension_numbers=('NCDHW', 'OIDHW', 'NCDHW'),
            precision=jax.lax.Precision.HIGHEST)
        x = x + b.reshape(1, -1, 1, 1, 1)
        x = jnp.maximum(x, 0.0)
    return x


# ---------------- main ----------------

if __name__ == "__main__":
    key = jax.random.PRNGKey(0)
    k_x, k_w1, k_b1, k_w2, k_b2 = jax.random.split(key, 5)

    # ConvBlock3D(fmaps=[4, 8, 8], block_type='down', kernel_size=3)
    fmaps = [4, 8, 8]
    ksz = 3
    N, D, H, W = 2, 16, 16, 16

    x = jax.random.normal(k_x, (N, fmaps[0], D, H, W), dtype=jnp.float32)
    w1 = 0.1 * jax.random.normal(k_w1, (fmaps[1], fmaps[0], ksz, ksz, ksz), jnp.float32)
    b1 = 0.1 * jax.random.normal(k_b1, (fmaps[1],), jnp.float32)
    w2 = 0.1 * jax.random.normal(k_w2, (fmaps[2], fmaps[1], ksz, ksz, ksz), jnp.float32)
    b2 = 0.1 * jax.random.normal(k_b2, (fmaps[2],), jnp.float32)
    params = [(w1, b1), (w2, b2)]

    fwd = jax.jit(conv_block_3d_down)
    out = jax.block_until_ready(fwd(x, params))
    ref = jax.block_until_ready(_ref_forward(x, params))

    assert out.shape == (N, fmaps[2], D // 2, H // 2, W // 2), out.shape
    max_err = float(jnp.max(jnp.abs(out - ref)))
    assert jnp.allclose(out, ref, atol=1e-3, rtol=1e-3), max_err

    print("KERNEL_OK")
</pallas_src>

<mosaic_0001>
module attributes {stable_mosaic.version = 11 : i64} {
  func.func @_conv_block_kernel(%arg0: memref<8x8x2048xf32, #tpu.memory_space<vmem>>, %arg1: memref<8x2048xf32, #tpu.memory_space<vmem>>, %arg2: memref<8x216xf32, #tpu.memory_space<vmem>>, %arg3: memref<8x216xf32, #tpu.memory_space<vmem>>, %arg4: memref<8x1xf32, #tpu.memory_space<vmem>>, %arg5: memref<8x1xf32, #tpu.memory_space<vmem>>, %arg6: memref<8x2048xf32, #tpu.memory_space<vmem>>, %arg7: memref<8x2272xf32, #tpu.memory_space<vmem>>, %arg8: memref<216x2048xf32, #tpu.memory_space<vmem>>) attributes {dimension_semantics = [], scalar_prefetch = 0 : i64, scratch_operands = 2 : i64, tpu.core_type = #tpu.core_type<tc>} {
    %c0 = arith.constant 0 : index
    %c0_0 = arith.constant 0 : index
    %c0_1 = arith.constant 0 : index
    %0 = vector.load %arg0[%c0, %c0_0, %c0_1] : memref<8x8x2048xf32, #tpu.memory_space<vmem>>, vector<1x8x2048xf32>
    %1 = vector.shape_cast %0 : vector<1x8x2048xf32> to vector<8x2048xf32>
    %c1 = arith.constant 1 : index
    %c0_2 = arith.constant 0 : index
    %c0_3 = arith.constant 0 : index
    %2 = vector.load %arg0[%c1, %c0_2, %c0_3] : memref<8x8x2048xf32, #tpu.memory_space<vmem>>, vector<1x8x2048xf32>
    %3 = vector.shape_cast %2 : vector<1x8x2048xf32> to vector<8x2048xf32>
    %4 = arith.maximumf %1, %3 : vector<8x2048xf32>
    %c2 = arith.constant 2 : index
    %c0_4 = arith.constant 0 : index
    %c0_5 = arith.constant 0 : index
    %5 = vector.load %arg0[%c2, %c0_4, %c0_5] : memref<8x8x2048xf32, #tpu.memory_space<vmem>>, vector<1x8x2048xf32>
    %6 = vector.shape_cast %5 : vector<1x8x2048xf32> to vector<8x2048xf32>
    %c3 = arith.constant 3 : index
    %c0_6 = arith.constant 0 : index
    %c0_7 = arith.constant 0 : index
    %7 = vector.load %arg0[%c3, %c0_6, %c0_7] : memref<8x8x2048xf32, #tpu.memory_space<vmem>>, vector<1x8x2048xf32>
    %8 = vector.shape_cast %7 : vector<1x8x2048xf32> to vector<8x2048xf32>
    %9 = arith.maximumf %6, %8 : vector<8x2048xf32>
    %10 = arith.maximumf %4, %9 : vector<8x2048xf32>
    %c4 = arith.constant 4 : index
    %c0_8 = arith.constant 0 : index
    %c0_9 = arith.constant 0 : index
    %11 = vector.load %arg0[%c4, %c0_8, %c0_9] : memref<8x8x2048xf32, #tpu.memory_space<vmem>>, vector<1x8x2048xf32>
    %12 = vector.shape_cast %11 : vector<1x8x2048xf32> to vector<8x2048xf32>
    %c5 = arith.constant 5 : index
    %c0_10 = arith.constant 0 : index
    %c0_11 = arith.constant 0 : index
    %13 = vector.load %arg0[%c5, %c0_10, %c0_11] : memref<8x8x2048xf32, #tpu.memory_space<vmem>>, vector<1x8x2048xf32>
    %14 = vector.shape_cast %13 : vector<1x8x2048xf32> to vector<8x2048xf32>
    %15 = arith.maximumf %12, %14 : vector<8x2048xf32>
    %c6 = arith.constant 6 : index
    %c0_12 = arith.constant 0 : index
    %c0_13 = arith.constant 0 : index
    %16 = vector.load %arg0[%c6, %c0_12, %c0_13] : memref<8x8x2048xf32, #tpu.memory_space<vmem>>, vector<1x8x2048xf32>
    %17 = vector.shape_cast %16 : vector<1x8x2048xf32> to vector<8x2048xf32>
    %c7 = arith.constant 7 : index
    %c0_14 = arith.constant 0 : index
    %c0_15 = arith.constant 0 : index
    %18 = vector.load %arg0[%c7, %c0_14, %c0_15] : memref<8x8x2048xf32, #tpu.memory_space<vmem>>, vector<1x8x2048xf32>
    %19 = vector.shape_cast %18 : vector<1x8x2048xf32> to vector<8x2048xf32>
    %20 = arith.maximumf %17, %19 : vector<8x2048xf32>
    %21 = arith.maximumf %15, %20 : vector<8x2048xf32>
    %22 = arith.maximumf %10, %21 : vector<8x2048xf32>
    %cst = arith.constant 0.000000e+00 : f32
    %23 = vector.broadcast %cst : f32 to vector<8x112xf32>
    %c0_16 = arith.constant 0 : index
    %c0_17 = arith.constant 0 : index
    %24 = vector.load %arg7[%c0_16, %c0_17] : memref<8x2272xf32, #tpu.memory_space<vmem>>, vector<8x112xf32>
    tpu.vector_store %arg7[%c0_16, %c0_17], %23 {strides = array<i32>} : memref<8x2272xf32, #tpu.memory_space<vmem>>, vector<8x112xf32>,
    %cst_18 = arith.constant 0.000000e+00 : f32
    %25 = vector.broadcast %cst_18 : f32 to vector<8x112xf32>
    %c0_19 = arith.constant 0 : index
    %c2160 = arith.constant 2160 : index
    %26 = vector.load %arg7[%c0_19, %c2160] : memref<8x2272xf32, #tpu.memory_space<vmem>>, vector<8x112xf32>
    tpu.vector_store %arg7[%c0_19, %c2160], %25 {strides = array<i32>} : memref<8x2272xf32, #tpu.memory_space<vmem>>, vector<8x112xf32>,
    %c0_20 = arith.constant 0 : index
    %c0_21 = arith.constant 0 : index
    %27 = vector.load %arg1[%c0_20, %c0_21] : memref<8x2048xf32, #tpu.memory_space<vmem>>, vector<8x2048xf32>
    %c0_22 = arith.constant 0 : index
    %c112 = arith.constant 112 : index
    %28 = vector.load %arg7[%c0_22, %c112] : memref<8x2272xf32, #tpu.memory_space<vmem>>, vector<8x2048xf32>
    tpu.vector_store %arg7[%c0_22, %c112], %22 {strides = array<i32>} : memref<8x2272xf32, #tpu.memory_space<vmem>>, vector<8x2048xf32>,
    %c0_23 = arith.constant 0 : index
    %c1_24 = arith.constant 1 : index
    %29 = vector.load %arg7[%c0_23, %c1_24] : memref<8x2272xf32, #tpu.memory_space<vmem>>, vector<8x2048xf32>
    %c0_25 = arith.constant 0 : index
    %c0_26 = arith.constant 0 : index
    %30 = vector.load %arg8[%c0_25, %c0_26] : memref<216x2048xf32, #tpu.memory_space<vmem>>, vector<8x2048xf32>
    tpu.vector_store %arg8[%c0_25, %c0_26], %29 {strides = array<i32>} : memref<216x2048xf32, #tpu.memory_space<vmem>>, vector<8x2048xf32>,
    %c0_27 = arith.constant 0 : index
    %c2_28 = arith.constant 2 : index
    %31 = vector.load %arg7[%c0_27, %c2_28] : memref<8x2272xf32, #tpu.memory_space<vmem>>, vector<8x2048xf32>
    %c8 = arith.constant 8 : index
    %c0_29 = arith.constant 0 : index
    %32 = vector.load %arg8[%c8, %c0_29] : memref<216x2048xf32, #tpu.memory_space<vmem>>, vector<8x2048xf32>
    tpu.vector_store %arg8[%c8, %c0_29], %31 {strides = array<i32>} : memref<216x2048xf32, #tpu.memory_space<vmem>>, vector<8x2048xf32>,
    %c0_30 = arith.constant 0 : index
    %c3_31 = arith.constant 3 : index
    %33 = vector.load %arg7[%c0_30, %c3_31] : memref<8x2272xf32, #tpu.memory_space<vmem>>, vector<8x2048xf32>
    %c16 = arith.constant 16 : index
    %c0_32 = arith.constant 0 : index
    %34 = vector.load %arg8[%c16, %c0_32] : memref<216x2048xf32, #tpu.memory_space<vmem>>, vector<8x2048xf32>
    tpu.vector_store %arg8[%c16, %c0_32], %33 {strides = array<i32>} : memref<216x2048xf32, #tpu.memory_space<vmem>>, vector<8x2048xf32>,
    %c0_33 = arith.constant 0 : index
    %c11 = arith.constant 11 : index
    %35 = vector.load %arg7[%c0_33, %c11] : memref<8x2272xf32, #tpu.memory_space<vmem>>, vector<8x2048xf32>
    %c24 = arith.constant 24 : index
    %c0_34 = arith.constant 0 : index
    %36 = vector.load %arg8[%c24, %c0_34] : memref<216x2048xf32, #tpu.memory_space<vmem>>, vector<8x2048xf32>
    tpu.vector_store %arg8[%c24, %c0_34], %35 {strides = array<i32>} : memref<216x2048xf32, #tpu.memory_space<vmem>>, vector<8x2048xf32>,
    %c0_35 = arith.constant 0 : index
    %c12 = arith.constant 12 : index
    %37 = vector.load %arg7[%c0_35, %c12] : memref<8x2272xf32, #tpu.memory_space<vmem>>, vector<8x2048xf32>
    %c32 = arith.constant 32 : index
    %c0_36 = arith.constant 0 : index
    %38 = vector.load %arg8[%c32, %c0_36] : memref<216x2048xf32, #tpu.memory_space<vmem>>, vector<8x2048xf32>
    tpu.vector_store %arg8[%c32, %c0_36], %37 {strides = array<i32>} : memref<216x2048xf32, #tpu.memory_space<vmem>>, vector<8x2048xf32>,
    %c0_37 = arith.constant 0 : index
    %c13 = arith.constant 13 : index
    %39 = vector.load %arg7[%c0_37, %c13] : memref<8x2272xf32, #tpu.memory_space<vmem>>, vector<8x2048xf32>
    %c40 = arith.constant 40 : index
    %c0_38 = arith.constant 0 : index
    %40 = vector.load %arg8[%c40, %c0_38] : memref<216x2048xf32, #tpu.memory_space<vmem>>, vector<8x2048xf32>
    tpu.vector_store %arg8[%c40, %c0_38], %39 {strides = array<i32>} : memref<216x2048xf32, #tpu.memory_space<vmem>>, vector<8x2048xf32>,
    %c0_39 = arith.constant 0 : index
    %c21 = arith.constant 21 : index
    %41 = vector.load %arg7[%c0_39, %c21] : memref<8x2272xf32, #tpu.memory_space<vmem>>, vector<8x2048xf32>
    %c48 = arith.constant 48 : index
    %c0_40 = arith.constant 0 : index
    %42 = vector.load %arg8[%c48, %c0_40] : memref<216x2048xf32, #tpu.memory_space<vmem>>, vector<8x2048xf32>
    tpu.vector_store %arg8[%c48, %c0_40], %41 {strides = array<i32>} : memref<216x2048xf32, #tpu.memory_space<vmem>>, vector<8x2048xf32>,
    %c0_41 = arith.constant 0 : index
    %c22 = arith.constant 22 : index
    %43 = vector.load %arg7[%c0_41, %c22] : memref<8x2272xf32, #tpu.memory_space<vmem>>, vector<8x2048xf32>
    %c56 = arith.constant 56 : index
    %c0_42 = arith.constant 0 : index
    %44 = vector.load %arg8[%c56, %c0_42] : memref<216x2048xf32, #tpu.memory_space<vmem>>, vector<8x2048xf32>
    tpu.vector_store %arg8[%c56, %c0_42], %43 {strides = array<i32>} : memref<216x2048xf32, #tpu.memory_space<vmem>>, vector<8x2048xf32>,
    %c0_43 = arith.constant 0 : index
    %c23 = arith.constant 23 : index
    %45 = vector.load %arg7[%c0_43, %c23] : memref<8x2272xf32, #tpu.memory_space<vmem>>, vector<8x2048xf32>
    %c64 = arith.constant 64 : index
    %c0_44 = arith.constant 0 : index
    %46 = vector.load %arg8[%c64, %c0_44] : memref<216x2048xf32, #tpu.memory_space<vmem>>, vector<8x2048xf32>
    tpu.vector_store %arg8[%c64, %c0_44], %45 {strides = array<i32>} : memref<216x2048xf32, #tpu.memory_space<vmem>>, vector<8x2048xf32>,
    %c0_45 = arith.constant 0 : index
    %c101 = arith.constant 101 : index
    %47 = vector.load %arg7[%c0_45, %c101] : memref<8x2272xf32, #tpu.memory_space<vmem>>, vector<8x2048xf32>
    %c72 = arith.constant 72 : index
    %c0_46 = arith.constant 0 : index
    %48 = vector.load %arg8[%c72, %c0_46] : memref<216x2048xf32, #tpu.memory_space<vmem>>, vector<8x2048xf32>
    tpu.vector_store %arg8[%c72, %c0_46], %47 {strides = array<i32>} : memref<216x2048xf32, #tpu.memory_space<vmem>>, vector<8x2048xf32>,
    %c0_47 = arith.constant 0 : index
    %c102 = arith.constant 102 : index
    %49 = vector.load %arg7[%c0_47, %c102] : memref<8x2272xf32, #tpu.memory_space<vmem>>, vector<8x2048xf32>
    %c80 = arith.constant 80 : index
    %c0_48 = arith.constant 0 : index
    %50 = vector.load %arg8[%c80, %c0_48] : memref<216x2048xf32, #tpu.memory_space<vmem>>, vector<8x2048xf32>
    tpu.vector_store %arg8[%c80, %c0_48], %49 {strides = array<i32>} : memref<216x2048xf32, #tpu.memory_space<vmem>>, vector<8x2048xf32>,
    %c0_49 = arith.constant 0 : index
    %c103 = arith.constant 103 : index
    %51 = vector.load %arg7[%c0_49, %c103] : memref<8x2272xf32, #tpu.memory_space<vmem>>, vector<8x2048xf32>
    %c88 = arith.constant 88 : index
    %c0_50 = arith.constant 0 : index
    %52 = vector.load %arg8[%c88, %c0_50] : memref<216x2048xf32, #tpu.memory_space<vmem>>, vector<8x2048xf32>
    tpu.vector_store %arg8[%c88, %c0_50], %51 {strides = array<i32>} : memref<216x2048xf32, #tpu.memory_space<vmem>>, vector<8x2048xf32>,
    %c0_51 = arith.constant 0 : index
    %c111 = arith.constant 111 : index
    %53 = vector.load %arg7[%c0_51, %c111] : memref<8x2272xf32, #tpu.memory_space<vmem>>, vector<8x2048xf32>
    %c96 = arith.constant 96 : index
    %c0_52 = arith.constant 0 : index
    %54 = vector.load %arg8[%c96, %c0_52] : memref<216x2048xf32, #tpu.memory_space<vmem>>, vector<8x2048xf32>
    tpu.vector_store %arg8[%c96, %c0_52], %53 {strides = array<i32>} : memref<216x2048xf32, #tpu.memory_space<vmem>>, vector<8x2048xf32>,
    %c0_53 = arith.constant 0 : index
    %c112_54 = arith.constant 112 : index
    %55 = vector.load %arg7[%c0_53, %c112_54] : memref<8x2272xf32, #tpu.memory_space<vmem>>, vector<8x2048xf32>
    %c104 = arith.constant 104 : index
    %c0_55 = arith.constant 0 : index
    %56 = vector.load %arg8[%c104, %c0_55] : memref<216x2048xf32, #tpu.memory_space<vmem>>, vector<8x2048xf32>
    tpu.vector_store %arg8[%c104, %c0_55], %55 {strides = array<i32>} : memref<216x2048xf32, #tpu.memory_space<vmem>>, vector<8x2048xf32>,
    %c0_56 = arith.constant 0 : index
    %c113 = arith.constant 113 : index
    %57 = vector.load %arg7[%c0_56, %c113] : memref<8x2272xf32, #tpu.memory_space<vmem>>, vector<8x2048xf32>
    %c112_57 = arith.constant 112 : index
    %c0_58 = arith.constant 0 : index
    %58 = vector.load %arg8[%c112_57, %c0_58] : memref<216x2048xf32, #tpu.memory_space<vmem>>, vector<8x2048xf32>
    tpu.vector_store %arg8[%c112_57, %c0_58], %57 {strides = array<i32>} : memref<216x2048xf32, #tpu.memory_space<vmem>>, vector<8x2048xf32>,
    %c0_59 = arith.constant 0 : index
    %c121 = arith.constant 121 : index
    %59 = vector.load %arg7[%c0_59, %c121] : memref<8x2272xf32, #tpu.memory_space<vmem>>, vector<8x2048xf32>
    %c120 = arith.constant 120 : index
    %c0_60 = arith.constant 0 : index
    %60 = vector.load %arg8[%c120, %c0_60] : memref<216x2048xf32, #tpu.memory_space<vmem>>, vector<8x2048xf32>
    tpu.vector_store %arg8[%c120, %c0_60], %59 {strides = array<i32>} : memref<216x2048xf32, #tpu.memory_space<vmem>>, vector<8x2048xf32>,
    %c0_61 = arith.constant 0 : index
    %c122 = arith.constant 122 : index
    %61 = vector.load %arg7[%c0_61, %c122] : memref<8x2272xf32, #tpu.memory_space<vmem>>, vector<8x2048xf32>
    %c128 = arith.constant 128 : index
    %c0_62 = arith.constant 0 : index
    %62 = vector.load %arg8[%c128, %c0_62] : memref<216x2048xf32, #tpu.memory_space<vmem>>, vector<8x2048xf32>
    tpu.vector_store %arg8[%c128, %c0_62], %61 {strides = array<i32>} : memref<216x2048xf32, #tpu.memory_space<vmem>>, vector<8x2048xf32>,
    %c0_63 = arith.constant 0 : index
    %c123 = arith.constant 123 : index
    %63 = vector.load %arg7[%c0_63, %c123] : memref<8x2272xf32, #tpu.memory_space<vmem>>, vector<8x2048xf32>
    %c136 = arith.constant 136 : index
    %c0_64 = arith.constant 0 : index
    %64 = vector.load %arg8[%c136, %c0_64] : memref<216x2048xf32, #tpu.memory_space<vmem>>, vector<8x2048xf32>
    tpu.vector_store %arg8[%c136, %c0_64], %63 {strides = array<i32>} : memref<216x2048xf32, #tpu.memory_space<vmem>>, vector<8x2048xf32>,
    %c0_65 = arith.constant 0 : index
    %c201 = arith.constant 201 : index
    %65 = vector.load %arg7[%c0_65, %c201] : memref<8x2272xf32, #tpu.memory_space<vmem>>, vector<8x2048xf32>
    %c144 = arith.constant 144 : index
    %c0_66 = arith.constant 0 : index
    %66 = vector.load %arg8[%c144, %c0_66] : memref<216x2048xf32, #tpu.memory_space<vmem>>, vector<8x2048xf32>
    tpu.vector_store %arg8[%c144, %c0_66], %65 {strides = array<i32>} : memref<216x2048xf32, #tpu.memory_space<vmem>>, vector<8x2048xf32>,
    %c0_67 = arith.constant 0 : index
    %c202 = arith.constant 202 : index
    %67 = vector.load %arg7[%c0_67, %c202] : memref<8x2272xf32, #tpu.memory_space<vmem>>, vector<8x2048xf32>
    %c152 = arith.constant 152 : index
    %c0_68 = arith.constant 0 : index
    %68 = vector.load %arg8[%c152, %c0_68] : memref<216x2048xf32, #tpu.memory_space<vmem>>, vector<8x2048xf32>
    tpu.vector_store %arg8[%c152, %c0_68], %67 {strides = array<i32>} : memref<216x2048xf32, #tpu.memory_space<vmem>>, vector<8x2048xf32>,
    %c0_69 = arith.constant 0 : index
    %c203 = arith.constant 203 : index
    %69 = vector.load %arg7[%c0_69, %c203] : memref<8x2272xf32, #tpu.memory_space<vmem>>, vector<8x2048xf32>
    %c160 = arith.constant 160 : index
    %c0_70 = arith.constant 0 : index
    %70 = vector.load %arg8[%c160, %c0_70] : memref<216x2048xf32, #tpu.memory_space<vmem>>, vector<8x2048xf32>
    tpu.vector_store %arg8[%c160, %c0_70], %69 {strides = array<i32>} : memref<216x2048xf32, #tpu.memory_space<vmem>>, vector<8x2048xf32>,
    %c0_71 = arith.constant 0 : index
    %c211 = arith.constant 211 : index
    %71 = vector.load %arg7[%c0_71, %c211] : memref<8x2272xf32, #tpu.memory_space<vmem>>, vector<8x2048xf32>
    %c168 = arith.constant 168 : index
    %c0_72 = arith.constant 0 : index
    %72 = vector.load %arg8[%c168, %c0_72] : memref<216x2048xf32, #tpu.memory_space<vmem>>, vector<8x2048xf32>
    tpu.vector_store %arg8[%c168, %c0_72], %71 {strides = array<i32>} : memref<216x2048xf32, #tpu.memory_space<vmem>>, vector<8x2048xf32>,
    %c0_73 = arith.constant 0 : index
    %c212 = arith.constant 212 : index
    %73 = vector.load %arg7[%c0_73, %c212] : memref<8x2272xf32, #tpu.memory_space<vmem>>, vector<8x2048xf32>
    %c176 = arith.constant 176 : index
    %c0_74 = arith.constant 0 : index
    %74 = vector.load %arg8[%c176, %c0_74] : memref<216x2048xf32, #tpu.memory_space<vmem>>, vector<8x2048xf32>
    tpu.vector_store %arg8[%c176, %c0_74], %73 {strides = array<i32>} : memref<216x2048xf32, #tpu.memory_space<vmem>>, vector<8x2048xf32>,
    %c0_75 = arith.constant 0 : index
    %c213 = arith.constant 213 : index
    %75 = vector.load %arg7[%c0_75, %c213] : memref<8x2272xf32, #tpu.memory_space<vmem>>, vector<8x2048xf32>
    %c184 = arith.constant 184 : index
    %c0_76 = arith.constant 0 : index
    %76 = vector.load %arg8[%c184, %c0_76] : memref<216x2048xf32, #tpu.memory_space<vmem>>, vector<8x2048xf32>
    tpu.vector_store %arg8[%c184, %c0_76], %75 {strides = array<i32>} : memref<216x2048xf32, #tpu.memory_space<vmem>>, vector<8x2048xf32>,
    %c0_77 = arith.constant 0 : index
    %c221 = arith.constant 221 : index
    %77 = vector.load %arg7[%c0_77, %c221] : memref<8x2272xf32, #tpu.memory_space<vmem>>, vector<8x2048xf32>
    %c192 = arith.constant 192 : index
    %c0_78 = arith.constant 0 : index
    %78 = vector.load %arg8[%c192, %c0_78] : memref<216x2048xf32, #tpu.memory_space<vmem>>, vector<8x2048xf32>
    tpu.vector_store %arg8[%c192, %c0_78], %77 {strides = array<i32>} : memref<216x2048xf32, #tpu.memory_space<vmem>>, vector<8x2048xf32>,
    %c0_79 = arith.constant 0 : index
    %c222 = arith.constant 222 : index
    %79 = vector.load %arg7[%c0_79, %c222] : memref<8x2272xf32, #tpu.memory_space<vmem>>, vector<8x2048xf32>
    %c200 = arith.constant 200 : index
    %c0_80 = arith.constant 0 : index
    %80 = vector.load %arg8[%c200, %c0_80] : memref<216x2048xf32, #tpu.memory_space<vmem>>, vector<8x2048xf32>
    tpu.vector_store %arg8[%c200, %c0_80], %79 {strides = array<i32>} : memref<216x2048xf32, #tpu.memory_space<vmem>>, vector<8x2048xf32>,
    %c0_81 = arith.constant 0 : index
    %c223 = arith.constant 223 : index
    %81 = vector.load %arg7[%c0_81, %c223] : memref<8x2272xf32, #tpu.memory_space<vmem>>, vector<8x2048xf32>
    %c208 = arith.constant 208 : index
    %c0_82 = arith.constant 0 : index
    %82 = vector.load %arg8[%c208, %c0_82] : memref<216x2048xf32, #tpu.memory_space<vmem>>, vector<8x2048xf32>
    tpu.vector_store %arg8[%c208, %c0_82], %81 {strides = array<i32>} : memref<216x2048xf32, #tpu.memory_space<vmem>>, vector<8x2048xf32>,
    %c0_83 = arith.constant 0 : index
    %c0_84 = arith.constant 0 : index
    %83 = vector.load %arg2[%c0_83, %c0_84] : memref<8x216xf32, #tpu.memory_space<vmem>>, vector<8x216xf32>
    %c0_85 = arith.constant 0 : index
    %c0_86 = arith.constant 0 : index
    %84 = vector.load %arg8[%c0_85, %c0_86] : memref<216x2048xf32, #tpu.memory_space<vmem>>, vector<216x2048xf32>
    %cst_87 = arith.constant dense<0.000000e+00> : vector<8x2048xf32>
    %85 = tpu.matmul %83, %84, %cst_87 {dimension_numbers = #tpu.dot_dimension_numbers<[1], [0], [0], [1], [0, 0, 1, 1], [], []>} : vector<8x216xf32>, vector<216x2048xf32>, vector<8x2048xf32> -> vector<8x2048xf32>
    %c0_88 = arith.constant 0 : index
    %c0_89 = arith.constant 0 : index
    %86 = vector.load %arg4[%c0_88, %c0_89] : memref<8x1xf32, #tpu.memory_space<vmem>>, vector<8x1xf32>
    %87 = vector.broadcast %86 : vector<8x1xf32> to vector<8x2048xf32>
    %88 = arith.addf %85, %87 : vector<8x2048xf32>
    %cst_90 = arith.constant 0.000000e+00 : f32
    %89 = vector.broadcast %cst_90 : f32 to vector<8x2048xf32>
    %90 = arith.maximumf %88, %89 : vector<8x2048xf32>
    %91 = arith.mulf %90, %27 : vector<8x2048xf32>
    %c0_91 = arith.constant 0 : index
    %c112_92 = arith.constant 112 : index
    %92 = vector.load %arg7[%c0_91, %c112_92] : memref<8x2272xf32, #tpu.memory_space<vmem>>, vector<8x2048xf32>
    tpu.vector_store %arg7[%c0_91, %c112_92], %91 {strides = array<i32>} : memref<8x2272xf32, #tpu.memory_space<vmem>>, vector<8x2048xf32>,
    %c0_93 = arith.constant 0 : index
    %c1_94 = arith.constant 1 : index
    %93 = vector.load %arg7[%c0_93, %c1_94] : memref<8x2272xf32, #tpu.memory_space<vmem>>, vector<8x2048xf32>
    %c0_95 = arith.constant 0 : index
    %c0_96 = arith.constant 0 : index
    %94 = vector.load %arg8[%c0_95, %c0_96] : memref<216x2048xf32, #tpu.memory_space<vmem>>, vector<8x2048xf32>
    tpu.vector_store %arg8[%c0_95, %c0_96], %93 {strides = array<i32>} : memref<216x2048xf32, #tpu.memory_space<vmem>>, vector<8x2048xf32>,
    %c0_97 = arith.constant 0 : index
    %c2_98 = arith.constant 2 : index
    %95 = vector.load %arg7[%c0_97, %c2_98] : memref<8x2272xf32, #tpu.memory_space<vmem>>, vector<8x2048xf32>
    %c8_99 = arith.constant 8 : index
    %c0_100 = arith.constant 0 : index
    %96 = vector.load %arg8[%c8_99, %c0_100] : memref<216x2048xf32, #tpu.memory_space<vmem>>, vector<8x2048xf32>
    tpu.vector_store %arg8[%c8_99, %c0_100], %95 {strides = array<i32>} : memref<216x2048xf32, #tpu.memory_space<vmem>>, vector<8x2048xf32>,
    %c0_101 = arith.constant 0 : index
    %c3_102 = arith.constant 3 : index
    %97 = vector.load %arg7[%c0_101, %c3_102] : memref<8x2272xf32, #tpu.memory_space<vmem>>, vector<8x2048xf32>
    %c16_103 = arith.constant 16 : index
    %c0_104 = arith.constant 0 : index
    %98 = vector.load %arg8[%c16_103, %c0_104] : memref<216x2048xf32, #tpu.memory_space<vmem>>, vector<8x2048xf32>
    tpu.vector_store %arg8[%c16_103, %c0_104], %97 {strides = array<i32>} : memref<216x2048xf32, #tpu.memory_space<vmem>>, vector<8x2048xf32>,
    %c0_105 = arith.constant 0 : index
    %c11_106 = arith.constant 11 : index
    %99 = vector.load %arg7[%c0_105, %c11_106] : memref<8x2272xf32, #tpu.memory_space<vmem>>, vector<8x2048xf32>
    %c24_107 = arith.constant 24 : index
    %c0_108 = arith.constant 0 : index
    %100 = vector.load %arg8[%c24_107, %c0_108] : memref<216x2048xf32, #tpu.memory_space<vmem>>, vector<8x2048xf32>
    tpu.vector_store %arg8[%c24_107, %c0_108], %99 {strides = array<i32>} : memref<216x2048xf32, #tpu.memory_space<vmem>>, vector<8x2048xf32>,
    %c0_109 = arith.constant 0 : index
    %c12_110 = arith.constant 12 : index
    %101 = vector.load %arg7[%c0_109, %c12_110] : memref<8x2272xf32, #tpu.memory_space<vmem>>, vector<8x2048xf32>
    %c32_111 = arith.constant 32 : index
    %c0_112 = arith.constant 0 : index
    %102 = vector.load %arg8[%c32_111, %c0_112] : memref<216x2048xf32, #tpu.memory_space<vmem>>, vector<8x2048xf32>
    tpu.vector_store %arg8[%c32_111, %c0_112], %101 {strides = array<i32>} : memref<216x2048xf32, #tpu.memory_space<vmem>>, vector<8x2048xf32>,
    %c0_113 = arith.constant 0 : index
    %c13_114 = arith.constant 13 : index
    %103 = vector.load %arg7[%c0_113, %c13_114] : memref<8x2272xf32, #tpu.memory_space<vmem>>, vector<8x2048xf32>
    %c40_115 = arith.constant 40 : index
    %c0_116 = arith.constant 0 : index
    %104 = vector.load %arg8[%c40_115, %c0_116] : memref<216x2048xf32, #tpu.memory_space<vmem>>, vector<8x2048xf32>
    tpu.vector_store %arg8[%c40_115, %c0_116], %103 {strides = array<i32>} : memref<216x2048xf32, #tpu.memory_space<vmem>>, vector<8x2048xf32>,
    %c0_117 = arith.constant 0 : index
    %c21_118 = arith.constant 21 : index
    %105 = vector.load %arg7[%c0_117, %c21_118] : memref<8x2272xf32, #tpu.memory_space<vmem>>, vector<8x2048xf32>
    %c48_119 = arith.constant 48 : index
    %c0_120 = arith.constant 0 : index
    %106 = vector.load %arg8[%c48_119, %c0_120] : memref<216x2048xf32, #tpu.memory_space<vmem>>, vector<8x2048xf32>
    tpu.vector_store %arg8[%c48_119, %c0_120], %105 {strides = array<i32>} : memref<216x2048xf32, #tpu.memory_space<vmem>>, vector<8x2048xf32>,
    %c0_121 = arith.constant 0 : index
    %c22_122 = arith.constant 22 : index
    %107 = vector.load %arg7[%c0_121, %c22_122] : memref<8x2272xf32, #tpu.memory_space<vmem>>, vector<8x2048xf32>
    %c56_123 = arith.constant 56 : index
    %c0_124 = arith.constant 0 : index
    %108 = vector.load %arg8[%c56_123, %c0_124] : memref<216x2048xf32, #tpu.memory_space<vmem>>, vector<8x2048xf32>
    tpu.vector_store %arg8[%c56_123, %c0_124], %107 {strides = array<i32>} : memref<216x2048xf32, #tpu.memory_space<vmem>>, vector<8x2048xf32>,
    %c0_125 = arith.constant 0 : index
    %c23_126 = arith.constant 23 : index
    %109 = vector.load %arg7[%c0_125, %c23_126] : memref<8x2272xf32, #tpu.memory_space<vmem>>, vector<8x2048xf32>
    %c64_127 = arith.constant 64 : index
    %c0_128 = arith.constant 0 : index
    %110 = vector.load %arg8[%c64_127, %c0_128] : memref<216x2048xf32, #tpu.memory_space<vmem>>, vector<8x2048xf32>
    tpu.vector_store %arg8[%c64_127, %c0_128], %109 {strides = array<i32>} : memref<216x2048xf32, #tpu.memory_space<vmem>>, vector<8x2048xf32>,
    %c0_129 = arith.constant 0 : index
    %c101_130 = arith.constant 101 : index
    %111 = vector.load %arg7[%c0_129, %c101_130] : memref<8x2272xf32, #tpu.memory_space<vmem>>, vector<8x2048xf32>
    %c72_131 = arith.constant 72 : index
    %c0_132 = arith.constant 0 : index
    %112 = vector.load %arg8[%c72_131, %c0_132] : memref<216x2048xf32, #tpu.memory_space<vmem>>, vector<8x2048xf32>
    tpu.vector_store %arg8[%c72_131, %c0_132], %111 {strides = array<i32>} : memref<216x2048xf32, #tpu.memory_space<vmem>>, vector<8x2048xf32>,
    %c0_133 = arith.constant 0 : index
    %c102_134 = arith.constant 102 : index
    %113 = vector.load %arg7[%c0_133, %c102_134] : memref<8x2272xf32, #tpu.memory_space<vmem>>, vector<8x2048xf32>
    %c80_135 = arith.constant 80 : index
    %c0_136 = arith.constant 0 : index
    %114 = vector.load %arg8[%c80_135, %c0_136] : memref<216x2048xf32, #tpu.memory_space<vmem>>, vector<8x2048xf32>
    tpu.vector_store %arg8[%c80_135, %c0_136], %113 {strides = array<i32>} : memref<216x2048xf32, #tpu.memory_space<vmem>>, vector<8x2048xf32>,
    %c0_137 = arith.constant 0 : index
    %c103_138 = arith.constant 103 : index
    %115 = vector.load %arg7[%c0_137, %c103_138] : memref<8x2272xf32, #tpu.memory_space<vmem>>, vector<8x2048xf32>
    %c88_139 = arith.constant 88 : index
    %c0_140 = arith.constant 0 : index
    %116 = vector.load %arg8[%c88_139, %c0_140] : memref<216x2048xf32, #tpu.memory_space<vmem>>, vector<8x2048xf32>
    tpu.vector_store %arg8[%c88_139, %c0_140], %115 {strides = array<i32>} : memref<216x2048xf32, #tpu.memory_space<vmem>>, vector<8x2048xf32>,
    %c0_141 = arith.constant 0 : index
    %c111_142 = arith.constant 111 : index
    %117 = vector.load %arg7[%c0_141, %c111_142] : memref<8x2272xf32, #tpu.memory_space<vmem>>, vector<8x2048xf32>
    %c96_143 = arith.constant 96 : index
    %c0_144 = arith.constant 0 : index
    %118 = vector.load %arg8[%c96_143, %c0_144] : memref<216x2048xf32, #tpu.memory_space<vmem>>, vector<8x2048xf32>
    tpu.vector_store %arg8[%c96_143, %c0_144], %117 {strides = array<i32>} : memref<216x2048xf32, #tpu.memory_space<vmem>>, vector<8x2048xf32>,
    %c0_145 = arith.constant 0 : index
    %c112_146 = arith.constant 112 : index
    %119 = vector.load %arg7[%c0_145, %c112_146] : memref<8x2272xf32, #tpu.memory_space<vmem>>, vector<8x2048xf32>
    %c104_147 = arith.constant 104 : index
    %c0_148 = arith.constant 0 : index
    %120 = vector.load %arg8[%c104_147, %c0_148] : memref<216x2048xf32, #tpu.memory_space<vmem>>, vector<8x2048xf32>
    tpu.vector_store %arg8[%c104_147, %c0_148], %119 {strides = array<i32>} : memref<216x2048xf32, #tpu.memory_space<vmem>>, vector<8x2048xf32>,
    %c0_149 = arith.constant 0 : index
    %c113_150 = arith.constant 113 : index
    %121 = vector.load %arg7[%c0_149, %c113_150] : memref<8x2272xf32, #tpu.memory_space<vmem>>, vector<8x2048xf32>
    %c112_151 = arith.constant 112 : index
    %c0_152 = arith.constant 0 : index
    %122 = vector.load %arg8[%c112_151, %c0_152] : memref<216x2048xf32, #tpu.memory_space<vmem>>, vector<8x2048xf32>
    tpu.vector_store %arg8[%c112_151, %c0_152], %121 {strides = array<i32>} : memref<216x2048xf32, #tpu.memory_space<vmem>>, vector<8x2048xf32>,
    %c0_153 = arith.constant 0 : index
    %c121_154 = arith.constant 121 : index
    %123 = vector.load %arg7[%c0_153, %c121_154] : memref<8x2272xf32, #tpu.memory_space<vmem>>, vector<8x2048xf32>
    %c120_155 = arith.constant 120 : index
    %c0_156 = arith.constant 0 : index
    %124 = vector.load %arg8[%c120_155, %c0_156] : memref<216x2048xf32, #tpu.memory_space<vmem>>, vector<8x2048xf32>
    tpu.vector_store %arg8[%c120_155, %c0_156], %123 {strides = array<i32>} : memref<216x2048xf32, #tpu.memory_space<vmem>>, vector<8x2048xf32>,
    %c0_157 = arith.constant 0 : index
    %c122_158 = arith.constant 122 : index
    %125 = vector.load %arg7[%c0_157, %c122_158] : memref<8x2272xf32, #tpu.memory_space<vmem>>, vector<8x2048xf32>
    %c128_159 = arith.constant 128 : index
    %c0_160 = arith.constant 0 : index
    %126 = vector.load %arg8[%c128_159, %c0_160] : memref<216x2048xf32, #tpu.memory_space<vmem>>, vector<8x2048xf32>
    tpu.vector_store %arg8[%c128_159, %c0_160], %125 {strides = array<i32>} : memref<216x2048xf32, #tpu.memory_space<vmem>>, vector<8x2048xf32>,
    %c0_161 = arith.constant 0 : index
    %c123_162 = arith.constant 123 : index
    %127 = vector.load %arg7[%c0_161, %c123_162] : memref<8x2272xf32, #tpu.memory_space<vmem>>, vector<8x2048xf32>
    %c136_163 = arith.constant 136 : index
    %c0_164 = arith.constant 0 : index
    %128 = vector.load %arg8[%c136_163, %c0_164] : memref<216x2048xf32, #tpu.memory_space<vmem>>, vector<8x2048xf32>
    tpu.vector_store %arg8[%c136_163, %c0_164], %127 {strides = array<i32>} : memref<216x2048xf32, #tpu.memory_space<vmem>>, vector<8x2048xf32>,
    %c0_165 = arith.constant 0 : index
    %c201_166 = arith.constant 201 : index
    %129 = vector.load %arg7[%c0_165, %c201_166] : memref<8x2272xf32, #tpu.memory_space<vmem>>, vector<8x2048xf32>
    %c144_167 = arith.constant 144 : index
    %c0_168 = arith.constant 0 : index
    %130 = vector.load %arg8[%c144_167, %c0_168] : memref<216x2048xf32, #tpu.memory_space<vmem>>, vector<8x2048xf32>
    tpu.vector_store %arg8[%c144_167, %c0_168], %129 {strides = array<i32>} : memref<216x2048xf32, #tpu.memory_space<vmem>>, vector<8x2048xf32>,
    %c0_169 = arith.constant 0 : index
    %c202_170 = arith.constant 202 : index
    %131 = vector.load %arg7[%c0_169, %c202_170] : memref<8x2272xf32, #tpu.memory_space<vmem>>, vector<8x2048xf32>
    %c152_171 = arith.constant 152 : index
    %c0_172 = arith.constant 0 : index
    %132 = vector.load %arg8[%c152_171, %c0_172] : memref<216x2048xf32, #tpu.memory_space<vmem>>, vector<8x2048xf32>
    tpu.vector_store %arg8[%c152_171, %c0_172], %131 {strides = array<i32>} : memref<216x2048xf32, #tpu.memory_space<vmem>>, vector<8x2048xf32>,
    %c0_173 = arith.constant 0 : index
    %c203_174 = arith.constant 203 : index
    %133 = vector.load %arg7[%c0_173, %c203_174] : memref<8x2272xf32, #tpu.memory_space<vmem>>, vector<8x2048xf32>
    %c160_175 = arith.constant 160 : index
    %c0_176 = arith.constant 0 : index
    %134 = vector.load %arg8[%c160_175, %c0_176] : memref<216x2048xf32, #tpu.memory_space<vmem>>, vector<8x2048xf32>
    tpu.vector_store %arg8[%c160_175, %c0_176], %133 {strides = array<i32>} : memref<216x2048xf32, #tpu.memory_space<vmem>>, vector<8x2048xf32>,
    %c0_177 = arith.constant 0 : index
    %c211_178 = arith.constant 211 : index
    %135 = vector.load %arg7[%c0_177, %c211_178] : memref<8x2272xf32, #tpu.memory_space<vmem>>, vector<8x2048xf32>
    %c168_179 = arith.constant 168 : index
    %c0_180 = arith.constant 0 : index
    %136 = vector.load %arg8[%c168_179, %c0_180] : memref<216x2048xf32, #tpu.memory_space<vmem>>, vector<8x2048xf32>
    tpu.vector_store %arg8[%c168_179, %c0_180], %135 {strides = array<i32>} : memref<216x2048xf32, #tpu.memory_space<vmem>>, vector<8x2048xf32>,
    %c0_181 = arith.constant 0 : index
    %c212_182 = arith.constant 212 : index
    %137 = vector.load %arg7[%c0_181, %c212_182] : memref<8x2272xf32, #tpu.memory_space<vmem>>, vector<8x2048xf32>
    %c176_183 = arith.constant 176 : index
    %c0_184 = arith.constant 0 : index
    %138 = vector.load %arg8[%c176_183, %c0_184] : memref<216x2048xf32, #tpu.memory_space<vmem>>, vector<8x2048xf32>
    tpu.vector_store %arg8[%c176_183, %c0_184], %137 {strides = array<i32>} : memref<216x2048xf32, #tpu.memory_space<vmem>>, vector<8x2048xf32>,
    %c0_185 = arith.constant 0 : index
    %c213_186 = arith.constant 213 : index
    %139 = vector.load %arg7[%c0_185, %c213_186] : memref<8x2272xf32, #tpu.memory_space<vmem>>, vector<8x2048xf32>
    %c184_187 = arith.constant 184 : index
    %c0_188 = arith.constant 0 : index
    %140 = vector.load %arg8[%c184_187, %c0_188] : memref<216x2048xf32, #tpu.memory_space<vmem>>, vector<8x2048xf32>
    tpu.vector_store %arg8[%c184_187, %c0_188], %139 {strides = array<i32>} : memref<216x2048xf32, #tpu.memory_space<vmem>>, vector<8x2048xf32>,
    %c0_189 = arith.constant 0 : index
    %c221_190 = arith.constant 221 : index
    %141 = vector.load %arg7[%c0_189, %c221_190] : memref<8x2272xf32, #tpu.memory_space<vmem>>, vector<8x2048xf32>
    %c192_191 = arith.constant 192 : index
    %c0_192 = arith.constant 0 : index
    %142 = vector.load %arg8[%c192_191, %c0_192] : memref<216x2048xf32, #tpu.memory_space<vmem>>, vector<8x2048xf32>
    tpu.vector_store %arg8[%c192_191, %c0_192], %141 {strides = array<i32>} : memref<216x2048xf32, #tpu.memory_space<vmem>>, vector<8x2048xf32>,
    %c0_193 = arith.constant 0 : index
    %c222_194 = arith.constant 222 : index
    %143 = vector.load %arg7[%c0_193, %c222_194] : memref<8x2272xf32, #tpu.memory_space<vmem>>, vector<8x2048xf32>
    %c200_195 = arith.constant 200 : index
    %c0_196 = arith.constant 0 : index
    %144 = vector.load %arg8[%c200_195, %c0_196] : memref<216x2048xf32, #tpu.memory_space<vmem>>, vector<8x2048xf32>
    tpu.vector_store %arg8[%c200_195, %c0_196], %143 {strides = array<i32>} : memref<216x2048xf32, #tpu.memory_space<vmem>>, vector<8x2048xf32>,
    %c0_197 = arith.constant 0 : index
    %c223_198 = arith.constant 223 : index
    %145 = vector.load %arg7[%c0_197, %c223_198] : memref<8x2272xf32, #tpu.memory_space<vmem>>, vector<8x2048xf32>
    %c208_199 = arith.constant 208 : index
    %c0_200 = arith.constant 0 : index
    %146 = vector.load %arg8[%c208_199, %c0_200] : memref<216x2048xf32, #tpu.memory_space<vmem>>, vector<8x2048xf32>
    tpu.vector_store %arg8[%c208_199, %c0_200], %145 {strides = array<i32>} : memref<216x2048xf32, #tpu.memory_space<vmem>>, vector<8x2048xf32>,
    %c0_201 = arith.constant 0 : index
    %c0_202 = arith.constant 0 : index
    %147 = vector.load %arg3[%c0_201, %c0_202] : memref<8x216xf32, #tpu.memory_space<vmem>>, vector<8x216xf32>
    %c0_203 = arith.constant 0 : index
    %c0_204 = arith.constant 0 : index
    %148 = vector.load %arg8[%c0_203, %c0_204] : memref<216x2048xf32, #tpu.memory_space<vmem>>, vector<216x2048xf32>
    %cst_205 = arith.constant dense<0.000000e+00> : vector<8x2048xf32>
    %149 = tpu.matmul %147, %148, %cst_205 {dimension_numbers = #tpu.dot_dimension_numbers<[1], [0], [0], [1], [0, 0, 1, 1], [], []>} : vector<8x216xf32>, vector<216x2048xf32>, vector<8x2048xf32> -> vector<8x2048xf32>
    %c0_206 = arith.constant 0 : index
    %c0_207 = arith.constant 0 : index
    %150 = vector.load %arg5[%c0_206, %c0_207] : memref<8x1xf32, #tpu.memory_space<vmem>>, vector<8x1xf32>
    %151 = vector.broadcast %150 : vector<8x1xf32> to vector<8x2048xf32>
    %152 = arith.addf %149, %151 : vector<8x2048xf32>
    %cst_208 = arith.constant 0.000000e+00 : f32
    %153 = vector.broadcast %cst_208 : f32 to vector<8x2048xf32>
    %154 = arith.maximumf %152, %153 : vector<8x2048xf32>
    %c0_209 = arith.constant 0 : index
    %c0_210 = arith.constant 0 : index
    %155 = vector.load %arg6[%c0_209, %c0_210] : memref<8x2048xf32, #tpu.memory_space<vmem>>, vector<8x2048xf32>
    tpu.vector_store %arg6[%c0_209, %c0_210], %154 {strides = array<i32>} : memref<8x2048xf32, #tpu.memory_space<vmem>>, vector<8x2048xf32>,
    return
  }
}

</mosaic_0001>

<bundles_post_ra>
// kernel: conv_block_3d_down.1
= control target key start
LH: loop header
LB: loop body
LE: loop exit
PB: predicated region body
PF: predicated region fallthrough
CT: control target
= control target key end

     0   :  { %vm15686_vm0 = vcmask 916480   ;;  %vm15687_vm1 = vcmask 1048448   ;;  %vm274_vm2 = vcmask 785408   ;;  %v9032_v3 = vmov 0.0   ;;  %s9033_s27 = smov 112   ;;  %s9035_s22 = smov 127   ;;  %s15489_s0 = inlined_call_operand.vmem [shape: f32[8,8,2048], index: 0, kind: input, shape index: {}]   ;;  %s15490_s2 = inlined_call_operand.vmem [shape: f32[8,216], index: 2, kind: input, shape index: {}]   ;;  %s15491_s4 = inlined_call_operand.vmem [shape: f32[8,1], index: 4, kind: input, shape index: {}]   ;;  %s15492_s1 = inlined_call_operand.vmem [shape: f32[8,2048], index: 1, kind: input, shape index: {}]   ;;  %s15493_s3 = inlined_call_operand.vmem [shape: f32[8,216], index: 3, kind: input, shape index: {}]   ;;  %s15494_s5 = inlined_call_operand.vmem [shape: f32[8,1], index: 5, kind: input, shape index: {}]   ;;  %s15495_s6 = inlined_call_operand.vmem [shape: f32[8,2048], index: 6, kind: output, shape index: {}]  }
   0x1   :  { %v25_v0 = vld [vmem:[%s15489_s0 + $0x10] sm:$0xff]  ;;  %271 = vst.msk [vmem:[#allocation2] sm:$0xff] %vm15686_vm0, %v9032_v3  ;;  %v23_v12 = vld [vmem:[%s15489_s0] sm:$0xff]  ;;  %v26_v26 = vld [vmem:[%s15489_s0 + $0x18] sm:$0xff]  ;;  %s9036_s23 = smov 117   ;;  %s9037_s24 = smov 125  }
   0x2   :  { %v8870_v1 = vld [vmem:[%s15489_s0 + $0x90] sm:$0xff]  ;;  %275 = vst.msk [vmem:[#allocation2 + $0x88] sm:$0xff] %vm274_vm2, %v9032_v3  ;;  %v8868_v14 = vld [vmem:[%s15489_s0 + $0x80] sm:$0xff]  ;;  %v8871_v27 = vld [vmem:[%s15489_s0 + $0x98] sm:$0xff]  ;;  %s9038_s25 = smov 116   ;;  %s9039_s26 = smov 115  }
   0x3   :  { %v8886_v2 = vld [vmem:[%s15489_s0 + $0x110] sm:$0xff]  ;;  %273 = vst.msk [vmem:[#allocation2 + $0x80] sm:$0xff] %vm15687_vm1, %v9032_v3  ;;  %v58_v4 = vmax.f32 %v25_v0, %v8870_v1  ;;  %v8884_v15 = vld [vmem:[%s15489_s0 + $0x100] sm:$0xff]  ;;  %v56_v18 = vmax.f32 %v23_v12, %v8868_v14  ;;  %v59_v30 = vmax.f32 %v26_v26, %v8871_v27  ;;  %v8887_v31 = vld [vmem:[%s15489_s0 + $0x118] sm:$0xff]  ;;  %s9040_s28 = smov 107   ;;  %s9041_s29 = smov 106  }
   0x4   :  { %v8902_v5 = vld [vmem:[%s15489_s0 + $0x190] sm:$0xff]  ;;  %v8900_v16 = vld [vmem:[%s15489_s0 + $0x180] sm:$0xff]  ;;  %v8903_v32 = vld [vmem:[%s15489_s0 + $0x198] sm:$0xff]  ;;  %s9042_s30 = smov 105   ;;  %s9043_s7 = smov 27   ;;  %vm2212_vm3 = vcmask 56320  }
   0x5   :  { %v8918_v6 = vld [vmem:[%s15489_s0 + $0x210] sm:$0xff]  ;;  %v108_v8 = vmax.f32 %v8886_v2, %v8902_v5  ;;  %v106_v19 = vmax.f32 %v8884_v15, %v8900_v16  ;;  %v8916_v20 = vld [vmem:[%s15489_s0 + $0x200] sm:$0xff]  ;;  %v8919_v33 = vld [vmem:[%s15489_s0 + $0x218] sm:$0xff]  ;;  %v109_v35 = vmax.f32 %v8887_v31, %v8903_v32  ;;  %s9044_s8 = smov 26   ;;  %s9045_s9 = smov 25   ;;  %vm2095_vm4 = vcmask 121856  }
   0x6   :  { %v8934_v7 = vld [vmem:[%s15489_s0 + $0x290] sm:$0xff]  ;;  %v8932_v21 = vld [vmem:[%s15489_s0 + $0x280] sm:$0xff]  ;;  %v8935_v36 = vld [vmem:[%s15489_s0 + $0x298] sm:$0xff]  ;;  %s9046_s10 = smov 17   ;;  %s9047_s11 = smov 16   ;;  %vm1978_vm5 = vcmask 130048  }
   0x7   :  { %v174_v9 = vmax.f32 %v8918_v6, %v8934_v7  ;;  %v8950_v10 = vld [vmem:[%s15489_s0 + $0x310] sm:$0xff]  ;;  %v124_v17 = vmax.f32 %v58_v4, %v108_v8  ;;  %v8948_v22 = vld [vmem:[%s15489_s0 + $0x300] sm:$0xff]  ;;  %v172_v24 = vmax.f32 %v8916_v20, %v8932_v21  ;;  %v122_v28 = vmax.f32 %v56_v18, %v106_v19  ;;  %v8951_v37 = vld [vmem:[%s15489_s0 + $0x318] sm:$0xff]  ;;  %s9048_s12 = smov 15   ;;  %s9049_s13 = smov 7  }
   0x8   :  { %v8966_v11 = vld [vmem:[%s15489_s0 + $0x390] sm:$0xff]  ;;  %v8964_v25 = vld [vmem:[%s15489_s0 + $0x380] sm:$0xff]  ;;  %v8967_v38 = vld [vmem:[%s15489_s0 + $0x398] sm:$0xff]  ;;  %v175_v40 = vmax.f32 %v8919_v33, %v8935_v36  ;;  %v125_v45 = vmax.f32 %v59_v30, %v109_v35  ;;  %s15742_s14 = smov 6   ;;  %s15754_s15 = smov 5   ;;  %vm1861_vm6 = vcmask 138240  }
   0x9   :  { %v224_v13 = vmax.f32 %v8950_v10, %v8966_v11  ;;  %v222_v29 = vmax.f32 %v8948_v22, %v8964_v25  ;;  %v225_v41 = vmax.f32 %v8951_v37, %v8967_v38  ;;  %v24_v42 = vld [vmem:[%s15489_s0 + $0x8] sm:$0xff]  ;;  %v27_v7 = vld [vmem:[%s15489_s0 + $0x20] sm:$0xff]  ;;  %v8891_v25 = vld [vmem:[%s15489_s0 + $0x138] sm:$0xff]  ;;  %s15773_s16 = smov 55   ;;  %vm1744_vm7 = vcmask 203776   ;;  %s15779_s17 = smov 54  }
   0xa   :  { %v8869_v43 = vld [vmem:[%s15489_s0 + $0x88] sm:$0xff]  ;;  %v8872_v8 = vld [vmem:[%s15489_s0 + $0xa0] sm:$0xff]  ;;  %v8939_v30 = vld [vmem:[%s15489_s0 + $0x2b8] sm:$0xff]  ;;  %vm15839_vm8 = vcmask 211968   ;;  %vm15838_vm9 = vcmask 220160   ;;  %vm15840_vm10 = vcmask 859136  }
   0xb   :  { %v240_v23 = vmax.f32 %v174_v9, %v224_v13  ;;  %v238_v39 = vmax.f32 %v172_v24, %v222_v29  ;;  %v8885_v44 = vld [vmem:[%s15489_s0 + $0x108] sm:$0xff]  ;;  %v57_v46 = vmax.f32 %v24_v42, %v8869_v43  ;;  %v241_v51 = vmax.f32 %v175_v40, %v225_v41  ;;  %v8888_v12 = vld [vmem:[%s15489_s0 + $0x120] sm:$0xff]  ;;  %v8875_v24 = vld [vmem:[%s15489_s0 + $0xb8] sm:$0xff]  ;;  %s15781_s18 = smov 53   ;;  %s15843_s19 = smov 45  }
   0xc   :  { %v8901_v47 = vld [vmem:[%s15489_s0 + $0x188] sm:$0xff]  ;;  %v60_v11 = vmax.f32 %v27_v7, %v8872_v8  ;;  %v8904_v13 = vld [vmem:[%s15489_s0 + $0x1a0] sm:$0xff]  ;;  %v8923_v29 = vld [vmem:[%s15489_s0 + $0x238] sm:$0xff]  ;;  %vm15841_vm11 = vcmask 867328   ;;  %vm15842_vm12 = vcmask 875520   ;;  %vm15832_vm13 = vcmask 941056  }
   0xd   :  { %v256_v34 = vmax.f32 %v124_v17, %v240_v23  ;;  %v8917_v48 = vld [vmem:[%s15489_s0 + $0x208] sm:$0xff]  ;;  %v254_v50 = vmax.f32 %v122_v28, %v238_v39  ;;  %v107_v52 = vmax.f32 %v8885_v44, %v8901_v47  ;;  %v257_v61 = vmax.f32 %v125_v45, %v241_v51  ;;  %v8920_v14 = vld [vmem:[%s15489_s0 + $0x220] sm:$0xff]  ;;  %v30_v23 = vld [vmem:[%s15489_s0 + $0x38] sm:$0xff]  ;;  %s15845_s20 = smov 44   ;;  %s9057_s21 = smov 43  }
   0xe   :  { %v8933_v49 = vld [vmem:[%s15489_s0 + $0x288] sm:$0xff]  ;;  %v110_v16 = vmax.f32 %v8888_v12, %v8904_v13  ;;  %v8936_v17 = vld [vmem:[%s15489_s0 + $0x2a0] sm:$0xff]  ;;  %v63_v27 = vmax.f32 %v30_v23, %v8875_v24  ;;  %v8907_v28 = vld [vmem:[%s15489_s0 + $0x1b8] sm:$0xff]  ;;  %vm15831_vm14 = vcmask 949248   ;;  %vm15830_vm15 = vcmask 957440  }
   0xf   :  { %312 = vrot.lane.b32.xlu1 %v256_v34, %s9033_s27  ;;  %v173_v53 = vmax.f32 %v8917_v48, %v8933_v49  ;;  %v8949_v54 = vld [vmem:[%s15489_s0 + $0x308] sm:$0xff]  ;;  %308 = vrot.lane.b32.xlu0 %v254_v50, %s9033_s27  ;;  %v123_v62 = vmax.f32 %v57_v46, %v107_v52  ;;  %v8952_v18 = vld [vmem:[%s15489_s0 + $0x320] sm:$0xff]  ;;  %v176_v21 = vmax.f32 %v8920_v14, %v8936_v17  ;;  %vm15827_vm2 = vcmask 1022976  }
  0x10   :  { %v8965_v55 = vld [vmem:[%s15489_s0 + $0x388] sm:$0xff]  ;;  %v8968_v19 = vld [vmem:[%s15489_s0 + $0x3a0] sm:$0xff]  ;;  %v126_v26 = vmax.f32 %v60_v11, %v110_v16  ;;  %v113_v33 = vmax.f32 %v8891_v25, %v8907_v28  ;;  %v179_v34 = vmax.f32 %v8923_v29, %v8939_v30  ;;  %v8955_v35 = vld [vmem:[%s15489_s0 + $0x338] sm:$0xff] }
  0x11   :  { %v28_v56 = vld [vmem:[%s15489_s0 + $0x28] sm:$0xff]  ;;  %v223_v57 = vmax.f32 %v8949_v54, %v8965_v55  ;;  %v226_v22 = vmax.f32 %v8952_v18, %v8968_v19  ;;  %v8971_v36 = vld [vmem:[%s15489_s0 + $0x3b8] sm:$0xff]  ;;  %v29_v37 = vld [vmem:[%s15489_s0 + $0x30] sm:$0xff] }
  0x12   :  { %v8873_v58 = vld [vmem:[%s15489_s0 + $0xa8] sm:$0xff]  ;;  %v229_v38 = vmax.f32 %v8955_v35, %v8971_v36  ;;  %v8874_v39 = vld [vmem:[%s15489_s0 + $0xb0] sm:$0xff]  ;;  %v129_v43 = vmax.f32 %v63_v27, %v113_v33  ;;  %v8940_v11 = vld [vmem:[%s15489_s0 + $0x2c0] sm:$0xff] }
  0x13   :  { %v8889_v59 = vld [vmem:[%s15489_s0 + $0x128] sm:$0xff]  ;;  %v61_v63 = vmax.f32 %v28_v56, %v8873_v58  ;;  %v239_v4 = vmax.f32 %v173_v53, %v223_v57  ;;  %314 = vrot.lane.b32.xlu1 %v257_v61, %s9033_s27  ;;  %v242_v32 = vmax.f32 %v176_v21, %v226_v22  ;;  %v8890_v40 = vld [vmem:[%s15489_s0 + $0x130] sm:$0xff]  ;;  %v62_v44 = vmax.f32 %v29_v37, %v8874_v39  ;;  %v8956_v16 = vld [vmem:[%s15489_s0 + $0x340] sm:$0xff] }
  0x14   :  { %v8905_v60 = vld [vmem:[%s15489_s0 + $0x1a8] sm:$0xff]  ;;  %v8906_v41 = vld [vmem:[%s15489_s0 + $0x1b0] sm:$0xff]  ;;  %v245_v49 = vmax.f32 %v179_v34, %v229_v38  ;;  %v8972_v17 = vld [vmem:[%s15489_s0 + $0x3c0] sm:$0xff] }
  0x15   :  { %v111_v0 = vmax.f32 %v8889_v59, %v8905_v60  ;;  %v8921_v1 = vld [vmem:[%s15489_s0 + $0x228] sm:$0xff]  ;;  %v255_v15 = vmax.f32 %v123_v62, %v239_v4  ;;  %v258_v42 = vmax.f32 %v126_v26, %v242_v32  ;;  %v112_v45 = vmax.f32 %v8890_v40, %v8906_v41  ;;  %v8922_v46 = vld [vmem:[%s15489_s0 + $0x230] sm:$0xff]  ;;  %v31_v4 = vld [vmem:[%s15489_s0 + $0x40] sm:$0xff] }
  0x16   :  { %v8937_v2 = vld [vmem:[%s15489_s0 + $0x2a8] sm:$0xff]  ;;  %v8938_v47 = vld [vmem:[%s15489_s0 + $0x2b0] sm:$0xff]  ;;  %v261_v60 = vmax.f32 %v129_v43, %v245_v49  ;;  %v34_v18 = vld [vmem:[%s15489_s0 + $0x58] sm:$0xff]  ;;  %v230_v19 = vmax.f32 %v8956_v16, %v8972_v17 }
  0x17   :  { %v8953_v3 = vld [vmem:[%s15489_s0 + $0x328] sm:$0xff]  ;;  %v177_v5 = vmax.f32 %v8921_v1, %v8937_v2  ;;  %v127_v9 = vmax.f32 %v61_v63, %v111_v0  ;;  %310 = vrot.lane.b32.xlu0 %v255_v15, %s9033_s27  ;;  %v8954_v48 = vld [vmem:[%s15489_s0 + $0x330] sm:$0xff]  ;;  %v178_v50 = vmax.f32 %v8922_v46, %v8938_v47  ;;  %v128_v54 = vmax.f32 %v62_v44, %v112_v45  ;;  %v8895_v21 = vld [vmem:[%s15489_s0 + $0x158] sm:$0xff] }
  0x18   :  { %v8969_v6 = vld [vmem:[%s15489_s0 + $0x3a8] sm:$0xff]  ;;  %v8970_v51 = vld [vmem:[%s15489_s0 + $0x3b0] sm:$0xff]  ;;  %v8911_v22 = vld [vmem:[%s15489_s0 + $0x1d8] sm:$0xff] }
  0x19   :  { %v227_v10 = vmax.f32 %v8953_v3, %v8969_v6  ;;  %v32_v52 = vld [vmem:[%s15489_s0 + $0x48] sm:$0xff]  ;;  %v228_v55 = vmax.f32 %v8954_v48, %v8970_v51  ;;  %v8892_v6 = vld [vmem:[%s15489_s0 + $0x140] sm:$0xff]  ;;  %v117_v26 = vmax.f32 %v8895_v21, %v8911_v22  ;;  %v8927_v27 = vld [vmem:[%s15489_s0 + $0x258] sm:$0xff] }
  0x1a   :  { %v8877_v53 = vld [vmem:[%s15489_s0 + $0xc8] sm:$0xff]  ;;  %v8943_v28 = vld [vmem:[%s15489_s0 + $0x2d8] sm:$0xff]  ;;  %v33_v33 = vld [vmem:[%s15489_s0 + $0x50] sm:$0xff] }
  0x1b   :  { %v243_v20 = vmax.f32 %v177_v5, %v227_v10  ;;  %316 = vrot.lane.b32.xlu0 %v258_v42, %s9033_s27  ;;  %v65_v56 = vmax.f32 %v32_v52, %v8877_v53  ;;  %v8893_v57 = vld [vmem:[%s15489_s0 + $0x148] sm:$0xff]  ;;  %v244_v1 = vmax.f32 %v178_v50, %v228_v55  ;;  %v8876_v5 = vld [vmem:[%s15489_s0 + $0xc0] sm:$0xff]  ;;  %v8959_v29 = vld [vmem:[%s15489_s0 + $0x358] sm:$0xff] }
  0x1c   :  { %v8909_v58 = vld [vmem:[%s15489_s0 + $0x1c8] sm:$0xff]  ;;  %v64_v8 = vmax.f32 %v31_v4, %v8876_v5  ;;  %v8924_v10 = vld [vmem:[%s15489_s0 + $0x240] sm:$0xff]  ;;  %v8975_v32 = vld [vmem:[%s15489_s0 + $0x3d8] sm:$0xff] }
  0x1d   :  { %v259_v31 = vmax.f32 %v127_v9, %v243_v20  ;;  %v8925_v59 = vld [vmem:[%s15489_s0 + $0x248] sm:$0xff]  ;;  %v115_v61 = vmax.f32 %v8893_v57, %v8909_v58  ;;  %v8908_v9 = vld [vmem:[%s15489_s0 + $0x1c0] sm:$0xff]  ;;  %v260_v12 = vmax.f32 %v128_v54, %v244_v1  ;;  %v180_v15 = vmax.f32 %v8924_v10, %v8940_v11  ;;  %v8879_v20 = vld [vmem:[%s15489_s0 + $0xd8] sm:$0xff] }
  0x1e   :  { %v8941_v62 = vld [vmem:[%s15489_s0 + $0x2c8] sm:$0xff]  ;;  %v114_v14 = vmax.f32 %v8892_v6, %v8908_v9  ;;  %v67_v25 = vmax.f32 %v34_v18, %v8879_v20  ;;  %v8878_v34 = vld [vmem:[%s15489_s0 + $0xd0] sm:$0xff]  ;;  %v233_v36 = vmax.f32 %v8959_v29, %v8975_v32  ;;  %v8880_v1 = vld [vmem:[%s15489_s0 + $0xe0] sm:$0xff] }
  0x1f   :  { %318 = vrot.lane.b32.xlu1 %v259_v31, %s9033_s27  ;;  %v8957_v63 = vld [vmem:[%s15489_s0 + $0x348] sm:$0xff]  ;;  %v181_v2 = vmax.f32 %v8925_v59, %v8941_v62  ;;  %v131_v7 = vmax.f32 %v65_v56, %v115_v61  ;;  %320 = vrot.lane.b32.xlu0 %v260_v12, %s9033_s27  ;;  %v246_v30 = vmax.f32 %v180_v15, %v230_v19  ;;  %v8894_v38 = vld [vmem:[%s15489_s0 + $0x150] sm:$0xff] }
  0x20   :  { %v8973_v0 = vld [vmem:[%s15489_s0 + $0x3c8] sm:$0xff]  ;;  %v130_v24 = vmax.f32 %v64_v8, %v114_v14  ;;  %v183_v31 = vmax.f32 %v8927_v27, %v8943_v28  ;;  %v133_v35 = vmax.f32 %v67_v25, %v117_v26  ;;  %v66_v37 = vmax.f32 %v33_v33, %v8878_v34  ;;  %v8910_v39 = vld [vmem:[%s15489_s0 + $0x1d0] sm:$0xff]  ;;  %v8928_v8 = vld [vmem:[%s15489_s0 + $0x260] sm:$0xff] }
  0x21   :  { %v231_v3 = vmax.f32 %v8957_v63, %v8973_v0  ;;  %v8926_v40 = vld [vmem:[%s15489_s0 + $0x250] sm:$0xff]  ;;  %v116_v42 = vmax.f32 %v8894_v38, %v8910_v39  ;;  %v36_v49 = vld [vmem:[%s15489_s0 + $0x68] sm:$0xff]  ;;  %v35_v63 = vld [vmem:[%s15489_s0 + $0x60] sm:$0xff] }
  0x22   :  { %v262_v41 = vmax.f32 %v130_v24, %v246_v30  ;;  %v8942_v43 = vld [vmem:[%s15489_s0 + $0x2d0] sm:$0xff]  ;;  %v249_v46 = vmax.f32 %v183_v31, %v233_v36  ;;  %v8881_v50 = vld [vmem:[%s15489_s0 + $0xe8] sm:$0xff]  ;;  %v68_v6 = vmax.f32 %v35_v63, %v8880_v1  ;;  %v8944_v9 = vld [vmem:[%s15489_s0 + $0x2e0] sm:$0xff] }
  0x23   :  { %322 = vrot.lane.b32.xlu1 %v261_v60, %s9033_s27  ;;  %v247_v13 = vmax.f32 %v181_v2, %v231_v3  ;;  %v8958_v44 = vld [vmem:[%s15489_s0 + $0x350] sm:$0xff]  ;;  %v182_v47 = vmax.f32 %v8926_v40, %v8942_v43  ;;  %v8897_v51 = vld [vmem:[%s15489_s0 + $0x168] sm:$0xff]  ;;  %v132_v52 = vmax.f32 %v66_v37, %v116_v42  ;;  %v69_v53 = vmax.f32 %v36_v49, %v8881_v50  ;;  %v8896_v2 = vld [vmem:[%s15489_s0 + $0x160] sm:$0xff] }
  0x24   :  { %v8974_v45 = vld [vmem:[%s15489_s0 + $0x3d0] sm:$0xff]  ;;  %324 = vrot.lane.b32.xlu0 %v262_v41, %s9033_s27  ;;  %v8913_v54 = vld [vmem:[%s15489_s0 + $0x1e8] sm:$0xff]  ;;  %v265_v57 = vmax.f32 %v133_v35, %v249_v46  ;;  %v8912_v3 = vld [vmem:[%s15489_s0 + $0x1e0] sm:$0xff]  ;;  %v184_v12 = vmax.f32 %v8928_v8, %v8944_v9 }
  0x25   :  { %v263_v23 = vmax.f32 %v131_v7, %v247_v13  ;;  %v232_v48 = vmax.f32 %v8958_v44, %v8974_v45  ;;  %v8929_v55 = vld [vmem:[%s15489_s0 + $0x268] sm:$0xff]  ;;  %v119_v59 = vmax.f32 %v8897_v51, %v8913_v54  ;;  %v118_v7 = vmax.f32 %v8896_v2, %v8912_v3  ;;  %v8960_v10 = vld [vmem:[%s15489_s0 + $0x360] sm:$0xff]  ;;  %v38_v14 = vld [vmem:[%s15489_s0 + $0x78] sm:$0xff] }
  0x26   :  { %v8945_v56 = vld [vmem:[%s15489_s0 + $0x2e8] sm:$0xff]  ;;  %v8976_v13 = vld [vmem:[%s15489_s0 + $0x3e0] sm:$0xff]  ;;  %v8883_v15 = vld [vmem:[%s15489_s0 + $0xf8] sm:$0xff] }
  0x27   :  { %326 = vrot.lane.b32.xlu1 %v263_v23, %s9033_s27  ;;  %v248_v58 = vmax.f32 %v182_v47, %v232_v48  ;;  %v185_v60 = vmax.f32 %v8929_v55, %v8945_v56  ;;  %v8961_v61 = vld [vmem:[%s15489_s0 + $0x368] sm:$0xff]  ;;  %v135_v5 = vmax.f32 %v69_v53, %v119_v59  ;;  %v134_v16 = vmax.f32 %v68_v6, %v118_v7  ;;  %v8899_v19 = vld [vmem:[%s15489_s0 + $0x178] sm:$0xff]  ;;  %v37_v30 = vld [vmem:[%s15489_s0 + $0x70] sm:$0xff] }
  0x28   :  { %v8977_v62 = vld [vmem:[%s15489_s0 + $0x3e8] sm:$0xff]  ;;  %v234_v17 = vmax.f32 %v8960_v10, %v8976_v13  ;;  %v71_v18 = vmax.f32 %v38_v14, %v8883_v15  ;;  %v8915_v20 = vld [vmem:[%s15489_s0 + $0x1f8] sm:$0xff]  ;;  %v8882_v31 = vld [vmem:[%s15489_s0 + $0xf0] sm:$0xff] }
  0x29   :  { %v235_v0 = vmax.f32 %v8961_v61, %v8977_v62  ;;  %v264_v4 = vmax.f32 %v132_v52, %v248_v58  ;;  %v8931_v21 = vld [vmem:[%s15489_s0 + $0x278] sm:$0xff]  ;;  %v121_v23 = vmax.f32 %v8899_v19, %v8915_v20  ;;  %v8898_v32 = vld [vmem:[%s15489_s0 + $0x170] sm:$0xff]  ;;  %v70_v34 = vmax.f32 %v37_v30, %v8882_v31 }
  0x2a   :  { %v8947_v24 = vld [vmem:[%s15489_s0 + $0x2f8] sm:$0xff]  ;;  %v250_v27 = vmax.f32 %v184_v12, %v234_v17  ;;  %v8914_v35 = vld [vmem:[%s15489_s0 + $0x1f0] sm:$0xff] }
  0x2b   :  { %330 = vrot.lane.b32.xlu1 %v265_v57, %s9033_s27  ;;  %v251_v11 = vmax.f32 %v185_v60, %v235_v0  ;;  %328 = vrot.lane.b32.xlu0 %v264_v4, %s9033_s27  ;;  %v8963_v25 = vld [vmem:[%s15489_s0 + $0x378] sm:$0xff]  ;;  %v187_v28 = vmax.f32 %v8931_v21, %v8947_v24  ;;  %v137_v33 = vmax.f32 %v71_v18, %v121_v23  ;;  %v8930_v36 = vld [vmem:[%s15489_s0 + $0x270] sm:$0xff] }
  0x2c   :  { %v8979_v26 = vld [vmem:[%s15489_s0 + $0x3f8] sm:$0xff]  ;;  %v8946_v37 = vld [vmem:[%s15489_s0 + $0x2f0] sm:$0xff]  ;;  %v266_v38 = vmax.f32 %v134_v16, %v250_v27  ;;  %v120_v40 = vmax.f32 %v8898_v32, %v8914_v35 }
  0x2d   :  { %v267_v22 = vmax.f32 %v135_v5, %v251_v11  ;;  %v237_v29 = vmax.f32 %v8963_v25, %v8979_v26  ;;  %v186_v41 = vmax.f32 %v8930_v36, %v8946_v37  ;;  %v8962_v42 = vld [vmem:[%s15489_s0 + $0x370] sm:$0xff] }
  0x2e   :  { %v8978_v43 = vld [vmem:[%s15489_s0 + $0x3f0] sm:$0xff]  ;;  %v136_v46 = vmax.f32 %v70_v34, %v120_v40  ;;  %s9034_s0 = smov 126  }
  0x2f   :  { %334 = vrot.lane.b32.xlu1 %v267_v22, %s9033_s27  ;;  %v253_v39 = vmax.f32 %v187_v28, %v237_v29  ;;  %v236_v44 = vmax.f32 %v8962_v42, %v8978_v43  ;;  %332 = vrot.lane.b32.xlu0 %v266_v38, %s9033_s27 }
  0x31   :  { %v269_v45 = vmax.f32 %v137_v33, %v253_v39  ;;  %v252_v47 = vmax.f32 %v186_v41, %v236_v44 }
  0x33   :  { %338 = vrot.lane.b32.xlu1 %v269_v45, %s9033_s27  ;;  %v268_v48 = vmax.f32 %v136_v46, %v252_v47 }
  0x35   :  { %336 = vrot.lane.b32.xlu0 %v268_v48, %s9033_s27 }
  0x81   :  { %v313_v49 = vpop.permute.xlu1 %312  ;;  %v309_v50 = vpop.permute.xlu0 %308 }
  0x82   :  { %372 = vst.msk [vmem:[#allocation2] sm:$0xff] %vm15687_vm1, %v309_v50  ;;  %vm15783_vm1 = vcmask 1039360  }
  0x85   :  { %v315_v51 = vpop.permute.xlu1 %314 }
  0x86   :  { %v9501_v52 = vsel %vm15686_vm0, %v313_v49, %v315_v51 }
  0x87   :  { %375 = vst [vmem:[#allocation2 + $0x18] sm:$0xff] %v9501_v52 }
  0x89   :  { %v311_v53 = vpop.permute.xlu0 %310  ;;  %v9512_v57 = vld [vmem:[#allocation2] sm:$0xff] }
  0x8a   :  { %v9505_v54 = vsel %vm15686_vm0, %v309_v50, %v311_v53  ;;  %v9508_v55 = vsel %vm15686_vm0, %v311_v53, %v313_v49  ;;  %540 = vrot.lane.b32.xlu1 %v9512_v57, %s9034_s0  ;;  %423 = vrot.lane.b32.xlu0 %v9512_v57, %s9035_s22 }
  0x8b   :  { %373 = vst [vmem:[#allocation2 + $0x8] sm:$0xff] %v9505_v54  ;;  %374 = vst [vmem:[#allocation2 + $0x10] sm:$0xff] %v9508_v55 }
  0x8d   :  { %v317_v58 = vpop.permute.xlu0 %316 }
  0x8e   :  { %v9519_v59 = vsel %vm15686_vm0, %v315_v51, %v317_v58 }
  0x8f   :  { %376 = vst [vmem:[#allocation2 + $0x20] sm:$0xff] %v9519_v59 }
  0x91   :  { %v319_v56 = vpop.permute.xlu1 %318  ;;  %v321_v62 = vpop.permute.xlu0 %320 }
  0x92   :  { %v9522_v60 = vsel %vm15686_vm0, %v317_v58, %v319_v56  ;;  %v9527_v63 = vsel %vm15686_vm0, %v319_v56, %v321_v62 }
  0x93   :  { %377 = vst [vmem:[#allocation2 + $0x28] sm:$0xff] %v9522_v60  ;;  %378 = vst [vmem:[#allocation2 + $0x30] sm:$0xff] %v9527_v63 }
  0x95   :  { %v323_v61 = vpop.permute.xlu1 %322 }
  0x96   :  { %v9530_v0 = vsel %vm15686_vm0, %v321_v62, %v323_v61  ;;  %v325_v2 = vpop.permute.xlu0 %324 }
  0x97   :  { %379 = vst [vmem:[#allocation2 + $0x38] sm:$0xff] %v9530_v0  ;;  %v9535_v3 = vsel %vm15686_vm0, %v323_v61, %v325_v2 }
  0x98   :  { %380 = vst [vmem:[#allocation2 + $0x40] sm:$0xff] %v9535_v3 }
  0x99   :  { %v327_v1 = vpop.permute.xlu1 %326 }
  0x9a   :  { %v9538_v4 = vsel %vm15686_vm0, %v325_v2, %v327_v1 }
  0x9b   :  { %381 = vst [vmem:[#allocation2 + $0x48] sm:$0xff] %v9538_v4 }
  0x9d   :  { %v331_v5 = vpop.permute.xlu1 %330  ;;  %v329_v6 = vpop.permute.xlu0 %328 }
  0x9e   :  { %v9543_v7 = vsel %vm15686_vm0, %v327_v1, %v329_v6  ;;  %v9546_v8 = vsel %vm15686_vm0, %v329_v6, %v331_v5 }
  0x9f   :  { %382 = vst [vmem:[#allocation2 + $0x50] sm:$0xff] %v9543_v7  ;;  %383 = vst [vmem:[#allocation2 + $0x58] sm:$0xff] %v9546_v8 }
  0xa1   :  { %v335_v9 = vpop.permute.xlu1 %334  ;;  %v333_v10 = vpop.permute.xlu0 %332 }
  0xa2   :  { %v9551_v11 = vsel %vm15686_vm0, %v331_v5, %v333_v10  ;;  %v9554_v12 = vsel %vm15686_vm0, %v333_v10, %v335_v9 }
  0xa3   :  { %384 = vst [vmem:[#allocation2 + $0x60] sm:$0xff] %v9551_v11  ;;  %385 = vst [vmem:[#allocation2 + $0x68] sm:$0xff] %v9554_v12 }
  0xa5   :  { %v339_v13 = vpop.permute.xlu1 %338 }
  0xa6   :  { %388 = vst.msk [vmem:[#allocation2 + $0x80] sm:$0xff] %vm15686_vm0, %v339_v13 }
  0xa7   :  { %v337_v14 = vpop.permute.xlu0 %336 }
  0xa8   :  { %v9560_v15 = vsel %vm15686_vm0, %v335_v9, %v337_v14  ;;  %v9563_v16 = vsel %vm15686_vm0, %v337_v14, %v339_v13  ;;  %vm15822_vm0 = vcmask 1031168  }
  0xa9   :  { %386 = vst [vmem:[#allocation2 + $0x70] sm:$0xff] %v9560_v15  ;;  %387 = vst [vmem:[#allocation2 + $0x78] sm:$0xff] %v9563_v16 }
  0xad   :  { %v9567_v17 = vld [vmem:[#allocation2 + $0x80] sm:$0xff] }
  0xae   :  { %572 = vrot.lane.b32.xlu1 %v9567_v17, %s9034_s0  ;;  %455 = vrot.lane.b32.xlu0 %v9567_v17, %s9035_s22 }
  0xb2   :  { %774 = vrot.lane.b32.xlu1 %v9512_v57, %s9036_s23  ;;  %657 = vrot.lane.b32.xlu0 %v9512_v57, %s9037_s24 }
  0xb6   :  { %689 = vrot.lane.b32.xlu0 %v9567_v17, %s9037_s24  ;;  %425 = vrot.lane.b32.xlu1 %v9505_v54, %s9035_s22 }
  0xba   :  { %427 = vrot.lane.b32.xlu0 %v9508_v55, %s9035_s22  ;;  %429 = vrot.lane.b32.xlu1 %v9501_v52, %s9035_s22 }
  0xbe   :  { %433 = vrot.lane.b32.xlu1 %v9522_v60, %s9035_s22  ;;  %431 = vrot.lane.b32.xlu0 %v9519_v59, %s9035_s22 }
  0xc2   :  { %437 = vrot.lane.b32.xlu1 %v9530_v0, %s9035_s22  ;;  %435 = vrot.lane.b32.xlu0 %v9527_v63, %s9035_s22 }
  0xc6   :  { %441 = vrot.lane.b32.xlu1 %v9538_v4, %s9035_s22  ;;  %439 = vrot.lane.b32.xlu0 %v9535_v3, %s9035_s22 }
  0xca   :  { %445 = vrot.lane.b32.xlu1 %v9546_v8, %s9035_s22  ;;  %443 = vrot.lane.b32.xlu0 %v9543_v7, %s9035_s22 }
  0xce   :  { %449 = vrot.lane.b32.xlu1 %v9554_v12, %s9035_s22  ;;  %447 = vrot.lane.b32.xlu0 %v9551_v11, %s9035_s22 }
  0xd2   :  { %453 = vrot.lane.b32.xlu1 %v9563_v16, %s9035_s22  ;;  %451 = vrot.lane.b32.xlu0 %v9560_v15, %s9035_s22 }
  0xd6   :  { %544 = vrot.lane.b32.xlu1 %v9508_v55, %s9034_s0  ;;  %542 = vrot.lane.b32.xlu0 %v9505_v54, %s9034_s0 }
  0xda   :  { %548 = vrot.lane.b32.xlu1 %v9519_v59, %s9034_s0  ;;  %546 = vrot.lane.b32.xlu0 %v9501_v52, %s9034_s0 }
  0xde   :  { %552 = vrot.lane.b32.xlu1 %v9527_v63, %s9034_s0  ;;  %550 = vrot.lane.b32.xlu0 %v9522_v60, %s9034_s0 }
  0xe2   :  { %556 = vrot.lane.b32.xlu1 %v9535_v3, %s9034_s0  ;;  %554 = vrot.lane.b32.xlu0 %v9530_v0, %s9034_s0 }
  0xe6   :  { %560 = vrot.lane.b32.xlu1 %v9543_v7, %s9034_s0  ;;  %558 = vrot.lane.b32.xlu0 %v9538_v4, %s9034_s0 }
  0xea   :  { %564 = vrot.lane.b32.xlu1 %v9551_v11, %s9034_s0  ;;  %562 = vrot.lane.b32.xlu0 %v9546_v8, %s9034_s0 }
  0xee   :  { %568 = vrot.lane.b32.xlu1 %v9560_v15, %s9034_s0  ;;  %566 = vrot.lane.b32.xlu0 %v9554_v12, %s9034_s0 }
  0xf2   :  { %659 = vrot.lane.b32.xlu1 %v9505_v54, %s9037_s24  ;;  %570 = vrot.lane.b32.xlu0 %v9563_v16, %s9034_s0 }
  0xf6   :  { %663 = vrot.lane.b32.xlu1 %v9501_v52, %s9037_s24  ;;  %661 = vrot.lane.b32.xlu0 %v9508_v55, %s9037_s24 }
  0xfa   :  { %667 = vrot.lane.b32.xlu1 %v9522_v60, %s9037_s24  ;;  %665 = vrot.lane.b32.xlu0 %v9519_v59, %s9037_s24 }
  0xfc   :  { %v9681_v18 = vpop.permute.xlu1 %540  ;;  %v9683_v19 = vpop.permute.xlu0 %423 }
  0xfd   :  { %16013 = vst [vmem:[#allocation4_spill] sm:$0xff] %v9681_v18  ;;  %16014 = vst [vmem:[#allocation5_spill] sm:$0xff] %v9683_v19 }
  0xfe   :  { %671 = vrot.lane.b32.xlu1 %v9530_v0, %s9037_s24  ;;  %669 = vrot.lane.b32.xlu0 %v9527_v63, %s9037_s24 }
 0x102   :  { %675 = vrot.lane.b32.xlu1 %v9538_v4, %s9037_s24  ;;  %673 = vrot.lane.b32.xlu0 %v9535_v3, %s9037_s24 }
 0x106   :  { %679 = vrot.lane.b32.xlu1 %v9546_v8, %s9037_s24  ;;  %677 = vrot.lane.b32.xlu0 %v9543_v7, %s9037_s24 }
 0x10a   :  { %683 = vrot.lane.b32.xlu1 %v9554_v12, %s9037_s24  ;;  %681 = vrot.lane.b32.xlu0 %v9551_v11, %s9037_s24 }
 0x10e   :  { %687 = vrot.lane.b32.xlu1 %v9563_v16, %s9037_s24  ;;  %685 = vrot.lane.b32.xlu0 %v9560_v15, %s9037_s24 }
 0x112   :  { %778 = vrot.lane.b32.xlu1 %v9508_v55, %s9036_s23  ;;  %776 = vrot.lane.b32.xlu0 %v9505_v54, %s9036_s23 }
 0x116   :  { %782 = vrot.lane.b32.xlu1 %v9519_v59, %s9036_s23  ;;  %780 = vrot.lane.b32.xlu0 %v9501_v52, %s9036_s23 }
 0x11a   :  { %786 = vrot.lane.b32.xlu1 %v9527_v63, %s9036_s23  ;;  %784 = vrot.lane.b32.xlu0 %v9522_v60, %s9036_s23 }
 0x11e   :  { %790 = vrot.lane.b32.xlu1 %v9535_v3, %s9036_s23  ;;  %788 = vrot.lane.b32.xlu0 %v9530_v0, %s9036_s23 }
 0x120   :  { %v9689_v20 = vpop.permute.xlu1 %572  ;;  %v9691_v21 = vpop.permute.xlu0 %455 }
 0x121   :  { %16015 = vst [vmem:[#allocation6_spill] sm:$0xff] %v9689_v20  ;;  %16016 = vst [vmem:[#allocation7_spill] sm:$0xff] %v9691_v21 }
 0x122   :  { %794 = vrot.lane.b32.xlu1 %v9543_v7, %s9036_s23  ;;  %792 = vrot.lane.b32.xlu0 %v9538_v4, %s9036_s23 }
 0x124   :  { %v9697_v22 = vpop.permute.xlu1 %774  ;;  %v9699_v23 = vpop.permute.xlu0 %657 }
 0x125   :  { %16017 = vst [vmem:[#allocation8_spill] sm:$0xff] %v9697_v22  ;;  %16018 = vst [vmem:[#allocation9_spill] sm:$0xff] %v9699_v23 }
 0x126   :  { %798 = vrot.lane.b32.xlu1 %v9551_v11, %s9036_s23  ;;  %796 = vrot.lane.b32.xlu0 %v9546_v8, %s9036_s23 }
 0x128   :  { %v9705_v24 = vpop.permute.xlu1 %425  ;;  %v9707_v25 = vpop.permute.xlu0 %689 }
 0x129   :  { %16019 = vst [vmem:[#allocation10_spill] sm:$0xff] %v9705_v24  ;;  %16020 = vst [vmem:[#allocation11_spill] sm:$0xff] %v9707_v25 }
 0x12a   :  { %802 = vrot.lane.b32.xlu1 %v9560_v15, %s9036_s23  ;;  %800 = vrot.lane.b32.xlu0 %v9554_v12, %s9036_s23 }
 0x12c   :  { %v9713_v26 = vpop.permute.xlu1 %429  ;;  %v9715_v27 = vpop.permute.xlu0 %427 }
 0x12d   :  { %16021 = vst [vmem:[#allocation12_spill] sm:$0xff] %v9713_v26  ;;  %16022 = vst [vmem:[#allocation13_spill] sm:$0xff] %v9715_v27  ;;  %v10291_v26 = vld [vmem:[#allocation2 + $0x80] sm:$0xff] }
 0x12e   :  { %806 = vrot.lane.b32.xlu1 %v9567_v17, %s9036_s23  ;;  %804 = vrot.lane.b32.xlu0 %v9563_v16, %s9036_s23 }
 0x130   :  { %v9721_v28 = vpop.permute.xlu1 %433  ;;  %v9723_v29 = vpop.permute.xlu0 %431 }
 0x131   :  { %16023 = vst [vmem:[#allocation14_spill] sm:$0xff] %v9721_v28  ;;  %16024 = vst [vmem:[#allocation15_spill] sm:$0xff] %v9723_v29  ;;  %v10293_v29 = vld [vmem:[#allocation2 + $0x78] sm:$0xff] }
 0x132   :  { %893 = vrot.lane.b32.xlu1 %v9505_v54, %s9038_s25  ;;  %891 = vrot.lane.b32.xlu0 %v9512_v57, %s9038_s25 }
 0x134   :  { %v9729_v30 = vpop.permute.xlu1 %437  ;;  %v9731_v31 = vpop.permute.xlu0 %435 }
 0x135   :  { %16025 = vst [vmem:[#allocation16_spill] sm:$0xff] %v9729_v30  ;;  %16026 = vst [vmem:[#allocation17_spill] sm:$0xff] %v9731_v31 }
 0x136   :  { %897 = vrot.lane.b32.xlu1 %v9501_v52, %s9038_s25  ;;  %895 = vrot.lane.b32.xlu0 %v9508_v55, %s9038_s25 }
 0x138   :  { %v9737_v32 = vpop.permute.xlu1 %441  ;;  %v9739_v33 = vpop.permute.xlu0 %439 }
 0x139   :  { %16027 = vst [vmem:[#allocation18_spill] sm:$0xff] %v9737_v32  ;;  %16028 = vst [vmem:[#allocation19_spill] sm:$0xff] %v9739_v33 }
 0x13a   :  { %901 = vrot.lane.b32.xlu1 %v9522_v60, %s9038_s25  ;;  %899 = vrot.lane.b32.xlu0 %v9519_v59, %s9038_s25 }
 0x13c   :  { %v9745_v34 = vpop.permute.xlu1 %445  ;;  %v9747_v35 = vpop.permute.xlu0 %443 }
 0x13d   :  { %16029 = vst [vmem:[#allocation20_spill] sm:$0xff] %v9745_v34  ;;  %16030 = vst [vmem:[#allocation21_spill] sm:$0xff] %v9747_v35 }
 0x13e   :  { %905 = vrot.lane.b32.xlu1 %v9530_v0, %s9038_s25  ;;  %903 = vrot.lane.b32.xlu0 %v9527_v63, %s9038_s25 }
 0x140   :  { %v9753_v36 = vpop.permute.xlu1 %449  ;;  %v9755_v37 = vpop.permute.xlu0 %447 }
 0x141   :  { %16031 = vst [vmem:[#allocation22_spill] sm:$0xff] %v9753_v36  ;;  %16032 = vst [vmem:[#allocation23_spill] sm:$0xff] %v9755_v37 }
 0x142   :  { %909 = vrot.lane.b32.xlu1 %v9538_v4, %s9038_s25  ;;  %907 = vrot.lane.b32.xlu0 %v9535_v3, %s9038_s25 }
 0x144   :  { %v9761_v38 = vpop.permute.xlu1 %453  ;;  %v9763_v39 = vpop.permute.xlu0 %451 }
 0x145   :  { %16033 = vst [vmem:[#allocation24_spill] sm:$0xff] %v9761_v38  ;;  %16034 = vst [vmem:[#allocation25_spill] sm:$0xff] %v9763_v39 }
 0x146   :  { %913 = vrot.lane.b32.xlu1 %v9546_v8, %s9038_s25  ;;  %911 = vrot.lane.b32.xlu0 %v9543_v7, %s9038_s25 }
 0x148   :  { %v9769_v40 = vpop.permute.xlu1 %544  ;;  %v9771_v41 = vpop.permute.xlu0 %542 }
 0x149   :  { %16035 = vst [vmem:[#allocation26_spill] sm:$0xff] %v9769_v40  ;;  %16036 = vst [vmem:[#allocation27_spill] sm:$0xff] %v9771_v41 }
 0x14a   :  { %917 = vrot.lane.b32.xlu1 %v9554_v12, %s9038_s25  ;;  %915 = vrot.lane.b32.xlu0 %v9551_v11, %s9038_s25 }
 0x14c   :  { %v9777_v42 = vpop.permute.xlu1 %548  ;;  %v9779_v43 = vpop.permute.xlu0 %546 }
 0x14d   :  { %16037 = vst [vmem:[#allocation28_spill] sm:$0xff] %v9777_v42  ;;  %16038 = vst [vmem:[#allocation29_spill] sm:$0xff] %v9779_v43 }
 0x14e   :  { %921 = vrot.lane.b32.xlu1 %v9563_v16, %s9038_s25  ;;  %919 = vrot.lane.b32.xlu0 %v9560_v15, %s9038_s25 }
 0x150   :  { %v9785_v44 = vpop.permute.xlu1 %552  ;;  %v9787_v45 = vpop.permute.xlu0 %550 }
 0x151   :  { %16039 = vst [vmem:[#allocation30_spill] sm:$0xff] %v9785_v44  ;;  %16040 = vst [vmem:[#allocation31_spill] sm:$0xff] %v9787_v45 }
 0x152   :  { %1008 = vrot.lane.b32.xlu1 %v9512_v57, %s9039_s26  ;;  %923 = vrot.lane.b32.xlu0 %v9567_v17, %s9038_s25 }
 0x154   :  { %v9793_v46 = vpop.permute.xlu1 %556  ;;  %v9795_v47 = vpop.permute.xlu0 %554 }
 0x155   :  { %16041 = vst [vmem:[#allocation32_spill] sm:$0xff] %v9793_v46  ;;  %16042 = vst [vmem:[#allocation33_spill] sm:$0xff] %v9795_v47 }
 0x156   :  { %1012 = vrot.lane.b32.xlu1 %v9508_v55, %s9039_s26  ;;  %1010 = vrot.lane.b32.xlu0 %v9505_v54, %s9039_s26 }
 0x158   :  { %v9801_v48 = vpop.permute.xlu1 %560  ;;  %v9803_v49 = vpop.permute.xlu0 %558 }
 0x159   :  { %16043 = vst [vmem:[#allocation34_spill] sm:$0xff] %v9801_v48  ;;  %16044 = vst [vmem:[#allocation35_spill] sm:$0xff] %v9803_v49 }
 0x15a   :  { %1016 = vrot.lane.b32.xlu1 %v9519_v59, %s9039_s26  ;;  %1014 = vrot.lane.b32.xlu0 %v9501_v52, %s9039_s26 }
 0x15c   :  { %v9809_v50 = vpop.permute.xlu1 %564  ;;  %v9811_v51 = vpop.permute.xlu0 %562 }
 0x15d   :  { %16045 = vst [vmem:[#allocation36_spill] sm:$0xff] %v9809_v50  ;;  %16046 = vst [vmem:[#allocation37_spill] sm:$0xff] %v9811_v51 }
 0x15e   :  { %1020 = vrot.lane.b32.xlu1 %v9527_v63, %s9039_s26  ;;  %1018 = vrot.lane.b32.xlu0 %v9522_v60, %s9039_s26 }
 0x160   :  { %v9817_v53 = vpop.permute.xlu1 %568  ;;  %v9819_v56 = vpop.permute.xlu0 %566 }
 0x161   :  { %16047 = vst [vmem:[#allocation38_spill] sm:$0xff] %v9817_v53  ;;  %16048 = vst [vmem:[#allocation39_spill] sm:$0xff] %v9819_v56 }
 0x162   :  { %1024 = vrot.lane.b32.xlu1 %v9535_v3, %s9039_s26  ;;  %1022 = vrot.lane.b32.xlu0 %v9530_v0, %s9039_s26 }
 0x164   :  { %v9825_v58 = vpop.permute.xlu1 %659  ;;  %v9827_v61 = vpop.permute.xlu0 %570 }
 0x165   :  { %16049 = vst [vmem:[#allocation40_spill] sm:$0xff] %v9825_v58  ;;  %16050 = vst [vmem:[#allocation41_spill] sm:$0xff] %v9827_v61 }
 0x166   :  { %1028 = vrot.lane.b32.xlu1 %v9543_v7, %s9039_s26  ;;  %1026 = vrot.lane.b32.xlu0 %v9538_v4, %s9039_s26 }
 0x168   :  { %v9833_v62 = vpop.permute.xlu1 %663  ;;  %v9835_v1 = vpop.permute.xlu0 %661 }
 0x169   :  { %16051 = vst [vmem:[#allocation42_spill] sm:$0xff] %v9833_v62  ;;  %16052 = vst [vmem:[#allocation43_spill] sm:$0xff] %v9835_v1 }
 0x16a   :  { %1032 = vrot.lane.b32.xlu1 %v9551_v11, %s9039_s26  ;;  %1030 = vrot.lane.b32.xlu0 %v9546_v8, %s9039_s26 }
 0x16c   :  { %v9841_v2 = vpop.permute.xlu1 %667  ;;  %v9843_v5 = vpop.permute.xlu0 %665 }
 0x16d   :  { %16053 = vst [vmem:[#allocation44_spill] sm:$0xff] %v9841_v2  ;;  %16054 = vst [vmem:[#allocation45_spill] sm:$0xff] %v9843_v5 }
 0x16e   :  { %1036 = vrot.lane.b32.xlu1 %v9560_v15, %s9039_s26  ;;  %1034 = vrot.lane.b32.xlu0 %v9554_v12, %s9039_s26 }
 0x170   :  { %v9849_v6 = vpop.permute.xlu1 %671  ;;  %v9851_v9 = vpop.permute.xlu0 %669 }
 0x171   :  { %16055 = vst [vmem:[#allocation46_spill] sm:$0xff] %v9849_v6  ;;  %16056 = vst [vmem:[#allocation47_spill] sm:$0xff] %v9851_v9 }
 0x172   :  { %1040 = vrot.lane.b32.xlu1 %v9567_v17, %s9039_s26  ;;  %1038 = vrot.lane.b32.xlu0 %v9563_v16, %s9039_s26 }
 0x174   :  { %v9857_v10 = vpop.permute.xlu1 %675  ;;  %v9859_v13 = vpop.permute.xlu0 %673 }
 0x175   :  { %16057 = vst [vmem:[#allocation48_spill] sm:$0xff] %v9857_v10  ;;  %16058 = vst [vmem:[#allocation49_spill] sm:$0xff] %v9859_v13 }
 0x176   :  { %1127 = vrot.lane.b32.xlu1 %v9505_v54, %s9040_s28  ;;  %1125 = vrot.lane.b32.xlu0 %v9512_v57, %s9040_s28 }
 0x178   :  { %v9865_v14 = vpop.permute.xlu1 %679  ;;  %v9867_v38 = vpop.permute.xlu0 %677 }
 0x179   :  { %16059 = vst [vmem:[#allocation50_spill] sm:$0xff] %v9865_v14  ;;  %16060 = vst [vmem:[#allocation51_spill] sm:$0xff] %v9867_v38 }
 0x17a   :  { %1131 = vrot.lane.b32.xlu1 %v9501_v52, %s9040_s28  ;;  %1129 = vrot.lane.b32.xlu0 %v9508_v55, %s9040_s28 }
 0x17c   :  { %v9873_v21 = vpop.permute.xlu1 %683  ;;  %v9875_v61 = vpop.permute.xlu0 %681 }
 0x17d   :  { %16061 = vst [vmem:[#allocation52_spill] sm:$0xff] %v9873_v21  ;;  %16062 = vst [vmem:[#allocation53_spill] sm:$0xff] %v9875_v61 }
 0x17e   :  { %1135 = vrot.lane.b32.xlu1 %v9522_v60, %s9040_s28  ;;  %1133 = vrot.lane.b32.xlu0 %v9519_v59, %s9040_s28 }
 0x180   :  { %v9881_v20 = vpop.permute.xlu1 %687  ;;  %v9883_v25 = vpop.permute.xlu0 %685 }
 0x181   :  { %16063 = vst [vmem:[#allocation54_spill] sm:$0xff] %v9881_v20  ;;  %16064 = vst [vmem:[#allocation55_spill] sm:$0xff] %v9883_v25 }
 0x182   :  { %1139 = vrot.lane.b32.xlu1 %v9530_v0, %s9040_s28  ;;  %1137 = vrot.lane.b32.xlu0 %v9527_v63, %s9040_s28 }
 0x184   :  { %v9889_v36 = vpop.permute.xlu1 %778  ;;  %v9891_v39 = vpop.permute.xlu0 %776 }
 0x185   :  { %16065 = vst [vmem:[#allocation56_spill] sm:$0xff] %v9889_v36  ;;  %16066 = vst [vmem:[#allocation57_spill] sm:$0xff] %v9891_v39 }
 0x186   :  { %1143 = vrot.lane.b32.xlu1 %v9538_v4, %s9040_s28  ;;  %1141 = vrot.lane.b32.xlu0 %v9535_v3, %s9040_s28 }
 0x188   :  { %v9897_v56 = vpop.permute.xlu1 %782  ;;  %v9899_v20 = vpop.permute.xlu0 %780 }
 0x189   :  { %16067 = vst [vmem:[#allocation58_spill] sm:$0xff] %v9897_v56  ;;  %16068 = vst [vmem:[#allocation59_spill] sm:$0xff] %v9899_v20 }
 0x18a   :  { %1147 = vrot.lane.b32.xlu1 %v9546_v8, %s9040_s28  ;;  %1145 = vrot.lane.b32.xlu0 %v9543_v7, %s9040_s28 }
 0x18c   :  { %v9905_v53 = vpop.permute.xlu1 %786  ;;  %v9907_v21 = vpop.permute.xlu0 %784 }
 0x18d   :  { %16069 = vst [vmem:[#allocation60_spill] sm:$0xff] %v9905_v53  ;;  %16070 = vst [vmem:[#allocation61_spill] sm:$0xff] %v9907_v21  ;;  %v10141_v53 = vld [vmem:[#allocation2 + $0x18] sm:$0xff] }
 0x18e   :  { %1151 = vrot.lane.b32.xlu1 %v9554_v12, %s9040_s28  ;;  %1149 = vrot.lane.b32.xlu0 %v9551_v11, %s9040_s28 }
 0x190   :  { %v9913_v25 = vpop.permute.xlu1 %790  ;;  %v9915_v34 = vpop.permute.xlu0 %788 }
 0x191   :  { %16071 = vst [vmem:[#allocation62_spill] sm:$0xff] %v9913_v25  ;;  %16072 = vst [vmem:[#allocation63_spill] sm:$0xff] %v9915_v34 }
 0x192   :  { %1155 = vrot.lane.b32.xlu1 %v9563_v16, %s9040_s28  ;;  %1153 = vrot.lane.b32.xlu0 %v9560_v15, %s9040_s28 }
 0x194   :  { %v9921_v37 = vpop.permute.xlu1 %794  ;;  %v9923_v51 = vpop.permute.xlu0 %792 }
 0x195   :  { %16073 = vst [vmem:[#allocation64_spill] sm:$0xff] %v9921_v37  ;;  %16074 = vst [vmem:[#allocation65_spill] sm:$0xff] %v9923_v51 }
 0x196   :  { %1242 = vrot.lane.b32.xlu1 %v9512_v57, %s9041_s29  ;;  %1157 = vrot.lane.b32.xlu0 %v9567_v17, %s9040_s28 }
 0x198   :  { %v9929_v50 = vpop.permute.xlu1 %798  ;;  %v9931_v14 = vpop.permute.xlu0 %796 }
 0x199   :  { %16075 = vst [vmem:[#allocation66_spill] sm:$0xff] %v9929_v50  ;;  %16076 = vst [vmem:[#allocation67_spill] sm:$0xff] %v9931_v14 }
 0x19a   :  { %1246 = vrot.lane.b32.xlu1 %v9508_v55, %s9041_s29  ;;  %1244 = vrot.lane.b32.xlu0 %v9505_v54, %s9041_s29 }
 0x19c   :  { %v9937_v61 = vpop.permute.xlu1 %802  ;;  %v9939_v32 = vpop.permute.xlu0 %800 }
 0x19d   :  { %16077 = vst [vmem:[#allocation68_spill] sm:$0xff] %v9937_v61  ;;  %16078 = vst [vmem:[#allocation69_spill] sm:$0xff] %v9939_v32 }
 0x19e   :  { %1250 = vrot.lane.b32.xlu1 %v9519_v59, %s9041_s29  ;;  %1248 = vrot.lane.b32.xlu0 %v9501_v52, %s9041_s29 }
 0x1a0   :  { %v9945_v35 = vpop.permute.xlu1 %806  ;;  %v9947_v50 = vpop.permute.xlu0 %804 }
 0x1a1   :  { %16079 = vst [vmem:[#allocation70_spill] sm:$0xff] %v9945_v35  ;;  %16080 = vst [vmem:[#allocation71_spill] sm:$0xff] %v9947_v50 }
 0x1a2   :  { %1254 = vrot.lane.b32.xlu1 %v9527_v63, %s9041_s29  ;;  %1252 = vrot.lane.b32.xlu0 %v9522_v60, %s9041_s29 }
 0x1a4   :  { %v9953_v14 = vpop.permute.xlu1 %893  ;;  %v9955_v61 = vpop.permute.xlu0 %891 }
 0x1a5   :  { %16081 = vst [vmem:[#allocation72_spill] sm:$0xff] %v9953_v14  ;;  %16082 = vst [vmem:[#allocation73_spill] sm:$0xff] %v9955_v61 }
 0x1a6   :  { %1258 = vrot.lane.b32.xlu1 %v9535_v3, %s9041_s29  ;;  %1256 = vrot.lane.b32.xlu0 %v9530_v0, %s9041_s29 }
 0x1a8   :  { %v9961_v32 = vpop.permute.xlu1 %897  ;;  %v9963_v35 = vpop.permute.xlu0 %895 }
 0x1a9   :  { %16083 = vst [vmem:[#allocation74_spill] sm:$0xff] %v9961_v32  ;;  %16084 = vst [vmem:[#allocation75_spill] sm:$0xff] %v9963_v35 }
 0x1aa   :  { %1262 = vrot.lane.b32.xlu1 %v9543_v7, %s9041_s29  ;;  %1260 = vrot.lane.b32.xlu0 %v9538_v4, %s9041_s29 }
 0x1ac   :  { %v9969_v50 = vpop.permute.xlu1 %901  ;;  %v9971_v49 = vpop.permute.xlu0 %899 }
 0x1ad   :  { %16085 = vst [vmem:[#allocation76_spill] sm:$0xff] %v9969_v50  ;;  %16086 = vst [vmem:[#allocation77_spill] sm:$0xff] %v9971_v49  ;;  %v10257_v50 = vld [vmem:[#allocation2 + $0x48] sm:$0xff] }
 0x1ae   :  { %1266 = vrot.lane.b32.xlu1 %v9551_v11, %s9041_s29  ;;  %1264 = vrot.lane.b32.xlu0 %v9546_v8, %s9041_s29 }
 0x1b0   :  { %v9977_v48 = vpop.permute.xlu1 %905  ;;  %v9979_v10 = vpop.permute.xlu0 %903 }
 0x1b1   :  { %16087 = vst [vmem:[#allocation78_spill] sm:$0xff] %v9977_v48  ;;  %16088 = vst [vmem:[#allocation79_spill] sm:$0xff] %v9979_v10 }
 0x1b2   :  { %1270 = vrot.lane.b32.xlu1 %v9560_v15, %s9041_s29  ;;  %1268 = vrot.lane.b32.xlu0 %v9554_v12, %s9041_s29 }
 0x1b4   :  { %v9985_v38 = vpop.permute.xlu1 %909  ;;  %v9987_v51 = vpop.permute.xlu0 %907 }
 0x1b5   :  { %16089 = vst [vmem:[#allocation80_spill] sm:$0xff] %v9985_v38  ;;  %16090 = vst [vmem:[#allocation81_spill] sm:$0xff] %v9987_v51 }
 0x1b6   :  { %1274 = vrot.lane.b32.xlu1 %v9567_v17, %s9041_s29  ;;  %1272 = vrot.lane.b32.xlu0 %v9563_v16, %s9041_s29 }
 0x1b8   :  { %v9993_v37 = vpop.permute.xlu1 %913  ;;  %v9995_v30 = vpop.permute.xlu0 %911 }
 0x1b9   :  { %16091 = vst [vmem:[#allocation82_spill] sm:$0xff] %v9993_v37  ;;  %16092 = vst [vmem:[#allocation83_spill] sm:$0xff] %v9995_v30 }
 0x1ba   :  { %1361 = vrot.lane.b32.xlu1 %v9505_v54, %s9042_s30  ;;  %1359 = vrot.lane.b32.xlu0 %v9512_v57, %s9042_s30 }
 0x1bc   :  { %v10001_v38 = vpop.permute.xlu1 %917  ;;  %v10003_v33 = vpop.permute.xlu0 %915 }
 0x1bd   :  { %16093 = vst [vmem:[#allocation84_spill] sm:$0xff] %v10001_v38  ;;  %16094 = vst [vmem:[#allocation85_spill] sm:$0xff] %v10003_v33 }
 0x1be   :  { %1365 = vrot.lane.b32.xlu1 %v9501_v52, %s9042_s30  ;;  %1363 = vrot.lane.b32.xlu0 %v9508_v55, %s9042_s30 }
 0x1c0   :  { %v10009_v37 = vpop.permute.xlu1 %921  ;;  %v10011_v30 = vpop.permute.xlu0 %919 }
 0x1c1   :  { %16095 = vst [vmem:[#allocation86_spill] sm:$0xff] %v10009_v37  ;;  %16096 = vst [vmem:[#allocation87_spill] sm:$0xff] %v10011_v30 }
 0x1c2   :  { %1369 = vrot.lane.b32.xlu1 %v9522_v60, %s9042_s30  ;;  %1367 = vrot.lane.b32.xlu0 %v9519_v59, %s9042_s30 }
 0x1c4   :  { %v10017_v47 = vpop.permute.xlu1 %1008  ;;  %v10019_v38 = vpop.permute.xlu0 %923 }
 0x1c5   :  { %16097 = vst [vmem:[#allocation88_spill] sm:$0xff] %v10017_v47  ;;  %16098 = vst [vmem:[#allocation89_spill] sm:$0xff] %v10019_v38 }
 0x1c6   :  { %1373 = vrot.lane.b32.xlu1 %v9530_v0, %s9042_s30  ;;  %1371 = vrot.lane.b32.xlu0 %v9527_v63, %s9042_s30 }
 0x1c8   :  { %v10025_v33 = vpop.permute.xlu1 %1012  ;;  %v10027_v37 = vpop.permute.xlu0 %1010 }
 0x1ca   :  { %1377 = vrot.lane.b32.xlu1 %v9538_v4, %s9042_s30  ;;  %1375 = vrot.lane.b32.xlu0 %v9535_v3, %s9042_s30 }
 0x1cc   :  { %v10033_v30 = vpop.permute.xlu1 %1016  ;;  %v10035_v46 = vpop.permute.xlu0 %1014 }
 0x1cd   :  { %16099 = vst [vmem:[#allocation90_spill] sm:$0xff] %v10033_v30  ;;  %16100 = vst [vmem:[#allocation91_spill] sm:$0xff] %v10035_v46 }
 0x1ce   :  { %1381 = vrot.lane.b32.xlu1 %v9546_v8, %s9042_s30  ;;  %1379 = vrot.lane.b32.xlu0 %v9543_v7, %s9042_s30 }
 0x1d0   :  { %v10041_v38 = vpop.permute.xlu1 %1020  ;;  %v10043_v6 = vpop.permute.xlu0 %1018 }
 0x1d1   :  { %16101 = vst [vmem:[#allocation92_spill] sm:$0xff] %v10041_v38  ;;  %16102 = vst [vmem:[#allocation93_spill] sm:$0xff] %v10043_v6  ;;  %v10269_v6 = vld [vmem:[#allocation2 + $0x58] sm:$0xff] }
 0x1d2   :  { %1385 = vrot.lane.b32.xlu1 %v9554_v12, %s9042_s30  ;;  %1383 = vrot.lane.b32.xlu0 %v9551_v11, %s9042_s30 }
 0x1d4   :  { %v10049_v13 = vpop.permute.xlu1 %1024  ;;  %v10051_v28 = vpop.permute.xlu0 %1022 }
 0x1d5   :  { %16103 = vst [vmem:[#allocation94_spill] sm:$0xff] %v10049_v13  ;;  %16104 = vst [vmem:[#allocation95_spill] sm:$0xff] %v10051_v28 }
 0x1d6   :  { %1389 = vrot.lane.b32.xlu1 %v9563_v16, %s9042_s30  ;;  %1387 = vrot.lane.b32.xlu0 %v9560_v15, %s9042_s30 }
 0x1d8   :  { %v10057_v31 = vpop.permute.xlu1 %1028  ;;  %v10059_v34 = vpop.permute.xlu0 %1026 }
 0x1d9   :  { %16105 = vst [vmem:[#allocation96_spill] sm:$0xff] %v10057_v31  ;;  %16106 = vst [vmem:[#allocation97_spill] sm:$0xff] %v10059_v34 }
 0x1da   :  { %1476 = vrot.lane.b32.xlu1 %v9512_v57, %s9043_s7  ;;  %1391 = vrot.lane.b32.xlu0 %v9567_v17, %s9042_s30 }
 0x1dc   :  { %v10065_v25 = vpop.permute.xlu1 %1032  ;;  %v10067_v45 = vpop.permute.xlu0 %1030 }
 0x1dd   :  { %16107 = vst [vmem:[#allocation98_spill] sm:$0xff] %v10065_v25  ;;  %16108 = vst [vmem:[#allocation99_spill] sm:$0xff] %v10067_v45 }
 0x1de   :  { %1480 = vrot.lane.b32.xlu1 %v9508_v55, %s9043_s7  ;;  %1478 = vrot.lane.b32.xlu0 %v9505_v54, %s9043_s7 }
 0x1e0   :  { %v10073_v31 = vpop.permute.xlu1 %1036  ;;  %v10075_v34 = vpop.permute.xlu0 %1034 }
 0x1e1   :  { %16109 = vst [vmem:[#allocation100_spill] sm:$0xff] %v10073_v31  ;;  %16110 = vst [vmem:[#allocation101_spill] sm:$0xff] %v10075_v34 }
 0x1e2   :  { %1484 = vrot.lane.b32.xlu1 %v9519_v59, %s9043_s7  ;;  %1482 = vrot.lane.b32.xlu0 %v9501_v52, %s9043_s7 }
 0x1e4   :  { %v10081_v44 = vpop.permute.xlu1 %1040  ;;  %v10083_v25 = vpop.permute.xlu0 %1038 }
 0x1e5   :  { %16111 = vst [vmem:[#allocation102_spill] sm:$0xff] %v10081_v44  ;;  %16112 = vst [vmem:[#allocation103_spill] sm:$0xff] %v10083_v25 }
 0x1e6   :  { %1488 = vrot.lane.b32.xlu1 %v9527_v63, %s9043_s7  ;;  %1486 = vrot.lane.b32.xlu0 %v9522_v60, %s9043_s7 }
 0x1e8   :  { %v10089_v45 = vpop.permute.xlu1 %1127  ;;  %v10091_v31 = vpop.permute.xlu0 %1125 }
 0x1ea   :  { %1492 = vrot.lane.b32.xlu1 %v9535_v3, %s9043_s7  ;;  %1490 = vrot.lane.b32.xlu0 %v9530_v0, %s9043_s7 }
 0x1ec   :  { %v10097_v52 = vpop.permute.xlu1 %1131  ;;  %v10099_v44 = vpop.permute.xlu0 %1129 }
 0x1ed   :  { %16113 = vst [vmem:[#allocation104_spill] sm:$0xff] %v10097_v52 }
 0x1ee   :  { %1496 = vrot.lane.b32.xlu1 %v9543_v7, %s9043_s7  ;;  %1494 = vrot.lane.b32.xlu0 %v9538_v4, %s9043_s7 }
 0x1f0   :  { %v10105_v25 = vpop.permute.xlu1 %1135  ;;  %v10107_v34 = vpop.permute.xlu0 %1133 }
 0x1f1   :  { %16114 = vst [vmem:[#allocation105_spill] sm:$0xff] %v10105_v25  ;;  %16115 = vst [vmem:[#allocation106_spill] sm:$0xff] %v10107_v34 }
 0x1f2   :  { %1500 = vrot.lane.b32.xlu1 %v9551_v11, %s9043_s7  ;;  %1498 = vrot.lane.b32.xlu0 %v9546_v8, %s9043_s7 }
 0x1f4   :  { %v10113_v48 = vpop.permute.xlu1 %1139  ;;  %v10115_v51 = vpop.permute.xlu0 %1137 }
 0x1f5   :  { %16116 = vst [vmem:[#allocation107_spill] sm:$0xff] %v10113_v48  ;;  %16117 = vst [vmem:[#allocation108_spill] sm:$0xff] %v10115_v51  ;;  %v10245_v48 = vld [vmem:[#allocation2 + $0x38] sm:$0xff]  ;;  %v10279_v51 = vld [vmem:[#allocation2 + $0x70] sm:$0xff] }
 0x1f6   :  { %1504 = vrot.lane.b32.xlu1 %v9560_v15, %s9043_s7  ;;  %1502 = vrot.lane.b32.xlu0 %v9554_v12, %s9043_s7 }
 0x1f8   :  { %v10121_v2 = vpop.permute.xlu1 %1143  ;;  %v10123_v9 = vpop.permute.xlu0 %1141 }
 0x1f9   :  { %16118 = vst [vmem:[#allocation109_spill] sm:$0xff] %v10121_v2  ;;  %16119 = vst [vmem:[#allocation110_spill] sm:$0xff] %v10123_v9  ;;  %v10255_v9 = vld [vmem:[#allocation2 + $0x50] sm:$0xff] }
 0x1fa   :  { %1508 = vrot.lane.b32.xlu1 %v9567_v17, %s9043_s7  ;;  %1506 = vrot.lane.b32.xlu0 %v9563_v16, %s9043_s7 }
 0x1fc   :  { %v10129_v28 = vpop.permute.xlu1 %1147  ;;  %v10131_v13 = vpop.permute.xlu0 %1145 }
 0x1fd   :  { %16120 = vst [vmem:[#allocation111_spill] sm:$0xff] %v10129_v28  ;;  %16121 = vst [vmem:[#allocation112_spill] sm:$0xff] %v10131_v13 }
 0x1fe   :  { %1595 = vrot.lane.b32.xlu1 %v9505_v54, %s9044_s8  ;;  %1593 = vrot.lane.b32.xlu0 %v9512_v57, %s9044_s8 }
 0x200   :  { %v10137_v2 = vpop.permute.xlu1 %1151  ;;  %v10139_v21 = vpop.permute.xlu0 %1149 }
 0x201   :  { %16122 = vst [vmem:[#allocation113_spill] sm:$0xff] %v10137_v2  ;;  %16123 = vst [vmem:[#allocation114_spill] sm:$0xff] %v10139_v21  ;;  %v10221_v21 = vld [vmem:[#allocation2 + $0x20] sm:$0xff] }
 0x202   :  { %1599 = vrot.lane.b32.xlu1 %v10141_v53, %s9044_s8  ;;  %1597 = vrot.lane.b32.xlu0 %v9508_v55, %s9044_s8 }
 0x204   :  { %v10147_v28 = vpop.permute.xlu1 %1155  ;;  %v10149_v13 = vpop.permute.xlu0 %1153 }
 0x205   :  { %16124 = vst [vmem:[#allocation115_spill] sm:$0xff] %v10147_v28  ;;  %16125 = vst [vmem:[#allocation116_spill] sm:$0xff] %v10149_v13 }
 0x206   :  { %1603 = vrot.lane.b32.xlu1 %v9522_v60, %s9044_s8  ;;  %1601 = vrot.lane.b32.xlu0 %v9519_v59, %s9044_s8 }
 0x208   :  { %v10155_v54 = vpop.permute.xlu1 %1242  ;;  %v10157_v57 = vpop.permute.xlu0 %1157 }
 0x209   :  { %16126 = vst [vmem:[#allocation117_spill] sm:$0xff] %v10157_v57  ;;  %v10199_v57 = vld [vmem:[#allocation2] sm:$0xff] }
 0x20a   :  { %1607 = vrot.lane.b32.xlu1 %v9530_v0, %s9044_s8  ;;  %1605 = vrot.lane.b32.xlu0 %v9527_v63, %s9044_s8 }
 0x20c   :  { %v10163_v55 = vpop.permute.xlu1 %1246  ;;  %v10165_v28 = vpop.permute.xlu0 %1244 }
 0x20e   :  { %1611 = vrot.lane.b32.xlu1 %v9538_v4, %s9044_s8  ;;  %1609 = vrot.lane.b32.xlu0 %v9535_v3, %s9044_s8 }
 0x210   :  { %v10171_v59 = vpop.permute.xlu1 %1250  ;;  %v10173_v60 = vpop.permute.xlu0 %1248 }
 0x211   :  { %16127 = vst [vmem:[#allocation118_spill] sm:$0xff] %v10171_v59  ;;  %16128 = vst [vmem:[#allocation119_spill] sm:$0xff] %v10173_v60 }
 0x212   :  { %1615 = vrot.lane.b32.xlu1 %v9546_v8, %s9044_s8  ;;  %1613 = vrot.lane.b32.xlu0 %v9543_v7, %s9044_s8 }
 0x214   :  { %v10179_v63 = vpop.permute.xlu1 %1254  ;;  %v10181_v0 = vpop.permute.xlu0 %1252 }
 0x215   :  { %16129 = vst [vmem:[#allocation120_spill] sm:$0xff] %v10179_v63  ;;  %16130 = vst [vmem:[#allocation121_spill] sm:$0xff] %v10181_v0  ;;  %v10281_v0 = vld [vmem:[#allocation2 + $0x68] sm:$0xff] }
 0x216   :  { %1619 = vrot.lane.b32.xlu1 %v9554_v12, %s9044_s8  ;;  %1617 = vrot.lane.b32.xlu0 %v9551_v11, %s9044_s8 }
 0x218   :  { %v10187_v3 = vpop.permute.xlu1 %1258  ;;  %v10189_v4 = vpop.permute.xlu0 %1256 }
 0x219   :  { %16131 = vst [vmem:[#allocation122_spill] sm:$0xff] %v10187_v3  ;;  %16132 = vst [vmem:[#allocation123_spill] sm:$0xff] %v10189_v4  ;;  %v10267_v3 = vld [vmem:[#allocation2 + $0x60] sm:$0xff] }
 0x21a   :  { %1623 = vrot.lane.b32.xlu1 %v9563_v16, %s9044_s8  ;;  %1621 = vrot.lane.b32.xlu0 %v9560_v15, %s9044_s8  ;;  %v10209_v16 = vld [vmem:[#allocation2 + $0x10] sm:$0xff]  ;;  %v10211_v15 = vld [vmem:[#allocation2 + $0x8] sm:$0xff] }
 0x21c   :  { %v10195_v7 = vpop.permute.xlu1 %1262  ;;  %v10197_v8 = vpop.permute.xlu0 %1260 }
 0x21d   :  { %16133 = vst [vmem:[#allocation124_spill] sm:$0xff] %v10195_v7  ;;  %16134 = vst [vmem:[#allocation125_spill] sm:$0xff] %v10197_v8  ;;  %v10233_v8 = vld [vmem:[#allocation2 + $0x28] sm:$0xff]  ;;  %v10243_v7 = vld [vmem:[#allocation2 + $0x40] sm:$0xff] }
 0x21e   :  { %1710 = vrot.lane.b32.xlu1 %v10199_v57, %s9045_s9  ;;  %1625 = vrot.lane.b32.xlu0 %v9567_v17, %s9044_s8 }
 0x220   :  { %v10205_v11 = vpop.permute.xlu1 %1266  ;;  %v10207_v12 = vpop.permute.xlu0 %1264 }
 0x221   :  { %16135 = vst [vmem:[#allocation126_spill] sm:$0xff] %v10205_v11  ;;  %16136 = vst [vmem:[#allocation127_spill] sm:$0xff] %v10207_v12  ;;  %v10231_v11 = vld [vmem:[#allocation2 + $0x30] sm:$0xff] }
 0x222   :  { %1714 = vrot.lane.b32.xlu1 %v10209_v16, %s9045_s9  ;;  %1712 = vrot.lane.b32.xlu0 %v10211_v15, %s9045_s9 }
 0x224   :  { %v10217_v2 = vpop.permute.xlu1 %1270  ;;  %v10219_v13 = vpop.permute.xlu0 %1268 }
 0x225   :  { %16137 = vst [vmem:[#allocation128_spill] sm:$0xff] %v10217_v2  ;;  %16138 = vst [vmem:[#allocation129_spill] sm:$0xff] %v10219_v13 }
 0x226   :  { %1718 = vrot.lane.b32.xlu1 %v10221_v21, %s9045_s9  ;;  %1716 = vrot.lane.b32.xlu0 %v10141_v53, %s9045_s9 }
 0x228   :  { %v10227_v17 = vpop.permute.xlu1 %1274  ;;  %v10229_v12 = vpop.permute.xlu0 %1272 }
 0x229   :  { %16139 = vst [vmem:[#allocation130_spill] sm:$0xff] %v10227_v17  ;;  %16140 = vst [vmem:[#allocation131_spill] sm:$0xff] %v10229_v12 }
 0x22a   :  { %1722 = vrot.lane.b32.xlu1 %v10231_v11, %s9045_s9  ;;  %1720 = vrot.lane.b32.xlu0 %v10233_v8, %s9045_s9 }
 0x22c   :  { %v10239_v13 = vpop.permute.xlu1 %1361  ;;  %v10241_v2 = vpop.permute.xlu0 %1359 }
 0x22e   :  { %1726 = vrot.lane.b32.xlu1 %v10243_v7, %s9045_s9  ;;  %1724 = vrot.lane.b32.xlu0 %v10245_v48, %s9045_s9 }
 0x230   :  { %v10251_v12 = vpop.permute.xlu1 %1365  ;;  %v10253_v17 = vpop.permute.xlu0 %1363 }
 0x232   :  { %1730 = vrot.lane.b32.xlu1 %v10255_v9, %s9045_s9  ;;  %1728 = vrot.lane.b32.xlu0 %v10257_v50, %s9045_s9 }
 0x234   :  { %v10263_v10 = vpop.permute.xlu1 %1369  ;;  %v10265_v4 = vpop.permute.xlu0 %1367 }
 0x235   :  { %16141 = vst [vmem:[#allocation132_spill] sm:$0xff] %v10263_v10  ;;  %16142 = vst [vmem:[#allocation133_spill] sm:$0xff] %v10265_v4 }
 0x236   :  { %1734 = vrot.lane.b32.xlu1 %v10267_v3, %s9045_s9  ;;  %1732 = vrot.lane.b32.xlu0 %v10269_v6, %s9045_s9 }
 0x238   :  { %v10275_v38 = vpop.permute.xlu1 %1373  ;;  %v10277_v25 = vpop.permute.xlu0 %1371 }
 0x239   :  { %16143 = vst [vmem:[#allocation134_spill] sm:$0xff] %v10275_v38  ;;  %16144 = vst [vmem:[#allocation135_spill] sm:$0xff] %v10277_v25 }
 0x23a   :  { %1738 = vrot.lane.b32.xlu1 %v10279_v51, %s9045_s9  ;;  %1736 = vrot.lane.b32.xlu0 %v10281_v0, %s9045_s9 }
 0x23c   :  { %v10287_v63 = vpop.permute.xlu1 %1377  ;;  %v10289_v10 = vpop.permute.xlu0 %1375 }
 0x23d   :  { %16145 = vst [vmem:[#allocation136_spill] sm:$0xff] %v10287_v63  ;;  %16146 = vst [vmem:[#allocation137_spill] sm:$0xff] %v10289_v10 }
 0x23e   :  { %1742 = vrot.lane.b32.xlu1 %v10291_v26, %s9045_s9  ;;  %1740 = vrot.lane.b32.xlu0 %v10293_v29, %s9045_s9 }
 0x240   :  { %v10299_v38 = vpop.permute.xlu1 %1381  ;;  %v10301_v25 = vpop.permute.xlu0 %1379 }
 0x241   :  { %16147 = vst [vmem:[#allocation138_spill] sm:$0xff] %v10299_v38  ;;  %16148 = vst [vmem:[#allocation139_spill] sm:$0xff] %v10301_v25 }
 0x242   :  { %1829 = vrot.lane.b32.xlu1 %v10211_v15, %s9046_s10  ;;  %1827 = vrot.lane.b32.xlu0 %v10199_v57, %s9046_s10 }
 0x244   :  { %v10307_v63 = vpop.permute.xlu1 %1385  ;;  %v10309_v10 = vpop.permute.xlu0 %1383 }
 0x245   :  { %16149 = vst [vmem:[#allocation140_spill] sm:$0xff] %v10307_v63  ;;  %16150 = vst [vmem:[#allocation141_spill] sm:$0xff] %v10309_v10 }
 0x246   :  { %1833 = vrot.lane.b32.xlu1 %v10141_v53, %s9046_s10  ;;  %1831 = vrot.lane.b32.xlu0 %v10209_v16, %s9046_s10 }
 0x248   :  { %v10315_v38 = vpop.permute.xlu1 %1389  ;;  %v10317_v25 = vpop.permute.xlu0 %1387 }
 0x249   :  { %16151 = vst [vmem:[#allocation142_spill] sm:$0xff] %v10315_v38  ;;  %16152 = vst [vmem:[#allocation143_spill] sm:$0xff] %v10317_v25 }
 0x24a   :  { %1837 = vrot.lane.b32.xlu1 %v10233_v8, %s9046_s10  ;;  %1835 = vrot.lane.b32.xlu0 %v10221_v21, %s9046_s10 }
 0x24c   :  { %v10323_v43 = vpop.permute.xlu1 %1476  ;;  %v10325_v63 = vpop.permute.xlu0 %1391 }
 0x24d   :  { %16153 = vst [vmem:[#allocation144_spill] sm:$0xff] %v10325_v63 }
 0x24e   :  { %1841 = vrot.lane.b32.xlu1 %v10245_v48, %s9046_s10  ;;  %1839 = vrot.lane.b32.xlu0 %v10231_v11, %s9046_s10 }
 0x250   :  { %v10331_v10 = vpop.permute.xlu1 %1480  ;;  %v10333_v38 = vpop.permute.xlu0 %1478 }
 0x252   :  { %1845 = vrot.lane.b32.xlu1 %v10257_v50, %s9046_s10  ;;  %1843 = vrot.lane.b32.xlu0 %v10243_v7, %s9046_s10 }
 0x254   :  { %v10339_v25 = vpop.permute.xlu1 %1484  ;;  %v10341_v42 = vpop.permute.xlu0 %1482 }
 0x255   :  { %16154 = vst [vmem:[#allocation145_spill] sm:$0xff] %v10339_v25 }
 0x256   :  { %1849 = vrot.lane.b32.xlu1 %v10269_v6, %s9046_s10  ;;  %1847 = vrot.lane.b32.xlu0 %v10255_v9, %s9046_s10 }
 0x258   :  { %v10347_v63 = vpop.permute.xlu1 %1488  ;;  %v10349_v19 = vpop.permute.xlu0 %1486 }
 0x259   :  { %16155 = vst [vmem:[#allocation146_spill] sm:$0xff] %v10347_v63  ;;  %16156 = vst [vmem:[#allocation147_spill] sm:$0xff] %v10349_v19 }
 0x25a   :  { %1853 = vrot.lane.b32.xlu1 %v10281_v0, %s9046_s10  ;;  %1851 = vrot.lane.b32.xlu0 %v10267_v3, %s9046_s10 }
 0x25c   :  { %v10355_v62 = vpop.permute.xlu1 %1492  ;;  %v10357_v5 = vpop.permute.xlu0 %1490 }
 0x25d   :  { %16157 = vst [vmem:[#allocation148_spill] sm:$0xff] %v10355_v62  ;;  %16158 = vst [vmem:[#allocation149_spill] sm:$0xff] %v10357_v5 }
 0x25e   :  { %1857 = vrot.lane.b32.xlu1 %v10293_v29, %s9046_s10  ;;  %1855 = vrot.lane.b32.xlu0 %v10279_v51, %s9046_s10 }
 0x260   :  { %v10363_v24 = vpop.permute.xlu1 %1496  ;;  %v10365_v63 = vpop.permute.xlu0 %1494 }
 0x261   :  { %16159 = vst [vmem:[#allocation150_spill] sm:$0xff] %v10363_v24  ;;  %16160 = vst [vmem:[#allocation151_spill] sm:$0xff] %v10365_v63 }
 0x262   :  { %1944 = vrot.lane.b32.xlu1 %v10199_v57, %s9047_s11  ;;  %1859 = vrot.lane.b32.xlu0 %v10291_v26, %s9046_s10 }
 0x264   :  { %v10371_v62 = vpop.permute.xlu1 %1500  ;;  %v10373_v5 = vpop.permute.xlu0 %1498 }
 0x265   :  { %16161 = vst [vmem:[#allocation152_spill] sm:$0xff] %v10371_v62  ;;  %16162 = vst [vmem:[#allocation153_spill] sm:$0xff] %v10373_v5 }
 0x266   :  { %1948 = vrot.lane.b32.xlu1 %v10209_v16, %s9047_s11  ;;  %1946 = vrot.lane.b32.xlu0 %v10211_v15, %s9047_s11 }
 0x268   :  { %v10379_v24 = vpop.permute.xlu1 %1504  ;;  %v10381_v63 = vpop.permute.xlu0 %1502 }
 0x269   :  { %16163 = vst [vmem:[#allocation154_spill] sm:$0xff] %v10379_v24  ;;  %16164 = vst [vmem:[#allocation155_spill] sm:$0xff] %v10381_v63 }
 0x26a   :  { %1952 = vrot.lane.b32.xlu1 %v10221_v21, %s9047_s11  ;;  %1950 = vrot.lane.b32.xlu0 %v10141_v53, %s9047_s11 }
 0x26c   :  { %v10387_v19 = vpop.permute.xlu1 %1508  ;;  %v10389_v62 = vpop.permute.xlu0 %1506 }
 0x26d   :  { %16165 = vst [vmem:[#allocation156_spill] sm:$0xff] %v10387_v19  ;;  %16166 = vst [vmem:[#allocation157_spill] sm:$0xff] %v10389_v62 }
 0x26e   :  { %1956 = vrot.lane.b32.xlu1 %v10231_v11, %s9047_s11  ;;  %1954 = vrot.lane.b32.xlu0 %v10233_v8, %s9047_s11 }
 0x270   :  { %v10395_v5 = vpop.permute.xlu1 %1595  ;;  %v10397_v24 = vpop.permute.xlu0 %1593 }
 0x272   :  { %1960 = vrot.lane.b32.xlu1 %v10243_v7, %s9047_s11  ;;  %1958 = vrot.lane.b32.xlu0 %v10245_v48, %s9047_s11 }
 0x274   :  { %v10403_v63 = vpop.permute.xlu1 %1599  ;;  %v10405_v19 = vpop.permute.xlu0 %1597 }
 0x276   :  { %1964 = vrot.lane.b32.xlu1 %v10255_v9, %s9047_s11  ;;  %1962 = vrot.lane.b32.xlu0 %v10257_v50, %s9047_s11 }
 0x278   :  { %v10411_v62 = vpop.permute.xlu1 %1603  ;;  %v10413_v27 = vpop.permute.xlu0 %1601 }
 0x279   :  { %16167 = vst [vmem:[#allocation158_spill] sm:$0xff] %v10411_v62  ;;  %16168 = vst [vmem:[#allocation159_spill] sm:$0xff] %v10413_v27 }
 0x27a   :  { %1968 = vrot.lane.b32.xlu1 %v10267_v3, %s9047_s11  ;;  %1966 = vrot.lane.b32.xlu0 %v10269_v6, %s9047_s11 }
 0x27c   :  { %v10419_v18 = vpop.permute.xlu1 %1607  ;;  %v10421_v20 = vpop.permute.xlu0 %1605 }
 0x27d   :  { %16169 = vst [vmem:[#allocation160_spill] sm:$0xff] %v10419_v18  ;;  %16170 = vst [vmem:[#allocation161_spill] sm:$0xff] %v10421_v20 }
 0x27e   :  { %1972 = vrot.lane.b32.xlu1 %v10279_v51, %s9047_s11  ;;  %1970 = vrot.lane.b32.xlu0 %v10281_v0, %s9047_s11 }
 0x280   :  { %v10427_v56 = vpop.permute.xlu1 %1611  ;;  %v10429_v62 = vpop.permute.xlu0 %1609 }
 0x281   :  { %16171 = vst [vmem:[#allocation162_spill] sm:$0xff] %v10427_v56  ;;  %16172 = vst [vmem:[#allocation163_spill] sm:$0xff] %v10429_v62 }
 0x282   :  { %1976 = vrot.lane.b32.xlu1 %v10291_v26, %s9047_s11  ;;  %1974 = vrot.lane.b32.xlu0 %v10293_v29, %s9047_s11 }
 0x284   :  { %v10435_v41 = vpop.permute.xlu1 %1615  ;;  %v10437_v18 = vpop.permute.xlu0 %1613 }
 0x285   :  { %16173 = vst [vmem:[#allocation164_spill] sm:$0xff] %v10435_v41  ;;  %16174 = vst [vmem:[#allocation165_spill] sm:$0xff] %v10437_v18 }
 0x286   :  { %2063 = vrot.lane.b32.xlu1 %v10211_v15, %s9048_s12  ;;  %2061 = vrot.lane.b32.xlu0 %v10199_v57, %s9048_s12 }
 0x288   :  { %v10443_v56 = vpop.permute.xlu1 %1619  ;;  %v10445_v62 = vpop.permute.xlu0 %1617 }
 0x289   :  { %16175 = vst [vmem:[#allocation166_spill] sm:$0xff] %v10443_v56  ;;  %16176 = vst [vmem:[#allocation167_spill] sm:$0xff] %v10445_v62 }
 0x28a   :  { %2067 = vrot.lane.b32.xlu1 %v10141_v53, %s9048_s12  ;;  %2065 = vrot.lane.b32.xlu0 %v10209_v16, %s9048_s12 }
 0x28c   :  { %v10451_v41 = vpop.permute.xlu1 %1623  ;;  %v10453_v18 = vpop.permute.xlu0 %1621 }
 0x28d   :  { %16177 = vst [vmem:[#allocation168_spill] sm:$0xff] %v10451_v41  ;;  %16178 = vst [vmem:[#allocation169_spill] sm:$0xff] %v10453_v18 }
 0x28e   :  { %2071 = vrot.lane.b32.xlu1 %v10233_v8, %s9048_s12  ;;  %2069 = vrot.lane.b32.xlu0 %v10221_v21, %s9048_s12 }
 0x290   :  { %v10459_v20 = vpop.permute.xlu1 %1710  ;;  %v10461_v56 = vpop.permute.xlu0 %1625 }
 0x291   :  { %16179 = vst [vmem:[#allocation170_spill] sm:$0xff] %v10461_v56 }
 0x292   :  { %2075 = vrot.lane.b32.xlu1 %v10245_v48, %s9048_s12  ;;  %2073 = vrot.lane.b32.xlu0 %v10231_v11, %s9048_s12 }
 0x294   :  { %v10467_v62 = vpop.permute.xlu1 %1714  ;;  %v10469_v41 = vpop.permute.xlu0 %1712 }
 0x296   :  { %2079 = vrot.lane.b32.xlu1 %v10257_v50, %s9048_s12  ;;  %2077 = vrot.lane.b32.xlu0 %v10243_v7, %s9048_s12 }
 0x298   :  { %v10475_v18 = vpop.permute.xlu1 %1718  ;;  %v10477_v40 = vpop.permute.xlu0 %1716 }
 0x299   :  { %16180 = vst [vmem:[#allocation171_spill] sm:$0xff] %v10475_v18 }
 0x29a   :  { %2083 = vrot.lane.b32.xlu1 %v10269_v6, %s9048_s12  ;;  %2081 = vrot.lane.b32.xlu0 %v10255_v9, %s9048_s12 }
 0x29c   :  { %v10483_v56 = vpop.permute.xlu1 %1722  ;;  %v10485_v23 = vpop.permute.xlu0 %1720 }
 0x29d   :  { %16181 = vst [vmem:[#allocation172_spill] sm:$0xff] %v10483_v56  ;;  %16182 = vst [vmem:[#allocation173_spill] sm:$0xff] %v10485_v23 }
 0x29e   :  { %2087 = vrot.lane.b32.xlu1 %v10281_v0, %s9048_s12  ;;  %2085 = vrot.lane.b32.xlu0 %v10267_v3, %s9048_s12 }
 0x2a0   :  { %v10491_v32 = vpop.permute.xlu1 %1726  ;;  %v10493_v49 = vpop.permute.xlu0 %1724 }
 0x2a1   :  { %16183 = vst [vmem:[#allocation174_spill] sm:$0xff] %v10491_v32  ;;  %16184 = vst [vmem:[#allocation175_spill] sm:$0xff] %v10493_v49 }
 0x2a2   :  { %2091 = vrot.lane.b32.xlu1 %v10293_v29, %s9048_s12  ;;  %2089 = vrot.lane.b32.xlu0 %v10279_v51, %s9048_s12 }
 0x2a4   :  { %v10499_v58 = vpop.permute.xlu1 %1730  ;;  %v10501_v56 = vpop.permute.xlu0 %1728 }
 0x2a5   :  { %16185 = vst [vmem:[#allocation176_spill] sm:$0xff] %v10499_v58  ;;  %16186 = vst [vmem:[#allocation177_spill] sm:$0xff] %v10501_v56 }
 0x2a6   :  { %2178 = vrot.lane.b32.xlu1 %v10199_v57, %s9049_s13  ;;  %2093 = vrot.lane.b32.xlu0 %v10291_v26, %s9048_s12 }
 0x2a8   :  { %v10507_v32 = vpop.permute.xlu1 %1734  ;;  %v10509_v49 = vpop.permute.xlu0 %1732 }
 0x2a9   :  { %16187 = vst [vmem:[#allocation178_spill] sm:$0xff] %v10507_v32  ;;  %16188 = vst [vmem:[#allocation179_spill] sm:$0xff] %v10509_v49 }
 0x2aa   :  { %2182 = vrot.lane.b32.xlu1 %v10209_v16, %s9049_s13  ;;  %2180 = vrot.lane.b32.xlu0 %v10211_v15, %s9049_s13 }
 0x2ac   :  { %v10515_v58 = vpop.permute.xlu1 %1738  ;;  %v10517_v56 = vpop.permute.xlu0 %1736 }
 0x2ad   :  { %16189 = vst [vmem:[#allocation180_spill] sm:$0xff] %v10515_v58  ;;  %16190 = vst [vmem:[#allocation181_spill] sm:$0xff] %v10517_v56 }
 0x2ae   :  { %2186 = vrot.lane.b32.xlu1 %v10221_v21, %s9049_s13  ;;  %2184 = vrot.lane.b32.xlu0 %v10141_v53, %s9049_s13 }
 0x2b0   :  { %v10523_v23 = vpop.permute.xlu1 %1742  ;;  %v10525_v32 = vpop.permute.xlu0 %1740 }
 0x2b1   :  { %16191 = vst [vmem:[#allocation182_spill] sm:$0xff] %v10523_v23  ;;  %16192 = vst [vmem:[#allocation183_spill] sm:$0xff] %v10525_v32 }
 0x2b2   :  { %2190 = vrot.lane.b32.xlu1 %v10231_v11, %s9049_s13  ;;  %2188 = vrot.lane.b32.xlu0 %v10233_v8, %s9049_s13 }
 0x2b4   :  { %v10531_v49 = vpop.permute.xlu1 %1829  ;;  %v10533_v58 = vpop.permute.xlu0 %1827 }
 0x2b6   :  { %2194 = vrot.lane.b32.xlu1 %v10243_v7, %s9049_s13  ;;  %2192 = vrot.lane.b32.xlu0 %v10245_v48, %s9049_s13 }
 0x2b8   :  { %v10539_v56 = vpop.permute.xlu1 %1833  ;;  %v10541_v23 = vpop.permute.xlu0 %1831 }
 0x2ba   :  { %2198 = vrot.lane.b32.xlu1 %v10255_v9, %s9049_s13  ;;  %2196 = vrot.lane.b32.xlu0 %v10257_v50, %s9049_s13 }
 0x2bc   :  { %v10547_v32 = vpop.permute.xlu1 %1837  ;;  %v10549_v1 = vpop.permute.xlu0 %1835 }
 0x2bd   :  { %16193 = vst [vmem:[#allocation184_spill] sm:$0xff] %v10547_v32  ;;  %16194 = vst [vmem:[#allocation185_spill] sm:$0xff] %v10549_v1 }
 0x2be   :  { %2202 = vrot.lane.b32.xlu1 %v10267_v3, %s9049_s13  ;;  %2200 = vrot.lane.b32.xlu0 %v10269_v6, %s9049_s13 }
 0x2c0   :  { %v10555_v22 = vpop.permute.xlu1 %1841  ;;  %v10557_v46 = vpop.permute.xlu0 %1839 }
 0x2c1   :  { %16195 = vst [vmem:[#allocation186_spill] sm:$0xff] %v10555_v22  ;;  %16196 = vst [vmem:[#allocation187_spill] sm:$0xff] %v10557_v46 }
 0x2c2   :  { %2206 = vrot.lane.b32.xlu1 %v10279_v51, %s9049_s13  ;;  %2204 = vrot.lane.b32.xlu0 %v10281_v0, %s9049_s13 }
 0x2c4   :  { %v10563_v30 = vpop.permute.xlu1 %1845  ;;  %v10565_v32 = vpop.permute.xlu0 %1843 }
 0x2c5   :  { %16197 = vst [vmem:[#allocation188_spill] sm:$0xff] %v10563_v30  ;;  %16198 = vst [vmem:[#allocation189_spill] sm:$0xff] %v10565_v32 }
 0x2c6   :  { %2210 = vrot.lane.b32.xlu1 %v10291_v26, %s9049_s13  ;;  %2208 = vrot.lane.b32.xlu0 %v10293_v29, %s9049_s13 }
 0x2c8   :  { %v10571_v39 = vpop.permute.xlu1 %1849  ;;  %v10573_v22 = vpop.permute.xlu0 %1847 }
 0x2c9   :  { %16199 = vst [vmem:[#allocation190_spill] sm:$0xff] %v10571_v39  ;;  %16200 = vst [vmem:[#allocation191_spill] sm:$0xff] %v10573_v22 }
 0x2ca   :  { %2297 = vrot.lane.b32.xlu1 %v10211_v15, %s15742_s14  ;;  %2295 = vrot.lane.b32.xlu0 %v10199_v57, %s15742_s14 }
 0x2cc   :  { %v10579_v30 = vpop.permute.xlu1 %1853  ;;  %v10581_v32 = vpop.permute.xlu0 %1851 }
 0x2cd   :  { %16201 = vst [vmem:[#allocation192_spill] sm:$0xff] %v10579_v30  ;;  %16202 = vst [vmem:[#allocation193_spill] sm:$0xff] %v10581_v32 }
 0x2ce   :  { %2301 = vrot.lane.b32.xlu1 %v10141_v53, %s15742_s14  ;;  %2299 = vrot.lane.b32.xlu0 %v10209_v16, %s15742_s14 }
 0x2d0   :  { %v10587_v39 = vpop.permute.xlu1 %1857  ;;  %v10589_v22 = vpop.permute.xlu0 %1855 }
 0x2d1   :  { %16203 = vst [vmem:[#allocation194_spill] sm:$0xff] %v10587_v39  ;;  %16204 = vst [vmem:[#allocation195_spill] sm:$0xff] %v10589_v22 }
 0x2d2   :  { %2305 = vrot.lane.b32.xlu1 %v10233_v8, %s15742_s14  ;;  %2303 = vrot.lane.b32.xlu0 %v10221_v21, %s15742_s14 }
 0x2d4   :  { %v10595_v46 = vpop.permute.xlu1 %1944  ;;  %v10597_v30 = vpop.permute.xlu0 %1859 }
 0x2d5   :  { %16205 = vst [vmem:[#allocation196_spill] sm:$0xff] %v10597_v30 }
 0x2d6   :  { %2309 = vrot.lane.b32.xlu1 %v10245_v48, %s15742_s14  ;;  %2307 = vrot.lane.b32.xlu0 %v10231_v11, %s15742_s14 }
 0x2d8   :  { %v10603_v32 = vpop.permute.xlu1 %1948  ;;  %v10605_v39 = vpop.permute.xlu0 %1946 }
 0x2da   :  { %2313 = vrot.lane.b32.xlu1 %v10257_v50, %s15742_s14  ;;  %2311 = vrot.lane.b32.xlu0 %v10243_v7, %s15742_s14 }
 0x2dc   :  { %v10611_v22 = vpop.permute.xlu1 %1952  ;;  %v10613_v36 = vpop.permute.xlu0 %1950 }
 0x2dd   :  { %16206 = vst [vmem:[#allocation197_spill] sm:$0xff] %v10611_v22 }
 0x2de   :  { %2317 = vrot.lane.b32.xlu1 %v10269_v6, %s15742_s14  ;;  %2315 = vrot.lane.b32.xlu0 %v10255_v9, %s15742_s14 }
 0x2e0   :  { %v10619_v30 = vpop.permute.xlu1 %1956  ;;  %v10621_v61 = vpop.permute.xlu0 %1954 }
 0x2e1   :  { %16207 = vst [vmem:[#allocation198_spill] sm:$0xff] %v10619_v30  ;;  %16208 = vst [vmem:[#allocation199_spill] sm:$0xff] %v10621_v61 }
 0x2e2   :  { %2321 = vrot.lane.b32.xlu1 %v10281_v0, %s15742_s14  ;;  %2319 = vrot.lane.b32.xlu0 %v10267_v3, %s15742_s14 }
 0x2e4   :  { %v10627_v52 = vpop.permute.xlu1 %1960  ;;  %v10629_v34 = vpop.permute.xlu0 %1958 }
 0x2e5   :  { %16209 = vst [vmem:[#allocation200_spill] sm:$0xff] %v10627_v52  ;;  %16210 = vst [vmem:[#allocation201_spill] sm:$0xff] %v10629_v34 }
 0x2e6   :  { %2325 = vrot.lane.b32.xlu1 %v10293_v29, %s15742_s14  ;;  %2323 = vrot.lane.b32.xlu0 %v10279_v51, %s15742_s14 }
 0x2e8   :  { %v10635_v14 = vpop.permute.xlu1 %1964  ;;  %v10637_v30 = vpop.permute.xlu0 %1962 }
 0x2e9   :  { %16211 = vst [vmem:[#allocation202_spill] sm:$0xff] %v10635_v14  ;;  %16212 = vst [vmem:[#allocation203_spill] sm:$0xff] %v10637_v30 }
 0x2ea   :  { %2412 = vrot.lane.b32.xlu1 %v10199_v57, %s15754_s15  ;;  %2327 = vrot.lane.b32.xlu0 %v10291_v26, %s15742_s14  ;;  %s9058_s14 = smov 35  }
 0x2ec   :  { %v10643_v52 = vpop.permute.xlu1 %1968  ;;  %v10645_v34 = vpop.permute.xlu0 %1966 }
 0x2ed   :  { %16213 = vst [vmem:[#allocation204_spill] sm:$0xff] %v10643_v52  ;;  %16214 = vst [vmem:[#allocation205_spill] sm:$0xff] %v10645_v34 }
 0x2ee   :  { %2416 = vrot.lane.b32.xlu1 %v10209_v16, %s15754_s15  ;;  %2414 = vrot.lane.b32.xlu0 %v10211_v15, %s15754_s15 }
 0x2f0   :  { %v10651_v14 = vpop.permute.xlu1 %1972  ;;  %v10653_v30 = vpop.permute.xlu0 %1970 }
 0x2f1   :  { %16215 = vst [vmem:[#allocation206_spill] sm:$0xff] %v10651_v14  ;;  %16216 = vst [vmem:[#allocation207_spill] sm:$0xff] %v10653_v30 }
 0x2f2   :  { %2420 = vrot.lane.b32.xlu1 %v10221_v21, %s15754_s15  ;;  %2418 = vrot.lane.b32.xlu0 %v10141_v53, %s15754_s15 }
 0x2f4   :  { %v10659_v57 = vpop.permute.xlu1 %1976  ;;  %v10661_v52 = vpop.permute.xlu0 %1974 }
 0x2f5   :  { %16217 = vst [vmem:[#allocation208_spill] sm:$0xff] %v10659_v57  ;;  %16218 = vst [vmem:[#allocation209_spill] sm:$0xff] %v10661_v52 }
 0x2f6   :  { %2424 = vrot.lane.b32.xlu1 %v10231_v11, %s15754_s15  ;;  %2422 = vrot.lane.b32.xlu0 %v10233_v8, %s15754_s15 }
 0x2f8   :  { %v2064_v34 = vpop.permute.xlu1 %2063  ;;  %v2062_v14 = vpop.permute.xlu0 %2061 }
 0x2fa   :  { %2428 = vrot.lane.b32.xlu1 %v10243_v7, %s15754_s15  ;;  %2426 = vrot.lane.b32.xlu0 %v10245_v48, %s15754_s15 }
 0x2fc   :  { %v10671_v30 = vpop.permute.xlu1 %2067  ;;  %v10673_v61 = vpop.permute.xlu0 %2065 }
 0x2fe   :  { %2432 = vrot.lane.b32.xlu1 %v10255_v9, %s15754_s15  ;;  %2430 = vrot.lane.b32.xlu0 %v10257_v50, %s15754_s15 }
 0x300   :  { %v10679_v52 = vpop.permute.xlu1 %2071  ;;  %v10681_v57 = vpop.permute.xlu0 %2069 }
 0x301   :  { %16219 = vst [vmem:[#allocation210_spill] sm:$0xff] %v10679_v52  ;;  %16220 = vst [vmem:[#allocation211_spill] sm:$0xff] %v10681_v57 }
 0x302   :  { %2436 = vrot.lane.b32.xlu1 %v10267_v3, %s15754_s15  ;;  %2434 = vrot.lane.b32.xlu0 %v10269_v6, %s15754_s15 }
 0x304   :  { %v10687_v35 = vpop.permute.xlu1 %2075  ;;  %v10689_v47 = vpop.permute.xlu0 %2073 }
 0x305   :  { %16221 = vst [vmem:[#allocation212_spill] sm:$0xff] %v10687_v35  ;;  %16222 = vst [vmem:[#allocation213_spill] sm:$0xff] %v10689_v47 }
 0x306   :  { %2440 = vrot.lane.b32.xlu1 %v10279_v51, %s15754_s15  ;;  %2438 = vrot.lane.b32.xlu0 %v10281_v0, %s15754_s15 }
 0x308   :  { %v10695_v60 = vpop.permute.xlu1 %2079  ;;  %v10697_v52 = vpop.permute.xlu0 %2077 }
 0x309   :  { %16223 = vst [vmem:[#allocation214_spill] sm:$0xff] %v10695_v60  ;;  %16224 = vst [vmem:[#allocation215_spill] sm:$0xff] %v10697_v52 }
 0x30a   :  { %2444 = vrot.lane.b32.xlu1 %v10291_v26, %s15754_s15  ;;  %2442 = vrot.lane.b32.xlu0 %v10293_v29, %s15754_s15  ;;  %s9059_s15 = smov 34  }
 0x30c   :  { %v10703_v59 = vpop.permute.xlu1 %2083  ;;  %v10705_v35 = vpop.permute.xlu0 %2081 }
 0x30d   :  { %16225 = vst [vmem:[#allocation216_spill] sm:$0xff] %v10703_v59  ;;  %16226 = vst [vmem:[#allocation217_spill] sm:$0xff] %v10705_v35 }
 0x30e   :  { %2531 = vrot.lane.b32.xlu1 %v10209_v16, %s15773_s16  ;;  %2529 = vrot.lane.b32.xlu0 %v10211_v15, %s15773_s16 }
 0x310   :  { %v10711_v60 = vpop.permute.xlu1 %2087  ;;  %v10713_v52 = vpop.permute.xlu0 %2085 }
 0x311   :  { %16227 = vst [vmem:[#allocation218_spill] sm:$0xff] %v10711_v60  ;;  %16228 = vst [vmem:[#allocation219_spill] sm:$0xff] %v10713_v52 }
 0x312   :  { %2535 = vrot.lane.b32.xlu1 %v10221_v21, %s15773_s16  ;;  %2533 = vrot.lane.b32.xlu0 %v10141_v53, %s15773_s16 }
 0x314   :  { %v10719_v59 = vpop.permute.xlu1 %2091  ;;  %v10721_v35 = vpop.permute.xlu0 %2089 }
 0x315   :  { %16229 = vst [vmem:[#allocation220_spill] sm:$0xff] %v10719_v59  ;;  %16230 = vst [vmem:[#allocation221_spill] sm:$0xff] %v10721_v35 }
 0x316   :  { %2539 = vrot.lane.b32.xlu1 %v10231_v11, %s15773_s16  ;;  %2537 = vrot.lane.b32.xlu0 %v10233_v8, %s15773_s16 }
 0x318   :  { %v2179_v47 = vpop.permute.xlu1 %2178  ;;  %v10727_v60 = vpop.permute.xlu0 %2093 }
 0x319   :  { %16231 = vst [vmem:[#allocation222_spill] sm:$0xff] %v10727_v60  ;;  %v2096_v60 = vsel %vm2095_vm4, %v2062_v14, %v2064_v34  ;;  %v1863_v14 = vsel %vm1861_vm6, %v10531_v49, %v10541_v23 }
 0x31a   :  { %2543 = vrot.lane.b32.xlu1 %v10243_v7, %s15773_s16  ;;  %2541 = vrot.lane.b32.xlu0 %v10245_v48, %s15773_s16  ;;  %v2097_v48 = vsel %vm2095_vm4, %v2064_v34, %v10673_v61  ;;  %v1979_v34 = vsel %vm1978_vm5, %v10595_v46, %v10605_v39  ;;  %v2098_v46 = vsel %vm2095_vm4, %v10673_v61, %v10671_v30 }
 0x31b   :  { %v1981_v61 = vsel %vm1978_vm5, %v10603_v32, %v10613_v36 }
 0x31c   :  { %v2183_v21 = vpop.permute.xlu1 %2182  ;;  %v2181_v53 = vpop.permute.xlu0 %2180 }
 0x31d   :  { %v2214_v59 = vsel %vm2212_vm3, %v2181_v53, %v2183_v21  ;;  %v2213_v35 = vsel %vm2212_vm3, %v2179_v47, %v2181_v53  ;;  %v1397_v53 = vsel %vm15840_vm10, %v10251_v12, %v10265_v4 }
 0x31e   :  { %2547 = vrot.lane.b32.xlu1 %v10255_v9, %s15773_s16  ;;  %2545 = vrot.lane.b32.xlu0 %v10257_v50, %s15773_s16 }
 0x31f   :  { %3992 = vmatprep.subr.mxu0 %v2214_v59 }
 0x320   :  { %3993 = vmatpush1.msra.mxu0 %v2213_v35  ;;  %v10739_v7 = vpop.permute.xlu1 %2186  ;;  %v2185_v11 = vpop.permute.xlu0 %2184  ;;  %v1980_v35 = vsel %vm1978_vm5, %v10605_v39, %v10603_v32  ;;  %v1862_v39 = vsel %vm1861_vm6, %v10533_v58, %v10531_v49  ;;  %v1982_v49 = vsel %vm1978_vm5, %v10613_v36, %v10611_v22  ;;  %v1864_v32 = vsel %vm1861_vm6, %v10541_v23, %v10539_v56 }
 0x321   :  { %3994 = vmatprep.subr.mxu0 %v2097_v48  ;;  %v2216_v47 = vsel %vm2212_vm3, %v2185_v11, %v10739_v7  ;;  %v2215_v50 = vsel %vm2212_vm3, %v2183_v21, %v2185_v11  ;;  %v1512_v36 = vsel %vm15838_vm9, %v10333_v38, %v10331_v10  ;;  %v1748_v23 = vsel %vm1744_vm7, %v10477_v40, %v10475_v18  ;;  %v16241_v11 = vld [vmem:[#allocation119_spill] sm:$0xff] }
 0x322   :  { %3995 = vmatpush1.msra.mxu0 %v2096_v60  ;;  %2551 = vrot.lane.b32.xlu1 %v10267_v3, %s15773_s16  ;;  %v1746_v60 = vsel %vm1744_vm7, %v10469_v41, %v10467_v62 }
 0x323   :  { %2549 = vrot.lane.b32.xlu0 %v10269_v6, %s15773_s16  ;;  %3996 = vmatprep.subr.mxu0 %v1980_v35  ;;  %v2099_v6 = vsel %vm2095_vm4, %v10671_v30, %v10681_v57  ;;  %v1745_v30 = vsel %vm1744_vm7, %v10459_v20, %v10469_v41  ;;  %v1865_v20 = vsel %vm1861_vm6, %v10539_v56, %v10549_v1 }
 0x324   :  { %4063 = vmatprep.subr.mxu1 %v2216_v47  ;;  %3997 = vmatpush1.msra.mxu0 %v1979_v34  ;;  %v10757_v9 = vpop.permute.xlu1 %2190  ;;  %v10762_v59 = vpop.permute.xlu0 %2188  ;;  %v1628_v41 = vsel %vm15839_vm8, %v10397_v24, %v10395_v5  ;;  %v1511_v24 = vsel %vm15838_vm9, %v10323_v43, %v10333_v38  ;;  %v1395_v56 = vsel %vm15840_vm10, %v10239_v13, %v10253_v17  ;;  %v10834_v43 = vld [vmem:[#allocation2 + $0x88] sm:$0xff]  ;;  %v16244_v34 = vld [vmem:[#allocation72_spill] sm:$0xff] }
 0x325   :  { %4064 = vmatpush1.msra.mxu1 %v2215_v50  ;;  %3998 = vmatprep.subr.mxu0 %v1863_v14  ;;  %v1394_v38 = vsel %vm15840_vm10, %v10241_v2, %v10239_v13  ;;  %v1278_v2 = vsel %vm15841_vm11, %v10165_v28, %v10163_v55  ;;  %v1277_v13 = vsel %vm15841_vm11, %v10155_v54, %v10165_v28  ;;  %v16243_v50 = vld [vmem:[#allocation75_spill] sm:$0xff] }
 0x326   :  { %4065 = vmatprep.subr.mxu1 %v2099_v6  ;;  %3999 = vmatpush1.msra.mxu0 %v1862_v39  ;;  %v1160_v28 = vsel %vm15842_vm12, %v10091_v31, %v10089_v45  ;;  %v1044_v31 = vsel %vm15832_vm13, %v10027_v37, %v10025_v33  ;;  %v1279_v35 = vsel %vm15841_vm11, %v10163_v55, %v16241_v11  ;;  %v16247_v39 = vld [vmem:[#allocation106_spill] sm:$0xff] }
 0x327   :  { %4066 = vmatpush1.msra.mxu1 %v2098_v46  ;;  %2555 = vrot.lane.b32.xlu1 %v10279_v51, %s15773_s16  ;;  %v927_v14 = vsel %vm15831_vm14, %v16244_v34, %v16243_v50  ;;  %v16248_v46 = vld [vmem:[#allocation104_spill] sm:$0xff] }
 0x328   :  { %2553 = vrot.lane.b32.xlu0 %v10281_v0, %s15773_s16  ;;  %4000 = vmatprep.subr.mxu0 %v1746_v60  ;;  %v10786_v58 = vpop.permute.xlu1 %2194  ;;  %v10788_v51 = vpop.permute.xlu0 %2192  ;;  %v1629_v0 = vsel %vm15839_vm8, %v10395_v5, %v10405_v19  ;;  %v16249_v60 = vld [vmem:[#allocation73_spill] sm:$0xff]  ;;  %v1162_v55 = vsel %vm15842_vm12, %v10099_v44, %v16248_v46 }
 0x329   :  { %16232 = vst [vmem:[#allocation223_spill] sm:$0xff] %v10786_v58  ;;  %16233 = vst [vmem:[#allocation224_spill] sm:$0xff] %v10788_v51  ;;  %4067 = vmatprep.subr.mxu1 %v1982_v49  ;;  %4001 = vmatpush1.msra.mxu0 %v1745_v30  ;;  %v926_v49 = vsel %vm15831_vm14, %v16249_v60, %v16244_v34  ;;  %v10911_v30 = vld [vmem:[#allocation2 + $0x20] sm:$0xff] }
 0x32a   :  { %4068 = vmatpush1.msra.mxu1 %v1981_v61  ;;  %4002 = vmatprep.subr.mxu0 %v1629_v0  ;;  %v16250_v61 = vld [vmem:[#allocation56_spill] sm:$0xff]  ;;  %v16251_v0 = vld [vmem:[#allocation57_spill] sm:$0xff] }
 0x32b   :  { %4069 = vmatprep.subr.mxu1 %v1865_v20  ;;  %4003 = vmatpush1.msra.mxu0 %v1628_v41  ;;  %v810_v20 = vsel %vm15830_vm15, %v16251_v0, %v16250_v61  ;;  %v16252_v41 = vld [vmem:[#allocation90_spill] sm:$0xff] }
 0x32c   :  { %4070 = vmatpush1.msra.mxu1 %v1864_v32  ;;  %2559 = vrot.lane.b32.xlu1 %v10291_v26, %s15773_s16  ;;  %v10810_v3 = vpop.permute.xlu1 %2198  ;;  %v10812_v21 = vpop.permute.xlu0 %2196  ;;  %v1747_v26 = vsel %vm1744_vm7, %v10467_v62, %v10477_v40  ;;  %v1630_v40 = vsel %vm15839_vm8, %v10405_v19, %v10403_v63  ;;  %v1514_v19 = vsel %vm15838_vm9, %v10341_v42, %v10339_v25  ;;  %v16253_v32 = vld [vmem:[#allocation91_spill] sm:$0xff] }
 0x32d   :  { %16234 = vst [vmem:[#allocation225_spill] sm:$0xff] %v10810_v3  ;;  %16235 = vst [vmem:[#allocation226_spill] sm:$0xff] %v10812_v21  ;;  %2557 = vrot.lane.b32.xlu0 %v10293_v29, %s15773_s16  ;;  %4004 = vmatprep.subr.mxu0 %v1512_v36  ;;  %v1631_v29 = vsel %vm15839_vm8, %v10403_v63, %v10413_v27  ;;  %v1513_v63 = vsel %vm15838_vm9, %v10331_v10, %v10341_v42  ;;  %v10875_v10 = vld [vmem:[#allocation2 + $0x18] sm:$0xff] }
 0x32e   :  { %4071 = vmatprep.subr.mxu1 %v1748_v23  ;;  %4005 = vmatpush1.msra.mxu0 %v1511_v24  ;;  %v1396_v42 = vsel %vm15840_vm10, %v10253_v17, %v10251_v12  ;;  %v16242_v12 = vld [vmem:[#allocation88_spill] sm:$0xff]  ;;  %v1046_v36 = vsel %vm15832_vm13, %v16253_v32, %v16252_v41 }
 0x32f   :  { %4072 = vmatpush1.msra.mxu1 %v1747_v26  ;;  %4006 = vmatprep.subr.mxu0 %v1395_v56  ;;  %v1043_v17 = vsel %vm15832_vm13, %v16242_v12, %v10027_v37  ;;  %v1163_v37 = vsel %vm15842_vm12, %v16248_v46, %v16247_v39  ;;  %v1045_v26 = vsel %vm15832_vm13, %v10025_v33, %v16253_v32  ;;  %v16255_v56 = vld [vmem:[#allocation43_spill] sm:$0xff]  ;;  %v16262_v12 = vld [vmem:[#allocation58_spill] sm:$0xff]  ;;  %v16265_v46 = vld [vmem:[#allocation13_spill] sm:$0xff]  ;;  %vm15837_vm13 = vcmask 367616  }
 0x330   :  { %4073 = vmatprep.subr.mxu1 %v1631_v29  ;;  %4007 = vmatpush1.msra.mxu0 %v1394_v38  ;;  %v10839_v62 = vpop.permute.xlu1 %2202  ;;  %v10841_v5 = vpop.permute.xlu0 %2200  ;;  %v16256_v29 = vld [vmem:[#allocation40_spill] sm:$0xff] }
 0x331   :  { %16236 = vst [vmem:[#allocation227_spill] sm:$0xff] %v10839_v62  ;;  %16237 = vst [vmem:[#allocation228_spill] sm:$0xff] %v10841_v5  ;;  %4074 = vmatpush1.msra.mxu1 %v1630_v40  ;;  %2646 = vrot.lane.b32.xlu1 %v10211_v15, %s15779_s17  ;;  %v1161_v15 = vsel %vm15842_vm12, %v10089_v45, %v10099_v44  ;;  %v16240_v45 = vld [vmem:[#allocation118_spill] sm:$0xff]  ;;  %v16254_v44 = vld [vmem:[#allocation8_spill] sm:$0xff]  ;;  %v693_v38 = vsel %vm15827_vm2, %v16256_v29, %v16255_v56 }
 0x332   :  { %2561 = vrot.lane.b32.xlu0 %v10834_v43, %s15773_s16  ;;  %4008 = vmatprep.subr.mxu0 %v1278_v2  ;;  %v1280_v47 = vsel %vm15841_vm11, %v16241_v11, %v16240_v45  ;;  %v809_v23 = vsel %vm15830_vm15, %v16254_v44, %v16251_v0  ;;  %v16257_v40 = vld [vmem:[#allocation77_spill] sm:$0xff]  ;;  %v16258_v2 = vld [vmem:[#allocation74_spill] sm:$0xff]  ;;  %s9060_s16 = smov 33  }
 0x333   :  { %4075 = vmatprep.subr.mxu1 %v1514_v19  ;;  %4009 = vmatpush1.msra.mxu0 %v1277_v13  ;;  %v929_v19 = vsel %vm15831_vm14, %v16258_v2, %v16257_v40  ;;  %v16259_v13 = vld [vmem:[#allocation9_spill] sm:$0xff]  ;;  %v928_v33 = vsel %vm15831_vm14, %v16243_v50, %v16258_v2  ;;  %v16264_v50 = vld [vmem:[#allocation4_spill] sm:$0xff]  ;;  %vm15836_vm14 = vcmask 359424  }
 0x334   :  { %4076 = vmatpush1.msra.mxu1 %v1513_v63  ;;  %4010 = vmatprep.subr.mxu0 %v1161_v15  ;;  %v10868_v54 = vpop.permute.xlu1 %2206  ;;  %v10870_v48 = vpop.permute.xlu0 %2204  ;;  %v692_v63 = vsel %vm15827_vm2, %v16259_v13, %v16256_v29  ;;  %v10943_v15 = vld [vmem:[#allocation2 + $0x38] sm:$0xff]  ;;  %v16271_v29 = vld [vmem:[#allocation28_spill] sm:$0xff] }
 0x335   :  { %16238 = vst [vmem:[#allocation229_spill] sm:$0xff] %v10868_v54  ;;  %16239 = vst [vmem:[#allocation230_spill] sm:$0xff] %v10870_v48  ;;  %4077 = vmatprep.subr.mxu1 %v1397_v53  ;;  %4011 = vmatpush1.msra.mxu0 %v1160_v28  ;;  %v10947_v53 = vld [vmem:[#allocation2 + $0x30] sm:$0xff]  ;;  %v16260_v28 = vld [vmem:[#allocation26_spill] sm:$0xff] }
 0x336   :  { %4078 = vmatpush1.msra.mxu1 %v1396_v42  ;;  %2650 = vrot.lane.b32.xlu1 %v10875_v10, %s15779_s17  ;;  %v16261_v42 = vld [vmem:[#allocation27_spill] sm:$0xff]  ;;  %v16274_v13 = vld [vmem:[#allocation12_spill] sm:$0xff] }
 0x337   :  { %2648 = vrot.lane.b32.xlu0 %v10209_v16, %s15779_s17  ;;  %4012 = vmatprep.subr.mxu0 %v1044_v31  ;;  %v576_v31 = vsel %vm15822_vm0, %v16261_v42, %v16260_v28  ;;  %v575_v34 = vsel %vm15822_vm0, %v16264_v50, %v16261_v42  ;;  %v11003_v42 = vld [vmem:[#allocation2 + $0x58] sm:$0xff] }
 0x338   :  { %4079 = vmatprep.subr.mxu1 %v1280_v47  ;;  %4013 = vmatpush1.msra.mxu0 %v1043_v17  ;;  %v10896_v16 = vpop.permute.xlu1 %2210  ;;  %v10898_v6 = vpop.permute.xlu0 %2208  ;;  %v16263_v17 = vld [vmem:[#allocation59_spill] sm:$0xff] }
 0x339   :  { %16245 = vst [vmem:[#allocation119_spill] sm:$0xff] %v10896_v16  ;;  %16246 = vst [vmem:[#allocation88_spill] sm:$0xff] %v10898_v6  ;;  %4080 = vmatpush1.msra.mxu1 %v1279_v35  ;;  %4014 = vmatprep.subr.mxu0 %v927_v14  ;;  %v812_v35 = vsel %vm15830_vm15, %v16263_v17, %v16262_v12  ;;  %v811_v14 = vsel %vm15830_vm15, %v16250_v61, %v16263_v17  ;;  %vm15835_vm15 = vcmask 351232  }
 0x33a   :  { %4081 = vmatprep.subr.mxu1 %v1163_v37  ;;  %4015 = vmatpush1.msra.mxu0 %v926_v49  ;;  %v16266_v37 = vld [vmem:[#allocation10_spill] sm:$0xff]  ;;  %v16267_v49 = vld [vmem:[#allocation45_spill] sm:$0xff] }
 0x33b   :  { %4082 = vmatpush1.msra.mxu1 %v1162_v55  ;;  %2654 = vrot.lane.b32.xlu1 %v10233_v8, %s15779_s17  ;;  %v459_v60 = vsel %vm15783_vm1, %v16266_v37, %v16265_v46  ;;  %v16268_v55 = vld [vmem:[#allocation42_spill] sm:$0xff] }
 0x33c   :  { %2652 = vrot.lane.b32.xlu0 %v10911_v30, %s15779_s17  ;;  %4016 = vmatprep.subr.mxu0 %v810_v20  ;;  %v10924_v8 = vpop.permute.xlu1 %2297  ;;  %v10926_v24 = vpop.permute.xlu0 %2295  ;;  %v695_v0 = vsel %vm15827_vm2, %v16268_v55, %v16267_v49  ;;  %v16269_v20 = vld [vmem:[#allocation5_spill] sm:$0xff]  ;;  %v694_v61 = vsel %vm15827_vm2, %v16255_v56, %v16268_v55  ;;  %v11035_v55 = vld [vmem:[#allocation2 + $0x70] sm:$0xff]  ;;  %vm15834_vm2 = vcmask 285696  }
 0x33d   :  { %4083 = vmatprep.subr.mxu1 %v1046_v36  ;;  %4017 = vmatpush1.msra.mxu0 %v809_v23  ;;  %v458_v32 = vsel %vm15783_vm1, %v16269_v20, %v16266_v37  ;;  %v10979_v36 = vld [vmem:[#allocation2 + $0x48] sm:$0xff] }
 0x33e   :  { %4084 = vmatpush1.msra.mxu1 %v1045_v26  ;;  %4018 = vmatprep.subr.mxu0 %v693_v38  ;;  %v10987_v26 = vld [vmem:[#allocation2 + $0x40] sm:$0xff]  ;;  %v16272_v38 = vld [vmem:[#allocation29_spill] sm:$0xff] }
 0x33f   :  { %4085 = vmatprep.subr.mxu1 %v929_v19  ;;  %4019 = vmatpush1.msra.mxu0 %v692_v63  ;;  %v578_v2 = vsel %vm15822_vm0, %v16272_v38, %v16271_v29  ;;  %v577_v56 = vsel %vm15822_vm0, %v16260_v28, %v16272_v38  ;;  %v16273_v19 = vld [vmem:[#allocation15_spill] sm:$0xff]  ;;  %v11011_v28 = vld [vmem:[#allocation2 + $0x50] sm:$0xff]  ;;  %vm15833_vm0 = vcmask 277504  }
 0x340   :  { %4086 = vmatpush1.msra.mxu1 %v928_v33  ;;  %2658 = vrot.lane.b32.xlu1 %v10943_v15, %s15779_s17  ;;  %v10952_v11 = vpop.permute.xlu1 %2301  ;;  %v10954_v47 = vpop.permute.xlu0 %2299  ;;  %v461_v63 = vsel %vm15783_vm1, %v16274_v13, %v16273_v19  ;;  %v460_v33 = vsel %vm15783_vm1, %v16265_v46, %v16274_v13  ;;  %v11027_v46 = vld [vmem:[#allocation2 + $0x78] sm:$0xff]  ;;  %vm15820_vm1 = vcmask 719872  }
 0x341   :  { %2656 = vrot.lane.b32.xlu0 %v10947_v53, %s15779_s17  ;;  %4020 = vmatprep.subr.mxu0 %v576_v31 }
 0x342   :  { %4087 = vmatprep.subr.mxu1 %v812_v35  ;;  %4021 = vmatpush1.msra.mxu0 %v575_v34  ;;  %v11015_v35 = vld [vmem:[#allocation2 + $0x68] sm:$0xff] }
 0x343   :  { %4088 = vmatpush1.msra.mxu1 %v811_v14  ;;  %4022 = vmatprep.subr.mxu0 %v459_v60  ;;  %v11023_v14 = vld [vmem:[#allocation2 + $0x60] sm:$0xff] }
 0x344   :  { %4089 = vmatprep.subr.mxu1 %v695_v0  ;;  %4023 = vmatpush1.msra.mxu0 %v458_v32  ;;  %v10981_v44 = vpop.permute.xlu1 %2305  ;;  %v10983_v23 = vpop.permute.xlu0 %2303  ;;  %v11045_v32 = vld [vmem:[#allocation2 + $0x80] sm:$0xff] }
 0x345   :  { %16270 = vst [vmem:[#allocation75_spill] sm:$0xff] %v10981_v44  ;;  %4090 = vmatpush1.msra.mxu1 %v694_v61  ;;  %2662 = vrot.lane.b32.xlu1 %v10979_v36, %s15779_s17  ;;  %v11049_v61 = vld [vmem:[#allocation2 + $0x10] sm:$0xff] }
 0x346   :  { %2660 = vrot.lane.b32.xlu0 %v10987_v26, %s15779_s17  ;;  %4091 = vmatprep.subr.mxu1 %v578_v2 }
 0x347   :  { %4092 = vmatpush1.msra.mxu1 %v577_v56  ;;  %v11057_v56 = vld [vmem:[#allocation2 + $0x8] sm:$0xff] }
 0x348   :  { %4093 = vmatprep.subr.mxu1 %v461_v63  ;;  %v11005_v31 = vpop.permute.xlu1 %2309  ;;  %v11007_v17 = vpop.permute.xlu0 %2307 }
 0x349   :  { %16275 = vst [vmem:[#allocation72_spill] sm:$0xff] %v11005_v31  ;;  %16276 = vst [vmem:[#allocation104_spill] sm:$0xff] %v11007_v17  ;;  %4094 = vmatpush1.msra.mxu1 %v460_v33  ;;  %2666 = vrot.lane.b32.xlu1 %v11003_v42, %s15779_s17 }
 0x34a   :  { %2664 = vrot.lane.b32.xlu0 %v11011_v28, %s15779_s17 }
 0x34c   :  { %v11017_v50 = vpop.permute.xlu1 %2313  ;;  %v11019_v34 = vpop.permute.xlu0 %2311 }
 0x34d   :  { %16277 = vst [vmem:[#allocation73_spill] sm:$0xff] %v11017_v50  ;;  %16278 = vst [vmem:[#allocation56_spill] sm:$0xff] %v11019_v34  ;;  %2670 = vrot.lane.b32.xlu1 %v11015_v35, %s15779_s17 }
 0x34e   :  { %2668 = vrot.lane.b32.xlu0 %v11023_v14, %s15779_s17 }
 0x350   :  { %v11029_v37 = vpop.permute.xlu1 %2317  ;;  %v11031_v60 = vpop.permute.xlu0 %2315 }
 0x351   :  { %16279 = vst [vmem:[#allocation57_spill] sm:$0xff] %v11029_v37  ;;  %16280 = vst [vmem:[#allocation91_spill] sm:$0xff] %v11031_v60  ;;  %2674 = vrot.lane.b32.xlu1 %v11027_v46, %s15779_s17 }
 0x352   :  { %2672 = vrot.lane.b32.xlu0 %v11035_v55, %s15779_s17 }
 0x354   :  { %v11039_v0 = vpop.permute.xlu1 %2321  ;;  %v11041_v20 = vpop.permute.xlu0 %2319 }
 0x355   :  { %16281 = vst [vmem:[#allocation8_spill] sm:$0xff] %v11039_v0  ;;  %16282 = vst [vmem:[#allocation43_spill] sm:$0xff] %v11041_v20  ;;  %2678 = vrot.lane.b32.xlu1 %v10834_v43, %s15779_s17  ;;  %v11075_v0 = vld [vmem:[#allocation2 + $0x28] sm:$0xff] }
 0x356   :  { %2676 = vrot.lane.b32.xlu0 %v11045_v32, %s15779_s17 }
 0x358   :  { %v11051_v38 = vpop.permute.xlu1 %2325  ;;  %v11053_v2 = vpop.permute.xlu0 %2323 }
 0x359   :  { %16283 = vst [vmem:[#allocation40_spill] sm:$0xff] %v11051_v38  ;;  %16284 = vst [vmem:[#allocation74_spill] sm:$0xff] %v11053_v2  ;;  %2765 = vrot.lane.b32.xlu1 %v11049_v61, %s15781_s18 }
 0x35a   :  { %2763 = vrot.lane.b32.xlu0 %v11057_v56, %s15781_s18 }
 0x35c   :  { %v11061_v13 = vpop.permute.xlu1 %2412  ;;  %v11063_v63 = vpop.permute.xlu0 %2327 }
 0x35d   :  { %16285 = vst [vmem:[#allocation9_spill] sm:$0xff] %v11063_v63  ;;  %2769 = vrot.lane.b32.xlu1 %v10911_v30, %s15781_s18 }
 0x35e   :  { %2767 = vrot.lane.b32.xlu0 %v10875_v10, %s15781_s18 }
 0x360   :  { %v11069_v33 = vpop.permute.xlu1 %2416  ;;  %v11071_v38 = vpop.permute.xlu0 %2414 }
 0x361   :  { %2773 = vrot.lane.b32.xlu1 %v10947_v53, %s15781_s18 }
 0x362   :  { %2771 = vrot.lane.b32.xlu0 %v11075_v0, %s15781_s18 }
 0x364   :  { %v11079_v2 = vpop.permute.xlu1 %2420  ;;  %v11081_v63 = vpop.permute.xlu0 %2418 }
 0x365   :  { %2777 = vrot.lane.b32.xlu1 %v10987_v26, %s15781_s18 }
 0x366   :  { %2775 = vrot.lane.b32.xlu0 %v10943_v15, %s15781_s18 }
 0x368   :  { %v11087_v6 = vpop.permute.xlu1 %2424  ;;  %v11089_v16 = vpop.permute.xlu0 %2422 }
 0x369   :  { %16286 = vst [vmem:[#allocation26_spill] sm:$0xff] %v11087_v6  ;;  %16287 = vst [vmem:[#allocation27_spill] sm:$0xff] %v11089_v16  ;;  %2781 = vrot.lane.b32.xlu1 %v11011_v28, %s15781_s18 }
 0x36a   :  { %2779 = vrot.lane.b32.xlu0 %v10979_v36, %s15781_s18 }
 0x36c   :  { %v11095_v37 = vpop.permute.xlu1 %2428  ;;  %v11097_v20 = vpop.permute.xlu0 %2426 }
 0x36d   :  { %16288 = vst [vmem:[#allocation59_spill] sm:$0xff] %v11095_v37  ;;  %16289 = vst [vmem:[#allocation4_spill] sm:$0xff] %v11097_v20  ;;  %2785 = vrot.lane.b32.xlu1 %v11023_v14, %s15781_s18 }
 0x36e   :  { %2783 = vrot.lane.b32.xlu0 %v11003_v42, %s15781_s18 }
 0x370   :  { %v11103_v48 = vpop.permute.xlu1 %2432  ;;  %v11105_v54 = vpop.permute.xlu0 %2430 }
 0x371   :  { %16290 = vst [vmem:[#allocation13_spill] sm:$0xff] %v11103_v48  ;;  %16291 = vst [vmem:[#allocation10_spill] sm:$0xff] %v11105_v54  ;;  %2789 = vrot.lane.b32.xlu1 %v11035_v55, %s15781_s18 }
 0x372   :  { %2787 = vrot.lane.b32.xlu0 %v11015_v35, %s15781_s18 }
 0x374   :  { %v11111_v50 = vpop.permute.xlu1 %2436  ;;  %v11113_v60 = vpop.permute.xlu0 %2434 }
 0x375   :  { %16292 = vst [vmem:[#allocation42_spill] sm:$0xff] %v11111_v50  ;;  %16293 = vst [vmem:[#allocation5_spill] sm:$0xff] %v11113_v60  ;;  %2793 = vrot.lane.b32.xlu1 %v11045_v32, %s15781_s18 }
 0x376   :  { %2791 = vrot.lane.b32.xlu0 %v11027_v46, %s15781_s18 }
 0x378   :  { %v11119_v52 = vpop.permute.xlu1 %2440  ;;  %v11121_v48 = vpop.permute.xlu0 %2438 }
 0x379   :  { %16294 = vst [vmem:[#allocation29_spill] sm:$0xff] %v11119_v52  ;;  %16295 = vst [vmem:[#allocation12_spill] sm:$0xff] %v11121_v48  ;;  %2880 = vrot.lane.b32.xlu1 %v11057_v56, %s15843_s19 }
 0x37a   :  { %2795 = vrot.lane.b32.xlu0 %v10834_v43, %s15781_s18 }
 0x37c   :  { %v11127_v50 = vpop.permute.xlu1 %2444  ;;  %v11129_v60 = vpop.permute.xlu0 %2442 }
 0x37d   :  { %16296 = vst [vmem:[#allocation231_spill] sm:$0xff] %v11127_v50  ;;  %16297 = vst [vmem:[#allocation232_spill] sm:$0xff] %v11129_v60  ;;  %2884 = vrot.lane.b32.xlu1 %v10875_v10, %s15843_s19 }
 0x37e   :  { %2882 = vrot.lane.b32.xlu0 %v11049_v61, %s15843_s19 }
 0x380   :  { %v11135_v52 = vpop.permute.xlu1 %2531  ;;  %v11137_v48 = vpop.permute.xlu0 %2529 }
 0x381   :  { %2888 = vrot.lane.b32.xlu1 %v11075_v0, %s15843_s19 }
 0x382   :  { %2886 = vrot.lane.b32.xlu0 %v10911_v30, %s15843_s19 }
 0x384   :  { %v11143_v54 = vpop.permute.xlu1 %2535  ;;  %v11145_v50 = vpop.permute.xlu0 %2533 }
 0x385   :  { %2892 = vrot.lane.b32.xlu1 %v10943_v15, %s15843_s19 }
 0x386   :  { %2890 = vrot.lane.b32.xlu0 %v10947_v53, %s15843_s19 }
 0x388   :  { %v11151_v60 = vpop.permute.xlu1 %2539  ;;  %v11153_v5 = vpop.permute.xlu0 %2537 }
 0x389   :  { %16298 = vst [vmem:[#allocation233_spill] sm:$0xff] %v11151_v60  ;;  %2896 = vrot.lane.b32.xlu1 %v10979_v36, %s15843_s19 }
 0x38a   :  { %2894 = vrot.lane.b32.xlu0 %v10987_v26, %s15843_s19 }
 0x38c   :  { %v11159_v62 = vpop.permute.xlu1 %2543  ;;  %v11161_v31 = vpop.permute.xlu0 %2541 }
 0x38d   :  { %16299 = vst [vmem:[#allocation234_spill] sm:$0xff] %v11159_v62  ;;  %16300 = vst [vmem:[#allocation235_spill] sm:$0xff] %v11161_v31  ;;  %2900 = vrot.lane.b32.xlu1 %v11003_v42, %s15843_s19 }
 0x38e   :  { %2898 = vrot.lane.b32.xlu0 %v11011_v28, %s15843_s19 }
 0x390   :  { %v11167_v34 = vpop.permute.xlu1 %2547  ;;  %v11169_v21 = vpop.permute.xlu0 %2545 }
 0x391   :  { %16301 = vst [vmem:[#allocation236_spill] sm:$0xff] %v11167_v34  ;;  %16302 = vst [vmem:[#allocation237_spill] sm:$0xff] %v11169_v21  ;;  %2904 = vrot.lane.b32.xlu1 %v11015_v35, %s15843_s19 }
 0x392   :  { %2902 = vrot.lane.b32.xlu0 %v11023_v14, %s15843_s19 }
 0x394   :  { %v11175_v3 = vpop.permute.xlu1 %2551 }
 0x395   :  { %16303 = vst [vmem:[#allocation238_spill] sm:$0xff] %v11175_v3  ;;  %2908 = vrot.lane.b32.xlu1 %v11027_v46, %s15843_s19  ;;  %v11179_v20 = vpop.permute.xlu0 %2549 }
 0x396   :  { %16304 = vst [vmem:[#allocation239_spill] sm:$0xff] %v11179_v20  ;;  %2906 = vrot.lane.b32.xlu0 %v11035_v55, %s15843_s19 }
 0x399   :  { %2912 = vrot.lane.b32.xlu1 %v10834_v43, %s15843_s19  ;;  %v11185_v34 = vpop.permute.xlu1 %2555 }
 0x39a   :  { %16305 = vst [vmem:[#allocation240_spill] sm:$0xff] %v11185_v34  ;;  %2910 = vrot.lane.b32.xlu0 %v11045_v32, %s15843_s19  ;;  %v11189_v37 = vpop.permute.xlu0 %2553 }
 0x39b   :  { %16306 = vst [vmem:[#allocation241_spill] sm:$0xff] %v11189_v37 }
 0x39d   :  { %2999 = vrot.lane.b32.xlu1 %v11049_v61, %s15845_s20 }
 0x39e   :  { %2997 = vrot.lane.b32.xlu0 %v11057_v56, %s15845_s20  ;;  %v11195_v3 = vpop.permute.xlu1 %2559 }
 0x39f   :  { %16307 = vst [vmem:[#allocation242_spill] sm:$0xff] %v11195_v3  ;;  %v11197_v20 = vpop.permute.xlu0 %2557 }
 0x3a0   :  { %16308 = vst [vmem:[#allocation243_spill] sm:$0xff] %v11197_v20 }
 0x3a1   :  { %3003 = vrot.lane.b32.xlu1 %v10911_v30, %s15845_s20 }
 0x3a2   :  { %3001 = vrot.lane.b32.xlu0 %v10875_v10, %s15845_s20 }
 0x3a3   :  { %v11203_v34 = vpop.permute.xlu1 %2646 }
 0x3a4   :  { %v11205_v37 = vpop.permute.xlu0 %2561 }
 0x3a5   :  { %16309 = vst [vmem:[#allocation244_spill] sm:$0xff] %v11205_v37  ;;  %3007 = vrot.lane.b32.xlu1 %v10947_v53, %s15845_s20 }
 0x3a6   :  { %3005 = vrot.lane.b32.xlu0 %v11075_v0, %s15845_s20 }
 0x3a8   :  { %v11211_v62 = vpop.permute.xlu1 %2650 }
 0x3a9   :  { %3011 = vrot.lane.b32.xlu1 %v10987_v26, %s15845_s20  ;;  %v11215_v3 = vpop.permute.xlu0 %2648 }
 0x3aa   :  { %3009 = vrot.lane.b32.xlu0 %v10943_v15, %s15845_s20 }
 0x3ad   :  { %3015 = vrot.lane.b32.xlu1 %v11011_v28, %s15845_s20  ;;  %v11221_v37 = vpop.permute.xlu1 %2654 }
 0x3ae   :  { %3013 = vrot.lane.b32.xlu0 %v10979_v36, %s15845_s20  ;;  %v11225_v20 = vpop.permute.xlu0 %2652 }
 0x3b1   :  { %3019 = vrot.lane.b32.xlu1 %v11023_v14, %s15845_s20 }
 0x3b2   :  { %3017 = vrot.lane.b32.xlu0 %v11003_v42, %s15845_s20  ;;  %v11231_v21 = vpop.permute.xlu1 %2658 }
 0x3b3   :  { %16310 = vst [vmem:[#allocation245_spill] sm:$0xff] %v11231_v21  ;;  %v11233_v44 = vpop.permute.xlu0 %2656 }
 0x3b4   :  { %16311 = vst [vmem:[#allocation246_spill] sm:$0xff] %v11233_v44 }
 0x3b5   :  { %3023 = vrot.lane.b32.xlu1 %v11035_v55, %s15845_s20 }
 0x3b6   :  { %3021 = vrot.lane.b32.xlu0 %v11015_v35, %s15845_s20 }
 0x3b7   :  { %v11239_v17 = vpop.permute.xlu1 %2662 }
 0x3b8   :  { %16312 = vst [vmem:[#allocation247_spill] sm:$0xff] %v11239_v17  ;;  %v11241_v16 = vpop.permute.xlu0 %2660 }
 0x3b9   :  { %16313 = vst [vmem:[#allocation248_spill] sm:$0xff] %v11241_v16  ;;  %3027 = vrot.lane.b32.xlu1 %v11045_v32, %s15845_s20 }
 0x3ba   :  { %3025 = vrot.lane.b32.xlu0 %v11027_v46, %s15845_s20 }
 0x3bb   :  { %v11247_v6 = vpop.permute.xlu1 %2666 }
 0x3bc   :  { %16314 = vst [vmem:[#allocation249_spill] sm:$0xff] %v11247_v6  ;;  %v11249_v60 = vpop.permute.xlu0 %2664 }
 0x3bd   :  { %16315 = vst [vmem:[#allocation250_spill] sm:$0xff] %v11249_v60  ;;  %3114 = vrot.lane.b32.xlu1 %v11057_v56, %s9057_s21 }
 0x3be   :  { %3029 = vrot.lane.b32.xlu0 %v10834_v43, %s15845_s20 }
 0x3bf   :  { %v11255_v17 = vpop.permute.xlu1 %2670 }
 0x3c0   :  { %16316 = vst [vmem:[#allocation251_spill] sm:$0xff] %v11255_v17  ;;  %v11257_v16 = vpop.permute.xlu0 %2668 }
 0x3c1   :  { %16317 = vst [vmem:[#allocation252_spill] sm:$0xff] %v11257_v16  ;;  %3118 = vrot.lane.b32.xlu1 %v10875_v10, %s9057_s21 }
 0x3c2   :  { %3116 = vrot.lane.b32.xlu0 %v11049_v61, %s9057_s21 }
 0x3c3   :  { %v11263_v6 = vpop.permute.xlu1 %2674 }
 0x3c4   :  { %16318 = vst [vmem:[#allocation253_spill] sm:$0xff] %v11263_v6  ;;  %v11265_v60 = vpop.permute.xlu0 %2672 }
 0x3c5   :  { %16319 = vst [vmem:[#allocation254_spill] sm:$0xff] %v11265_v60  ;;  %3122 = vrot.lane.b32.xlu1 %v11075_v0, %s9057_s21 }
 0x3c6   :  { %3120 = vrot.lane.b32.xlu0 %v10911_v30, %s9057_s21 }
 0x3c7   :  { %v11271_v31 = vpop.permute.xlu1 %2678 }
 0x3c8   :  { %16320 = vst [vmem:[#allocation255_spill] sm:$0xff] %v11271_v31  ;;  %v11273_v17 = vpop.permute.xlu0 %2676 }
 0x3c9   :  { %16321 = vst [vmem:[#allocation256_spill] sm:$0xff] %v11273_v17  ;;  %3126 = vrot.lane.b32.xlu1 %v10943_v15, %s9057_s21 }
 0x3ca   :  { %3124 = vrot.lane.b32.xlu0 %v10947_v53, %s9057_s21 }
 0x3cb   :  { %v11279_v16 = vpop.permute.xlu1 %2765 }
 0x3cc   :  { %v11281_v6 = vpop.permute.xlu0 %2763 }
 0x3cd   :  { %3130 = vrot.lane.b32.xlu1 %v10979_v36, %s9057_s21 }
 0x3ce   :  { %3128 = vrot.lane.b32.xlu0 %v10987_v26, %s9057_s21 }
 0x3cf   :  { %v11287_v60 = vpop.permute.xlu1 %2769 }
 0x3d0   :  { %v11289_v31 = vpop.permute.xlu0 %2767 }
 0x3d1   :  { %3134 = vrot.lane.b32.xlu1 %v11003_v42, %s9057_s21 }
 0x3d2   :  { %3132 = vrot.lane.b32.xlu0 %v11011_v28, %s9057_s21 }
 0x3d3   :  { %v11295_v17 = vpop.permute.xlu1 %2773 }
 0x3d4   :  { %16322 = vst [vmem:[#allocation257_spill] sm:$0xff] %v11295_v17  ;;  %v11297_v44 = vpop.permute.xlu0 %2771 }
 0x3d5   :  { %3138 = vrot.lane.b32.xlu1 %v11015_v35, %s9057_s21 }
 0x3d6   :  { %3136 = vrot.lane.b32.xlu0 %v11023_v14, %s9057_s21 }
 0x3d7   :  { %v11303_v21 = vpop.permute.xlu1 %2777 }
 0x3d8   :  { %16323 = vst [vmem:[#allocation258_spill] sm:$0xff] %v11303_v21  ;;  %v11305_v19 = vpop.permute.xlu0 %2775 }
 0x3d9   :  { %16324 = vst [vmem:[#allocation259_spill] sm:$0xff] %v11305_v19  ;;  %3142 = vrot.lane.b32.xlu1 %v11027_v46, %s9057_s21 }
 0x3da   :  { %3140 = vrot.lane.b32.xlu0 %v11035_v55, %s9057_s21 }
 0x3db   :  { %v11311_v29 = vpop.permute.xlu1 %2781 }
 0x3dc   :  { %16325 = vst [vmem:[#allocation260_spill] sm:$0xff] %v11311_v29  ;;  %v11313_v17 = vpop.permute.xlu0 %2779 }
 0x3dd   :  { %16326 = vst [vmem:[#allocation261_spill] sm:$0xff] %v11313_v17  ;;  %3146 = vrot.lane.b32.xlu1 %v10834_v43, %s9057_s21 }
 0x3de   :  { %3144 = vrot.lane.b32.xlu0 %v11045_v32, %s9057_s21 }
 0x3df   :  { %v11319_v49 = vpop.permute.xlu1 %2785 }
 0x3e0   :  { %16327 = vst [vmem:[#allocation262_spill] sm:$0xff] %v11319_v49  ;;  %v11321_v21 = vpop.permute.xlu0 %2783 }
 0x3e1   :  { %16328 = vst [vmem:[#allocation263_spill] sm:$0xff] %v11321_v21  ;;  %3233 = vrot.lane.b32.xlu1 %v11049_v61, %s9058_s14 }
 0x3e2   :  { %3231 = vrot.lane.b32.xlu0 %v11057_v56, %s9058_s14 }
 0x3e3   :  { %v11327_v29 = vpop.permute.xlu1 %2789 }
 0x3e4   :  { %16329 = vst [vmem:[#allocation264_spill] sm:$0xff] %v11327_v29  ;;  %v11329_v17 = vpop.permute.xlu0 %2787 }
 0x3e5   :  { %16330 = vst [vmem:[#allocation265_spill] sm:$0xff] %v11329_v17  ;;  %3237 = vrot.lane.b32.xlu1 %v10911_v30, %s9058_s14 }
 0x3e6   :  { %3235 = vrot.lane.b32.xlu0 %v10875_v10, %s9058_s14 }
 0x3e7   :  { %v11335_v49 = vpop.permute.xlu1 %2793 }
 0x3e8   :  { %16331 = vst [vmem:[#allocation266_spill] sm:$0xff] %v11335_v49  ;;  %v11337_v21 = vpop.permute.xlu0 %2791 }
 0x3e9   :  { %16332 = vst [vmem:[#allocation267_spill] sm:$0xff] %v11337_v21  ;;  %3241 = vrot.lane.b32.xlu1 %v10947_v53, %s9058_s14 }
 0x3ea   :  { %3239 = vrot.lane.b32.xlu0 %v11075_v0, %s9058_s14 }
 0x3eb   :  { %v11343_v19 = vpop.permute.xlu1 %2880 }
 0x3ec   :  { %v11345_v29 = vpop.permute.xlu0 %2795 }
 0x3ed   :  { %16333 = vst [vmem:[#allocation268_spill] sm:$0xff] %v11345_v29  ;;  %3245 = vrot.lane.b32.xlu1 %v10987_v26, %s9058_s14 }
 0x3ee   :  { %3243 = vrot.lane.b32.xlu0 %v10943_v15, %s9058_s14 }
 0x3ef   :  { %v11351_v17 = vpop.permute.xlu1 %2884 }
 0x3f0   :  { %v11353_v49 = vpop.permute.xlu0 %2882 }
 0x3f1   :  { %3249 = vrot.lane.b32.xlu1 %v11011_v28, %s9058_s14 }
 0x3f2   :  { %3247 = vrot.lane.b32.xlu0 %v10979_v36, %s9058_s14 }
 0x3f3   :  { %v11359_v21 = vpop.permute.xlu1 %2888 }
 0x3f4   :  { %v11361_v12 = vpop.permute.xlu0 %2886 }
 0x3f5   :  { %3253 = vrot.lane.b32.xlu1 %v11023_v14, %s9058_s14 }
 0x3f6   :  { %3251 = vrot.lane.b32.xlu0 %v11003_v42, %s9058_s14 }
 0x3f7   :  { %v11367_v29 = vpop.permute.xlu1 %2892 }
 0x3f8   :  { %16334 = vst [vmem:[#allocation269_spill] sm:$0xff] %v11367_v29  ;;  %v11369_v40 = vpop.permute.xlu0 %2890 }
 0x3f9   :  { %16335 = vst [vmem:[#allocation270_spill] sm:$0xff] %v11369_v40  ;;  %3257 = vrot.lane.b32.xlu1 %v11035_v55, %s9058_s14 }
 0x3fa   :  { %3255 = vrot.lane.b32.xlu0 %v11015_v35, %s9058_s14 }
 0x3fb   :  { %v11375_v41 = vpop.permute.xlu1 %2896 }
 0x3fc   :  { %16336 = vst [vmem:[#allocation271_spill] sm:$0xff] %v11375_v41  ;;  %v11377_v39 = vpop.permute.xlu0 %2894 }
 0x3fd   :  { %16337 = vst [vmem:[#allocation272_spill] sm:$0xff] %v11377_v39  ;;  %3261 = vrot.lane.b32.xlu1 %v11045_v32, %s9058_s14 }
 0x3fe   :  { %3259 = vrot.lane.b32.xlu0 %v11027_v46, %s9058_s14 }
 0x3ff   :  { %v11383_v45 = vpop.permute.xlu1 %2900 }
 0x400   :  { %16338 = vst [vmem:[#allocation273_spill] sm:$0xff] %v11383_v45  ;;  %v11385_v29 = vpop.permute.xlu0 %2898 }
 0x401   :  { %16339 = vst [vmem:[#allocation274_spill] sm:$0xff] %v11385_v29  ;;  %3348 = vrot.lane.b32.xlu1 %v11057_v56, %s9059_s15 }
 0x402   :  { %3263 = vrot.lane.b32.xlu0 %v10834_v43, %s9058_s14 }
 0x403   :  { %v11391_v41 = vpop.permute.xlu1 %2904 }
 0x404   :  { %16340 = vst [vmem:[#allocation275_spill] sm:$0xff] %v11391_v41  ;;  %v11393_v39 = vpop.permute.xlu0 %2902 }
 0x405   :  { %16341 = vst [vmem:[#allocation276_spill] sm:$0xff] %v11393_v39  ;;  %3352 = vrot.lane.b32.xlu1 %v10875_v10, %s9059_s15 }
 0x406   :  { %3350 = vrot.lane.b32.xlu0 %v11049_v61, %s9059_s15 }
 0x407   :  { %v11399_v45 = vpop.permute.xlu1 %2908 }
 0x408   :  { %16342 = vst [vmem:[#allocation277_spill] sm:$0xff] %v11399_v45  ;;  %v11401_v29 = vpop.permute.xlu0 %2906 }
 0x409   :  { %16343 = vst [vmem:[#allocation278_spill] sm:$0xff] %v11401_v29  ;;  %3356 = vrot.lane.b32.xlu1 %v11075_v0, %s9059_s15 }
 0x40a   :  { %3354 = vrot.lane.b32.xlu0 %v10911_v30, %s9059_s15 }
 0x40b   :  { %v11407_v40 = vpop.permute.xlu1 %2912 }
 0x40c   :  { %16344 = vst [vmem:[#allocation279_spill] sm:$0xff] %v11407_v40  ;;  %v11409_v41 = vpop.permute.xlu0 %2910 }
 0x40d   :  { %16345 = vst [vmem:[#allocation280_spill] sm:$0xff] %v11409_v41  ;;  %3360 = vrot.lane.b32.xlu1 %v10943_v15, %s9059_s15 }
 0x40e   :  { %3358 = vrot.lane.b32.xlu0 %v10947_v53, %s9059_s15 }
 0x40f   :  { %v11415_v39 = vpop.permute.xlu1 %2999 }
 0x410   :  { %v11417_v45 = vpop.permute.xlu0 %2997 }
 0x411   :  { %3364 = vrot.lane.b32.xlu1 %v10979_v36, %s9059_s15 }
 0x412   :  { %3362 = vrot.lane.b32.xlu0 %v10987_v26, %s9059_s15 }
 0x413   :  { %v11423_v29 = vpop.permute.xlu1 %3003 }
 0x414   :  { %v11425_v40 = vpop.permute.xlu0 %3001 }
 0x415   :  { %3368 = vrot.lane.b32.xlu1 %v11003_v42, %s9059_s15 }
 0x416   :  { %3366 = vrot.lane.b32.xlu0 %v11011_v28, %s9059_s15 }
 0x417   :  { %v11431_v41 = vpop.permute.xlu1 %3007 }
 0x418   :  { %16346 = vst [vmem:[#allocation281_spill] sm:$0xff] %v11431_v41  ;;  %v11433_v4 = vpop.permute.xlu0 %3005 }
 0x419   :  { %3372 = vrot.lane.b32.xlu1 %v11015_v35, %s9059_s15 }
 0x41a   :  { %3370 = vrot.lane.b32.xlu0 %v11023_v14, %s9059_s15 }
 0x41b   :  { %v11439_v25 = vpop.permute.xlu1 %3011 }
 0x41c   :  { %16347 = vst [vmem:[#allocation282_spill] sm:$0xff] %v11439_v25  ;;  %v11441_v27 = vpop.permute.xlu0 %3009 }
 0x41d   :  { %16348 = vst [vmem:[#allocation283_spill] sm:$0xff] %v11441_v27  ;;  %3376 = vrot.lane.b32.xlu1 %v11027_v46, %s9059_s15 }
 0x41e   :  { %3374 = vrot.lane.b32.xlu0 %v11035_v55, %s9059_s15 }
 0x41f   :  { %v11447_v18 = vpop.permute.xlu1 %3015 }
 0x420   :  { %16349 = vst [vmem:[#allocation284_spill] sm:$0xff] %v11447_v18  ;;  %v11449_v41 = vpop.permute.xlu0 %3013 }
 0x421   :  { %16350 = vst [vmem:[#allocation285_spill] sm:$0xff] %v11449_v41  ;;  %3380 = vrot.lane.b32.xlu1 %v10834_v43, %s9059_s15 }
 0x422   :  { %3378 = vrot.lane.b32.xlu0 %v11045_v32, %s9059_s15 }
 0x423   :  { %v11455_v1 = vpop.permute.xlu1 %3019 }
 0x424   :  { %16351 = vst [vmem:[#allocation286_spill] sm:$0xff] %v11455_v1  ;;  %v11457_v25 = vpop.permute.xlu0 %3017 }
 0x425   :  { %16352 = vst [vmem:[#allocation287_spill] sm:$0xff] %v11457_v25  ;;  %3467 = vrot.lane.b32.xlu1 %v11049_v61, %s9060_s16 }
 0x426   :  { %3465 = vrot.lane.b32.xlu0 %v11057_v56, %s9060_s16 }
 0x427   :  { %v11463_v18 = vpop.permute.xlu1 %3023 }
 0x428   :  { %16353 = vst [vmem:[#allocation288_spill] sm:$0xff] %v11463_v18  ;;  %v11465_v41 = vpop.permute.xlu0 %3021 }
 0x429   :  { %16354 = vst [vmem:[#allocation289_spill] sm:$0xff] %v11465_v41  ;;  %3471 = vrot.lane.b32.xlu1 %v10911_v30, %s9060_s16 }
 0x42a   :  { %3469 = vrot.lane.b32.xlu0 %v10875_v10, %s9060_s16  ;;  %v11490_v10 = vld [vmem:[%s15490_s2 + $0x8] sm:$0xff] }
 0x42b   :  { %v11471_v1 = vpop.permute.xlu1 %3027  ;;  %16358 = vst [vmem:[#allocation293_spill] sm:$0xff] %v11490_v10  ;;  %8980 = vmatprep.mubr.msk.f32.mxu0 %vm15820_vm1, %v11490_v10  ;;  %8981 = vmatprep.mubr.msk.f32.mxu1 %vm15820_vm1, %v11490_v10  ;;  %vm3499_vm1 = vcmask 269312  }
 0x42c   :  { %16355 = vst [vmem:[#allocation290_spill] sm:$0xff] %v11471_v1  ;;  %v11473_v25 = vpop.permute.xlu0 %3025 }
 0x42d   :  { %16356 = vst [vmem:[#allocation291_spill] sm:$0xff] %v11473_v25  ;;  %3475 = vrot.lane.b32.xlu1 %v10947_v53, %s9060_s16 }
 0x42e   :  { %3473 = vrot.lane.b32.xlu0 %v11075_v0, %s9060_s16 }
 0x42f   :  { %v11479_v61 = vpop.permute.xlu1 %3114 }
 0x430   :  { %v11481_v56 = vpop.permute.xlu0 %3029 }
 0x431   :  { %16357 = vst [vmem:[#allocation292_spill] sm:$0xff] %v11481_v56  ;;  %3479 = vrot.lane.b32.xlu1 %v10987_v26, %s9060_s16 }
 0x432   :  { %3477 = vrot.lane.b32.xlu0 %v10943_v15, %s9060_s16 }
 0x433   :  { %v11492_v30 = vpop.permute.xlu1 %3118 }
 0x434   :  { %v11498_v53 = vpop.permute.xlu0 %3116 }
 0x435   :  { %3483 = vrot.lane.b32.xlu1 %v11011_v28, %s9060_s16 }
 0x436   :  { %3481 = vrot.lane.b32.xlu0 %v10979_v36, %s9060_s16 }
 0x437   :  { %v11504_v15 = vpop.permute.xlu1 %3122 }
 0x438   :  { %v11506_v26 = vpop.permute.xlu0 %3120 }
 0x439   :  { %3487 = vrot.lane.b32.xlu1 %v11023_v14, %s9060_s16 }
 0x43a   :  { %3485 = vrot.lane.b32.xlu0 %v11003_v42, %s9060_s16 }
 0x43b   :  { %v11512_v0 = vpop.permute.xlu1 %3126 }
 0x43c   :  { %16359 = vst [vmem:[#allocation294_spill] sm:$0xff] %v11512_v0  ;;  %v11514_v1 = vpop.permute.xlu0 %3124 }
 0x43d   :  { %16360 = vst [vmem:[#allocation295_spill] sm:$0xff] %v11514_v1  ;;  %3491 = vrot.lane.b32.xlu1 %v11035_v55, %s9060_s16 }
 0x43e   :  { %3489 = vrot.lane.b32.xlu0 %v11015_v35, %s9060_s16 }
 0x43f   :  { %v11520_v36 = vpop.permute.xlu1 %3130 }
 0x440   :  { %16361 = vst [vmem:[#allocation296_spill] sm:$0xff] %v11520_v36  ;;  %v11522_v28 = vpop.permute.xlu0 %3128 }
 0x441   :  { %16362 = vst [vmem:[#allocation297_spill] sm:$0xff] %v11522_v28  ;;  %3495 = vrot.lane.b32.xlu1 %v11045_v32, %s9060_s16 }
 0x442   :  { %3493 = vrot.lane.b32.xlu0 %v11027_v46, %s9060_s16 }
 0x443   :  { %v11528_v42 = vpop.permute.xlu1 %3134 }
 0x444   :  { %16363 = vst [vmem:[#allocation298_spill] sm:$0xff] %v11528_v42  ;;  %v11530_v14 = vpop.permute.xlu0 %3132 }
 0x445   :  { %16364 = vst [vmem:[#allocation299_spill] sm:$0xff] %v11530_v14 }
 0x446   :  { %3497 = vrot.lane.b32.xlu0 %v10834_v43, %s9060_s16 }
 0x447   :  { %v11534_v55 = vpop.permute.xlu1 %3138 }
 0x448   :  { %16365 = vst [vmem:[#allocation300_spill] sm:$0xff] %v11534_v55  ;;  %v11536_v35 = vpop.permute.xlu0 %3136 }
 0x449   :  { %16366 = vst [vmem:[#allocation301_spill] sm:$0xff] %v11536_v35 }
 0x44b   :  { %v11538_v56 = vpop.permute.xlu1 %3142 }
 0x44c   :  { %16367 = vst [vmem:[#allocation302_spill] sm:$0xff] %v11538_v56  ;;  %v11540_v18 = vpop.permute.xlu0 %3140 }
 0x44d   :  { %16368 = vst [vmem:[#allocation303_spill] sm:$0xff] %v11540_v18 }
 0x44f   :  { %v11542_v25 = vpop.permute.xlu1 %3146 }
 0x450   :  { %16369 = vst [vmem:[#allocation304_spill] sm:$0xff] %v11542_v25  ;;  %v11544_v32 = vpop.permute.xlu0 %3144 }
 0x451   :  { %16370 = vst [vmem:[#allocation305_spill] sm:$0xff] %v11544_v32 }
 0x453   :  { %v3234_v46 = vpop.permute.xlu1 %3233 }
 0x454   :  { %v3232_v41 = vpop.permute.xlu0 %3231 }
 0x457   :  { %v11546_v42 = vpop.permute.xlu1 %3237 }
 0x458   :  { %v11548_v14 = vpop.permute.xlu0 %3235 }
 0x45b   :  { %v11550_v10 = vpop.permute.xlu1 %3241 }
 0x45c   :  { %16371 = vst [vmem:[#allocation306_spill] sm:$0xff] %v11550_v10  ;;  %v11552_v43 = vpop.permute.xlu0 %3239 }
 0x45f   :  { %v11554_v55 = vpop.permute.xlu1 %3245 }
 0x460   :  { %16372 = vst [vmem:[#allocation307_spill] sm:$0xff] %v11554_v55  ;;  %v11556_v35 = vpop.permute.xlu0 %3243 }
 0x461   :  { %16373 = vst [vmem:[#allocation308_spill] sm:$0xff] %v11556_v35 }
 0x463   :  { %v11558_v56 = vpop.permute.xlu1 %3249 }
 0x464   :  { %16374 = vst [vmem:[#allocation309_spill] sm:$0xff] %v11558_v56  ;;  %v11560_v18 = vpop.permute.xlu0 %3247 }
 0x465   :  { %16375 = vst [vmem:[#allocation310_spill] sm:$0xff] %v11560_v18  ;;  %v9061_v18 = vmov 0  }
 0x466   :  { %9026 = vset.pattern.permute.xlu1 %v9061_v18  ;;  %9027 = vset.pattern.permute.xlu0 %v9061_v18 }
 0x467   :  { %v11562_v25 = vpop.permute.xlu1 %3253 }
 0x468   :  { %16376 = vst [vmem:[#allocation311_spill] sm:$0xff] %v11562_v25  ;;  %v11564_v32 = vpop.permute.xlu0 %3251  ;;  %v3982_v25 = vld [vmem:[%s15491_s4] sm:$0xff] }
 0x469   :  { %16377 = vst [vmem:[#allocation312_spill] sm:$0xff] %v11564_v32  ;;  %3985 = vperm.xlu1 %9026, %v3982_v25  }
 0x46b   :  { %v11566_v28 = vpop.permute.xlu1 %3257 }
 0x46c   :  { %16378 = vst [vmem:[#allocation313_spill] sm:$0xff] %v11566_v28  ;;  %v11568_v36 = vpop.permute.xlu0 %3255 }
 0x46d   :  { %16379 = vst [vmem:[#allocation314_spill] sm:$0xff] %v11568_v36 }
 0x46f   :  { %v11570_v27 = vpop.permute.xlu1 %3261 }
 0x470   :  { %16380 = vst [vmem:[#allocation315_spill] sm:$0xff] %v11570_v27  ;;  %v11572_v1 = vpop.permute.xlu0 %3259 }
 0x471   :  { %16381 = vst [vmem:[#allocation316_spill] sm:$0xff] %v11572_v1 }
 0x473   :  { %v3349_v0 = vpop.permute.xlu1 %3348 }
 0x474   :  { %v11574_v55 = vpop.permute.xlu0 %3263 }
 0x475   :  { %16382 = vst [vmem:[#allocation317_spill] sm:$0xff] %v11574_v55 }
 0x477   :  { %v3353_v10 = vpop.permute.xlu1 %3352 }
 0x478   :  { %v3351_v35 = vpop.permute.xlu0 %3350 }
 0x47b   :  { %v11576_v56 = vpop.permute.xlu1 %3356 }
 0x47c   :  { %v3355_v28 = vpop.permute.xlu0 %3354 }
 0x47f   :  { %v11581_v36 = vpop.permute.xlu1 %3360 }
 0x480   :  { %16383 = vst [vmem:[#allocation318_spill] sm:$0xff] %v11581_v36  ;;  %v11583_v27 = vpop.permute.xlu0 %3358 }
 0x481   :  { %16384 = vst [vmem:[#allocation319_spill] sm:$0xff] %v11583_v27 }
 0x483   :  { %v11585_v1 = vpop.permute.xlu1 %3364 }
 0x484   :  { %16385 = vst [vmem:[#allocation320_spill] sm:$0xff] %v11585_v1  ;;  %v11587_v55 = vpop.permute.xlu0 %3362 }
 0x485   :  { %16386 = vst [vmem:[#allocation321_spill] sm:$0xff] %v11587_v55 }
 0x487   :  { %v11589_v32 = vpop.permute.xlu1 %3368 }
 0x488   :  { %16387 = vst [vmem:[#allocation322_spill] sm:$0xff] %v11589_v32  ;;  %v11591_v22 = vpop.permute.xlu0 %3366 }
 0x489   :  { %16388 = vst [vmem:[#allocation323_spill] sm:$0xff] %v11591_v22 }
 0x48b   :  { %v11593_v51 = vpop.permute.xlu1 %3372 }
 0x48c   :  { %16389 = vst [vmem:[#allocation324_spill] sm:$0xff] %v11593_v51  ;;  %v11595_v58 = vpop.permute.xlu0 %3370 }
 0x48f   :  { %v11597_v57 = vpop.permute.xlu1 %3376 }
 0x490   :  { %16390 = vst [vmem:[#allocation325_spill] sm:$0xff] %v11597_v57  ;;  %v11599_v18 = vpop.permute.xlu0 %3374  ;;  %v3384_v57 = vsel %vm15833_vm0, %v3351_v35, %v3353_v10 }
 0x491   :  { %16391 = vst [vmem:[#allocation326_spill] sm:$0xff] %v11599_v18 }
 0x493   :  { %v11601_v25 = vpop.permute.xlu1 %3380 }
 0x494   :  { %16392 = vst [vmem:[#allocation327_spill] sm:$0xff] %v11601_v25  ;;  %v11603_v36 = vpop.permute.xlu0 %3378  ;;  %v3267_v25 = vsel %vm15834_vm2, %v3234_v46, %v11548_v14 }
 0x495   :  { %16393 = vst [vmem:[#allocation328_spill] sm:$0xff] %v11603_v36  ;;  %v3383_v36 = vsel %vm15833_vm0, %v3349_v0, %v3351_v35  ;;  %v3149_v0 = vsel %vm15835_vm15, %v11479_v61, %v11498_v53  ;;  %v3268_v61 = vsel %vm15834_vm2, %v11548_v14, %v11546_v42  ;;  %v11707_v14 = vld [vmem:[%s15490_s2] sm:$0xff] }
 0x496   :  { %v16395_v35 = vld [vmem:[#allocation210_spill] sm:$0xff] }
 0x497   :  { %v3468_v1 = vpop.permute.xlu1 %3467 }
 0x498   :  { %v3466_v27 = vpop.permute.xlu0 %3465 }
 0x499   :  { %v3500_v51 = vsel %vm3499_vm1, %v3466_v27, %v3468_v1  ;;  %v3266_v27 = vsel %vm15834_vm2, %v3232_v41, %v3234_v46  ;;  %v3385_v41 = vsel %vm15833_vm0, %v3353_v10, %v3355_v28  ;;  %v2916_v10 = vsel %vm15837_vm13, %v11353_v49, %v11351_v17 }
 0x49b   :  { %v3472_v22 = vpop.permute.xlu1 %3471 }
 0x49c   :  { %v3470_v55 = vpop.permute.xlu0 %3469 }
 0x49d   :  { %v3501_v32 = vsel %vm3499_vm1, %v3468_v1, %v3470_v55  ;;  %v3502_v1 = vsel %vm3499_vm1, %v3470_v55, %v3472_v22  ;;  %v3032_v55 = vsel %vm15836_vm14, %v11417_v45, %v11415_v39  ;;  %v2915_v45 = vsel %vm15837_vm13, %v11343_v19, %v11353_v49 }
 0x49e   :  { %4034 = vmatprep.subr.mxu0 %v3501_v32  ;;  %v3034_v19 = vsel %vm15836_vm14, %v11425_v40, %v11423_v29 }
 0x49f   :  { %4035 = vmatpush2.msra.mxu0 %v3500_v51  ;;  %v3386_v51 = vsel %vm15833_vm0, %v3355_v28, %v11576_v56  ;;  %vm2797_vm0 = vcmask 433152  }
 0x4a0   :  { %4036 = vmatprep.subr.mxu0 %v3384_v57  ;;  %v11608_v18 = vpop.permute.xlu0 %3473  ;;  %v3150_v57 = vsel %vm15835_vm15, %v11498_v53, %v11492_v30  ;;  %v3152_v53 = vsel %vm15835_vm15, %v11506_v26, %v11504_v15  ;;  %v2799_v28 = vsel %vm2797_vm0, %v11279_v16, %v11289_v31  ;;  %v2798_v49 = vsel %vm2797_vm0, %v11281_v6, %v11279_v16 }
 0x4a1   :  { %4037 = vmatpush2.msra.mxu0 %v3383_v36  ;;  %v3503_v32 = vsel %vm3499_vm1, %v3472_v22, %v11608_v18  ;;  %v3033_v22 = vsel %vm15836_vm14, %v11415_v39, %v11425_v40  ;;  %v3269_v36 = vsel %vm15834_vm2, %v11546_v42, %v11552_v43  ;;  %v3151_v39 = vsel %vm15835_vm15, %v11492_v30, %v11506_v26 }
 0x4a2   :  { %4038 = vmatprep.subr.mxu0 %v3267_v25  ;;  %4105 = vmatprep.subr.mxu1 %v3503_v32  ;;  %vm2680_vm2 = vcmask 441344   ;;  %v3035_v42 = vsel %vm15836_vm14, %v11423_v29, %v11433_v4  ;;  %v2918_v26 = vsel %vm15837_vm13, %v11361_v12, %v11359_v21  ;;  %vm2563_vm15 = vcmask 449536   ;;  %v16398_v25 = vld [vmem:[#allocation199_spill] sm:$0xff] }
 0x4a3   :  { %4039 = vmatpush2.msra.mxu0 %v3266_v27  ;;  %4106 = vmatpush2.msra.mxu1 %v3502_v1  ;;  %v2682_v30 = vsel %vm2680_vm2, %v11215_v3, %v11211_v62  ;;  %v2681_v16 = vsel %vm2680_vm2, %v11203_v34, %v11215_v3  ;;  %v2917_v6 = vsel %vm15837_vm13, %v11351_v17, %v11361_v12  ;;  %vm2446_vm14 = vcmask 39936   ;;  %v16399_v27 = vld [vmem:[#allocation223_spill] sm:$0xff]  ;;  %v16400_v1 = vld [vmem:[#allocation224_spill] sm:$0xff] }
 0x4a4   :  { %4040 = vmatprep.subr.mxu0 %v3150_v57  ;;  %4107 = vmatprep.subr.mxu1 %v3386_v51  ;;  %v2565_v40 = vsel %vm2563_vm15, %v11135_v52, %v11145_v50  ;;  %v2801_v29 = vsel %vm2797_vm0, %v11287_v60, %v11297_v44  ;;  %v2564_v3 = vsel %vm2563_vm15, %v11137_v48, %v11135_v52  ;;  %vm2329_vm13 = vcmask 48128  }
 0x4a5   :  { %4041 = vmatpush2.msra.mxu0 %v3149_v0  ;;  %4108 = vmatpush2.msra.mxu1 %v3385_v41  ;;  %v2800_v12 = vsel %vm2797_vm0, %v11289_v31, %v11287_v60  ;;  %v2448_v17 = vsel %vm2446_vm14, %v11071_v38, %v11069_v33  ;;  %v2684_v34 = vsel %vm2680_vm2, %v11225_v20, %v11221_v37  ;;  %v16402_v0 = vld [vmem:[#allocation187_spill] sm:$0xff]  ;;  %v16403_v41 = vld [vmem:[#allocation184_spill] sm:$0xff] }
 0x4a6   :  { %4042 = vmatprep.subr.mxu0 %v3033_v22  ;;  %4109 = vmatprep.subr.mxu1 %v3269_v36  ;;  %v2447_v52 = vsel %vm2446_vm14, %v11061_v13, %v11071_v38  ;;  %v2683_v48 = vsel %vm2680_vm2, %v11211_v62, %v11225_v20  ;;  %v2331_v31 = vsel %vm2329_vm13, %v10924_v8, %v10954_v47  ;;  %v16404_v36 = vld [vmem:[#allocation215_spill] sm:$0xff] }
 0x4a7   :  { %4043 = vmatpush2.msra.mxu0 %v3032_v55  ;;  %4110 = vmatpush2.msra.mxu1 %v3268_v61  ;;  %v2567_v60 = vsel %vm2563_vm15, %v11143_v54, %v11153_v5  ;;  %v2330_v62 = vsel %vm2329_vm13, %v10926_v24, %v10924_v8  ;;  %v2566_v20 = vsel %vm2563_vm15, %v11145_v50, %v11143_v54  ;;  %v16394_v50 = vld [vmem:[#allocation213_spill] sm:$0xff]  ;;  %v16405_v55 = vld [vmem:[#allocation212_spill] sm:$0xff] }
 0x4a8   :  { %4044 = vmatprep.subr.mxu0 %v2916_v10  ;;  %4111 = vmatprep.subr.mxu1 %v3152_v53  ;;  %v2450_v38 = vsel %vm2446_vm14, %v11081_v63, %v11079_v2  ;;  %v2218_v13 = vsel %vm2212_vm3, %v10762_v59, %v10757_v9  ;;  %v2449_v8 = vsel %vm2446_vm14, %v11069_v33, %v11081_v63  ;;  %v16396_v33 = vld [vmem:[#allocation211_spill] sm:$0xff]  ;;  %v16406_v10 = vld [vmem:[#allocation185_spill] sm:$0xff] }
 0x4a9   :  { %4045 = vmatpush2.msra.mxu0 %v2915_v45  ;;  %4112 = vmatpush2.msra.mxu1 %v3151_v39  ;;  %v2217_v54 = vsel %vm2212_vm3, %v10739_v7, %v10762_v59  ;;  %v2333_v24 = vsel %vm2329_vm13, %v10952_v11, %v10983_v23  ;;  %v2101_v46 = vsel %vm2095_vm4, %v16395_v35, %v16394_v50  ;;  %v16397_v59 = vld [vmem:[#allocation198_spill] sm:$0xff]  ;;  %v16407_v45 = vld [vmem:[#allocation172_spill] sm:$0xff]  ;;  %v16408_v39 = vld [vmem:[#allocation173_spill] sm:$0xff] }
 0x4aa   :  { %4046 = vmatprep.subr.mxu0 %v2799_v28  ;;  %4113 = vmatprep.subr.mxu1 %v3035_v42  ;;  %v2332_v63 = vsel %vm2329_vm13, %v10954_v47, %v10952_v11  ;;  %v2100_v7 = vsel %vm2095_vm4, %v16396_v33, %v16395_v35  ;;  %v1984_v32 = vsel %vm1978_vm5, %v16398_v25, %v16397_v59  ;;  %v16401_v11 = vld [vmem:[#allocation197_spill] sm:$0xff]  ;;  %v16409_v42 = vld [vmem:[#allocation200_spill] sm:$0xff] }
 0x4ab   :  { %4047 = vmatpush2.msra.mxu0 %v2798_v49  ;;  %4114 = vmatpush2.msra.mxu1 %v3034_v19  ;;  %v2220_v57 = vsel %vm2212_vm3, %v16400_v1, %v16399_v27  ;;  %v1983_v47 = vsel %vm1978_vm5, %v16401_v11, %v16398_v25  ;;  %v2219_v51 = vsel %vm2212_vm3, %v10757_v9, %v16400_v1  ;;  %v16410_v49 = vld [vmem:[#allocation201_spill] sm:$0xff]  ;;  %v16423_v35 = vld [vmem:[#allocation132_spill] sm:$0xff] }
 0x4ac   :  { %4048 = vmatprep.subr.mxu0 %v2682_v30  ;;  %4115 = vmatprep.subr.mxu1 %v2918_v26  ;;  %v1867_v22 = vsel %vm1861_vm6, %v16403_v41, %v16402_v0  ;;  %v2103_v61 = vsel %vm2095_vm4, %v16405_v55, %v16404_v36  ;;  %v1866_v53 = vsel %vm1861_vm6, %v16406_v10, %v16403_v41  ;;  %v16411_v30 = vld [vmem:[#allocation171_spill] sm:$0xff]  ;;  %v16425_v33 = vld [vmem:[#allocation160_spill] sm:$0xff]  ;;  %v16431_v41 = vld [vmem:[#allocation118_spill] sm:$0xff] }
 0x4ad   :  { %4049 = vmatpush2.msra.mxu0 %v2681_v16  ;;  %4116 = vmatpush2.msra.mxu1 %v2917_v6  ;;  %v2102_v9 = vsel %vm2095_vm4, %v16394_v50, %v16405_v55  ;;  %v1750_v28 = vsel %vm1744_vm7, %v16408_v39, %v16407_v45  ;;  %v1986_v19 = vsel %vm1978_vm5, %v16410_v49, %v16409_v42  ;;  %v16412_v6 = vld [vmem:[#allocation161_spill] sm:$0xff]  ;;  %v16422_v50 = vld [vmem:[#allocation135_spill] sm:$0xff]  ;;  %v16427_v1 = vld [vmem:[#allocation120_spill] sm:$0xff] }
 0x4ae   :  { %4050 = vmatprep.subr.mxu0 %v2565_v40  ;;  %4117 = vmatprep.subr.mxu1 %v2801_v29  ;;  %v1749_v26 = vsel %vm1744_vm7, %v16411_v30, %v16408_v39  ;;  %v1985_v16 = vsel %vm1978_vm5, %v16397_v59, %v16410_v49  ;;  %v16413_v40 = vld [vmem:[#allocation158_spill] sm:$0xff]  ;;  %v16426_v59 = vld [vmem:[#allocation133_spill] sm:$0xff]  ;;  %v16437_v30 = vld [vmem:[#allocation92_spill] sm:$0xff] }
 0x4af   :  { %4051 = vmatpush2.msra.mxu0 %v2564_v3  ;;  %4118 = vmatpush2.msra.mxu1 %v2800_v12  ;;  %v1633_v29 = vsel %vm15839_vm8, %v16413_v40, %v16412_v6  ;;  %v16414_v3 = vld [vmem:[#allocation189_spill] sm:$0xff]  ;;  %v16415_v12 = vld [vmem:[#allocation186_spill] sm:$0xff]  ;;  %v1398_v25 = vsel %vm15840_vm10, %v16426_v59, %v16423_v35 }
 0x4b0   :  { %4052 = vmatprep.subr.mxu0 %v2448_v17  ;;  %4119 = vmatprep.subr.mxu1 %v2684_v34  ;;  %v1869_v17 = vsel %vm1861_vm6, %v16415_v12, %v16414_v3  ;;  %v16416_v34 = vld [vmem:[#allocation159_spill] sm:$0xff]  ;;  %v16433_v10 = vld [vmem:[#allocation105_spill] sm:$0xff]  ;;  %v16457_v59 = vld [vmem:[#allocation58_spill] sm:$0xff] }
 0x4b1   :  { %4053 = vmatpush2.msra.mxu0 %v2447_v52  ;;  %4120 = vmatpush2.msra.mxu1 %v2683_v48  ;;  %v1632_v52 = vsel %vm15839_vm8, %v16416_v34, %v16413_v40  ;;  %v1868_v48 = vsel %vm1861_vm6, %v16402_v0, %v16415_v12  ;;  %v16441_v40 = vld [vmem:[#allocation123_spill] sm:$0xff]  ;;  %v16442_v12 = vld [vmem:[#allocation90_spill] sm:$0xff] }
 0x4b2   :  { %4054 = vmatprep.subr.mxu0 %v2331_v31  ;;  %4121 = vmatprep.subr.mxu1 %v2567_v60  ;;  %v16417_v31 = vld [vmem:[#allocation146_spill] sm:$0xff]  ;;  %v16418_v60 = vld [vmem:[#allocation147_spill] sm:$0xff]  ;;  %v1283_v34 = vsel %vm15841_vm11, %v16427_v1, %v16441_v40 }
 0x4b3   :  { %4055 = vmatpush2.msra.mxu0 %v2330_v62  ;;  %4122 = vmatpush2.msra.mxu1 %v2566_v20  ;;  %v1516_v62 = vsel %vm15838_vm9, %v16418_v60, %v16417_v31  ;;  %v16419_v20 = vld [vmem:[#allocation174_spill] sm:$0xff] }
 0x4b4   :  { %4057 = vmatmul.mubr.f32.vlgmr.msra.gmra.mxu0 %v11707_v14  ;;  %4123 = vmatprep.subr.mxu1 %v2450_v38  ;;  %v16420_v38 = vld [vmem:[#allocation175_spill] sm:$0xff] }
 0x4b5   :  { %4134 = vmatprep.subr.mxu0 %v2218_v13  ;;  %4124 = vmatpush2.msra.mxu1 %v2449_v8  ;;  %v1752_v13 = vsel %vm1744_vm7, %v16420_v38, %v16419_v20  ;;  %v16421_v8 = vld [vmem:[#allocation145_spill] sm:$0xff] }
 0x4b6   :  { %4135 = vmatpush1.msra.mxu0 %v2217_v54  ;;  %4125 = vmatprep.subr.mxu1 %v2333_v24  ;;  %v1515_v54 = vsel %vm15838_vm9, %v16421_v8, %v16418_v60  ;;  %v1751_v24 = vsel %vm1744_vm7, %v16407_v45, %v16420_v38  ;;  %v16435_v45 = vld [vmem:[#allocation134_spill] sm:$0xff] }
 0x4b7   :  { %4136 = vmatprep.subr.mxu0 %v2101_v46  ;;  %4126 = vmatpush2.msra.mxu1 %v2332_v63  ;;  %v1399_v46 = vsel %vm15840_vm10, %v16423_v35, %v16422_v50  ;;  %v16424_v63 = vld [vmem:[#allocation163_spill] sm:$0xff]  ;;  %v16447_v60 = vld [vmem:[#allocation110_spill] sm:$0xff] }
 0x4b8   :  { %4137 = vmatpush1.msra.mxu0 %v2100_v7  ;;  %4128 = vmatmul.mubr.f32.vlgmr.msra.gmra.mxu1 %v11707_v14  ;;  %v1635_v7 = vsel %vm15839_vm8, %v16425_v33, %v16424_v63 }
 0x4b9   :  { %4138 = vmatprep.subr.mxu0 %v1984_v32  ;;  %4205 = vmatprep.subr.mxu1 %v2220_v57  ;;  %v1634_v32 = vsel %vm15839_vm8, %v16412_v6, %v16425_v33  ;;  %v16428_v57 = vld [vmem:[#allocation121_spill] sm:$0xff]  ;;  %v16440_v6 = vld [vmem:[#allocation122_spill] sm:$0xff]  ;;  %v16455_v33 = vld [vmem:[#allocation95_spill] sm:$0xff] }
 0x4ba   :  { %4139 = vmatpush1.msra.mxu0 %v1983_v47  ;;  %4206 = vmatpush1.msra.mxu1 %v2219_v51  ;;  %v1282_v11 = vsel %vm15841_vm11, %v16428_v57, %v16427_v1  ;;  %v16429_v47 = vld [vmem:[#allocation148_spill] sm:$0xff]  ;;  %v16430_v51 = vld [vmem:[#allocation149_spill] sm:$0xff]  ;;  %v16460_v1 = vld [vmem:[#allocation47_spill] sm:$0xff] }
 0x4bb   :  { %4140 = vmatprep.subr.mxu0 %v1867_v22  ;;  %4207 = vmatprep.subr.mxu1 %v2103_v61  ;;  %v1518_v0 = vsel %vm15838_vm9, %v16430_v51, %v16429_v47  ;;  %v1281_v22 = vsel %vm15841_vm11, %v16431_v41, %v16428_v57  ;;  %v1517_v55 = vsel %vm15838_vm9, %v16417_v31, %v16430_v51  ;;  %v16432_v61 = vld [vmem:[#allocation108_spill] sm:$0xff]  ;;  %vm16439_vm9 = vcmask 941056   ;;  %v16463_v51 = vld [vmem:[#allocation81_spill] sm:$0xff] }
 0x4bc   :  { %4141 = vmatpush1.msra.mxu0 %v1866_v53  ;;  %4208 = vmatpush1.msra.mxu1 %v2102_v9  ;;  %v1165_v53 = vsel %vm15842_vm12, %v16433_v10, %v16432_v61  ;;  %v16434_v9 = vld [vmem:[#allocation137_spill] sm:$0xff]  ;;  %vm16443_vm8 = vmmov %vm16439_vm9  ;;  %v16461_v57 = vld [vmem:[#allocation44_spill] sm:$0xff] }
 0x4bd   :  { %4142 = vmatprep.subr.mxu0 %v1750_v28  ;;  %4209 = vmatprep.subr.mxu1 %v1986_v19  ;;  %v1401_v39 = vsel %vm15840_vm10, %v16435_v45, %v16434_v9  ;;  %v16436_v28 = vld [vmem:[#allocation106_spill] sm:$0xff]  ;;  %v1400_v19 = vsel %vm15840_vm10, %v16422_v50, %v16435_v45  ;;  %vm16446_vm10 = vcmask 949248   ;;  %v16452_v50 = vld [vmem:[#allocation61_spill] sm:$0xff] }
 0x4be   :  { %4143 = vmatpush1.msra.mxu0 %v1749_v26  ;;  %4210 = vmatpush1.msra.mxu1 %v1985_v16  ;;  %v1164_v49 = vsel %vm15842_vm12, %v16436_v28, %v16433_v10  ;;  %v16438_v26 = vld [vmem:[#allocation93_spill] sm:$0xff]  ;;  %v16469_v45 = vld [vmem:[#allocation30_spill] sm:$0xff] }
 0x4bf   :  { %4144 = vmatprep.subr.mxu0 %v1633_v29  ;;  %4211 = vmatprep.subr.mxu1 %v1869_v17  ;;  %v1048_v16 = vsel %vm16439_vm9, %v16438_v26, %v16437_v30  ;;  %v1284_v29 = vsel %vm15841_vm11, %v16441_v40, %v16440_v6  ;;  %v1047_v17 = vsel %vm16443_vm8, %v16442_v12, %v16438_v26  ;;  %vm16450_vm9 = vmmov %vm16446_vm10  ;;  %vm16453_vm8 = vcmask 957440   ;;  %v16475_v26 = vld [vmem:[#allocation28_spill] sm:$0xff]  ;;  %v16479_v12 = vld [vmem:[#allocation14_spill] sm:$0xff] }
 0x4c0   :  { %4145 = vmatpush1.msra.mxu0 %v1632_v52  ;;  %4212 = vmatpush1.msra.mxu1 %v1868_v48  ;;  %v16444_v52 = vld [vmem:[#allocation79_spill] sm:$0xff]  ;;  %v16445_v48 = vld [vmem:[#allocation76_spill] sm:$0xff]  ;;  %vm16458_vm11 = vmmov %vm16453_vm8 }
 0x4c1   :  { %4146 = vmatprep.subr.mxu0 %v1516_v62  ;;  %4213 = vmatprep.subr.mxu1 %v1752_v13  ;;  %v931_v31 = vsel %vm16446_vm10, %v16445_v48, %v16444_v52  ;;  %v16448_v62 = vld [vmem:[#allocation107_spill] sm:$0xff]  ;;  %v16449_v13 = vld [vmem:[#allocation77_spill] sm:$0xff]  ;;  %vm16456_vm10 = vcmask 941056  }
 0x4c2   :  { %4147 = vmatpush1.msra.mxu0 %v1515_v54  ;;  %4214 = vmatpush1.msra.mxu1 %v1751_v24  ;;  %v1167_v38 = vsel %vm15842_vm12, %v16448_v62, %v16447_v60  ;;  %v930_v8 = vsel %vm16450_vm9, %v16449_v13, %v16445_v48  ;;  %v1166_v54 = vsel %vm15842_vm12, %v16432_v61, %v16448_v62  ;;  %v16451_v24 = vld [vmem:[#allocation60_spill] sm:$0xff]  ;;  %vm16459_vm9 = vmmov %vm16456_vm10  ;;  %vm16462_vm12 = vcmask 1022976  }
 0x4c3   :  { %4148 = vmatprep.subr.mxu0 %v1399_v46  ;;  %4215 = vmatprep.subr.mxu1 %v1635_v7  ;;  %v814_v35 = vsel %vm16453_vm8, %v16452_v50, %v16451_v24  ;;  %v16454_v46 = vld [vmem:[#allocation94_spill] sm:$0xff]  ;;  %vm16465_vm8 = vcmask 949248  }
 0x4c4   :  { %4149 = vmatpush1.msra.mxu0 %v1398_v25  ;;  %4216 = vmatpush1.msra.mxu1 %v1634_v32  ;;  %v1050_v7 = vsel %vm16456_vm10, %v16455_v33, %v16454_v46  ;;  %v813_v25 = vsel %vm16458_vm11, %v16457_v59, %v16452_v50  ;;  %v1049_v32 = vsel %vm16459_vm9, %v16437_v30, %v16455_v33  ;;  %vm16467_vm11 = vmmov %vm16462_vm12  ;;  %vm16474_vm9 = vcmask 957440   ;;  %v16491_v59 = vld [vmem:[#allocation318_spill] sm:$0xff] }
 0x4c5   :  { %4150 = vmatprep.subr.mxu0 %v1282_v11  ;;  %4217 = vmatprep.subr.mxu1 %v1518_v0  ;;  %v697_v11 = vsel %vm16462_vm12, %v16461_v57, %v16460_v1  ;;  %v16464_v0 = vld [vmem:[#allocation78_spill] sm:$0xff]  ;;  %vm16468_vm10 = vmmov %vm16465_vm8  ;;  %vm16471_vm12 = vcmask 1031168  }
 0x4c6   :  { %4151 = vmatpush1.msra.mxu0 %v1281_v22  ;;  %4218 = vmatpush1.msra.mxu1 %v1517_v55  ;;  %v933_v41 = vsel %vm16465_vm8, %v16464_v0, %v16463_v51  ;;  %v3478_v22 = vpop.permute.xlu0 %3477  ;;  %v16466_v55 = vld [vmem:[#allocation45_spill] sm:$0xff]  ;;  %v932_v10 = vsel %vm16468_vm10, %v16444_v52, %v16464_v0  ;;  %vm16476_vm8 = vmmov %vm16471_vm12  ;;  %vm16480_vm10 = vcmask 1039360   ;;  %v16482_v52 = vld [vmem:[#allocation46_spill] sm:$0xff] }
 0x4c7   :  { %4152 = vmatprep.subr.mxu0 %v1165_v53  ;;  %4219 = vmatprep.subr.mxu1 %v1401_v39  ;;  %v696_v61 = vsel %vm16467_vm11, %v16466_v55, %v16461_v57  ;;  %v3476_v53 = vpop.permute.xlu1 %3475  ;;  %v16470_v39 = vld [vmem:[#allocation31_spill] sm:$0xff]  ;;  %vm16477_vm11 = vmmov %vm16474_vm9  ;;  %v16495_v57 = vld [vmem:[#allocation16_spill] sm:$0xff] }
 0x4c8   :  { %4153 = vmatpush1.msra.mxu0 %v1164_v49  ;;  %4220 = vmatpush1.msra.mxu1 %v1400_v19  ;;  %v580_v28 = vsel %vm16471_vm12, %v16470_v39, %v16469_v45  ;;  %v16472_v49 = vld [vmem:[#allocation62_spill] sm:$0xff]  ;;  %v16473_v19 = vld [vmem:[#allocation63_spill] sm:$0xff]  ;;  %vm16483_vm12 = vcmask 1022976   ;;  %v3505_v13 = vsel %vm3499_vm1, %v3476_v53, %v3478_v22 }
 0x4c9   :  { %4154 = vmatprep.subr.mxu0 %v1048_v16  ;;  %4221 = vmatprep.subr.mxu1 %v1284_v29  ;;  %v816_v30 = vsel %vm16474_vm9, %v16473_v19, %v16472_v49  ;;  %v579_v16 = vsel %vm16476_vm8, %v16475_v26, %v16470_v39  ;;  %v815_v40 = vsel %vm16477_vm11, %v16451_v24, %v16473_v19  ;;  %v16478_v29 = vld [vmem:[#allocation17_spill] sm:$0xff]  ;;  %vm16485_vm9 = vmmov %vm16480_vm10  ;;  %vm16489_vm11 = vcmask 1031168   ;;  %v16499_v55 = vld [vmem:[#allocation306_spill] sm:$0xff] }
 0x4ca   :  { %4155 = vmatpush1.msra.mxu0 %v1047_v17  ;;  %4222 = vmatpush1.msra.mxu1 %v1283_v34  ;;  %v463_v17 = vsel %vm16480_vm10, %v16479_v12, %v16478_v29  ;;  %v16481_v34 = vld [vmem:[#allocation49_spill] sm:$0xff]  ;;  %vm16486_vm8 = vmmov %vm16483_vm12  ;;  %v11913_v50 = vpop.permute.xlu0 %3481  ;;  %v16503_v39 = vld [vmem:[#allocation295_spill] sm:$0xff] }
 0x4cb   :  { %4156 = vmatprep.subr.mxu0 %v931_v31  ;;  %4223 = vmatprep.subr.mxu1 %v1167_v38  ;;  %v699_v48 = vsel %vm16483_vm12, %v16482_v52, %v16481_v34  ;;  %v16484_v31 = vld [vmem:[#allocation15_spill] sm:$0xff]  ;;  %v698_v38 = vsel %vm16486_vm8, %v16460_v1, %v16482_v52  ;;  %vm16490_vm10 = vmmov %vm16489_vm11  ;;  %vm16493_vm12 = vcmask 277504   ;;  %v16505_v19 = vld [vmem:[#allocation320_spill] sm:$0xff] }
 0x4cc   :  { %4157 = vmatpush1.msra.mxu0 %v930_v8  ;;  %4224 = vmatpush1.msra.mxu1 %v1166_v54  ;;  %v462_v62 = vsel %vm16485_vm9, %v16484_v31, %v16479_v12  ;;  %v16487_v8 = vld [vmem:[#allocation32_spill] sm:$0xff]  ;;  %v16488_v54 = vld [vmem:[#allocation33_spill] sm:$0xff]  ;;  %v16494_v1 = vld [vmem:[#allocation19_spill] sm:$0xff] }
 0x4cd   :  { %4158 = vmatprep.subr.mxu0 %v814_v35  ;;  %4225 = vmatprep.subr.mxu1 %v1050_v7  ;;  %v582_v24 = vsel %vm16489_vm11, %v16488_v54, %v16487_v8  ;;  %v3504_v35 = vsel %vm3499_vm1, %v11608_v18, %v3476_v53  ;;  %v581_v33 = vsel %vm16490_vm10, %v16469_v45, %v16488_v54  ;;  %v3480_v7 = vpop.permute.xlu1 %3479  ;;  %vm16496_vm8 = vmmov %vm16493_vm12  ;;  %vm16500_vm10 = vcmask 285696   ;;  %v16502_v45 = vld [vmem:[#allocation294_spill] sm:$0xff]  ;;  %v16517_v31 = vld [vmem:[#allocation269_spill] sm:$0xff] }
 0x4ce   :  { %4159 = vmatpush1.msra.mxu0 %v813_v25  ;;  %4226 = vmatpush1.msra.mxu1 %v1049_v32  ;;  %v16492_v25 = vld [vmem:[#allocation319_spill] sm:$0xff]  ;;  %vm16497_vm11 = vmmov %vm16485_vm9  ;;  %v16512_v12 = vld [vmem:[#allocation310_spill] sm:$0xff] }
 0x4cf   :  { %4160 = vmatprep.subr.mxu0 %v697_v11  ;;  %4227 = vmatprep.subr.mxu1 %v933_v41  ;;  %v3388_v32 = vsel %vm16493_vm12, %v16492_v25, %v16491_v59  ;;  %v465_v11 = vsel %vm16485_vm9, %v16495_v57, %v16494_v1  ;;  %v3387_v18 = vsel %vm16496_vm8, %v11576_v56, %v16492_v25  ;;  %v16498_v41 = vld [vmem:[#allocation308_spill] sm:$0xff]  ;;  %vm16501_vm12 = vmmov %vm16500_vm10  ;;  %vm16504_vm9 = vcmask 351232   ;;  %v16521_v54 = vld [vmem:[#allocation297_spill] sm:$0xff] }
 0x4d0   :  { %4161 = vmatpush1.msra.mxu0 %v696_v61  ;;  %4228 = vmatpush1.msra.mxu1 %v932_v10  ;;  %v464_v0 = vsel %vm16497_vm11, %v16478_v29, %v16495_v57  ;;  %v3271_v61 = vsel %vm16500_vm10, %v16499_v55, %v16498_v41  ;;  %v3507_v10 = vsel %vm3499_vm1, %v3480_v7, %v11913_v50  ;;  %vm16507_vm11 = vmmov %vm16504_vm9  ;;  %v16527_v25 = vld [vmem:[#allocation285_spill] sm:$0xff] }
 0x4d1   :  { %4162 = vmatprep.subr.mxu0 %v580_v28  ;;  %4229 = vmatprep.subr.mxu1 %v816_v30  ;;  %v3270_v53 = vsel %vm16501_vm12, %v11552_v43, %v16499_v55  ;;  %v3506_v56 = vsel %vm3499_vm1, %v3478_v22, %v3480_v7  ;;  %v3154_v28 = vsel %vm16504_vm9, %v16503_v39, %v16502_v45  ;;  %v16506_v30 = vld [vmem:[#allocation321_spill] sm:$0xff]  ;;  %vm16508_vm10 = vmmov %vm16496_vm8  ;;  %v16509_v22 = vld [vmem:[#allocation283_spill] sm:$0xff]  ;;  %vm16511_vm12 = vcmask 359424  }
 0x4d2   :  { %4163 = vmatpush1.msra.mxu0 %v579_v16  ;;  %4230 = vmatpush1.msra.mxu1 %v815_v40  ;;  %v3390_v26 = vsel %vm16496_vm8, %v16506_v30, %v16505_v19  ;;  %v3153_v16 = vsel %vm16507_vm11, %v11504_v15, %v16503_v39  ;;  %v3389_v43 = vsel %vm16508_vm10, %v16491_v59, %v16506_v30  ;;  %v16510_v40 = vld [vmem:[#allocation281_spill] sm:$0xff]  ;;  %vm16514_vm9 = vcmask 285696   ;;  %vm16515_vm8 = vmmov %vm16511_vm12  ;;  %v16533_v55 = vld [vmem:[#allocation271_spill] sm:$0xff] }
 0x4d3   :  { %4164 = vmatprep.subr.mxu0 %v463_v17  ;;  %4231 = vmatprep.subr.mxu1 %v699_v48  ;;  %v3037_v29 = vsel %vm16511_vm12, %v16510_v40, %v16509_v22  ;;  %v16513_v17 = vld [vmem:[#allocation307_spill] sm:$0xff]  ;;  %v3036_v15 = vsel %vm16515_vm8, %v11433_v4, %v16510_v40  ;;  %vm16516_vm11 = vmmov %vm16514_vm9  ;;  %vm16519_vm10 = vcmask 367616   ;;  %vm16522_vm12 = vcmask 351232   ;;  %v16526_v7 = vld [vmem:[#allocation257_spill] sm:$0xff] }
 0x4d4   :  { %4165 = vmatpush1.msra.mxu0 %v462_v62  ;;  %4232 = vmatpush1.msra.mxu1 %v698_v38  ;;  %v3273_v52 = vsel %vm16514_vm9, %v16513_v17, %v16512_v12  ;;  %v3272_v48 = vsel %vm16516_vm11, %v16498_v41, %v16513_v17  ;;  %v16518_v62 = vld [vmem:[#allocation270_spill] sm:$0xff]  ;;  %vm16523_vm9 = vmmov %vm16519_vm10  ;;  %vm16529_vm11 = vcmask 359424   ;;  %v16543_v17 = vld [vmem:[#allocation248_spill] sm:$0xff] }
 0x4d5   :  { %4176 = vmatprep.subr.mxu0 %v3505_v13  ;;  %4233 = vmatprep.subr.mxu1 %v582_v24  ;;  %v2920_v38 = vsel %vm16519_vm10, %v16518_v62, %v16517_v31  ;;  %v16520_v13 = vld [vmem:[#allocation296_spill] sm:$0xff]  ;;  %v2919_v4 = vsel %vm16523_vm9, %v11359_v21, %v16518_v62  ;;  %vm16524_vm8 = vmmov %vm16522_vm12  ;;  %v2802_v21 = vsel %vm2797_vm0, %v11297_v44, %v16526_v7  ;;  %v16539_v30 = vld [vmem:[#allocation258_spill] sm:$0xff] }
 0x4d6   :  { %4177 = vmatpush2.msra.mxu0 %v3504_v35  ;;  %4234 = vmatpush1.msra.mxu1 %v581_v33  ;;  %v3156_v24 = vsel %vm16522_vm12, %v16521_v54, %v16520_v13  ;;  %v3155_v35 = vsel %vm16524_vm8, %v16502_v45, %v16521_v54  ;;  %v16525_v33 = vld [vmem:[#allocation259_spill] sm:$0xff]  ;;  %vm16530_vm10 = vmmov %vm16529_vm11  ;;  %v16537_v45 = vld [vmem:[#allocation233_spill] sm:$0xff]  ;;  %vm16549_vm8 = vcmask 719872  }
 0x4d7   :  { %4178 = vmatprep.subr.mxu0 %v3388_v32  ;;  %4235 = vmatprep.subr.mxu1 %v465_v11  ;;  %v2803_v59 = vsel %vm2797_vm0, %v16526_v7, %v16525_v33  ;;  %v16528_v32 = vld [vmem:[#allocation282_spill] sm:$0xff]  ;;  %vm16535_vm12 = vmmov %vm16523_vm9  ;;  %v16551_v7 = vld [vmem:[#allocation4_spill] sm:$0xff] }
 0x4d8   :  { %4179 = vmatpush2.msra.mxu0 %v3387_v18  ;;  %4236 = vmatpush1.msra.mxu1 %v464_v0  ;;  %v3039_v57 = vsel %vm16529_vm11, %v16528_v32, %v16527_v25  ;;  %v3038_v11 = vsel %vm16530_vm10, %v16509_v22, %v16528_v32  ;;  %v16531_v18 = vld [vmem:[#allocation245_spill] sm:$0xff]  ;;  %v16532_v0 = vld [vmem:[#allocation246_spill] sm:$0xff]  ;;  %v16541_v22 = vld [vmem:[#allocation27_spill] sm:$0xff]  ;;  %vm16573_vm10 = vcmask 211968  }
 0x4d9   :  { %4180 = vmatprep.subr.mxu0 %v3271_v61  ;;  %4247 = vmatprep.subr.mxu1 %v3507_v10  ;;  %v2686_v41 = vsel %vm2680_vm2, %v16532_v0, %v16531_v18  ;;  %v16534_v61 = vld [vmem:[#allocation272_spill] sm:$0xff]  ;;  %v2685_v44 = vsel %vm2680_vm2, %v11221_v37, %v16532_v0  ;;  %v2568_v37 = vsel %vm2563_vm15, %v11153_v5, %v16537_v45  ;;  %v16547_v54 = vld [vmem:[#allocation234_spill] sm:$0xff]  ;;  %v16552_v32 = vld [vmem:[#allocation225_spill] sm:$0xff] }
 0x4da   :  { %4181 = vmatpush2.msra.mxu0 %v3270_v53  ;;  %4248 = vmatpush2.msra.mxu1 %v3506_v56  ;;  %v2922_v10 = vsel %vm16535_vm12, %v16534_v61, %v16533_v55  ;;  %v2921_v53 = vsel %vm16523_vm9, %v16517_v31, %v16534_v61  ;;  %v16536_v56 = vld [vmem:[#allocation235_spill] sm:$0xff]  ;;  %v2451_v5 = vsel %vm2446_vm14, %v11079_v2, %v16541_v22  ;;  %v16555_v0 = vld [vmem:[#allocation72_spill] sm:$0xff]  ;;  %v16556_v61 = vld [vmem:[#allocation217_spill] sm:$0xff]  ;;  %vm16579_vm9 = vcmask 220160  }
 0x4db   :  { %4182 = vmatprep.subr.mxu0 %v3154_v28  ;;  %4249 = vmatprep.subr.mxu1 %v3390_v26  ;;  %v2569_v39 = vsel %vm2563_vm15, %v16537_v45, %v16536_v56  ;;  %v16538_v28 = vld [vmem:[#allocation261_spill] sm:$0xff]  ;;  %v16545_v31 = vld [vmem:[#allocation75_spill] sm:$0xff]  ;;  %vm16558_vm11 = vmmov %vm16549_vm8 }
 0x4dc   :  { %4183 = vmatpush2.msra.mxu0 %v3153_v16  ;;  %4250 = vmatpush2.msra.mxu1 %v3389_v43  ;;  %v2805_v26 = vsel %vm2797_vm0, %v16539_v30, %v16538_v28  ;;  %v2804_v16 = vsel %vm2797_vm0, %v16525_v33, %v16539_v30  ;;  %v16540_v43 = vld [vmem:[#allocation26_spill] sm:$0xff]  ;;  %v2334_v2 = vsel %vm2329_vm13, %v10983_v23, %v16545_v31  ;;  %v16550_v33 = vld [vmem:[#allocation59_spill] sm:$0xff]  ;;  %vm16576_vm12 = vmmov %vm16573_vm10 }
 0x4dd   :  { %4184 = vmatprep.subr.mxu0 %v3037_v29  ;;  %4251 = vmatprep.subr.mxu1 %v3273_v52  ;;  %v2452_v40 = vsel %vm2446_vm14, %v16541_v22, %v16540_v43  ;;  %v16542_v29 = vld [vmem:[#allocation247_spill] sm:$0xff]  ;;  %v2453_v23 = vsel %vm2446_vm14, %v16540_v43, %v16551_v7  ;;  %v16564_v22 = vld [vmem:[#allocation188_spill] sm:$0xff] }
 0x4de   :  { %4185 = vmatpush2.msra.mxu0 %v3036_v15  ;;  %4252 = vmatpush2.msra.mxu1 %v3272_v48  ;;  %v2688_v52 = vsel %vm2680_vm2, %v16543_v17, %v16542_v29  ;;  %v2687_v15 = vsel %vm2680_vm2, %v16531_v18, %v16543_v17  ;;  %v16544_v48 = vld [vmem:[#allocation104_spill] sm:$0xff]  ;;  %v16560_v45 = vld [vmem:[#allocation203_spill] sm:$0xff] }
 0x4df   :  { %4186 = vmatprep.subr.mxu0 %v2920_v38  ;;  %4253 = vmatprep.subr.mxu1 %v3156_v24  ;;  %v2335_v62 = vsel %vm2329_vm13, %v16545_v31, %v16544_v48  ;;  %v16546_v38 = vld [vmem:[#allocation237_spill] sm:$0xff]  ;;  %v16554_v18 = vld [vmem:[#allocation56_spill] sm:$0xff]  ;;  %v16561_v30 = vld [vmem:[#allocation227_spill] sm:$0xff] }
 0x4e0   :  { %4187 = vmatpush2.msra.mxu0 %v2919_v4  ;;  %4254 = vmatpush2.msra.mxu1 %v3155_v35  ;;  %v2571_v24 = vsel %vm2563_vm15, %v16547_v54, %v16546_v38  ;;  %v16548_v4 = vld [vmem:[#allocation293_spill] sm:$0xff]  ;;  %v2570_v35 = vsel %vm2563_vm15, %v16536_v56, %v16547_v54  ;;  %v16559_v56 = vld [vmem:[#allocation202_spill] sm:$0xff]  ;;  %v16563_v43 = vld [vmem:[#allocation191_spill] sm:$0xff] }
 0x4e1   :  { %4188 = vmatprep.subr.mxu0 %v2803_v59  ;;  %4255 = vmatprep.subr.mxu1 %v3039_v57  ;;  %v2454_v59 = vsel %vm2446_vm14, %v16551_v7, %v16550_v33  ;;  %v16553_v57 = vld [vmem:[#allocation226_spill] sm:$0xff]  ;;  %v16565_v17 = vld [vmem:[#allocation219_spill] sm:$0xff]  ;;  %v16568_v31 = vld [vmem:[#allocation177_spill] sm:$0xff] }
 0x4e2   :  { %4189 = vmatpush2.msra.mxu0 %v2802_v21  ;;  %4256 = vmatpush2.msra.mxu1 %v3038_v11  ;;  %v2222_v21 = vsel %vm2212_vm3, %v16553_v57, %v16552_v32  ;;  %v2221_v11 = vsel %vm2212_vm3, %v16399_v27, %v16553_v57  ;;  %v16569_v54 = vld [vmem:[#allocation204_spill] sm:$0xff]  ;;  %v16572_v7 = vld [vmem:[#allocation162_spill] sm:$0xff] }
 0x4e3   :  { %4190 = vmatprep.subr.mxu0 %v2686_v41  ;;  %4257 = vmatprep.subr.mxu1 %v2922_v10  ;;  %v2337_v41 = vsel %vm2329_vm13, %v16555_v0, %v16554_v18  ;;  %v16557_v10 = vld [vmem:[#allocation214_spill] sm:$0xff] }
 0x4e4   :  { %4191 = vmatpush2.msra.mxu0 %v2685_v44  ;;  %4258 = vmatpush2.msra.mxu1 %v2921_v53  ;;  %v2105_v44 = vsel %vm2095_vm4, %v16557_v10, %v16556_v61  ;;  %v2336_v53 = vsel %vm2329_vm13, %v16544_v48, %v16555_v0  ;;  %v2104_v27 = vsel %vm2095_vm4, %v16404_v36, %v16557_v10  ;;  %v16567_v48 = vld [vmem:[#allocation176_spill] sm:$0xff]  ;;  %v16575_v57 = vld [vmem:[#allocation190_spill] sm:$0xff]  ;;  %v16578_v0 = vld [vmem:[#allocation151_spill] sm:$0xff] }
 0x4e5   :  { %4192 = vmatprep.subr.mxu0 %v2569_v39  ;;  %4259 = vmatprep.subr.mxu1 %v2805_v26  ;;  %v1988_v39 = vsel %vm1978_vm5, %v16560_v45, %v16559_v56  ;;  %v16562_v26 = vld [vmem:[#allocation228_spill] sm:$0xff]  ;;  %v16581_v10 = vld [vmem:[#allocation179_spill] sm:$0xff] }
 0x4e6   :  { %4193 = vmatpush2.msra.mxu0 %v2568_v37  ;;  %4260 = vmatpush2.msra.mxu1 %v2804_v16  ;;  %v2224_v37 = vsel %vm2212_vm3, %v16562_v26, %v16561_v30  ;;  %v1987_v16 = vsel %vm1978_vm5, %v16409_v42, %v16560_v45  ;;  %v2223_v36 = vsel %vm2212_vm3, %v16552_v32, %v16562_v26  ;;  %v16574_v32 = vld [vmem:[#allocation193_spill] sm:$0xff]  ;;  %v16587_v26 = vld [vmem:[#allocation164_spill] sm:$0xff] }
 0x4e7   :  { %4194 = vmatprep.subr.mxu0 %v2452_v40  ;;  %4261 = vmatprep.subr.mxu1 %v2688_v52  ;;  %v1871_v40 = vsel %vm1861_vm6, %v16564_v22, %v16563_v43  ;;  %v16566_v52 = vld [vmem:[#allocation216_spill] sm:$0xff]  ;;  %v1870_v42 = vsel %vm1861_vm6, %v16414_v3, %v16564_v22  ;;  %v1753_v3 = vsel %vm1744_vm7, %v16419_v20, %v16568_v31 }
 0x4e8   :  { %4195 = vmatpush2.msra.mxu0 %v2451_v5  ;;  %4262 = vmatpush2.msra.mxu1 %v2687_v15  ;;  %v2107_v5 = vsel %vm2095_vm4, %v16566_v52, %v16565_v17  ;;  %v2106_v15 = vsel %vm2095_vm4, %v16556_v61, %v16566_v52  ;;  %v1636_v20 = vsel %vm16576_vm12, %v16424_v63, %v16572_v7  ;;  %v16580_v61 = vld [vmem:[#allocation178_spill] sm:$0xff]  ;;  %v16594_v52 = vld [vmem:[#allocation153_spill] sm:$0xff] }
 0x4e9   :  { %4196 = vmatprep.subr.mxu0 %v2335_v62  ;;  %4263 = vmatprep.subr.mxu1 %v2571_v24  ;;  %v1754_v62 = vsel %vm1744_vm7, %v16568_v31, %v16567_v48  ;;  %v16570_v24 = vld [vmem:[#allocation205_spill] sm:$0xff] }
 0x4ea   :  { %4197 = vmatpush2.msra.mxu0 %v2334_v2  ;;  %8982 = vmatprep.mubr.msk.f32.mxu0 %vm16549_vm8, %v16548_v4  ;;  %v1990_v2 = vsel %vm1978_vm5, %v16570_v24, %v16569_v54  ;;  %vm16582_vm8 = vmmov %vm16579_vm9 }
 0x4eb   :  { %4264 = vmatpush2.msra.mxu1 %v2570_v35  ;;  %4199 = vmatmul.mubr.f32.vlgmr.msra.gmra.mxu0 %v11707_v14  ;;  %v16571_v35 = vld [vmem:[#allocation165_spill] sm:$0xff]  ;;  %v1519_v63 = vsel %vm16582_vm8, %v16429_v47, %v16578_v0  ;;  %vm16592_vm8 = vcmask 867328  }
 0x4ec   :  { %4265 = vmatprep.subr.mxu1 %v2454_v59  ;;  %4276 = vmatprep.subr.mxu0 %v2222_v21  ;;  %v1637_v59 = vsel %vm16573_vm10, %v16572_v7, %v16571_v35  ;;  %v1873_v21 = vsel %vm1861_vm6, %v16575_v57, %v16574_v32 }
 0x4ed   :  { %4266 = vmatpush2.msra.mxu1 %v2453_v23  ;;  %4277 = vmatpush1.msra.mxu0 %v2221_v11  ;;  %v1872_v23 = vsel %vm1861_vm6, %v16563_v43, %v16575_v57  ;;  %v16577_v11 = vld [vmem:[#allocation150_spill] sm:$0xff]  ;;  %v16591_v43 = vld [vmem:[#allocation125_spill] sm:$0xff]  ;;  %v16610_v57 = vld [vmem:[#allocation127_spill] sm:$0xff] }
 0x4ee   :  { %4267 = vmatprep.subr.mxu1 %v2337_v41  ;;  %4278 = vmatprep.subr.mxu0 %v2105_v44  ;;  %v1520_v41 = vsel %vm16579_vm9, %v16578_v0, %v16577_v11  ;;  %v1756_v44 = vsel %vm1744_vm7, %v16581_v10, %v16580_v61  ;;  %vm16589_vm9 = vmmov %vm16573_vm10 }
 0x4ef   :  { %4268 = vmatpush2.msra.mxu1 %v2336_v53  ;;  %8983 = vmatprep.mubr.msk.f32.mxu1 %vm16558_vm11, %v16548_v4  ;;  %v1989_v4 = vsel %vm1978_vm5, %v16559_v56, %v16570_v24  ;;  %v1755_v53 = vsel %vm1744_vm7, %v16567_v48, %v16581_v10  ;;  %v16584_v56 = vld [vmem:[#allocation136_spill] sm:$0xff]  ;;  %vm16585_vm11 = vcmask 859136   ;;  %v16599_v48 = vld [vmem:[#allocation109_spill] sm:$0xff]  ;;  %v16602_v24 = vld [vmem:[#allocation138_spill] sm:$0xff] }
 0x4f0   :  { %4279 = vmatpush1.msra.mxu0 %v2104_v27  ;;  %4270 = vmatmul.mubr.f32.vlgmr.msra.gmra.mxu1 %v11707_v14  ;;  %v16583_v27 = vld [vmem:[#allocation139_spill] sm:$0xff]  ;;  %vm16588_vm12 = vmmov %vm16585_vm11 }
 0x4f1   :  { %4280 = vmatprep.subr.mxu0 %v1988_v39  ;;  %4347 = vmatprep.subr.mxu1 %v2224_v37  ;;  %v1403_v45 = vsel %vm16585_vm11, %v16584_v56, %v16583_v27  ;;  %v16586_v39 = vld [vmem:[#allocation167_spill] sm:$0xff]  ;;  %v1402_v47 = vsel %vm16588_vm12, %v16434_v9, %v16584_v56  ;;  %vm16595_vm11 = vcmask 220160  }
 0x4f2   :  { %4281 = vmatpush1.msra.mxu0 %v1987_v16  ;;  %4348 = vmatpush1.msra.mxu1 %v2223_v36  ;;  %v1639_v37 = vsel %vm16573_vm10, %v16587_v26, %v16586_v39  ;;  %v1638_v16 = vsel %vm16589_vm9, %v16571_v35, %v16587_v26  ;;  %v16590_v36 = vld [vmem:[#allocation124_spill] sm:$0xff]  ;;  %vm16596_vm10 = vmmov %vm16592_vm8  ;;  %vm16600_vm9 = vcmask 875520   ;;  %v16607_v35 = vld [vmem:[#allocation97_spill] sm:$0xff] }
 0x4f3   :  { %4282 = vmatprep.subr.mxu0 %v1871_v40  ;;  %4349 = vmatprep.subr.mxu1 %v2107_v5  ;;  %v1286_v22 = vsel %vm16592_vm8, %v16591_v43, %v16590_v36  ;;  %v16593_v40 = vld [vmem:[#allocation152_spill] sm:$0xff]  ;;  %v1285_v9 = vsel %vm16596_vm10, %v16440_v6, %v16591_v43  ;;  %vm16597_vm12 = vmmov %vm16595_vm11  ;;  %vm16603_vm8 = vcmask 859136   ;;  %v16618_v10 = vld [vmem:[#allocation111_spill] sm:$0xff] }
 0x4f4   :  { %4283 = vmatpush1.msra.mxu0 %v1870_v42  ;;  %4350 = vmatpush1.msra.mxu1 %v2106_v15  ;;  %v1522_v5 = vsel %vm16595_vm11, %v16594_v52, %v16593_v40  ;;  %v1521_v42 = vsel %vm16597_vm12, %v16577_v11, %v16594_v52  ;;  %v16598_v15 = vld [vmem:[#allocation112_spill] sm:$0xff]  ;;  %vm16604_vm11 = vmmov %vm16600_vm9  ;;  %vm16608_vm12 = vcmask 941056   ;;  %v16626_v26 = vld [vmem:[#allocation99_spill] sm:$0xff] }
 0x4f5   :  { %4284 = vmatprep.subr.mxu0 %v1754_v62  ;;  %4351 = vmatprep.subr.mxu1 %v1990_v2  ;;  %v1169_v31 = vsel %vm16600_vm9, %v16599_v48, %v16598_v15  ;;  %v16601_v62 = vld [vmem:[#allocation141_spill] sm:$0xff]  ;;  %v1168_v6 = vsel %vm16604_vm11, %v16447_v60, %v16599_v48  ;;  %vm16605_vm10 = vmmov %vm16603_vm8  ;;  %vm16611_vm9 = vcmask 867328   ;;  %v16615_v11 = vld [vmem:[#allocation80_spill] sm:$0xff] }
 0x4f6   :  { %4285 = vmatpush1.msra.mxu0 %v1753_v3  ;;  %4352 = vmatpush1.msra.mxu1 %v1989_v4  ;;  %v1405_v2 = vsel %vm16603_vm8, %v16602_v24, %v16601_v62  ;;  %v1404_v3 = vsel %vm16605_vm10, %v16583_v27, %v16602_v24  ;;  %v16606_v4 = vld [vmem:[#allocation96_spill] sm:$0xff]  ;;  %vm16612_vm8 = vmmov %vm16608_vm12  ;;  %vm16616_vm10 = vcmask 949248   ;;  %v16623_v27 = vld [vmem:[#allocation65_spill] sm:$0xff] }
 0x4f7   :  { %4286 = vmatprep.subr.mxu0 %v1637_v59  ;;  %4353 = vmatprep.subr.mxu1 %v1873_v21  ;;  %v1052_v7 = vsel %vm16608_vm12, %v16607_v35, %v16606_v4  ;;  %v16609_v59 = vld [vmem:[#allocation126_spill] sm:$0xff]  ;;  %v1051_v60 = vsel %vm16612_vm8, %v16454_v46, %v16607_v35  ;;  %vm16613_vm11 = vmmov %vm16611_vm9  ;;  %vm16619_vm12 = vcmask 875520   ;;  %v16646_v35 = vld [vmem:[#allocation21_spill] sm:$0xff] }
 0x4f8   :  { %4287 = vmatpush1.msra.mxu0 %v1636_v20  ;;  %4354 = vmatpush1.msra.mxu1 %v1872_v23  ;;  %v1288_v21 = vsel %vm16611_vm9, %v16610_v57, %v16609_v59  ;;  %v1287_v20 = vsel %vm16613_vm11, %v16590_v36, %v16610_v57  ;;  %v16614_v23 = vld [vmem:[#allocation83_spill] sm:$0xff]  ;;  %vm16620_vm9 = vmmov %vm16616_vm10  ;;  %vm16624_vm11 = vcmask 957440   ;;  %v16631_v36 = vld [vmem:[#allocation48_spill] sm:$0xff] }
 0x4f9   :  { %4288 = vmatprep.subr.mxu0 %v1520_v41  ;;  %4355 = vmatprep.subr.mxu1 %v1756_v44  ;;  %v935_v0 = vsel %vm16616_vm10, %v16615_v11, %v16614_v23  ;;  %v16617_v41 = vld [vmem:[#allocation114_spill] sm:$0xff]  ;;  %v934_v46 = vsel %vm16620_vm9, %v16463_v51, %v16615_v11  ;;  %vm16621_vm8 = vmmov %vm16619_vm12  ;;  %vm16627_vm10 = vcmask 941056  }
 0x4fa   :  { %4289 = vmatpush1.msra.mxu0 %v1519_v63  ;;  %4356 = vmatpush1.msra.mxu1 %v1755_v53  ;;  %v1171_v44 = vsel %vm16619_vm12, %v16618_v10, %v16617_v41  ;;  %v1170_v63 = vsel %vm16621_vm8, %v16598_v15, %v16618_v10  ;;  %v16622_v53 = vld [vmem:[#allocation64_spill] sm:$0xff]  ;;  %vm16628_vm12 = vmmov %vm16624_vm11  ;;  %vm16632_vm8 = vcmask 1022976   ;;  %v16634_v52 = vld [vmem:[#allocation82_spill] sm:$0xff]  ;;  %v3484_v15 = vpop.permute.xlu1 %3483 }
 0x4fb   :  { %4290 = vmatprep.subr.mxu0 %v1403_v45  ;;  %4357 = vmatprep.subr.mxu1 %v1639_v37  ;;  %v818_v56 = vsel %vm16624_vm11, %v16623_v27, %v16622_v53  ;;  %v16625_v45 = vld [vmem:[#allocation98_spill] sm:$0xff]  ;;  %v817_v51 = vsel %vm16628_vm12, %v16472_v49, %v16623_v27  ;;  %vm16629_vm9 = vmmov %vm16627_vm10  ;;  %vm16635_vm11 = vcmask 949248   ;;  %v16655_v10 = vld [vmem:[#allocation37_spill] sm:$0xff] }
 0x4fc   :  { %4291 = vmatpush1.msra.mxu0 %v1402_v47  ;;  %4358 = vmatpush1.msra.mxu1 %v1638_v16  ;;  %v1054_v37 = vsel %vm16627_vm10, %v16626_v26, %v16625_v45  ;;  %v1053_v47 = vsel %vm16629_vm9, %v16606_v4, %v16626_v26  ;;  %v16630_v16 = vld [vmem:[#allocation51_spill] sm:$0xff]  ;;  %vm16636_vm10 = vmmov %vm16632_vm8  ;;  %v16638_v48 = vld [vmem:[#allocation34_spill] sm:$0xff]  ;;  %vm16640_vm9 = vcmask 1031168  }
 0x4fd   :  { %4292 = vmatprep.subr.mxu0 %v1286_v22  ;;  %4359 = vmatprep.subr.mxu1 %v1522_v5  ;;  %v701_v43 = vsel %vm16632_vm8, %v16631_v36, %v16630_v16  ;;  %v16633_v22 = vld [vmem:[#allocation85_spill] sm:$0xff]  ;;  %v700_v49 = vsel %vm16636_vm10, %v16481_v34, %v16631_v36  ;;  %vm16637_vm12 = vmmov %vm16635_vm11  ;;  %vm16643_vm8 = vcmask 957440   ;;  %v16658_v27 = vld [vmem:[#allocation322_spill] sm:$0xff] }
 0x4fe   :  { %4293 = vmatpush1.msra.mxu0 %v1285_v9  ;;  %4360 = vmatpush1.msra.mxu1 %v1521_v42  ;;  %v937_v5 = vsel %vm16635_vm11, %v16634_v52, %v16633_v22  ;;  %v3486_v9 = vpop.permute.xlu0 %3485  ;;  %v936_v42 = vsel %vm16637_vm12, %v16614_v23, %v16634_v52  ;;  %vm16644_vm11 = vmmov %vm16640_vm9  ;;  %vm16648_vm12 = vcmask 1039360   ;;  %v16665_v36 = vld [vmem:[#allocation312_spill] sm:$0xff] }
 0x4ff   :  { %4294 = vmatprep.subr.mxu0 %v1169_v31  ;;  %4361 = vmatprep.subr.mxu1 %v1405_v2  ;;  %v16639_v31 = vld [vmem:[#allocation35_spill] sm:$0xff]  ;;  %v16641_v2 = vld [vmem:[#allocation66_spill] sm:$0xff]  ;;  %vm16645_vm10 = vmmov %vm16643_vm8  ;;  %v3509_v11 = vsel %vm3499_vm1, %v3484_v15, %v3486_v9 }
 0x500   :  { %4295 = vmatpush1.msra.mxu0 %v1168_v6  ;;  %4362 = vmatpush1.msra.mxu1 %v1404_v3  ;;  %v584_v24 = vsel %vm16640_vm9, %v16639_v31, %v16638_v48  ;;  %v16642_v6 = vld [vmem:[#allocation67_spill] sm:$0xff]  ;;  %v583_v34 = vsel %vm16644_vm11, %v16487_v8, %v16639_v31  ;;  %vm16651_vm9 = vcmask 1022976   ;;  %v16672_v31 = vld [vmem:[#allocation324_spill] sm:$0xff] }
 0x501   :  { %4296 = vmatprep.subr.mxu0 %v1052_v7  ;;  %4363 = vmatprep.subr.mxu1 %v1288_v21  ;;  %v820_v3 = vsel %vm16643_vm8, %v16642_v6, %v16641_v2  ;;  %v819_v4 = vsel %vm16645_vm10, %v16622_v53, %v16642_v6  ;;  %v16647_v7 = vld [vmem:[#allocation18_spill] sm:$0xff]  ;;  %v16649_v21 = vld [vmem:[#allocation53_spill] sm:$0xff]  ;;  %vm16652_vm8 = vmmov %vm16648_vm12  ;;  %vm16656_vm10 = vcmask 1031168   ;;  %v3488_v53 = vpop.permute.xlu1 %3487 }
 0x502   :  { %4297 = vmatpush1.msra.mxu0 %v1051_v60  ;;  %4364 = vmatpush1.msra.mxu1 %v1287_v20  ;;  %v467_v57 = vsel %vm16648_vm12, %v16647_v7, %v16646_v35  ;;  %v16650_v60 = vld [vmem:[#allocation50_spill] sm:$0xff]  ;;  %v466_v8 = vsel %vm16652_vm8, %v16494_v1, %v16647_v7  ;;  %vm16653_vm11 = vmmov %vm16651_vm9 }
 0x503   :  { %4298 = vmatprep.subr.mxu0 %v935_v0  ;;  %4365 = vmatprep.subr.mxu1 %v1171_v44  ;;  %v703_v20 = vsel %vm16651_vm9, %v16650_v60, %v16649_v21  ;;  %v702_v23 = vsel %vm16653_vm11, %v16630_v16, %v16650_v60  ;;  %v16654_v0 = vld [vmem:[#allocation36_spill] sm:$0xff]  ;;  %vm16657_vm12 = vmmov %vm16656_vm10  ;;  %vm16660_vm9 = vcmask 277504   ;;  %v16684_v60 = vld [vmem:[#allocation274_spill] sm:$0xff] }
 0x504   :  { %4299 = vmatpush1.msra.mxu0 %v934_v46  ;;  %4366 = vmatpush1.msra.mxu1 %v1170_v63  ;;  %v586_v44 = vsel %vm16656_vm10, %v16655_v10, %v16654_v0  ;;  %v12239_v46 = vpop.permute.xlu0 %3489  ;;  %v3508_v63 = vsel %vm3499_vm1, %v11913_v50, %v3484_v15  ;;  %v585_v1 = vsel %vm16657_vm12, %v16638_v48, %v16655_v10  ;;  %vm16663_vm11 = vmmov %vm16660_vm9  ;;  %vm16667_vm12 = vcmask 285696   ;;  %v16670_v15 = vld [vmem:[#allocation299_spill] sm:$0xff] }
 0x505   :  { %4300 = vmatprep.subr.mxu0 %v818_v56  ;;  %4367 = vmatprep.subr.mxu1 %v1054_v37  ;;  %v16659_v56 = vld [vmem:[#allocation323_spill] sm:$0xff]  ;;  %vm16664_vm10 = vmmov %vm16652_vm8 }
 0x506   :  { %4301 = vmatpush1.msra.mxu0 %v817_v51  ;;  %4368 = vmatpush1.msra.mxu1 %v1053_v47  ;;  %v3392_v26 = vsel %vm16660_vm9, %v16659_v56, %v16658_v27  ;;  %v16661_v37 = vld [vmem:[#allocation23_spill] sm:$0xff]  ;;  %v16662_v51 = vld [vmem:[#allocation20_spill] sm:$0xff]  ;;  %v3391_v50 = vsel %vm16663_vm11, %v16505_v19, %v16659_v56  ;;  %vm16668_vm9 = vmmov %vm16667_vm12  ;;  %v3510_v19 = vsel %vm3499_vm1, %v3486_v9, %v3488_v53 }
 0x507   :  { %4302 = vmatprep.subr.mxu0 %v701_v43  ;;  %4369 = vmatprep.subr.mxu1 %v937_v5  ;;  %v469_v47 = vsel %vm16652_vm8, %v16662_v51, %v16661_v37  ;;  %v468_v16 = vsel %vm16664_vm10, %v16646_v35, %v16662_v51  ;;  %v16666_v43 = vld [vmem:[#allocation309_spill] sm:$0xff]  ;;  %v3511_v5 = vsel %vm3499_vm1, %v3488_v53, %v12239_v46  ;;  %vm16671_vm8 = vcmask 351232   ;;  %v16675_v9 = vld [vmem:[#allocation287_spill] sm:$0xff] }
 0x508   :  { %4303 = vmatpush1.msra.mxu0 %v700_v49  ;;  %4370 = vmatpush1.msra.mxu1 %v936_v42  ;;  %v3275_v52 = vsel %vm16667_vm12, %v16666_v43, %v16665_v36  ;;  %v3274_v49 = vsel %vm16668_vm9, %v16512_v12, %v16666_v43  ;;  %v16669_v42 = vld [vmem:[#allocation298_spill] sm:$0xff]  ;;  %vm16673_vm10 = vmmov %vm16671_vm8  ;;  %vm16677_vm9 = vcmask 359424   ;;  %v16679_v35 = vld [vmem:[#allocation311_spill] sm:$0xff] }
 0x509   :  { %4304 = vmatprep.subr.mxu0 %v584_v24  ;;  %4371 = vmatprep.subr.mxu1 %v820_v3  ;;  %v3158_v48 = vsel %vm16671_vm8, %v16670_v15, %v16669_v42  ;;  %v3394_v24 = vsel %vm16663_vm11, %v11595_v58, %v16672_v31  ;;  %v3157_v6 = vsel %vm16673_vm10, %v16520_v13, %v16670_v15  ;;  %vm16674_vm12 = vmmov %vm16663_vm11  ;;  %v16676_v3 = vld [vmem:[#allocation284_spill] sm:$0xff]  ;;  %vm16680_vm8 = vcmask 285696   ;;  %v16693_v53 = vld [vmem:[#allocation289_spill] sm:$0xff] }
 0x50a   :  { %4305 = vmatpush1.msra.mxu0 %v583_v34  ;;  %4372 = vmatpush1.msra.mxu1 %v819_v4  ;;  %v3393_v12 = vsel %vm16674_vm12, %v16658_v27, %v11595_v58  ;;  %v3041_v34 = vsel %vm16677_vm9, %v16676_v3, %v16675_v9  ;;  %v16678_v4 = vld [vmem:[#allocation314_spill] sm:$0xff]  ;;  %vm16681_vm11 = vmmov %vm16677_vm9  ;;  %vm16685_vm12 = vcmask 367616   ;;  %vm16688_vm9 = vcmask 351232   ;;  %v16697_v51 = vld [vmem:[#allocation249_spill] sm:$0xff] }
 0x50b   :  { %4306 = vmatprep.subr.mxu0 %v467_v57  ;;  %4373 = vmatprep.subr.mxu1 %v703_v20  ;;  %v3277_v7 = vsel %vm16680_vm8, %v16679_v35, %v16678_v4  ;;  %v3040_v13 = vsel %vm16681_vm11, %v16527_v25, %v16676_v3  ;;  %vm16682_vm10 = vmmov %vm16680_vm8  ;;  %v16683_v57 = vld [vmem:[#allocation273_spill] sm:$0xff]  ;;  %v16694_v27 = vld [vmem:[#allocation286_spill] sm:$0xff] }
 0x50c   :  { %4307 = vmatpush1.msra.mxu0 %v466_v8  ;;  %4374 = vmatpush1.msra.mxu1 %v702_v23  ;;  %v3276_v58 = vsel %vm16682_vm10, %v16665_v36, %v16679_v35  ;;  %v2924_v20 = vsel %vm16685_vm12, %v16684_v60, %v16683_v57  ;;  %v16686_v8 = vld [vmem:[#allocation300_spill] sm:$0xff]  ;;  %v16687_v23 = vld [vmem:[#allocation301_spill] sm:$0xff]  ;;  %vm16689_vm8 = vmmov %vm16685_vm12  ;;  %vm16695_vm10 = vcmask 359424  }
 0x50d   :  { %4318 = vmatprep.subr.mxu0 %v3509_v11  ;;  %4375 = vmatprep.subr.mxu1 %v586_v44  ;;  %v3160_v11 = vsel %vm16688_vm9, %v16687_v23, %v16686_v8  ;;  %v2923_v25 = vsel %vm16689_vm8, %v16533_v55, %v16684_v60  ;;  %vm16690_vm11 = vmmov %vm16688_vm9  ;;  %v16691_v44 = vld [vmem:[#allocation263_spill] sm:$0xff]  ;;  %v3043_v56 = vsel %vm16695_vm10, %v16694_v27, %v16693_v53  ;;  %v16700_v36 = vld [vmem:[#allocation276_spill] sm:$0xff] }
 0x50e   :  { %4319 = vmatpush2.msra.mxu0 %v3508_v63  ;;  %4376 = vmatpush1.msra.mxu1 %v585_v1  ;;  %v3159_v10 = vsel %vm16690_vm11, %v16669_v42, %v16687_v23  ;;  %v16692_v63 = vld [vmem:[#allocation260_spill] sm:$0xff]  ;;  %vm16696_vm12 = vmmov %vm16695_vm10  ;;  %v16704_v42 = vld [vmem:[#allocation265_spill] sm:$0xff]  ;;  %vm16714_vm11 = vcmask 719872  }
 0x50f   :  { %4320 = vmatprep.subr.mxu0 %v3392_v26  ;;  %4377 = vmatprep.subr.mxu1 %v469_v47  ;;  %v2807_v1 = vsel %vm2797_vm0, %v16692_v63, %v16691_v44  ;;  %v2806_v55 = vsel %vm2797_vm0, %v16538_v28, %v16692_v63  ;;  %v3042_v26 = vsel %vm16696_vm12, %v16675_v9, %v16694_v27  ;;  %v16698_v47 = vld [vmem:[#allocation250_spill] sm:$0xff]  ;;  %vm16701_vm9 = vmmov %vm16689_vm8  ;;  %v16708_v3 = vld [vmem:[#allocation251_spill] sm:$0xff]  ;;  %vm16738_vm12 = vcmask 211968  }
 0x510   :  { %4321 = vmatpush2.msra.mxu0 %v3391_v50  ;;  %4378 = vmatpush1.msra.mxu1 %v468_v16  ;;  %v2690_v50 = vsel %vm2680_vm2, %v16698_v47, %v16697_v51  ;;  %v16699_v16 = vld [vmem:[#allocation275_spill] sm:$0xff]  ;;  %v2689_v28 = vsel %vm2680_vm2, %v16542_v29, %v16698_v47  ;;  %v16705_v15 = vld [vmem:[#allocation262_spill] sm:$0xff]  ;;  %v16712_v60 = vld [vmem:[#allocation241_spill] sm:$0xff] }
 0x511   :  { %4322 = vmatprep.subr.mxu0 %v3275_v52  ;;  %4389 = vmatprep.subr.mxu1 %v3511_v5  ;;  %v2926_v43 = vsel %vm16701_vm9, %v16700_v36, %v16699_v16  ;;  %v2925_v52 = vsel %vm16689_vm8, %v16683_v57, %v16700_v36  ;;  %v16702_v5 = vld [vmem:[#allocation239_spill] sm:$0xff]  ;;  %v16717_v63 = vld [vmem:[#allocation229_spill] sm:$0xff]  ;;  %v16722_v36 = vld [vmem:[#allocation218_spill] sm:$0xff]  ;;  %vm16744_vm8 = vcmask 220160  }
 0x512   :  { %4323 = vmatpush2.msra.mxu0 %v3274_v49  ;;  %4390 = vmatpush2.msra.mxu1 %v3510_v19  ;;  %v16703_v49 = vld [vmem:[#allocation236_spill] sm:$0xff]  ;;  %vm16723_vm10 = vmmov %vm16714_vm11 }
 0x513   :  { %4324 = vmatprep.subr.mxu0 %v3158_v48  ;;  %4391 = vmatprep.subr.mxu1 %v3394_v24  ;;  %v2573_v19 = vsel %vm2563_vm15, %v16703_v49, %v16702_v5  ;;  %v2809_v48 = vsel %vm2797_vm0, %v16705_v15, %v16704_v42  ;;  %v2572_v29 = vsel %vm2563_vm15, %v16546_v38, %v16703_v49  ;;  %vm16741_vm9 = vmmov %vm16738_vm12 }
 0x514   :  { %4325 = vmatpush2.msra.mxu0 %v3157_v6  ;;  %4392 = vmatpush2.msra.mxu1 %v3393_v12  ;;  %v2808_v24 = vsel %vm2797_vm0, %v16691_v44, %v16705_v15  ;;  %v16706_v6 = vld [vmem:[#allocation13_spill] sm:$0xff]  ;;  %v16707_v12 = vld [vmem:[#allocation10_spill] sm:$0xff]  ;;  %v16727_v15 = vld [vmem:[#allocation88_spill] sm:$0xff] }
 0x515   :  { %4326 = vmatprep.subr.mxu0 %v3041_v34  ;;  %4393 = vmatprep.subr.mxu1 %v3277_v7  ;;  %v2456_v9 = vsel %vm2446_vm14, %v16707_v12, %v16706_v6  ;;  %v16709_v34 = vld [vmem:[#allocation252_spill] sm:$0xff]  ;;  %v2455_v38 = vsel %vm2446_vm14, %v16550_v33, %v16707_v12  ;;  %v16716_v44 = vld [vmem:[#allocation5_spill] sm:$0xff]  ;;  %v16730_v12 = vld [vmem:[#allocation222_spill] sm:$0xff] }
 0x516   :  { %4327 = vmatpush2.msra.mxu0 %v3040_v13  ;;  %4394 = vmatpush2.msra.mxu1 %v3276_v58  ;;  %v2692_v35 = vsel %vm2680_vm2, %v16709_v34, %v16708_v3  ;;  %v2691_v7 = vsel %vm2680_vm2, %v16697_v51, %v16709_v34  ;;  %v16710_v13 = vld [vmem:[#allocation91_spill] sm:$0xff]  ;;  %v16711_v58 = vld [vmem:[#allocation73_spill] sm:$0xff] }
 0x517   :  { %4328 = vmatprep.subr.mxu0 %v2924_v20  ;;  %4395 = vmatprep.subr.mxu1 %v3160_v11  ;;  %v2339_v57 = vsel %vm2329_vm13, %v16711_v58, %v16710_v13  ;;  %v16713_v20 = vld [vmem:[#allocation238_spill] sm:$0xff]  ;;  %v2338_v33 = vsel %vm2329_vm13, %v16554_v18, %v16711_v58  ;;  %v12363_v11 = vld [vmem:[%s15490_s2 + $0x8] sm:$0xff]  ;;  %v16720_v51 = vld [vmem:[#allocation57_spill] sm:$0xff] }
 0x518   :  { %4329 = vmatpush2.msra.mxu0 %v2923_v25  ;;  %4396 = vmatpush2.msra.mxu1 %v3159_v10  ;;  %v2575_v23 = vsel %vm2563_vm15, %v16713_v20, %v16712_v60  ;;  %v2574_v25 = vsel %vm2563_vm15, %v16702_v5, %v16713_v20  ;;  %v16715_v10 = vld [vmem:[#allocation42_spill] sm:$0xff]  ;;  %v16725_v5 = vld [vmem:[#allocation207_spill] sm:$0xff]  ;;  %v16734_v58 = vld [vmem:[#allocation208_spill] sm:$0xff] }
 0x519   :  { %4330 = vmatprep.subr.mxu0 %v2807_v1  ;;  %4397 = vmatprep.subr.mxu1 %v3043_v56  ;;  %v2458_v18 = vsel %vm2446_vm14, %v16716_v44, %v16715_v10  ;;  %v16718_v1 = vld [vmem:[#allocation230_spill] sm:$0xff]  ;;  %v2457_v56 = vsel %vm2446_vm14, %v16706_v6, %v16716_v44 }
 0x51a   :  { %4331 = vmatpush2.msra.mxu0 %v2806_v55  ;;  %4398 = vmatpush2.msra.mxu1 %v3042_v26  ;;  %v2226_v27 = vsel %vm2212_vm3, %v16718_v1, %v16717_v63  ;;  %v2225_v55 = vsel %vm2212_vm3, %v16561_v30, %v16718_v1  ;;  %v16719_v26 = vld [vmem:[#allocation43_spill] sm:$0xff]  ;;  %v2108_v30 = vsel %vm2095_vm4, %v16565_v17, %v16722_v36 }
 0x51b   :  { %4332 = vmatprep.subr.mxu0 %v2690_v50  ;;  %4399 = vmatprep.subr.mxu1 %v2926_v43  ;;  %v2341_v47 = vsel %vm2329_vm13, %v16720_v51, %v16719_v26  ;;  %v16721_v50 = vld [vmem:[#allocation221_spill] sm:$0xff]  ;;  %v2227_v17 = vsel %vm2212_vm3, %v16717_v63, %v16727_v15  ;;  %v16740_v63 = vld [vmem:[#allocation194_spill] sm:$0xff] }
 0x51c   :  { %4333 = vmatpush2.msra.mxu0 %v2689_v28  ;;  %4400 = vmatpush2.msra.mxu1 %v2925_v52  ;;  %v2109_v43 = vsel %vm2095_vm4, %v16722_v36, %v16721_v50  ;;  %v2340_v28 = vsel %vm2329_vm13, %v16710_v13, %v16720_v51  ;;  %v16724_v52 = vld [vmem:[#allocation206_spill] sm:$0xff] }
 0x51d   :  { %4334 = vmatprep.subr.mxu0 %v2573_v19  ;;  %4401 = vmatprep.subr.mxu1 %v2809_v48  ;;  %v1992_v49 = vsel %vm1978_vm5, %v16725_v5, %v16724_v52  ;;  %v16726_v19 = vld [vmem:[#allocation119_spill] sm:$0xff] }
 0x51e   :  { %4335 = vmatpush2.msra.mxu0 %v2572_v29  ;;  %4402 = vmatpush2.msra.mxu1 %v2808_v24  ;;  %v2228_v48 = vsel %vm2212_vm3, %v16727_v15, %v16726_v19  ;;  %v1991_v29 = vsel %vm1978_vm5, %v16569_v54, %v16725_v5  ;;  %v16729_v24 = vld [vmem:[#allocation192_spill] sm:$0xff]  ;;  %v16751_v5 = vld [vmem:[#allocation170_spill] sm:$0xff] }
 0x51f   :  { %4336 = vmatprep.subr.mxu0 %v2456_v9  ;;  %4403 = vmatprep.subr.mxu1 %v2692_v35  ;;  %v16731_v9 = vld [vmem:[#allocation220_spill] sm:$0xff]  ;;  %v1874_v54 = vsel %vm1861_vm6, %v16574_v32, %v16729_v24 }
 0x520   :  { %4337 = vmatpush2.msra.mxu0 %v2455_v38  ;;  %4404 = vmatpush2.msra.mxu1 %v2691_v7  ;;  %v2111_v34 = vsel %vm2095_vm4, %v16731_v9, %v16730_v12  ;;  %v2110_v35 = vsel %vm2095_vm4, %v16721_v50, %v16731_v9  ;;  %v16732_v38 = vld [vmem:[#allocation180_spill] sm:$0xff]  ;;  %v16733_v7 = vld [vmem:[#allocation181_spill] sm:$0xff]  ;;  %v16746_v50 = vld [vmem:[#allocation183_spill] sm:$0xff] }
 0x521   :  { %4338 = vmatprep.subr.mxu0 %v2339_v57  ;;  %4405 = vmatprep.subr.mxu1 %v2575_v23  ;;  %v1758_v13 = vsel %vm1744_vm7, %v16733_v7, %v16732_v38  ;;  %v16735_v57 = vld [vmem:[#allocation209_spill] sm:$0xff]  ;;  %v1757_v32 = vsel %vm1744_vm7, %v16580_v61, %v16733_v7  ;;  %v16764_v9 = vld [vmem:[#allocation116_spill] sm:$0xff] }
 0x522   :  { %4339 = vmatpush2.msra.mxu0 %v2338_v33  ;;  %8984 = vmatprep.mubr.msk.f32.mxu0 %vm16714_vm11, %v12363_v11  ;;  %v1994_v20 = vsel %vm1978_vm5, %v16735_v57, %v16734_v58  ;;  %v1993_v23 = vsel %vm1978_vm5, %v16724_v52, %v16735_v57  ;;  %v16736_v33 = vld [vmem:[#allocation169_spill] sm:$0xff]  ;;  %vm16747_vm11 = vmmov %vm16744_vm8  ;;  %v16772_v58 = vld [vmem:[#allocation100_spill] sm:$0xff] }
 0x523   :  { %4406 = vmatpush2.msra.mxu1 %v2574_v25  ;;  %4341 = vmatmul.mubr.f32.vlgmr.msra.gmra.mxu0 %v11707_v14  ;;  %v16737_v25 = vld [vmem:[#allocation166_spill] sm:$0xff]  ;;  %v16773_v57 = vld [vmem:[#allocation101_spill] sm:$0xff] }
 0x524   :  { %4407 = vmatprep.subr.mxu1 %v2458_v18  ;;  %4418 = vmatprep.subr.mxu0 %v2226_v27  ;;  %v1641_v44 = vsel %vm16738_vm12, %v16737_v25, %v16736_v33  ;;  %v16739_v18 = vld [vmem:[#allocation196_spill] sm:$0xff]  ;;  %v1640_v61 = vsel %vm16741_vm9, %v16586_v39, %v16737_v25  ;;  %vm16753_vm12 = vmmov %vm16741_vm9 }
 0x525   :  { %4408 = vmatpush2.msra.mxu1 %v2457_v56  ;;  %4419 = vmatpush1.msra.mxu0 %v2225_v55  ;;  %v1877_v1 = vsel %vm1861_vm6, %v16740_v63, %v16739_v18  ;;  %v16742_v56 = vld [vmem:[#allocation154_spill] sm:$0xff]  ;;  %v16743_v55 = vld [vmem:[#allocation155_spill] sm:$0xff]  ;;  %v16781_v18 = vld [vmem:[#allocation84_spill] sm:$0xff] }
 0x526   :  { %4409 = vmatprep.subr.mxu1 %v2341_v47  ;;  %4420 = vmatprep.subr.mxu0 %v2109_v43  ;;  %v1524_v51 = vsel %vm16744_vm8, %v16743_v55, %v16742_v56  ;;  %v16745_v47 = vld [vmem:[#allocation182_spill] sm:$0xff]  ;;  %v1523_v39 = vsel %vm16747_vm11, %v16593_v40, %v16743_v55  ;;  %v1759_v43 = vsel %vm1744_vm7, %v16732_v38, %v16746_v50  ;;  %vm16755_vm8 = vmmov %vm16753_vm12  ;;  %vm16758_vm11 = vcmask 867328   ;;  %v16788_v55 = vld [vmem:[#allocation68_spill] sm:$0xff] }
 0x527   :  { %4410 = vmatpush2.msra.mxu1 %v2340_v28  ;;  %8985 = vmatprep.mubr.msk.f32.mxu1 %vm16723_vm10, %v12363_v11  ;;  %v1760_v36 = vsel %vm1744_vm7, %v16746_v50, %v16745_v47  ;;  %v16748_v28 = vld [vmem:[#allocation143_spill] sm:$0xff]  ;;  %vm16750_vm10 = vcmask 859136   ;;  %v16768_v38 = vld [vmem:[#allocation142_spill] sm:$0xff] }
 0x528   :  { %4421 = vmatpush1.msra.mxu0 %v2108_v30  ;;  %4412 = vmatmul.mubr.f32.vlgmr.msra.gmra.mxu1 %v11707_v14  ;;  %v16728_v14 = vld [vmem:[#allocation195_spill] sm:$0xff]  ;;  %v16749_v30 = vld [vmem:[#allocation140_spill] sm:$0xff]  ;;  %vm16754_vm9 = vmmov %vm16750_vm10 }
 0x529   :  { %4422 = vmatprep.subr.mxu0 %v1992_v49  ;;  %4489 = vmatprep.subr.mxu1 %v2228_v48  ;;  %v1875_v6 = vsel %vm1861_vm6, %v16729_v24, %v16728_v14  ;;  %v1876_v27 = vsel %vm1861_vm6, %v16728_v14, %v16740_v63  ;;  %v1407_v52 = vsel %vm16750_vm10, %v16749_v30, %v16748_v28  ;;  %v16752_v49 = vld [vmem:[#allocation168_spill] sm:$0xff]  ;;  %v16760_v24 = vld [vmem:[#allocation157_spill] sm:$0xff]  ;;  %vm16761_vm10 = vcmask 220160   ;;  %v16791_v50 = vld [vmem:[#allocation102_spill] sm:$0xff] }
 0x52a   :  { %4423 = vmatpush1.msra.mxu0 %v1991_v29  ;;  %4490 = vmatpush1.msra.mxu1 %v2227_v17  ;;  %v1643_v19 = vsel %vm16753_vm12, %v16752_v49, %v16751_v5  ;;  %v1406_v40 = vsel %vm16754_vm9, %v16601_v62, %v16749_v30  ;;  %v1642_v15 = vsel %vm16755_vm8, %v16736_v33, %v16752_v49  ;;  %v16756_v48 = vld [vmem:[#allocation128_spill] sm:$0xff]  ;;  %v16757_v29 = vld [vmem:[#allocation129_spill] sm:$0xff]  ;;  %vm16762_vm12 = vmmov %vm16758_vm11  ;;  %vm16766_vm8 = vcmask 875520  }
 0x52b   :  { %4424 = vmatprep.subr.mxu0 %v1875_v6  ;;  %4491 = vmatprep.subr.mxu1 %v2111_v34  ;;  %v1290_v17 = vsel %vm16758_vm11, %v16757_v29, %v16756_v48  ;;  %v16759_v14 = vld [vmem:[#allocation156_spill] sm:$0xff]  ;;  %v1289_v62 = vsel %vm16762_vm12, %v16609_v59, %v16757_v29  ;;  %vm16763_vm9 = vmmov %vm16761_vm10  ;;  %v16765_v34 = vld [vmem:[#allocation113_spill] sm:$0xff]  ;;  %vm16769_vm11 = vcmask 859136  }
 0x52c   :  { %4425 = vmatpush1.msra.mxu0 %v1874_v54  ;;  %4492 = vmatpush1.msra.mxu1 %v2110_v35  ;;  %v1526_v6 = vsel %vm16761_vm10, %v16760_v24, %v16759_v14  ;;  %v1525_v12 = vsel %vm16763_vm9, %v16742_v56, %v16760_v24  ;;  %v1173_v54 = vsel %vm16766_vm8, %v16765_v34, %v16764_v9  ;;  %v16767_v35 = vld [vmem:[#allocation144_spill] sm:$0xff]  ;;  %vm16770_vm10 = vmmov %vm16766_vm8  ;;  %vm16774_vm9 = vcmask 941056   ;;  %v16799_v5 = vld [vmem:[#allocation89_spill] sm:$0xff] }
 0x52d   :  { %4426 = vmatprep.subr.mxu0 %v1758_v13  ;;  %4493 = vmatprep.subr.mxu1 %v1994_v20  ;;  %v1409_v7 = vsel %vm16769_vm11, %v16768_v38, %v16767_v35  ;;  %v1172_v59 = vsel %vm16770_vm10, %v16617_v41, %v16765_v34  ;;  %vm16771_vm12 = vmmov %vm16769_vm11  ;;  %v1056_v20 = vsel %vm16774_vm9, %v16773_v57, %v16772_v58  ;;  %vm16777_vm8 = vcmask 867328   ;;  %v16797_v30 = vld [vmem:[#allocation52_spill] sm:$0xff]  ;;  %v16800_v49 = vld [vmem:[#allocation86_spill] sm:$0xff] }
 0x52e   :  { %4427 = vmatpush1.msra.mxu0 %v1757_v32  ;;  %4494 = vmatpush1.msra.mxu1 %v1993_v23  ;;  %v1408_v13 = vsel %vm16771_vm12, %v16748_v28, %v16768_v38  ;;  %v16775_v32 = vld [vmem:[#allocation130_spill] sm:$0xff]  ;;  %v16776_v23 = vld [vmem:[#allocation131_spill] sm:$0xff]  ;;  %vm16778_vm11 = vmmov %vm16774_vm9  ;;  %vm16782_vm12 = vcmask 949248   ;;  %vm16785_vm9 = vcmask 875520  }
 0x52f   :  { %4428 = vmatprep.subr.mxu0 %v1641_v44  ;;  %4495 = vmatprep.subr.mxu1 %v1877_v1  ;;  %v1292_v33 = vsel %vm16777_vm8, %v16776_v23, %v16775_v32  ;;  %v1055_v41 = vsel %vm16778_vm11, %v16625_v45, %v16773_v57  ;;  %vm16779_vm10 = vmmov %vm16777_vm8  ;;  %v16780_v44 = vld [vmem:[#allocation87_spill] sm:$0xff]  ;;  %v16783_v1 = vld [vmem:[#allocation117_spill] sm:$0xff] }
 0x530   :  { %4429 = vmatpush1.msra.mxu0 %v1640_v61  ;;  %4496 = vmatpush1.msra.mxu1 %v1876_v27  ;;  %v1291_v25 = vsel %vm16779_vm10, %v16756_v48, %v16776_v23  ;;  %v939_v63 = vsel %vm16782_vm12, %v16781_v18, %v16780_v44  ;;  %v16784_v61 = vld [vmem:[#allocation115_spill] sm:$0xff]  ;;  %vm16786_vm8 = vmmov %vm16782_vm12  ;;  %vm16790_vm10 = vcmask 957440   ;;  %vm16793_vm12 = vcmask 941056   ;;  %v3492_v48 = vpop.permute.xlu1 %3491  ;;  %v16804_v29 = vld [vmem:[#allocation38_spill] sm:$0xff] }
 0x531   :  { %4430 = vmatprep.subr.mxu0 %v1524_v51  ;;  %4497 = vmatprep.subr.mxu1 %v1760_v36  ;;  %v1175_v27 = vsel %vm16785_vm9, %v16784_v61, %v16783_v1  ;;  %v938_v45 = vsel %vm16786_vm8, %v16633_v22, %v16781_v18  ;;  %vm16787_vm11 = vmmov %vm16785_vm9  ;;  %v16789_v51 = vld [vmem:[#allocation69_spill] sm:$0xff]  ;;  %v16792_v36 = vld [vmem:[#allocation103_spill] sm:$0xff]  ;;  %v3512_v23 = vsel %vm3499_vm1, %v12239_v46, %v3492_v48 }
 0x532   :  { %4431 = vmatpush1.msra.mxu0 %v1523_v39  ;;  %4498 = vmatpush1.msra.mxu1 %v1759_v43  ;;  %v1174_v56 = vsel %vm16787_vm11, %v16764_v9, %v16784_v61  ;;  %v822_v47 = vsel %vm16790_vm10, %v16789_v51, %v16788_v55  ;;  %v1058_v39 = vsel %vm16793_vm12, %v16792_v36, %v16791_v50  ;;  %vm16794_vm9 = vmmov %vm16790_vm10  ;;  %v16796_v28 = vld [vmem:[#allocation55_spill] sm:$0xff]  ;;  %vm16798_vm11 = vcmask 1022976   ;;  %v16807_v24 = vld [vmem:[#allocation70_spill] sm:$0xff] }
 0x533   :  { %4432 = vmatprep.subr.mxu0 %v1407_v52  ;;  %4499 = vmatprep.subr.mxu1 %v1643_v19  ;;  %v821_v22 = vsel %vm16794_vm9, %v16641_v2, %v16789_v51  ;;  %vm16795_vm8 = vmmov %vm16793_vm12  ;;  %v705_v52 = vsel %vm16798_vm11, %v16797_v30, %v16796_v28  ;;  %vm16801_vm10 = vcmask 949248   ;;  %v16812_v9 = vld [vmem:[#allocation25_spill] sm:$0xff]  ;;  %v16813_v34 = vld [vmem:[#allocation22_spill] sm:$0xff] }
 0x534   :  { %4433 = vmatpush1.msra.mxu0 %v1406_v40  ;;  %4500 = vmatpush1.msra.mxu1 %v1642_v15  ;;  %v1057_v43 = vsel %vm16795_vm8, %v16772_v58, %v16792_v36  ;;  %v941_v19 = vsel %vm16801_vm10, %v16800_v49, %v16799_v5  ;;  %v3494_v40 = vpop.permute.xlu0 %3493  ;;  %vm16802_vm12 = vmmov %vm16798_vm11  ;;  %vm16806_vm8 = vcmask 1031168   ;;  %vm16809_vm11 = vcmask 957440   ;;  %v16815_v35 = vld [vmem:[#allocation11_spill] sm:$0xff]  ;;  %v16816_v38 = vld [vmem:[#allocation54_spill] sm:$0xff] }
 0x535   :  { %4434 = vmatprep.subr.mxu0 %v1290_v17  ;;  %4501 = vmatprep.subr.mxu1 %v1526_v6  ;;  %v704_v2 = vsel %vm16802_vm12, %v16649_v21, %v16797_v30  ;;  %vm16803_vm9 = vmmov %vm16801_vm10  ;;  %v16805_v17 = vld [vmem:[#allocation39_spill] sm:$0xff]  ;;  %v16820_v58 = vld [vmem:[#allocation6_spill] sm:$0xff] }
 0x536   :  { %4435 = vmatpush1.msra.mxu0 %v1289_v62  ;;  %4502 = vmatpush1.msra.mxu1 %v1525_v12  ;;  %v940_v15 = vsel %vm16803_vm9, %v16780_v44, %v16800_v49  ;;  %v588_v14 = vsel %vm16806_vm8, %v16805_v17, %v16804_v29  ;;  %v16808_v6 = vld [vmem:[#allocation71_spill] sm:$0xff]  ;;  %vm16810_vm10 = vmmov %vm16806_vm8  ;;  %vm16814_vm9 = vcmask 1039360   ;;  %vm16817_vm8 = vcmask 1022976   ;;  %v16821_v57 = vld [vmem:[#allocation41_spill] sm:$0xff] }
 0x537   :  { %4436 = vmatprep.subr.mxu0 %v1173_v54  ;;  %4503 = vmatprep.subr.mxu1 %v1409_v7  ;;  %v824_v62 = vsel %vm16809_vm11, %v16808_v6, %v16807_v24  ;;  %v587_v21 = vsel %vm16810_vm10, %v16654_v0, %v16805_v17  ;;  %vm16811_vm12 = vmmov %vm16809_vm11  ;;  %v471_v54 = vsel %vm16814_vm9, %v16813_v34, %v16812_v9  ;;  %v16827_v18 = vld [vmem:[#allocation7_spill] sm:$0xff]  ;;  %v16845_v49 = vld [vmem:[#allocation317_spill] sm:$0xff] }
 0x538   :  { %4437 = vmatpush1.msra.mxu0 %v1172_v59  ;;  %4504 = vmatpush1.msra.mxu1 %v1408_v13  ;;  %v823_v12 = vsel %vm16811_vm12, %v16788_v55, %v16808_v6  ;;  %v707_v7 = vsel %vm16817_vm8, %v16816_v38, %v16815_v35  ;;  %vm16818_vm11 = vmmov %vm16814_vm9  ;;  %v3513_v13 = vsel %vm3499_vm1, %v3492_v48, %v3494_v40  ;;  %vm16822_vm12 = vcmask 1031168   ;;  %v3498_v32 = vpop.permute.xlu0 %3497  ;;  %v16836_v50 = vld [vmem:[#allocation303_spill] sm:$0xff]  ;;  %v16851_v48 = vld [vmem:[#allocation278_spill] sm:$0xff] }
 0x539   :  { %4438 = vmatprep.subr.mxu0 %v1056_v20  ;;  %4505 = vmatprep.subr.mxu1 %v1292_v33  ;;  %v470_v0 = vsel %vm16818_vm11, %v16661_v37, %v16813_v34  ;;  %vm16819_vm10 = vmmov %vm16817_vm8  ;;  %v590_v20 = vsel %vm16822_vm12, %v16821_v57, %v16820_v58  ;;  %v3496_v33 = vpop.permute.xlu1 %3495  ;;  %vm16826_vm8 = vcmask 277504   ;;  %v16842_v30 = vld [vmem:[#allocation291_spill] sm:$0xff]  ;;  %v16853_v17 = vld [vmem:[#allocation304_spill] sm:$0xff] }
 0x53a   :  { %4439 = vmatpush1.msra.mxu0 %v1055_v41  ;;  %4506 = vmatpush1.msra.mxu1 %v1291_v25  ;;  %v706_v59 = vsel %vm16819_vm10, %v16796_v28, %v16816_v38  ;;  %vm16823_vm9 = vmmov %vm16822_vm12  ;;  %v16824_v41 = vld [vmem:[#allocation325_spill] sm:$0xff]  ;;  %v16825_v25 = vld [vmem:[#allocation326_spill] sm:$0xff]  ;;  %v3515_v55 = vsel %vm3499_vm1, %v3496_v33, %v3498_v32 }
 0x53b   :  { %4440 = vmatprep.subr.mxu0 %v939_v63  ;;  %4507 = vmatprep.subr.mxu1 %v1175_v27  ;;  %v589_v37 = vsel %vm16823_vm9, %v16804_v29, %v16821_v57  ;;  %v3396_v44 = vsel %vm16826_vm8, %v16825_v25, %v16824_v41  ;;  %v16828_v63 = vld [vmem:[#allocation24_spill] sm:$0xff]  ;;  %vm16829_vm10 = vmmov %vm16826_vm8  ;;  %vm16833_vm9 = vcmask 285696   ;;  %v16861_v34 = vld [vmem:[#allocation290_spill] sm:$0xff] }
 0x53c   :  { %4441 = vmatpush1.msra.mxu0 %v938_v45  ;;  %4508 = vmatpush1.msra.mxu1 %v1174_v56  ;;  %v473_v1 = vsel %vm16818_vm11, %v16828_v63, %v16827_v18  ;;  %v3395_v46 = vsel %vm16829_vm10, %v16672_v31, %v16825_v25  ;;  %vm16830_vm12 = vmmov %vm16818_vm11  ;;  %v16831_v27 = vld [vmem:[#allocation316_spill] sm:$0xff]  ;;  %v16832_v45 = vld [vmem:[#allocation313_spill] sm:$0xff]  ;;  %v3514_v31 = vsel %vm3499_vm1, %v3494_v40, %v3496_v33  ;;  %vm16837_vm11 = vcmask 351232  }
 0x53d   :  { %4442 = vmatprep.subr.mxu0 %v822_v47  ;;  %4509 = vmatprep.subr.mxu1 %v1058_v39  ;;  %v472_v61 = vsel %vm16830_vm12, %v16812_v9, %v16828_v63  ;;  %v3279_v56 = vsel %vm16833_vm9, %v16832_v45, %v16831_v27  ;;  %vm16834_vm8 = vmmov %vm16833_vm9  ;;  %v16835_v47 = vld [vmem:[#allocation302_spill] sm:$0xff]  ;;  %v16838_v39 = vld [vmem:[#allocation327_spill] sm:$0xff] }
 0x53e   :  { %4443 = vmatpush1.msra.mxu0 %v821_v22  ;;  %4510 = vmatpush1.msra.mxu1 %v1057_v43  ;;  %v3278_v51 = vsel %vm16834_vm8, %v16678_v4, %v16832_v45  ;;  %v3162_v36 = vsel %vm16837_vm11, %v16836_v50, %v16835_v47  ;;  %v16839_v22 = vld [vmem:[#allocation328_spill] sm:$0xff]  ;;  %vm16840_vm12 = vmmov %vm16837_vm11  ;;  %vm16844_vm8 = vcmask 359424   ;;  %vm16847_vm11 = vcmask 285696   ;;  %v16864_v38 = vld [vmem:[#allocation253_spill] sm:$0xff] }
 0x53f   :  { %4444 = vmatprep.subr.mxu0 %v705_v52  ;;  %4511 = vmatprep.subr.mxu1 %v941_v19  ;;  %v3398_v43 = vsel %vm16829_vm10, %v16839_v22, %v16838_v39  ;;  %v3161_v28 = vsel %vm16840_vm12, %v16686_v8, %v16836_v50  ;;  %vm16841_vm9 = vmmov %vm16829_vm10  ;;  %v16843_v52 = vld [vmem:[#allocation288_spill] sm:$0xff]  ;;  %v16846_v19 = vld [vmem:[#allocation315_spill] sm:$0xff] }
 0x540   :  { %4445 = vmatpush1.msra.mxu0 %v704_v2  ;;  %4512 = vmatpush1.msra.mxu1 %v940_v15  ;;  %v3397_v4 = vsel %vm16841_vm9, %v16824_v41, %v16839_v22  ;;  %v3045_v5 = vsel %vm16844_vm8, %v16843_v52, %v16842_v30  ;;  %v3281_v40 = vsel %vm16847_vm11, %v16846_v19, %v16845_v49  ;;  %vm16848_vm10 = vmmov %vm16844_vm8  ;;  %v16850_v15 = vld [vmem:[#allocation277_spill] sm:$0xff]  ;;  %vm16852_vm9 = vcmask 367616   ;;  %v16860_v9 = vld [vmem:[#allocation292_spill] sm:$0xff] }
 0x541   :  { %4446 = vmatprep.subr.mxu0 %v588_v14  ;;  %4513 = vmatprep.subr.mxu1 %v824_v62  ;;  %v3044_v8 = vsel %vm16848_vm10, %v16693_v53, %v16843_v52  ;;  %vm16849_vm12 = vmmov %vm16847_vm11  ;;  %v2928_v29 = vsel %vm16852_vm9, %v16851_v48, %v16850_v15  ;;  %v16854_v14 = vld [vmem:[#allocation305_spill] sm:$0xff]  ;;  %vm16855_vm8 = vcmask 351232   ;;  %v16858_v62 = vld [vmem:[#allocation267_spill] sm:$0xff] }
 0x542   :  { %4447 = vmatpush1.msra.mxu0 %v587_v21  ;;  %4514 = vmatpush1.msra.mxu1 %v823_v12  ;;  %v3280_v2 = vsel %vm16849_vm12, %v16831_v27, %v16846_v19  ;;  %v3164_v24 = vsel %vm16855_vm8, %v16854_v14, %v16853_v17  ;;  %vm16856_vm11 = vmmov %vm16852_vm9  ;;  %v16859_v21 = vld [vmem:[#allocation264_spill] sm:$0xff]  ;;  %vm16862_vm12 = vcmask 359424   ;;  %v16873_v33 = vld [vmem:[#allocation266_spill] sm:$0xff] }
 0x543   :  { %4448 = vmatprep.subr.mxu0 %v471_v54  ;;  %4515 = vmatprep.subr.mxu1 %v707_v7  ;;  %v2927_v53 = vsel %vm16856_vm11, %v16699_v16, %v16851_v48  ;;  %vm16857_vm10 = vmmov %vm16855_vm8  ;;  %v2811_v12 = vsel %vm2797_vm0, %v16859_v21, %v16858_v62  ;;  %v3047_v54 = vsel %vm16862_vm12, %v16861_v34, %v16860_v9  ;;  %v16865_v7 = vld [vmem:[#allocation254_spill] sm:$0xff]  ;;  %v16871_v32 = vld [vmem:[#allocation240_spill] sm:$0xff] }
 0x544   :  { %4449 = vmatpush1.msra.mxu0 %v470_v0  ;;  %4516 = vmatpush1.msra.mxu1 %v706_v59  ;;  %v3163_v6 = vsel %vm16857_vm10, %v16835_v47, %v16854_v14  ;;  %v2810_v16 = vsel %vm2797_vm0, %v16704_v42, %v16859_v21  ;;  %vm16863_vm9 = vmmov %vm16862_vm12  ;;  %v2694_v0 = vsel %vm2680_vm2, %v16865_v7, %v16864_v38  ;;  %v16866_v59 = vld [vmem:[#allocation279_spill] sm:$0xff]  ;;  %v16875_v18 = vld [vmem:[#allocation12_spill] sm:$0xff]  ;;  %vm16882_vm10 = vcmask 719872  }
 0x545   :  { %4460 = vmatprep.subr.mxu0 %v3513_v13  ;;  %4517 = vmatprep.subr.mxu1 %v590_v20  ;;  %v3046_v35 = vsel %vm16863_vm9, %v16842_v30, %v16861_v34  ;;  %v16867_v13 = vld [vmem:[#allocation280_spill] sm:$0xff]  ;;  %vm16868_vm8 = vmmov %vm16856_vm11  ;;  %v2693_v42 = vsel %vm2680_vm2, %v16708_v3, %v16865_v7  ;;  %v16870_v20 = vld [vmem:[#allocation243_spill] sm:$0xff]  ;;  %v2576_v3 = vsel %vm2563_vm15, %v16712_v60, %v16871_v32  ;;  %vm16888_vm9 = vcmask 1048448  }
 0x546   :  { %4461 = vmatpush2.msra.mxu0 %v3512_v23  ;;  %4518 = vmatpush1.msra.mxu1 %v589_v37  ;;  %v2930_v58 = vsel %vm16868_vm8, %v16867_v13, %v16866_v59  ;;  %vm16869_vm11 = vmmov %vm16868_vm8  ;;  %v2577_v23 = vsel %vm2563_vm15, %v16871_v32, %v16870_v20  ;;  %v16872_v37 = vld [vmem:[#allocation268_spill] sm:$0xff]  ;;  %v2812_v25 = vsel %vm2797_vm0, %v16858_v62, %v16873_v33  ;;  %v16878_v45 = vld [vmem:[#allocation74_spill] sm:$0xff]  ;;  %vm16889_vm8 = vcmask 916480  }
 0x547   :  { %4462 = vmatprep.subr.mxu0 %v3396_v44  ;;  %4519 = vmatprep.subr.mxu1 %v473_v1  ;;  %v2929_v57 = vsel %vm16869_vm11, %v16850_v15, %v16867_v13  ;;  %v2813_v41 = vsel %vm2797_vm0, %v16873_v33, %v16872_v37  ;;  %v16874_v44 = vld [vmem:[#allocation29_spill] sm:$0xff]  ;;  %v16876_v1 = vld [vmem:[#allocation255_spill] sm:$0xff]  ;;  %v2459_v60 = vsel %vm2446_vm14, %v16715_v10, %v16875_v18  ;;  %v16884_v22 = vld [vmem:[#allocation232_spill] sm:$0xff] }
 0x548   :  { %4463 = vmatpush2.msra.mxu0 %v3395_v46  ;;  %4520 = vmatpush1.msra.mxu1 %v472_v61  ;;  %v2460_v63 = vsel %vm2446_vm14, %v16875_v18, %v16874_v44  ;;  %v16877_v46 = vld [vmem:[#allocation256_spill] sm:$0xff]  ;;  %v16883_v39 = vld [vmem:[#allocation231_spill] sm:$0xff]  ;;  %vm16885_vm12 = vmmov %vm16882_vm10 }
 0x549   :  { %4464 = vmatprep.subr.mxu0 %v3279_v56  ;;  %4531 = vmatprep.subr.mxu1 %v3515_v55  ;;  %v2696_v61 = vsel %vm2680_vm2, %v16877_v46, %v16876_v1  ;;  %v2695_v27 = vsel %vm2680_vm2, %v16864_v38, %v16877_v46  ;;  %v16879_v56 = vld [vmem:[#allocation8_spill] sm:$0xff]  ;;  %v277_v15 = vld [vmem:[%s15492_s1 + $0x8] sm:$0xff]  ;;  %v280_v38 = vld [vmem:[%s15492_s1 + $0x20] sm:$0xff] }
 0x54a   :  { %4465 = vmatpush2.msra.mxu0 %v3278_v51  ;;  %4532 = vmatpush2.msra.mxu1 %v3514_v31  ;;  %v2343_v55 = vsel %vm2329_vm13, %v16879_v56, %v16878_v45  ;;  %v16880_v51 = vld [vmem:[#allocation244_spill] sm:$0xff]  ;;  %v16881_v31 = vld [vmem:[#allocation242_spill] sm:$0xff]  ;;  %v2342_v10 = vsel %vm2329_vm13, %v16719_v26, %v16879_v56  ;;  %v2461_v26 = vsel %vm2446_vm14, %v16874_v44, %v16884_v22  ;;  %v281_v13 = vld [vmem:[%s15492_s1 + $0x28] sm:$0xff] }
 0x54b   :  { %4466 = vmatprep.subr.mxu0 %v3162_v36  ;;  %4533 = vmatprep.subr.mxu1 %v3398_v43  ;;  %v2579_v47 = vsel %vm2563_vm15, %v16881_v31, %v16880_v51  ;;  %v2578_v50 = vsel %vm2563_vm15, %v16870_v20, %v16881_v31  ;;  %v9029_v36 = vld [vmem:[%s15490_s2] sm:$0xff]  ;;  %v2462_v43 = vsel %vm2446_vm14, %v16884_v22, %v16883_v39  ;;  %v287_v22 = vld [vmem:[%s15492_s1 + $0x58] sm:$0xff]  ;;  %vm16890_vm11 = vmmov %vm16889_vm8 }
 0x54c   :  { %4467 = vmatpush2.msra.mxu0 %v3161_v28  ;;  %4534 = vmatpush2.msra.mxu1 %v3397_v4  ;;  %v16886_v28 = vld [vmem:[#allocation9_spill] sm:$0xff]  ;;  %v16887_v4 = vld [vmem:[#allocation40_spill] sm:$0xff]  ;;  %v284_v46 = vld [vmem:[%s15492_s1 + $0x40] sm:$0xff] }
 0x54d   :  { %4468 = vmatprep.subr.mxu0 %v3045_v5  ;;  %4535 = vmatprep.subr.mxu1 %v3281_v40  ;;  %v2345_v30 = vsel %vm2329_vm13, %v16887_v4, %v16886_v28  ;;  %v2344_v52 = vsel %vm2329_vm13, %v16878_v45, %v16887_v4  ;;  %v12710_v5 = vpop.permute.xlu1 %3985  ;;  %v285_v45 = vld [vmem:[%s15492_s1 + $0x48] sm:$0xff] }
 0x54e   :  { %4469 = vmatpush2.msra.mxu0 %v3044_v8  ;;  %4536 = vmatpush2.msra.mxu1 %v3280_v2 }
 0x54f   :  { %4470 = vmatprep.subr.mxu0 %v2928_v29  ;;  %4537 = vmatprep.subr.mxu1 %v3164_v24  ;;  %v278_v24 = vld [vmem:[%s15492_s1 + $0x10] sm:$0xff] }
 0x550   :  { %4471 = vmatpush2.msra.mxu0 %v2927_v53  ;;  %4538 = vmatpush2.msra.mxu1 %v3163_v6 }
 0x551   :  { %4472 = vmatprep.subr.mxu0 %v2811_v12  ;;  %4539 = vmatprep.subr.mxu1 %v3047_v54  ;;  %v279_v12 = vld [vmem:[%s15492_s1 + $0x18] sm:$0xff] }
 0x552   :  { %4473 = vmatpush2.msra.mxu0 %v2810_v16  ;;  %4540 = vmatpush2.msra.mxu1 %v3046_v35 }
 0x553   :  { %4474 = vmatprep.subr.mxu0 %v2694_v0  ;;  %4541 = vmatprep.subr.mxu1 %v2930_v58 }
 0x554   :  { %4475 = vmatpush2.msra.mxu0 %v2693_v42  ;;  %4542 = vmatpush2.msra.mxu1 %v2929_v57 }
 0x555   :  { %4476 = vmatprep.subr.mxu0 %v2577_v23  ;;  %4543 = vmatprep.subr.mxu1 %v2813_v41  ;;  %v282_v23 = vld [vmem:[%s15492_s1 + $0x30] sm:$0xff] }
 0x556   :  { %4477 = vmatpush2.msra.mxu0 %v2576_v3  ;;  %4544 = vmatpush2.msra.mxu1 %v2812_v25  ;;  %v283_v3 = vld [vmem:[%s15492_s1 + $0x38] sm:$0xff] }
 0x557   :  { %4478 = vmatprep.subr.mxu0 %v2460_v63  ;;  %4545 = vmatprep.subr.mxu1 %v2696_v61 }
 0x558   :  { %4479 = vmatpush2.msra.mxu0 %v2459_v60  ;;  %4546 = vmatpush2.msra.mxu1 %v2695_v27 }
 0x559   :  { %4480 = vmatprep.subr.mxu0 %v2343_v55  ;;  %4547 = vmatprep.subr.mxu1 %v2579_v47 }
 0x55a   :  { %4481 = vmatpush2.msra.mxu0 %v2342_v10  ;;  %8986 = vmatprep.mubr.msk.f32.mxu0 %vm16882_vm10, %v12363_v11  ;;  %v286_v10 = vld [vmem:[%s15492_s1 + $0x50] sm:$0xff]  ;;  %vm16891_vm10 = vmmov %vm16889_vm8 }
 0x55b   :  { %4548 = vmatpush2.msra.mxu1 %v2578_v50  ;;  %4483 = vmatmul.mubr.f32.vlgmr.msra.gmra.mxu0 %v9029_v36 }
 0x55c   :  { %4549 = vmatprep.subr.mxu1 %v2462_v43  ;;  %8987 = vmatprep.mubr.msk.f32.mxu1 %vm16885_vm12, %v12363_v11  ;;  %v276_v11 = vld [vmem:[%s15492_s1] sm:$0xff]  ;;  %vm16892_vm12 = vmmov %vm16889_vm8 }
 0x55d   :  { %4550 = vmatpush2.msra.mxu1 %v2461_v26 }
 0x55e   :  { %4551 = vmatprep.subr.mxu1 %v2345_v30 }
 0x55f   :  { %4552 = vmatpush2.msra.mxu1 %v2344_v52 }
 0x560   :  { %4554 = vmatmul.mubr.f32.vlgmr.msra.gmra.mxu1 %v9029_v36 }
 0x574   :  { %v4058_v49 = vpop.f32.mrf.mxu0 }
 0x575   :  { %v4059_v19 = vadd.f32 %v4058_v49, %v12710_v5 }
 0x576   :  { %v4060_v40 = vpop.f32.mrf.mxu0 }
 0x577   :  { %v4560_v8 = vmax.f32 %v4059_v19, 0.0  ;;  %v4061_v2 = vadd.f32 %v4060_v40, %v12710_v5 }
 0x578   :  { %v4129_v48 = vpop.f32.mrf.mxu1 }
 0x579   :  { %v4576_v29 = vmul.f32 %v4560_v8, %v276_v11  ;;  %v4561_v17 = vmax.f32 %v4061_v2, 0.0  ;;  %v4130_v14 = vadd.f32 %v4129_v48, %v12710_v5 }
 0x57a   :  { %v4131_v53 = vpop.f32.mrf.mxu1 }
 0x57b   :  { %v4577_v6 = vmul.f32 %v4561_v17, %v277_v15  ;;  %v4562_v62 = vmax.f32 %v4130_v14, 0.0  ;;  %v4132_v21 = vadd.f32 %v4131_v53, %v12710_v5  ;;  %4608 = vrot.lane.b32.xlu0 %v4576_v29, %s9033_s27  ;;  %v288_v15 = vld [vmem:[%s15492_s1 + $0x60] sm:$0xff]  ;;  %v289_v14 = vld [vmem:[%s15492_s1 + $0x68] sm:$0xff] }
 0x57d   :  { %v4578_v9 = vmul.f32 %v4562_v62, %v278_v24  ;;  %v4563_v34 = vmax.f32 %v4132_v21, 0.0  ;;  %4610 = vrot.lane.b32.xlu1 %v4577_v6, %s9033_s27 }
 0x57f   :  { %v4579_v54 = vmul.f32 %v4563_v34, %v279_v12  ;;  %4612 = vrot.lane.b32.xlu0 %v4578_v9, %s9033_s27  ;;  %v290_v12 = vld [vmem:[%s15492_s1 + $0x70] sm:$0xff] }
 0x581   :  { %4614 = vrot.lane.b32.xlu1 %v4579_v54, %s9033_s27 }
 0x5ab   :  { %v4200_v16 = vpop.f32.mrf.mxu0 }
 0x5ac   :  { %v4201_v35 = vadd.f32 %v4200_v16, %v12710_v5  ;;  %v291_v16 = vld [vmem:[%s15492_s1 + $0x78] sm:$0xff]  ;;  %s17070_s1 = smov 44  }
 0x5ad   :  { %v4202_v7 = vpop.f32.mrf.mxu0 }
 0x5ae   :  { %v4564_v0 = vmax.f32 %v4201_v35, 0.0  ;;  %v4203_v59 = vadd.f32 %v4202_v7, %v12710_v5 }
 0x5b0   :  { %v4580_v58 = vmul.f32 %v4564_v0, %v280_v38  ;;  %v4565_v42 = vmax.f32 %v4203_v59, 0.0  ;;  %v4271_v57 = vpop.f32.mrf.mxu1 }
 0x5b1   :  { %v4272_v20 = vadd.f32 %v4271_v57, %v12710_v5 }
 0x5b2   :  { %v4581_v32 = vmul.f32 %v4565_v42, %v281_v13  ;;  %v4273_v37 = vpop.f32.mrf.mxu1  ;;  %4616 = vrot.lane.b32.xlu0 %v4580_v58, %s9033_s27 }
 0x5b3   :  { %v4566_v33 = vmax.f32 %v4272_v20, 0.0  ;;  %v4274_v41 = vadd.f32 %v4273_v37, %v12710_v5 }
 0x5b4   :  { %4618 = vrot.lane.b32.xlu1 %v4581_v32, %s9033_s27 }
 0x5b5   :  { %v4582_v25 = vmul.f32 %v4566_v33, %v282_v23  ;;  %v4567_v44 = vmax.f32 %v4274_v41, 0.0 }
 0x5b7   :  { %v4583_v18 = vmul.f32 %v4567_v44, %v283_v3  ;;  %4620 = vrot.lane.b32.xlu0 %v4582_v25, %s9033_s27 }
 0x5b9   :  { %4622 = vrot.lane.b32.xlu1 %v4583_v18, %s9033_s27 }
 0x5e3   :  { %v4342_v63 = vpop.f32.mrf.mxu0 }
 0x5e4   :  { %v4343_v1 = vadd.f32 %v4342_v63, %v12710_v5 }
 0x5e5   :  { %v4344_v61 = vpop.f32.mrf.mxu0 }
 0x5e6   :  { %v4568_v60 = vmax.f32 %v4343_v1, 0.0  ;;  %v4345_v27 = vadd.f32 %v4344_v61, %v12710_v5 }
 0x5e8   :  { %v4584_v56 = vmul.f32 %v4568_v60, %v284_v46  ;;  %v4569_v55 = vmax.f32 %v4345_v27, 0.0  ;;  %v4413_v51 = vpop.f32.mrf.mxu1 }
 0x5e9   :  { %v4414_v31 = vadd.f32 %v4413_v51, %v12710_v5 }
 0x5ea   :  { %v4585_v47 = vmul.f32 %v4569_v55, %v285_v45  ;;  %v4415_v50 = vpop.f32.mrf.mxu1  ;;  %4624 = vrot.lane.b32.xlu0 %v4584_v56, %s9033_s27 }
 0x5eb   :  { %v4570_v36 = vmax.f32 %v4414_v31, 0.0  ;;  %v4416_v39 = vadd.f32 %v4415_v50, %v12710_v5 }
 0x5ec   :  { %4626 = vrot.lane.b32.xlu1 %v4585_v47, %s9033_s27 }
 0x5ed   :  { %v4586_v43 = vmul.f32 %v4570_v36, %v286_v10  ;;  %v4571_v26 = vmax.f32 %v4416_v39, 0.0  ;;  %v4609_v28 = vpop.permute.xlu0 %4608 }
 0x5ee   :  { %4672 = vst.msk [vmem:[#allocation2] sm:$0xff] %vm16888_vm9, %v4609_v28  ;;  %vm16893_vm9 = vmmov %vm16889_vm8 }
 0x5ef   :  { %v4587_v4 = vmul.f32 %v4571_v26, %v287_v22  ;;  %4628 = vrot.lane.b32.xlu0 %v4586_v43, %s9033_s27  ;;  %v4611_v30 = vpop.permute.xlu1 %4610 }
 0x5f0   :  { %v12773_v52 = vsel %vm16889_vm8, %v4609_v28, %v4611_v30 }
 0x5f1   :  { %4630 = vrot.lane.b32.xlu1 %v4587_v4, %s9033_s27  ;;  %4673 = vst [vmem:[#allocation2 + $0x8] sm:$0xff] %v12773_v52  ;;  %v4613_v49 = vpop.permute.xlu0 %4612 }
 0x5f2   :  { %v12778_v19 = vsel %vm16890_vm11, %v4611_v30, %v4613_v49  ;;  %vm16894_vm11 = vmmov %vm16889_vm8 }
 0x5f3   :  { %4674 = vst [vmem:[#allocation2 + $0x10] sm:$0xff] %v12778_v19  ;;  %v4615_v11 = vpop.permute.xlu1 %4614 }
 0x5f4   :  { %v12782_v40 = vsel %vm16891_vm10, %v4613_v49, %v4615_v11  ;;  %vm16895_vm10 = vmmov %vm16889_vm8 }
 0x5f5   :  { %4675 = vst [vmem:[#allocation2 + $0x18] sm:$0xff] %v12782_v40  ;;  %v12813_v42 = vld [vmem:[#allocation2] sm:$0xff] }
 0x61b   :  { %v4484_v8 = vpop.f32.mrf.mxu0 }
 0x61c   :  { %v4485_v2 = vadd.f32 %v4484_v8, %v12710_v5 }
 0x61d   :  { %v4486_v48 = vpop.f32.mrf.mxu0 }
 0x61e   :  { %v4572_v29 = vmax.f32 %v4485_v2, 0.0  ;;  %v4487_v17 = vadd.f32 %v4486_v48, %v12710_v5 }
 0x620   :  { %v4588_v24 = vmul.f32 %v4572_v29, %v288_v15  ;;  %v4573_v53 = vmax.f32 %v4487_v17, 0.0  ;;  %v4555_v6 = vpop.f32.mrf.mxu1 }
 0x621   :  { %v4556_v62 = vadd.f32 %v4555_v6, %v12710_v5 }
 0x622   :  { %v4589_v21 = vmul.f32 %v4573_v53, %v289_v14  ;;  %v4557_v9 = vpop.f32.mrf.mxu1  ;;  %4632 = vrot.lane.b32.xlu0 %v4588_v24, %s9033_s27 }
 0x623   :  { %v4574_v34 = vmax.f32 %v4556_v62, 0.0  ;;  %v4558_v54 = vadd.f32 %v4557_v9, %v12710_v5 }
 0x624   :  { %4634 = vrot.lane.b32.xlu1 %v4589_v21, %s9033_s27  ;;  %v4617_v35 = vpop.permute.xlu0 %4616 }
 0x625   :  { %v4590_v38 = vmul.f32 %v4574_v34, %v290_v12  ;;  %v4575_v7 = vmax.f32 %v4558_v54, 0.0  ;;  %v12804_v0 = vsel %vm16892_vm12, %v4615_v11, %v4617_v35  ;;  %vm16896_vm12 = vmmov %vm16889_vm8 }
 0x626   :  { %4676 = vst [vmem:[#allocation2 + $0x20] sm:$0xff] %v12804_v0  ;;  %v4619_v59 = vpop.permute.xlu1 %4618 }
 0x627   :  { %v4591_v13 = vmul.f32 %v4575_v7, %v291_v16  ;;  %4636 = vrot.lane.b32.xlu0 %v4590_v38, %s9033_s27  ;;  %v12809_v5 = vsel %vm16893_vm9, %v4617_v35, %v4619_v59  ;;  %vm16897_vm9 = vmmov %vm16889_vm8 }
 0x628   :  { %4677 = vst [vmem:[#allocation2 + $0x28] sm:$0xff] %v12809_v5 }
 0x629   :  { %4638 = vrot.lane.b32.xlu1 %v4591_v13, %s9033_s27  ;;  %v4621_v58 = vpop.permute.xlu0 %4620  ;;  %s17072_s27 = smov 45  }
 0x62a   :  { %v12816_v57 = vsel %vm16889_vm8, %v4619_v59, %v4621_v58 }
 0x62b   :  { %4723 = vrot.lane.b32.xlu0 %v12813_v42, %s9035_s22  ;;  %4678 = vst [vmem:[#allocation2 + $0x30] sm:$0xff] %v12816_v57  ;;  %v4623_v20 = vpop.permute.xlu1 %4622 }
 0x62c   :  { %v12822_v32 = vsel %vm16894_vm11, %v4621_v58, %v4623_v20  ;;  %vm16898_vm11 = vmmov %vm16889_vm8 }
 0x62d   :  { %4725 = vrot.lane.b32.xlu1 %v12773_v52, %s9035_s22  ;;  %4679 = vst [vmem:[#allocation2 + $0x38] sm:$0xff] %v12822_v32 }
 0x62f   :  { %4727 = vrot.lane.b32.xlu0 %v12778_v19, %s9035_s22 }
 0x631   :  { %4729 = vrot.lane.b32.xlu1 %v12782_v40, %s9035_s22 }
 0x633   :  { %4731 = vrot.lane.b32.xlu0 %v12804_v0, %s9035_s22 }
 0x635   :  { %4733 = vrot.lane.b32.xlu1 %v12809_v5, %s9035_s22 }
 0x637   :  { %4735 = vrot.lane.b32.xlu0 %v12816_v57, %s9035_s22 }
 0x639   :  { %4737 = vrot.lane.b32.xlu1 %v12822_v32, %s9035_s22 }
 0x65c   :  { %v4625_v23 = vpop.permute.xlu0 %4624 }
 0x65d   :  { %v12840_v37 = vsel %vm16895_vm10, %v4623_v20, %v4625_v23  ;;  %vm16899_vm10 = vmmov %vm16889_vm8 }
 0x65e   :  { %4680 = vst [vmem:[#allocation2 + $0x40] sm:$0xff] %v12840_v37  ;;  %v4627_v33 = vpop.permute.xlu1 %4626  ;;  %4739 = vrot.lane.b32.xlu0 %v12840_v37, %s9035_s22 }
 0x65f   :  { %v12846_v41 = vsel %vm16896_vm12, %v4625_v23, %v4627_v33  ;;  %vm16900_vm12 = vmmov %vm16889_vm8 }
 0x660   :  { %4681 = vst [vmem:[#allocation2 + $0x48] sm:$0xff] %v12846_v41  ;;  %4741 = vrot.lane.b32.xlu1 %v12846_v41, %s9035_s22 }
 0x661   :  { %v4629_v3 = vpop.permute.xlu0 %4628 }
 0x662   :  { %v12852_v25 = vsel %vm16897_vm9, %v4627_v33, %v4629_v3  ;;  %vm16901_vm9 = vmmov %vm16889_vm8 }
 0x663   :  { %4682 = vst [vmem:[#allocation2 + $0x50] sm:$0xff] %v12852_v25  ;;  %v4631_v44 = vpop.permute.xlu1 %4630  ;;  %4743 = vrot.lane.b32.xlu0 %v12852_v25, %s9035_s22 }
 0x664   :  { %v12858_v18 = vsel %vm16889_vm8, %v4629_v3, %v4631_v44 }
 0x665   :  { %4683 = vst [vmem:[#allocation2 + $0x58] sm:$0xff] %v12858_v18  ;;  %4745 = vrot.lane.b32.xlu1 %v12858_v18, %s9035_s22 }
 0x694   :  { %v4633_v63 = vpop.permute.xlu0 %4632 }
 0x695   :  { %v12864_v1 = vsel %vm16898_vm11, %v4631_v44, %v4633_v63  ;;  %vm17091_vm11 = vcmask 211968  }
 0x696   :  { %4684 = vst [vmem:[#allocation2 + $0x60] sm:$0xff] %v12864_v1  ;;  %v4635_v46 = vpop.permute.xlu1 %4634  ;;  %4747 = vrot.lane.b32.xlu0 %v12864_v1, %s9035_s22 }
 0x697   :  { %v12870_v61 = vsel %vm16899_vm10, %v4633_v63, %v4635_v46  ;;  %vm17092_vm10 = vmmov %vm17091_vm11 }
 0x698   :  { %4685 = vst [vmem:[#allocation2 + $0x68] sm:$0xff] %v12870_v61  ;;  %4749 = vrot.lane.b32.xlu1 %v12870_v61, %s9035_s22 }
 0x699   :  { %v4637_v60 = vpop.permute.xlu0 %4636 }
 0x69a   :  { %v12876_v27 = vsel %vm16900_vm12, %v4635_v46, %v4637_v60  ;;  %vm17093_vm12 = vcmask 220160  }
 0x69b   :  { %4686 = vst [vmem:[#allocation2 + $0x70] sm:$0xff] %v12876_v27  ;;  %v4639_v45 = vpop.permute.xlu1 %4638  ;;  %4751 = vrot.lane.b32.xlu0 %v12876_v27, %s9035_s22 }
 0x69c   :  { %v12882_v56 = vsel %vm16901_vm9, %v4637_v60, %v4639_v45  ;;  %4688 = vst.msk [vmem:[#allocation2 + $0x80] sm:$0xff] %vm16889_vm8, %v4639_v45  ;;  %vm17094_vm9 = vmmov %vm17093_vm12 }
 0x69d   :  { %4687 = vst [vmem:[#allocation2 + $0x78] sm:$0xff] %v12882_v56  ;;  %4753 = vrot.lane.b32.xlu1 %v12882_v56, %s9035_s22  ;;  %v12966_v31 = vpop.permute.xlu0 %4723  ;;  %vm17095_vm8 = vmmov %vm17092_vm10 }
 0x69e   :  { %16903 = vst [vmem:[#allocation210_spill] sm:$0xff] %v12966_v31 }
 0x69f   :  { %v12964_v51 = vpop.permute.xlu1 %4725 }
 0x6a0   :  { %16902 = vst [vmem:[#allocation213_spill] sm:$0xff] %v12964_v51 }
 0x6a1   :  { %4839 = vrot.lane.b32.xlu1 %v12813_v42, %s9034_s0  ;;  %v12978_v10 = vpop.permute.xlu0 %4727 }
 0x6a2   :  { %16905 = vst [vmem:[#allocation198_spill] sm:$0xff] %v12978_v10 }
 0x6a3   :  { %v12890_v55 = vld [vmem:[#allocation2 + $0x80] sm:$0xff]  ;;  %v12972_v47 = vpop.permute.xlu1 %4729 }
 0x6a4   :  { %4755 = vrot.lane.b32.xlu0 %v12890_v55, %s9035_s22  ;;  %16904 = vst [vmem:[#allocation211_spill] sm:$0xff] %v12972_v47  ;;  %s17082_s22 = smov 54  }
 0x6a5   :  { %4843 = vrot.lane.b32.xlu1 %v12778_v19, %s9034_s0  ;;  %v12986_v36 = vpop.permute.xlu0 %4731 }
 0x6a6   :  { %16907 = vst [vmem:[#allocation223_spill] sm:$0xff] %v12986_v36  ;;  %v5980_v36 = vld [vmem:[#allocation2 + $0x78] sm:$0xff] }
 0x6a7   :  { %v12984_v50 = vpop.permute.xlu1 %4733 }
 0x6a8   :  { %4841 = vrot.lane.b32.xlu0 %v12773_v52, %s9034_s0  ;;  %16906 = vst [vmem:[#allocation199_spill] sm:$0xff] %v12984_v50 }
 0x6a9   :  { %4847 = vrot.lane.b32.xlu1 %v12804_v0, %s9034_s0  ;;  %v12998_v22 = vpop.permute.xlu0 %4735 }
 0x6aa   :  { %16909 = vst [vmem:[#allocation197_spill] sm:$0xff] %v12998_v22 }
 0x6ab   :  { %v12992_v39 = vpop.permute.xlu1 %4737 }
 0x6ac   :  { %4845 = vrot.lane.b32.xlu0 %v12782_v40, %s9034_s0  ;;  %16908 = vst [vmem:[#allocation224_spill] sm:$0xff] %v12992_v39 }
 0x6ad   :  { %4851 = vrot.lane.b32.xlu1 %v12816_v57, %s9034_s0 }
 0x6b0   :  { %4849 = vrot.lane.b32.xlu0 %v12809_v5, %s9034_s0 }
 0x6b1   :  { %4855 = vrot.lane.b32.xlu1 %v12840_v37, %s9034_s0 }
 0x6b4   :  { %4853 = vrot.lane.b32.xlu0 %v12822_v32, %s9034_s0 }
 0x6b5   :  { %4859 = vrot.lane.b32.xlu1 %v12852_v25, %s9034_s0 }
 0x6b8   :  { %4857 = vrot.lane.b32.xlu0 %v12846_v41, %s9034_s0 }
 0x6b9   :  { %4863 = vrot.lane.b32.xlu1 %v12864_v1, %s9034_s0 }
 0x6bc   :  { %4861 = vrot.lane.b32.xlu0 %v12858_v18, %s9034_s0 }
 0x6bd   :  { %4867 = vrot.lane.b32.xlu1 %v12876_v27, %s9034_s0 }
 0x6c0   :  { %4865 = vrot.lane.b32.xlu0 %v12870_v61, %s9034_s0 }
 0x6c1   :  { %4871 = vrot.lane.b32.xlu1 %v12890_v55, %s9034_s0 }
 0x6c4   :  { %4869 = vrot.lane.b32.xlu0 %v12882_v56, %s9034_s0  ;;  %s17077_s0 = smov 53  }
 0x6c5   :  { %4957 = vrot.lane.b32.xlu1 %v12773_v52, %s9037_s24 }
 0x6c8   :  { %4955 = vrot.lane.b32.xlu0 %v12813_v42, %s9037_s24 }
 0x6c9   :  { %4961 = vrot.lane.b32.xlu1 %v12782_v40, %s9037_s24 }
 0x6cc   :  { %4959 = vrot.lane.b32.xlu0 %v12778_v19, %s9037_s24 }
 0x6cd   :  { %4965 = vrot.lane.b32.xlu1 %v12809_v5, %s9037_s24 }
 0x6d0   :  { %4963 = vrot.lane.b32.xlu0 %v12804_v0, %s9037_s24  ;;  %v13006_v26 = vpop.permute.xlu0 %4739 }
 0x6d1   :  { %4969 = vrot.lane.b32.xlu1 %v12822_v32, %s9037_s24  ;;  %16911 = vst [vmem:[#allocation184_spill] sm:$0xff] %v13006_v26 }
 0x6d2   :  { %v13000_v43 = vpop.permute.xlu1 %4741 }
 0x6d3   :  { %16910 = vst [vmem:[#allocation187_spill] sm:$0xff] %v13000_v43 }
 0x6d4   :  { %4967 = vrot.lane.b32.xlu0 %v12816_v57, %s9037_s24 }
 0x6d5   :  { %4973 = vrot.lane.b32.xlu1 %v12846_v41, %s9037_s24  ;;  %v13014_v4 = vpop.permute.xlu0 %4743 }
 0x6d6   :  { %16913 = vst [vmem:[#allocation212_spill] sm:$0xff] %v13014_v4 }
 0x6d7   :  { %v13012_v28 = vpop.permute.xlu1 %4745 }
 0x6d8   :  { %4971 = vrot.lane.b32.xlu0 %v12840_v37, %s9037_s24  ;;  %16912 = vst [vmem:[#allocation215_spill] sm:$0xff] %v13012_v28 }
 0x6d9   :  { %4977 = vrot.lane.b32.xlu1 %v12858_v18, %s9037_s24 }
 0x6dc   :  { %4975 = vrot.lane.b32.xlu0 %v12852_v25, %s9037_s24 }
 0x6dd   :  { %4981 = vrot.lane.b32.xlu1 %v12870_v61, %s9037_s24 }
 0x6e0   :  { %4979 = vrot.lane.b32.xlu0 %v12864_v1, %s9037_s24 }
 0x6e1   :  { %4985 = vrot.lane.b32.xlu1 %v12882_v56, %s9037_s24 }
 0x6e4   :  { %4983 = vrot.lane.b32.xlu0 %v12876_v27, %s9037_s24 }
 0x6e5   :  { %5071 = vrot.lane.b32.xlu1 %v12813_v42, %s9036_s23 }
 0x6e8   :  { %4987 = vrot.lane.b32.xlu0 %v12890_v55, %s9037_s24  ;;  %s17089_s24 = smov 5  }
 0x6e9   :  { %5075 = vrot.lane.b32.xlu1 %v12778_v19, %s9036_s23 }
 0x6ec   :  { %5073 = vrot.lane.b32.xlu0 %v12773_v52, %s9036_s23 }
 0x6ed   :  { %5079 = vrot.lane.b32.xlu1 %v12804_v0, %s9036_s23 }
 0x6f0   :  { %5077 = vrot.lane.b32.xlu0 %v12782_v40, %s9036_s23 }
 0x6f1   :  { %5083 = vrot.lane.b32.xlu1 %v12816_v57, %s9036_s23 }
 0x6f4   :  { %5081 = vrot.lane.b32.xlu0 %v12809_v5, %s9036_s23 }
 0x6f5   :  { %5087 = vrot.lane.b32.xlu1 %v12840_v37, %s9036_s23 }
 0x6f8   :  { %5085 = vrot.lane.b32.xlu0 %v12822_v32, %s9036_s23 }
 0x6f9   :  { %5091 = vrot.lane.b32.xlu1 %v12852_v25, %s9036_s23 }
 0x6fc   :  { %5089 = vrot.lane.b32.xlu0 %v12846_v41, %s9036_s23 }
 0x6fd   :  { %5095 = vrot.lane.b32.xlu1 %v12864_v1, %s9036_s23 }
 0x700   :  { %5093 = vrot.lane.b32.xlu0 %v12858_v18, %s9036_s23 }
 0x701   :  { %5099 = vrot.lane.b32.xlu1 %v12876_v27, %s9036_s23 }
 0x704   :  { %5097 = vrot.lane.b32.xlu0 %v12870_v61, %s9036_s23 }
 0x705   :  { %5103 = vrot.lane.b32.xlu1 %v12890_v55, %s9036_s23 }
 0x708   :  { %5101 = vrot.lane.b32.xlu0 %v12882_v56, %s9036_s23  ;;  %v13024_v49 = vpop.permute.xlu0 %4747  ;;  %s17087_s23 = smov 55  }
 0x709   :  { %5189 = vrot.lane.b32.xlu1 %v12773_v52, %s9038_s25  ;;  %16915 = vst [vmem:[#allocation172_spill] sm:$0xff] %v13024_v49 }
 0x70a   :  { %v13020_v30 = vpop.permute.xlu1 %4749 }
 0x70b   :  { %16914 = vst [vmem:[#allocation185_spill] sm:$0xff] %v13020_v30 }
 0x70c   :  { %5187 = vrot.lane.b32.xlu0 %v12813_v42, %s9038_s25 }
 0x70d   :  { %5193 = vrot.lane.b32.xlu1 %v12782_v40, %s9038_s25  ;;  %v13034_v8 = vpop.permute.xlu0 %4751 }
 0x70e   :  { %16917 = vst [vmem:[#allocation200_spill] sm:$0xff] %v13034_v8 }
 0x70f   :  { %v13028_v11 = vpop.permute.xlu1 %4753 }
 0x710   :  { %16916 = vst [vmem:[#allocation173_spill] sm:$0xff] %v13028_v11  ;;  %5191 = vrot.lane.b32.xlu0 %v12778_v19, %s9038_s25 }
 0x711   :  { %5197 = vrot.lane.b32.xlu1 %v12809_v5, %s9038_s25 }
 0x713   :  { %v13036_v2 = vpop.permute.xlu1 %4839 }
 0x714   :  { %16918 = vst [vmem:[#allocation201_spill] sm:$0xff] %v13036_v2  ;;  %5195 = vrot.lane.b32.xlu0 %v12804_v0, %s9038_s25 }
 0x715   :  { %5201 = vrot.lane.b32.xlu1 %v12822_v32, %s9038_s25 }
 0x716   :  { %v13042_v15 = vpop.permute.xlu0 %4755 }
 0x717   :  { %16919 = vst [vmem:[#allocation171_spill] sm:$0xff] %v13042_v15  ;;  %v13044_v48 = vpop.permute.xlu1 %4843 }
 0x718   :  { %16920 = vst [vmem:[#allocation161_spill] sm:$0xff] %v13044_v48  ;;  %5199 = vrot.lane.b32.xlu0 %v12816_v57, %s9038_s25 }
 0x719   :  { %5205 = vrot.lane.b32.xlu1 %v12846_v41, %s9038_s25 }
 0x71a   :  { %v13050_v29 = vpop.permute.xlu0 %4841 }
 0x71b   :  { %16921 = vst [vmem:[#allocation158_spill] sm:$0xff] %v13050_v29  ;;  %v13052_v17 = vpop.permute.xlu1 %4847 }
 0x71c   :  { %16922 = vst [vmem:[#allocation189_spill] sm:$0xff] %v13052_v17  ;;  %5203 = vrot.lane.b32.xlu0 %v12840_v37, %s9038_s25 }
 0x71d   :  { %5209 = vrot.lane.b32.xlu1 %v12858_v18, %s9038_s25 }
 0x71e   :  { %v13058_v14 = vpop.permute.xlu0 %4845 }
 0x71f   :  { %16923 = vst [vmem:[#allocation186_spill] sm:$0xff] %v13058_v14  ;;  %v13060_v24 = vpop.permute.xlu1 %4851 }
 0x720   :  { %16924 = vst [vmem:[#allocation159_spill] sm:$0xff] %v13060_v24  ;;  %5207 = vrot.lane.b32.xlu0 %v12852_v25, %s9038_s25 }
 0x721   :  { %5213 = vrot.lane.b32.xlu1 %v12870_v61, %s9038_s25 }
 0x722   :  { %v13066_v53 = vpop.permute.xlu0 %4849 }
 0x723   :  { %16925 = vst [vmem:[#allocation146_spill] sm:$0xff] %v13066_v53  ;;  %v13068_v6 = vpop.permute.xlu1 %4855 }
 0x724   :  { %16926 = vst [vmem:[#allocation147_spill] sm:$0xff] %v13068_v6  ;;  %5211 = vrot.lane.b32.xlu0 %v12864_v1, %s9038_s25 }
 0x725   :  { %5217 = vrot.lane.b32.xlu1 %v12882_v56, %s9038_s25 }
 0x726   :  { %v13074_v62 = vpop.permute.xlu0 %4853 }
 0x727   :  { %16927 = vst [vmem:[#allocation174_spill] sm:$0xff] %v13074_v62  ;;  %v13076_v21 = vpop.permute.xlu1 %4859 }
 0x728   :  { %16928 = vst [vmem:[#allocation175_spill] sm:$0xff] %v13076_v21  ;;  %5215 = vrot.lane.b32.xlu0 %v12876_v27, %s9038_s25 }
 0x729   :  { %5303 = vrot.lane.b32.xlu1 %v12813_v42, %s9039_s26 }
 0x72a   :  { %v13082_v12 = vpop.permute.xlu0 %4857 }
 0x72b   :  { %16929 = vst [vmem:[#allocation145_spill] sm:$0xff] %v13082_v12  ;;  %v13084_v9 = vpop.permute.xlu1 %4863 }
 0x72c   :  { %16930 = vst [vmem:[#allocation135_spill] sm:$0xff] %v13084_v9  ;;  %5219 = vrot.lane.b32.xlu0 %v12890_v55, %s9038_s25  ;;  %s17090_s25 = smov 6  }
 0x72d   :  { %5307 = vrot.lane.b32.xlu1 %v12778_v19, %s9039_s26 }
 0x72e   :  { %v13090_v34 = vpop.permute.xlu0 %4861 }
 0x72f   :  { %16931 = vst [vmem:[#allocation132_spill] sm:$0xff] %v13090_v34  ;;  %v13092_v54 = vpop.permute.xlu1 %4867 }
 0x730   :  { %16932 = vst [vmem:[#allocation163_spill] sm:$0xff] %v13092_v54  ;;  %5305 = vrot.lane.b32.xlu0 %v12773_v52, %s9039_s26 }
 0x731   :  { %5311 = vrot.lane.b32.xlu1 %v12804_v0, %s9039_s26 }
 0x732   :  { %v13098_v16 = vpop.permute.xlu0 %4865 }
 0x733   :  { %16933 = vst [vmem:[#allocation160_spill] sm:$0xff] %v13098_v16  ;;  %v13100_v35 = vpop.permute.xlu1 %4871 }
 0x734   :  { %16934 = vst [vmem:[#allocation133_spill] sm:$0xff] %v13100_v35  ;;  %5309 = vrot.lane.b32.xlu0 %v12782_v40, %s9039_s26 }
 0x735   :  { %5315 = vrot.lane.b32.xlu1 %v12816_v57, %s9039_s26 }
 0x736   :  { %v13106_v38 = vpop.permute.xlu0 %4869 }
 0x737   :  { %16935 = vst [vmem:[#allocation120_spill] sm:$0xff] %v13106_v38  ;;  %v13108_v7 = vpop.permute.xlu1 %4957 }
 0x738   :  { %16936 = vst [vmem:[#allocation121_spill] sm:$0xff] %v13108_v7  ;;  %5313 = vrot.lane.b32.xlu0 %v12809_v5, %s9039_s26 }
 0x739   :  { %5319 = vrot.lane.b32.xlu1 %v12840_v37, %s9039_s26 }
 0x73a   :  { %v13114_v59 = vpop.permute.xlu0 %4955 }
 0x73b   :  { %16937 = vst [vmem:[#allocation148_spill] sm:$0xff] %v13114_v59  ;;  %v13116_v13 = vpop.permute.xlu1 %4961 }
 0x73c   :  { %16938 = vst [vmem:[#allocation149_spill] sm:$0xff] %v13116_v13  ;;  %5317 = vrot.lane.b32.xlu0 %v12822_v32, %s9039_s26 }
 0x73d   :  { %5323 = vrot.lane.b32.xlu1 %v12852_v25, %s9039_s26 }
 0x73e   :  { %v13122_v58 = vpop.permute.xlu0 %4959 }
 0x73f   :  { %16939 = vst [vmem:[#allocation118_spill] sm:$0xff] %v13122_v58  ;;  %v13124_v20 = vpop.permute.xlu1 %4965 }
 0x740   :  { %16940 = vst [vmem:[#allocation108_spill] sm:$0xff] %v13124_v20  ;;  %5321 = vrot.lane.b32.xlu0 %v12846_v41, %s9039_s26 }
 0x741   :  { %5327 = vrot.lane.b32.xlu1 %v12864_v1, %s9039_s26 }
 0x742   :  { %v13130_v23 = vpop.permute.xlu0 %4963 }
 0x743   :  { %16941 = vst [vmem:[#allocation105_spill] sm:$0xff] %v13130_v23  ;;  %v13132_v33 = vpop.permute.xlu1 %4969 }
 0x744   :  { %16942 = vst [vmem:[#allocation137_spill] sm:$0xff] %v13132_v33  ;;  %5325 = vrot.lane.b32.xlu0 %v12858_v18, %s9039_s26 }
 0x745   :  { %5331 = vrot.lane.b32.xlu1 %v12876_v27, %s9039_s26 }
 0x746   :  { %v13138_v3 = vpop.permute.xlu0 %4967 }
 0x747   :  { %16943 = vst [vmem:[#allocation134_spill] sm:$0xff] %v13138_v3  ;;  %v13140_v44 = vpop.permute.xlu1 %4973  ;;  %v13424_v3 = vld [vmem:[#allocation2 + $0x8] sm:$0xff] }
 0x748   :  { %16944 = vst [vmem:[#allocation106_spill] sm:$0xff] %v13140_v44  ;;  %5329 = vrot.lane.b32.xlu0 %v12870_v61, %s9039_s26 }
 0x749   :  { %5335 = vrot.lane.b32.xlu1 %v12890_v55, %s9039_s26 }
 0x74a   :  { %v13146_v63 = vpop.permute.xlu0 %4971 }
 0x74b   :  { %16945 = vst [vmem:[#allocation92_spill] sm:$0xff] %v13146_v63  ;;  %v13148_v46 = vpop.permute.xlu1 %4977 }
 0x74c   :  { %16946 = vst [vmem:[#allocation93_spill] sm:$0xff] %v13148_v46  ;;  %5333 = vrot.lane.b32.xlu0 %v12882_v56, %s9039_s26 }
 0x74d   :  { %5421 = vrot.lane.b32.xlu1 %v12773_v52, %s9040_s28 }
 0x74e   :  { %v13154_v60 = vpop.permute.xlu0 %4975 }
 0x74f   :  { %16947 = vst [vmem:[#allocation122_spill] sm:$0xff] %v13154_v60  ;;  %v13156_v45 = vpop.permute.xlu1 %4981 }
 0x750   :  { %16948 = vst [vmem:[#allocation123_spill] sm:$0xff] %v13156_v45  ;;  %5419 = vrot.lane.b32.xlu0 %v12813_v42, %s9040_s28 }
 0x751   :  { %5425 = vrot.lane.b32.xlu1 %v12782_v40, %s9040_s28 }
 0x752   :  { %v13162_v11 = vpop.permute.xlu0 %4979 }
 0x753   :  { %16949 = vst [vmem:[#allocation90_spill] sm:$0xff] %v13162_v11  ;;  %v13164_v15 = vpop.permute.xlu1 %4985 }
 0x754   :  { %16950 = vst [vmem:[#allocation79_spill] sm:$0xff] %v13164_v15  ;;  %5423 = vrot.lane.b32.xlu0 %v12778_v19, %s9040_s28 }
 0x755   :  { %5429 = vrot.lane.b32.xlu1 %v12809_v5, %s9040_s28 }
 0x756   :  { %v13170_v38 = vpop.permute.xlu0 %4983 }
 0x757   :  { %16951 = vst [vmem:[#allocation76_spill] sm:$0xff] %v13170_v38  ;;  %v13172_v35 = vpop.permute.xlu1 %5071 }
 0x758   :  { %16952 = vst [vmem:[#allocation110_spill] sm:$0xff] %v13172_v35  ;;  %5427 = vrot.lane.b32.xlu0 %v12804_v0, %s9040_s28 }
 0x759   :  { %5433 = vrot.lane.b32.xlu1 %v12822_v32, %s9040_s28 }
 0x75a   :  { %v13178_v30 = vpop.permute.xlu0 %4987 }
 0x75b   :  { %16953 = vst [vmem:[#allocation107_spill] sm:$0xff] %v13178_v30  ;;  %v13180_v8 = vpop.permute.xlu1 %5075 }
 0x75c   :  { %16954 = vst [vmem:[#allocation77_spill] sm:$0xff] %v13180_v8  ;;  %5431 = vrot.lane.b32.xlu0 %v12816_v57, %s9040_s28 }
 0x75d   :  { %5437 = vrot.lane.b32.xlu1 %v12846_v41, %s9040_s28 }
 0x75e   :  { %v13186_v15 = vpop.permute.xlu0 %5073 }
 0x75f   :  { %16955 = vst [vmem:[#allocation60_spill] sm:$0xff] %v13186_v15  ;;  %v13188_v16 = vpop.permute.xlu1 %5079 }
 0x760   :  { %16956 = vst [vmem:[#allocation61_spill] sm:$0xff] %v13188_v16  ;;  %5435 = vrot.lane.b32.xlu0 %v12840_v37, %s9040_s28 }
 0x761   :  { %5441 = vrot.lane.b32.xlu1 %v12858_v18, %s9040_s28 }
 0x762   :  { %v13194_v54 = vpop.permute.xlu0 %5077 }
 0x763   :  { %16957 = vst [vmem:[#allocation94_spill] sm:$0xff] %v13194_v54  ;;  %v13196_v30 = vpop.permute.xlu1 %5083 }
 0x764   :  { %16958 = vst [vmem:[#allocation95_spill] sm:$0xff] %v13196_v30  ;;  %5439 = vrot.lane.b32.xlu0 %v12852_v25, %s9040_s28 }
 0x765   :  { %5445 = vrot.lane.b32.xlu1 %v12870_v61, %s9040_s28 }
 0x766   :  { %v13202_v45 = vpop.permute.xlu0 %5081 }
 0x767   :  { %16959 = vst [vmem:[#allocation58_spill] sm:$0xff] %v13202_v45  ;;  %v13204_v38 = vpop.permute.xlu1 %5087  ;;  %v13440_v45 = vld [vmem:[#allocation2 + $0x10] sm:$0xff] }
 0x768   :  { %16960 = vst [vmem:[#allocation47_spill] sm:$0xff] %v13204_v38  ;;  %5443 = vrot.lane.b32.xlu0 %v12864_v1, %s9040_s28 }
 0x769   :  { %5449 = vrot.lane.b32.xlu1 %v12882_v56, %s9040_s28 }
 0x76a   :  { %v13210_v28 = vpop.permute.xlu0 %5085 }
 0x76b   :  { %16961 = vst [vmem:[#allocation44_spill] sm:$0xff] %v13210_v28  ;;  %v13212_v49 = vpop.permute.xlu1 %5091 }
 0x76c   :  { %16962 = vst [vmem:[#allocation81_spill] sm:$0xff] %v13212_v49  ;;  %5447 = vrot.lane.b32.xlu0 %v12876_v27, %s9040_s28 }
 0x76d   :  { %5535 = vrot.lane.b32.xlu1 %v12813_v42, %s9041_s29 }
 0x76e   :  { %v13218_v34 = vpop.permute.xlu0 %5089 }
 0x76f   :  { %16963 = vst [vmem:[#allocation78_spill] sm:$0xff] %v13218_v34  ;;  %v13220_v9 = vpop.permute.xlu1 %5095 }
 0x770   :  { %16964 = vst [vmem:[#allocation45_spill] sm:$0xff] %v13220_v9  ;;  %5451 = vrot.lane.b32.xlu0 %v12890_v55, %s9040_s28 }
 0x771   :  { %5539 = vrot.lane.b32.xlu1 %v12778_v19, %s9041_s29 }
 0x772   :  { %v13226_v46 = vpop.permute.xlu0 %5093 }
 0x773   :  { %16965 = vst [vmem:[#allocation30_spill] sm:$0xff] %v13226_v46  ;;  %v13228_v11 = vpop.permute.xlu1 %5099 }
 0x774   :  { %16966 = vst [vmem:[#allocation31_spill] sm:$0xff] %v13228_v11  ;;  %5537 = vrot.lane.b32.xlu0 %v12773_v52, %s9041_s29 }
 0x775   :  { %5543 = vrot.lane.b32.xlu1 %v12804_v0, %s9041_s29 }
 0x776   :  { %v13234_v43 = vpop.permute.xlu0 %5097 }
 0x777   :  { %16967 = vst [vmem:[#allocation62_spill] sm:$0xff] %v13234_v43  ;;  %v13236_v4 = vpop.permute.xlu1 %5103 }
 0x778   :  { %16968 = vst [vmem:[#allocation63_spill] sm:$0xff] %v13236_v4  ;;  %5541 = vrot.lane.b32.xlu0 %v12782_v40, %s9041_s29 }
 0x779   :  { %5547 = vrot.lane.b32.xlu1 %v12816_v57, %s9041_s29 }
 0x77a   :  { %v13242_v9 = vpop.permute.xlu0 %5101 }
 0x77b   :  { %16969 = vst [vmem:[#allocation28_spill] sm:$0xff] %v13242_v9  ;;  %v13244_v46 = vpop.permute.xlu1 %5189 }
 0x77c   :  { %5545 = vrot.lane.b32.xlu0 %v12809_v5, %s9041_s29 }
 0x77d   :  { %5551 = vrot.lane.b32.xlu1 %v12840_v37, %s9041_s29 }
 0x77e   :  { %v13250_v11 = vpop.permute.xlu0 %5187 }
 0x77f   :  { %v13252_v43 = vpop.permute.xlu1 %5193 }
 0x780   :  { %16970 = vst [vmem:[#allocation17_spill] sm:$0xff] %v13252_v43  ;;  %5549 = vrot.lane.b32.xlu0 %v12822_v32, %s9041_s29 }
 0x781   :  { %5555 = vrot.lane.b32.xlu1 %v12852_v25, %s9041_s29 }
 0x782   :  { %v13258_v4 = vpop.permute.xlu0 %5191 }
 0x783   :  { %v13260_v9 = vpop.permute.xlu1 %5197 }
 0x784   :  { %16971 = vst [vmem:[#allocation14_spill] sm:$0xff] %v13260_v9  ;;  %5553 = vrot.lane.b32.xlu0 %v12846_v41, %s9041_s29  ;;  %v13549_v9 = vld [vmem:[#allocation2 + $0x48] sm:$0xff] }
 0x785   :  { %5559 = vrot.lane.b32.xlu1 %v12864_v1, %s9041_s29  ;;  %17022 = vst [vmem:[#allocation217_spill] sm:$0xff] %v13549_v9 }
 0x786   :  { %v13266_v12 = vpop.permute.xlu0 %5195 }
 0x787   :  { %16972 = vst [vmem:[#allocation49_spill] sm:$0xff] %v13266_v12  ;;  %v13268_v21 = vpop.permute.xlu1 %5201 }
 0x788   :  { %16973 = vst [vmem:[#allocation46_spill] sm:$0xff] %v13268_v21  ;;  %5557 = vrot.lane.b32.xlu0 %v12858_v18, %s9041_s29 }
 0x789   :  { %5563 = vrot.lane.b32.xlu1 %v12876_v27, %s9041_s29 }
 0x78a   :  { %v13274_v44 = vpop.permute.xlu0 %5199 }
 0x78b   :  { %16974 = vst [vmem:[#allocation15_spill] sm:$0xff] %v13274_v44  ;;  %v13276_v60 = vpop.permute.xlu1 %5205 }
 0x78c   :  { %16975 = vst [vmem:[#allocation32_spill] sm:$0xff] %v13276_v60  ;;  %5561 = vrot.lane.b32.xlu0 %v12870_v61, %s9041_s29 }
 0x78d   :  { %5567 = vrot.lane.b32.xlu1 %v12890_v55, %s9041_s29 }
 0x78e   :  { %v13282_v34 = vpop.permute.xlu0 %5203 }
 0x78f   :  { %16976 = vst [vmem:[#allocation33_spill] sm:$0xff] %v13282_v34  ;;  %v13284_v49 = vpop.permute.xlu1 %5209 }
 0x790   :  { %16977 = vst [vmem:[#allocation318_spill] sm:$0xff] %v13284_v49  ;;  %5565 = vrot.lane.b32.xlu0 %v12882_v56, %s9041_s29 }
 0x791   :  { %5653 = vrot.lane.b32.xlu1 %v12773_v52, %s9042_s30 }
 0x792   :  { %v13290_v39 = vpop.permute.xlu0 %5207 }
 0x793   :  { %16978 = vst [vmem:[#allocation319_spill] sm:$0xff] %v13290_v39  ;;  %v13292_v26 = vpop.permute.xlu1 %5213 }
 0x794   :  { %16979 = vst [vmem:[#allocation19_spill] sm:$0xff] %v13292_v26  ;;  %5651 = vrot.lane.b32.xlu0 %v12813_v42, %s9042_s30 }
 0x795   :  { %5657 = vrot.lane.b32.xlu1 %v12782_v40, %s9042_s30 }
 0x796   :  { %v13298_v60 = vpop.permute.xlu0 %5211 }
 0x797   :  { %16980 = vst [vmem:[#allocation16_spill] sm:$0xff] %v13298_v60  ;;  %v13300_v62 = vpop.permute.xlu1 %5217 }
 0x798   :  { %16981 = vst [vmem:[#allocation308_spill] sm:$0xff] %v13300_v62  ;;  %5655 = vrot.lane.b32.xlu0 %v12778_v19, %s9042_s30 }
 0x799   :  { %5661 = vrot.lane.b32.xlu1 %v12809_v5, %s9042_s30 }
 0x79a   :  { %v13306_v49 = vpop.permute.xlu0 %5215 }
 0x79b   :  { %16982 = vst [vmem:[#allocation306_spill] sm:$0xff] %v13306_v49  ;;  %v13308_v39 = vpop.permute.xlu1 %5303 }
 0x79c   :  { %5659 = vrot.lane.b32.xlu0 %v12804_v0, %s9042_s30 }
 0x79d   :  { %5665 = vrot.lane.b32.xlu1 %v12822_v32, %s9042_s30 }
 0x79e   :  { %v13314_v26 = vpop.permute.xlu0 %5219 }
 0x79f   :  { %16983 = vst [vmem:[#allocation294_spill] sm:$0xff] %v13314_v26  ;;  %v13316_v60 = vpop.permute.xlu1 %5307 }
 0x7a0   :  { %5663 = vrot.lane.b32.xlu0 %v12816_v57, %s9042_s30 }
 0x7a1   :  { %5669 = vrot.lane.b32.xlu1 %v12846_v41, %s9042_s30 }
 0x7a2   :  { %v13322_v62 = vpop.permute.xlu0 %5305 }
 0x7a3   :  { %v13324_v49 = vpop.permute.xlu1 %5311 }
 0x7a4   :  { %16984 = vst [vmem:[#allocation295_spill] sm:$0xff] %v13324_v49  ;;  %5667 = vrot.lane.b32.xlu0 %v12840_v37, %s9042_s30 }
 0x7a5   :  { %5673 = vrot.lane.b32.xlu1 %v12858_v18, %s9042_s30 }
 0x7a6   :  { %v13330_v6 = vpop.permute.xlu0 %5309 }
 0x7a7   :  { %16985 = vst [vmem:[#allocation320_spill] sm:$0xff] %v13330_v6  ;;  %v13332_v26 = vpop.permute.xlu1 %5315 }
 0x7a8   :  { %16986 = vst [vmem:[#allocation321_spill] sm:$0xff] %v13332_v26  ;;  %5671 = vrot.lane.b32.xlu0 %v12852_v25, %s9042_s30 }
 0x7a9   :  { %5677 = vrot.lane.b32.xlu1 %v12870_v61, %s9042_s30 }
 0x7aa   :  { %v13338_v33 = vpop.permute.xlu0 %5313 }
 0x7ab   :  { %16987 = vst [vmem:[#allocation283_spill] sm:$0xff] %v13338_v33  ;;  %v13340_v63 = vpop.permute.xlu1 %5319  ;;  %v5976_v33 = vld [vmem:[#allocation2 + $0x58] sm:$0xff] }
 0x7ac   :  { %16988 = vst [vmem:[#allocation281_spill] sm:$0xff] %v13340_v63  ;;  %5675 = vrot.lane.b32.xlu0 %v12864_v1, %s9042_s30  ;;  %v13434_v63 = vld [vmem:[#allocation2 + $0x18] sm:$0xff] }
 0x7ad   :  { %5681 = vrot.lane.b32.xlu1 %v12882_v56, %s9042_s30 }
 0x7ae   :  { %v13346_v50 = vpop.permute.xlu0 %5317 }
 0x7af   :  { %16989 = vst [vmem:[#allocation310_spill] sm:$0xff] %v13346_v50  ;;  %v13348_v22 = vpop.permute.xlu1 %5323 }
 0x7b0   :  { %16990 = vst [vmem:[#allocation307_spill] sm:$0xff] %v13348_v22  ;;  %5679 = vrot.lane.b32.xlu0 %v12876_v27, %s9042_s30 }
 0x7b1   :  { %5767 = vrot.lane.b32.xlu1 %v12813_v42, %s9043_s7 }
 0x7b2   :  { %v13354_v28 = vpop.permute.xlu0 %5321 }
 0x7b3   :  { %16991 = vst [vmem:[#allocation269_spill] sm:$0xff] %v13354_v28  ;;  %v13356_v38 = vpop.permute.xlu1 %5327 }
 0x7b4   :  { %16992 = vst [vmem:[#allocation270_spill] sm:$0xff] %v13356_v38  ;;  %5683 = vrot.lane.b32.xlu0 %v12890_v55, %s9042_s30 }
 0x7b5   :  { %5771 = vrot.lane.b32.xlu1 %v12778_v19, %s9043_s7 }
 0x7b6   :  { %v13362_v53 = vpop.permute.xlu0 %5325 }
 0x7b7   :  { %16993 = vst [vmem:[#allocation296_spill] sm:$0xff] %v13362_v53  ;;  %v13364_v24 = vpop.permute.xlu1 %5331 }
 0x7b8   :  { %16994 = vst [vmem:[#allocation297_spill] sm:$0xff] %v13364_v24  ;;  %5769 = vrot.lane.b32.xlu0 %v12773_v52, %s9043_s7 }
 0x7b9   :  { %5775 = vrot.lane.b32.xlu1 %v12804_v0, %s9043_s7 }
 0x7ba   :  { %v13370_v22 = vpop.permute.xlu0 %5329 }
 0x7bb   :  { %16995 = vst [vmem:[#allocation259_spill] sm:$0xff] %v13370_v22  ;;  %v13372_v28 = vpop.permute.xlu1 %5335 }
 0x7bc   :  { %16996 = vst [vmem:[#allocation257_spill] sm:$0xff] %v13372_v28  ;;  %5773 = vrot.lane.b32.xlu0 %v12782_v40, %s9043_s7 }
 0x7bd   :  { %5779 = vrot.lane.b32.xlu1 %v12816_v57, %s9043_s7 }
 0x7be   :  { %v13378_v19 = vpop.permute.xlu0 %5333 }
 0x7bf   :  { %16997 = vst [vmem:[#allocation285_spill] sm:$0xff] %v13378_v19  ;;  %v13380_v53 = vpop.permute.xlu1 %5421 }
 0x7c0   :  { %5777 = vrot.lane.b32.xlu0 %v12809_v5, %s9043_s7 }
 0x7c1   :  { %5783 = vrot.lane.b32.xlu1 %v12840_v37, %s9043_s7 }
 0x7c2   :  { %v13386_v52 = vpop.permute.xlu0 %5419 }
 0x7c3   :  { %v13388_v22 = vpop.permute.xlu1 %5425 }
 0x7c4   :  { %5781 = vrot.lane.b32.xlu0 %v12822_v32, %s9043_s7 }
 0x7c5   :  { %5787 = vrot.lane.b32.xlu1 %v12852_v25, %s9043_s7 }
 0x7c6   :  { %v13394_v40 = vpop.permute.xlu0 %5423 }
 0x7c7   :  { %v13396_v19 = vpop.permute.xlu1 %5429 }
 0x7c8   :  { %16998 = vst [vmem:[#allocation282_spill] sm:$0xff] %v13396_v19  ;;  %5785 = vrot.lane.b32.xlu0 %v12846_v41, %s9043_s7  ;;  %v5979_v19 = vld [vmem:[#allocation2 + $0x70] sm:$0xff] }
 0x7c9   :  { %5791 = vrot.lane.b32.xlu1 %v12864_v1, %s9043_s7 }
 0x7ca   :  { %v13402_v28 = vpop.permute.xlu0 %5427 }
 0x7cb   :  { %v13404_v24 = vpop.permute.xlu1 %5433 }
 0x7cc   :  { %16999 = vst [vmem:[#allocation245_spill] sm:$0xff] %v13404_v24  ;;  %5789 = vrot.lane.b32.xlu0 %v12858_v18, %s9043_s7 }
 0x7cd   :  { %5795 = vrot.lane.b32.xlu1 %v12876_v27, %s9043_s7 }
 0x7ce   :  { %v13410_v38 = vpop.permute.xlu0 %5431 }
 0x7cf   :  { %17000 = vst [vmem:[#allocation246_spill] sm:$0xff] %v13410_v38  ;;  %v13412_v21 = vpop.permute.xlu1 %5437 }
 0x7d0   :  { %17001 = vst [vmem:[#allocation271_spill] sm:$0xff] %v13412_v21  ;;  %5793 = vrot.lane.b32.xlu0 %v12870_v61, %s9043_s7 }
 0x7d1   :  { %5799 = vrot.lane.b32.xlu1 %v12890_v55, %s9043_s7 }
 0x7d2   :  { %v13418_v34 = vpop.permute.xlu0 %5435 }
 0x7d3   :  { %17002 = vst [vmem:[#allocation272_spill] sm:$0xff] %v13418_v34  ;;  %v13420_v20 = vpop.permute.xlu1 %5441 }
 0x7d4   :  { %17003 = vst [vmem:[#allocation235_spill] sm:$0xff] %v13420_v20  ;;  %5797 = vrot.lane.b32.xlu0 %v12882_v56, %s9043_s7 }
 0x7d5   :  { %5885 = vrot.lane.b32.xlu1 %v13424_v3, %s9044_s8 }
 0x7d6   :  { %v13428_v50 = vpop.permute.xlu0 %5439 }
 0x7d7   :  { %17004 = vst [vmem:[#allocation233_spill] sm:$0xff] %v13428_v50  ;;  %v13430_v21 = vpop.permute.xlu1 %5445 }
 0x7d8   :  { %17005 = vst [vmem:[#allocation261_spill] sm:$0xff] %v13430_v21  ;;  %5883 = vrot.lane.b32.xlu0 %v12813_v42, %s9044_s8 }
 0x7d9   :  { %5889 = vrot.lane.b32.xlu1 %v13434_v63, %s9044_s8 }
 0x7da   :  { %v13438_v20 = vpop.permute.xlu0 %5443 }
 0x7db   :  { %17006 = vst [vmem:[#allocation258_spill] sm:$0xff] %v13438_v20  ;;  %v13442_v30 = vpop.permute.xlu1 %5449 }
 0x7dc   :  { %17007 = vst [vmem:[#allocation26_spill] sm:$0xff] %v13442_v30  ;;  %5887 = vrot.lane.b32.xlu0 %v13440_v45, %s9044_s8 }
 0x7dd   :  { %5893 = vrot.lane.b32.xlu1 %v12809_v5, %s9044_s8 }
 0x7de   :  { %v13448_v21 = vpop.permute.xlu0 %5447 }
 0x7df   :  { %17008 = vst [vmem:[#allocation27_spill] sm:$0xff] %v13448_v21  ;;  %v13450_v42 = vpop.permute.xlu1 %5535 }
 0x7e0   :  { %5891 = vrot.lane.b32.xlu0 %v12804_v0, %s9044_s8 }
 0x7e1   :  { %5897 = vrot.lane.b32.xlu1 %v12822_v32, %s9044_s8 }
 0x7e2   :  { %v13456_v20 = vpop.permute.xlu0 %5451 }
 0x7e3   :  { %17009 = vst [vmem:[#allocation247_spill] sm:$0xff] %v13456_v20  ;;  %v13458_v50 = vpop.permute.xlu1 %5539 }
 0x7e4   :  { %5895 = vrot.lane.b32.xlu0 %v12816_v57, %s9044_s8 }
 0x7e5   :  { %5901 = vrot.lane.b32.xlu1 %v12846_v41, %s9044_s8 }
 0x7e6   :  { %v13464_v5 = vpop.permute.xlu0 %5537 }
 0x7e7   :  { %v13466_v30 = vpop.permute.xlu1 %5543 }
 0x7e8   :  { %5899 = vrot.lane.b32.xlu0 %v12840_v37, %s9044_s8 }
 0x7e9   :  { %5905 = vrot.lane.b32.xlu1 %v12858_v18, %s9044_s8 }
 0x7ea   :  { %v13472_v0 = vpop.permute.xlu0 %5541 }
 0x7eb   :  { %v13474_v32 = vpop.permute.xlu1 %5547 }
 0x7ec   :  { %17010 = vst [vmem:[#allocation248_spill] sm:$0xff] %v13474_v32  ;;  %5903 = vrot.lane.b32.xlu0 %v12852_v25, %s9044_s8  ;;  %v13494_v25 = vld [vmem:[#allocation2] sm:$0xff] }
 0x7ed   :  { %5909 = vrot.lane.b32.xlu1 %v12870_v61, %s9044_s8 }
 0x7ee   :  { %v13480_v57 = vpop.permute.xlu0 %5545 }
 0x7ef   :  { %17011 = vst [vmem:[#allocation104_spill] sm:$0xff] %v13480_v57  ;;  %v13482_v41 = vpop.permute.xlu1 %5551  ;;  %v5978_v57 = vld [vmem:[#allocation2 + $0x68] sm:$0xff] }
 0x7f0   :  { %17012 = vst [vmem:[#allocation75_spill] sm:$0xff] %v13482_v41  ;;  %5907 = vrot.lane.b32.xlu0 %v12864_v1, %s9044_s8 }
 0x7f1   :  { %5913 = vrot.lane.b32.xlu1 %v12882_v56, %s9044_s8 }
 0x7f2   :  { %v13488_v37 = vpop.permute.xlu0 %5549 }
 0x7f3   :  { %17013 = vst [vmem:[#allocation237_spill] sm:$0xff] %v13488_v37  ;;  %v13490_v18 = vpop.permute.xlu1 %5555  ;;  %v5977_v37 = vld [vmem:[#allocation2 + $0x60] sm:$0xff] }
 0x7f4   :  { %17014 = vst [vmem:[#allocation234_spill] sm:$0xff] %v13490_v18  ;;  %5911 = vrot.lane.b32.xlu0 %v12876_v27, %s9044_s8  ;;  %v13512_v27 = vld [vmem:[#allocation2 + $0x20] sm:$0xff]  ;;  %v13540_v18 = vld [vmem:[#allocation2 + $0x38] sm:$0xff] }
 0x7f5   :  { %5999 = vrot.lane.b32.xlu1 %v13494_v25, %s9045_s9 }
 0x7f6   :  { %v13498_v61 = vpop.permute.xlu0 %5553 }
 0x7f7   :  { %17015 = vst [vmem:[#allocation293_spill] sm:$0xff] %v13498_v61  ;;  %v13500_v20 = vpop.permute.xlu1 %5559 }
 0x7f8   :  { %17016 = vst [vmem:[#allocation59_spill] sm:$0xff] %v13500_v20  ;;  %5915 = vrot.lane.b32.xlu0 %v12890_v55, %s9044_s8  ;;  %v13522_v55 = vld [vmem:[#allocation2 + $0x30] sm:$0xff] }
 0x7f9   :  { %6003 = vrot.lane.b32.xlu1 %v13440_v45, %s9045_s9 }
 0x7fa   :  { %v13506_v1 = vpop.permute.xlu0 %5557 }
 0x7fb   :  { %17017 = vst [vmem:[#allocation4_spill] sm:$0xff] %v13506_v1  ;;  %v13508_v56 = vpop.permute.xlu1 %5563  ;;  %v13528_v1 = vld [vmem:[#allocation2 + $0x28] sm:$0xff] }
 0x7fc   :  { %17018 = vst [vmem:[#allocation225_spill] sm:$0xff] %v13508_v56  ;;  %6001 = vrot.lane.b32.xlu0 %v13424_v3, %s9045_s9 }
 0x7fd   :  { %6007 = vrot.lane.b32.xlu1 %v13512_v27, %s9045_s9 }
 0x7fe   :  { %v13516_v21 = vpop.permute.xlu0 %5561 }
 0x7ff   :  { %17019 = vst [vmem:[#allocation226_spill] sm:$0xff] %v13516_v21  ;;  %v13518_v20 = vpop.permute.xlu1 %5567  ;;  %v13534_v21 = vld [vmem:[#allocation2 + $0x40] sm:$0xff] }
 0x800   :  { %17020 = vst [vmem:[#allocation56_spill] sm:$0xff] %v13518_v20  ;;  %6005 = vrot.lane.b32.xlu0 %v13434_v63, %s9045_s9 }
 0x801   :  { %6011 = vrot.lane.b32.xlu1 %v13522_v55, %s9045_s9 }
 0x802   :  { %v13526_v56 = vpop.permute.xlu0 %5565 }
 0x803   :  { %17021 = vst [vmem:[#allocation72_spill] sm:$0xff] %v13526_v56  ;;  %v13530_v61 = vpop.permute.xlu1 %5653  ;;  %v5975_v56 = vld [vmem:[#allocation2 + $0x50] sm:$0xff] }
 0x804   :  { %6009 = vrot.lane.b32.xlu0 %v13528_v1, %s9045_s9 }
 0x805   :  { %6015 = vrot.lane.b32.xlu1 %v13534_v21, %s9045_s9 }
 0x806   :  { %v13538_v20 = vpop.permute.xlu0 %5651 }
 0x807   :  { %v13542_v24 = vpop.permute.xlu1 %5657 }
 0x808   :  { %6013 = vrot.lane.b32.xlu0 %v13540_v18, %s9045_s9 }
 0x809   :  { %6019 = vrot.lane.b32.xlu1 %v5975_v56, %s9045_s9 }
 0x80a   :  { %v13547_v34 = vpop.permute.xlu0 %5655 }
 0x80b   :  { %v13551_v44 = vpop.permute.xlu1 %5661 }
 0x80c   :  { %17023 = vst [vmem:[#allocation214_spill] sm:$0xff] %v13551_v44  ;;  %6017 = vrot.lane.b32.xlu0 %v13549_v9, %s9045_s9  ;;  %v5981_v44 = vld [vmem:[#allocation2 + $0x80] sm:$0xff] }
 0x80d   :  { %6023 = vrot.lane.b32.xlu1 %v5977_v37, %s9045_s9 }
 0x80e   :  { %v13556_v41 = vpop.permute.xlu0 %5659 }
 0x80f   :  { %v13558_v26 = vpop.permute.xlu1 %5665 }
 0x810   :  { %17024 = vst [vmem:[#allocation202_spill] sm:$0xff] %v13558_v26  ;;  %6021 = vrot.lane.b32.xlu0 %v5976_v33, %s9045_s9 }
 0x811   :  { %6027 = vrot.lane.b32.xlu1 %v5979_v19, %s9045_s9 }
 0x812   :  { %v13562_v38 = vpop.permute.xlu0 %5663 }
 0x813   :  { %17025 = vst [vmem:[#allocation203_spill] sm:$0xff] %v13562_v38  ;;  %v13564_v32 = vpop.permute.xlu1 %5669 }
 0x814   :  { %17026 = vst [vmem:[#allocation227_spill] sm:$0xff] %v13564_v32  ;;  %6025 = vrot.lane.b32.xlu0 %v5978_v57, %s9045_s9 }
 0x815   :  { %6031 = vrot.lane.b32.xlu1 %v5981_v44, %s9045_s9 }
 0x816   :  { %v13568_v47 = vpop.permute.xlu0 %5667 }
 0x817   :  { %17027 = vst [vmem:[#allocation228_spill] sm:$0xff] %v13568_v47  ;;  %v13570_v14 = vpop.permute.xlu1 %5673 }
 0x818   :  { %17028 = vst [vmem:[#allocation191_spill] sm:$0xff] %v13570_v14  ;;  %6029 = vrot.lane.b32.xlu0 %v5980_v36, %s9045_s9 }
 0x819   :  { %6117 = vrot.lane.b32.xlu1 %v13424_v3, %s9046_s10 }
 0x81a   :  { %v13575_v26 = vpop.permute.xlu0 %5671 }
 0x81b   :  { %17029 = vst [vmem:[#allocation188_spill] sm:$0xff] %v13575_v26  ;;  %v13577_v38 = vpop.permute.xlu1 %5677 }
 0x81c   :  { %17030 = vst [vmem:[#allocation219_spill] sm:$0xff] %v13577_v38  ;;  %6115 = vrot.lane.b32.xlu0 %v13494_v25, %s9046_s10 }
 0x81d   :  { %6121 = vrot.lane.b32.xlu1 %v13434_v63, %s9046_s10 }
 0x81e   :  { %v13583_v32 = vpop.permute.xlu0 %5675 }
 0x81f   :  { %17031 = vst [vmem:[#allocation216_spill] sm:$0xff] %v13583_v32  ;;  %v13585_v47 = vpop.permute.xlu1 %5681 }
 0x820   :  { %17032 = vst [vmem:[#allocation176_spill] sm:$0xff] %v13585_v47  ;;  %6119 = vrot.lane.b32.xlu0 %v13440_v45, %s9046_s10 }
 0x821   :  { %6125 = vrot.lane.b32.xlu1 %v13528_v1, %s9046_s10 }
 0x822   :  { %v13591_v14 = vpop.permute.xlu0 %5679 }
 0x823   :  { %17033 = vst [vmem:[#allocation177_spill] sm:$0xff] %v13591_v14  ;;  %v13593_v26 = vpop.permute.xlu1 %5767 }
 0x824   :  { %6123 = vrot.lane.b32.xlu0 %v13512_v27, %s9046_s10 }
 0x825   :  { %6129 = vrot.lane.b32.xlu1 %v13540_v18, %s9046_s10 }
 0x826   :  { %v13599_v38 = vpop.permute.xlu0 %5683 }
 0x827   :  { %17034 = vst [vmem:[#allocation204_spill] sm:$0xff] %v13599_v38  ;;  %v13601_v32 = vpop.permute.xlu1 %5771 }
 0x828   :  { %6127 = vrot.lane.b32.xlu0 %v13522_v55, %s9046_s10 }
 0x829   :  { %6133 = vrot.lane.b32.xlu1 %v13549_v9, %s9046_s10 }
 0x82a   :  { %v13607_v47 = vpop.permute.xlu0 %5769 }
 0x82b   :  { %v13609_v14 = vpop.permute.xlu1 %5775 }
 0x82c   :  { %6131 = vrot.lane.b32.xlu0 %v13534_v21, %s9046_s10 }
 0x82d   :  { %6137 = vrot.lane.b32.xlu1 %v5976_v33, %s9046_s10 }
 0x82e   :  { %v13614_v17 = vpop.permute.xlu0 %5773 }
 0x82f   :  { %v13616_v38 = vpop.permute.xlu1 %5779 }
 0x830   :  { %17035 = vst [vmem:[#allocation205_spill] sm:$0xff] %v13616_v38  ;;  %6135 = vrot.lane.b32.xlu0 %v5975_v56, %s9046_s10 }
 0x831   :  { %6141 = vrot.lane.b32.xlu1 %v5978_v57, %s9046_s10 }
 0x832   :  { %v13620_v31 = vpop.permute.xlu0 %5777 }
 0x833   :  { %17036 = vst [vmem:[#allocation165_spill] sm:$0xff] %v13620_v31  ;;  %v13622_v9 = vpop.permute.xlu1 %5783 }
 0x834   :  { %17037 = vst [vmem:[#allocation162_spill] sm:$0xff] %v13622_v9  ;;  %6139 = vrot.lane.b32.xlu0 %v5977_v37, %s9046_s10 }
 0x835   :  { %6145 = vrot.lane.b32.xlu1 %v5980_v36, %s9046_s10 }
 0x836   :  { %v13626_v51 = vpop.permute.xlu0 %5781 }
 0x837   :  { %17038 = vst [vmem:[#allocation193_spill] sm:$0xff] %v13626_v51  ;;  %v13628_v10 = vpop.permute.xlu1 %5787 }
 0x838   :  { %17039 = vst [vmem:[#allocation190_spill] sm:$0xff] %v13628_v10  ;;  %6143 = vrot.lane.b32.xlu0 %v5979_v19, %s9046_s10 }
 0x839   :  { %6231 = vrot.lane.b32.xlu1 %v13494_v25, %s9047_s11 }
 0x83a   :  { %v13633_v33 = vpop.permute.xlu0 %5785 }
 0x83b   :  { %17040 = vst [vmem:[#allocation150_spill] sm:$0xff] %v13633_v33  ;;  %v13635_v57 = vpop.permute.xlu1 %5791 }
 0x83c   :  { %17041 = vst [vmem:[#allocation151_spill] sm:$0xff] %v13635_v57  ;;  %6147 = vrot.lane.b32.xlu0 %v5981_v44, %s9046_s10 }
 0x83d   :  { %6235 = vrot.lane.b32.xlu1 %v13440_v45, %s9047_s11 }
 0x83e   :  { %v13640_v37 = vpop.permute.xlu0 %5789 }
 0x83f   :  { %17042 = vst [vmem:[#allocation178_spill] sm:$0xff] %v13640_v37  ;;  %v13642_v36 = vpop.permute.xlu1 %5795 }
 0x840   :  { %17043 = vst [vmem:[#allocation179_spill] sm:$0xff] %v13642_v36  ;;  %6233 = vrot.lane.b32.xlu0 %v13424_v3, %s9047_s11 }
 0x841   :  { %6467 = vrot.lane.b32.xlu1 %v13440_v45, %s9049_s13 }
 0x842   :  { %v13648_v19 = vpop.permute.xlu0 %5793 }
 0x843   :  { %17044 = vst [vmem:[#allocation139_spill] sm:$0xff] %v13648_v19  ;;  %v13650_v56 = vpop.permute.xlu1 %5799 }
 0x844   :  { %17045 = vst [vmem:[#allocation136_spill] sm:$0xff] %v13650_v56  ;;  %6465 = vrot.lane.b32.xlu0 %v13424_v3, %s9049_s13 }
 0x845   :  { %6471 = vrot.lane.b32.xlu1 %v13512_v27, %s9049_s13 }
 0x846   :  { %v13656_v44 = vpop.permute.xlu0 %5797 }
 0x847   :  { %17046 = vst [vmem:[#allocation167_spill] sm:$0xff] %v13656_v44  ;;  %v13658_v37 = vpop.permute.xlu1 %5885 }
 0x848   :  { %6469 = vrot.lane.b32.xlu0 %v13434_v63, %s9049_s13 }
 0x849   :  { %6349 = vrot.lane.b32.xlu1 %v13424_v3, %s9048_s12 }
 0x84a   :  { %v13664_v36 = vpop.permute.xlu0 %5883 }
 0x84b   :  { %v13666_v19 = vpop.permute.xlu1 %5889 }
 0x84c   :  { %6463 = vrot.lane.b32.xlu0 %v13494_v25, %s9049_s13 }
 0x84d   :  { %6353 = vrot.lane.b32.xlu1 %v13434_v63, %s9048_s12 }
 0x84e   :  { %v13672_v56 = vpop.permute.xlu0 %5887 }
 0x84f   :  { %v13674_v44 = vpop.permute.xlu1 %5893 }
 0x850   :  { %17047 = vst [vmem:[#allocation164_spill] sm:$0xff] %v13674_v44  ;;  %6351 = vrot.lane.b32.xlu0 %v13440_v45, %s9048_s12 }
 0x851   :  { %6347 = vrot.lane.b32.xlu1 %v13494_v25, %s9048_s12 }
 0x852   :  { %v13680_v57 = vpop.permute.xlu0 %5891 }
 0x853   :  { %v13682_v33 = vpop.permute.xlu1 %5897 }
 0x854   :  { %17048 = vst [vmem:[#allocation124_spill] sm:$0xff] %v13682_v33  ;;  %6355 = vrot.lane.b32.xlu0 %v13512_v27, %s9048_s12 }
 0x855   :  { %6239 = vrot.lane.b32.xlu1 %v13512_v27, %s9047_s11 }
 0x856   :  { %v13688_v10 = vpop.permute.xlu0 %5895 }
 0x857   :  { %17049 = vst [vmem:[#allocation125_spill] sm:$0xff] %v13688_v10  ;;  %v13690_v51 = vpop.permute.xlu1 %5901 }
 0x858   :  { %17050 = vst [vmem:[#allocation152_spill] sm:$0xff] %v13690_v51  ;;  %6237 = vrot.lane.b32.xlu0 %v13434_v63, %s9047_s11 }
 0x859   :  { %6243 = vrot.lane.b32.xlu1 %v13522_v55, %s9047_s11 }
 0x85a   :  { %v13696_v9 = vpop.permute.xlu0 %5899 }
 0x85b   :  { %17051 = vst [vmem:[#allocation153_spill] sm:$0xff] %v13696_v9  ;;  %v13698_v31 = vpop.permute.xlu1 %5905 }
 0x85c   :  { %17052 = vst [vmem:[#allocation112_spill] sm:$0xff] %v13698_v31  ;;  %6241 = vrot.lane.b32.xlu0 %v13528_v1, %s9047_s11 }
 0x85d   :  { %6247 = vrot.lane.b32.xlu1 %v13534_v21, %s9047_s11 }
 0x85e   :  { %v13704_v33 = vpop.permute.xlu0 %5903 }
 0x85f   :  { %17053 = vst [vmem:[#allocation109_spill] sm:$0xff] %v13704_v33  ;;  %v13706_v38 = vpop.permute.xlu1 %5909 }
 0x860   :  { %17054 = vst [vmem:[#allocation141_spill] sm:$0xff] %v13706_v38  ;;  %6245 = vrot.lane.b32.xlu0 %v13540_v18, %s9047_s11 }
 0x861   :  { %7743 = vrot.lane.b32.xlu1 %v13434_v63, %s9060_s16 }
 0x862   :  { %v13712_v51 = vpop.permute.xlu0 %5907 }
 0x863   :  { %17055 = vst [vmem:[#allocation138_spill] sm:$0xff] %v13712_v51  ;;  %v13714_v9 = vpop.permute.xlu1 %5913 }
 0x864   :  { %17056 = vst [vmem:[#allocation96_spill] sm:$0xff] %v13714_v9  ;;  %7741 = vrot.lane.b32.xlu0 %v13440_v45, %s9060_s16 }
 0x865   :  { %7747 = vrot.lane.b32.xlu1 %v13528_v1, %s9060_s16 }
 0x866   :  { %v13720_v31 = vpop.permute.xlu0 %5911 }
 0x867   :  { %17057 = vst [vmem:[#allocation97_spill] sm:$0xff] %v13720_v31  ;;  %v13722_v33 = vpop.permute.xlu1 %5999 }
 0x868   :  { %7745 = vrot.lane.b32.xlu0 %v13512_v27, %s9060_s16 }
 0x869   :  { %7625 = vrot.lane.b32.xlu1 %v13440_v45, %s9059_s15 }
 0x86a   :  { %v13728_v38 = vpop.permute.xlu0 %5915 }
 0x86b   :  { %17058 = vst [vmem:[#allocation126_spill] sm:$0xff] %v13728_v38  ;;  %v13730_v51 = vpop.permute.xlu1 %6003 }
 0x86c   :  { %7739 = vrot.lane.b32.xlu0 %v13424_v3, %s9060_s16 }
 0x86d   :  { %7629 = vrot.lane.b32.xlu1 %v13512_v27, %s9059_s15 }
 0x86e   :  { %v13736_v9 = vpop.permute.xlu0 %6001 }
 0x86f   :  { %v13738_v31 = vpop.permute.xlu1 %6007 }
 0x870   :  { %7627 = vrot.lane.b32.xlu0 %v13434_v63, %s9059_s15 }
 0x871   :  { %7623 = vrot.lane.b32.xlu1 %v13424_v3, %s9059_s15 }
 0x872   :  { %v13744_v44 = vpop.permute.xlu0 %6005 }
 0x873   :  { %v13746_v38 = vpop.permute.xlu1 %6011 }
 0x874   :  { %17059 = vst [vmem:[#allocation127_spill] sm:$0xff] %v13746_v38  ;;  %7631 = vrot.lane.b32.xlu0 %v13528_v1, %s9059_s15 }
 0x875   :  { %7511 = vrot.lane.b32.xlu1 %v13434_v63, %s9058_s14 }
 0x876   :  { %v13752_v10 = vpop.permute.xlu0 %6009 }
 0x877   :  { %17060 = vst [vmem:[#allocation83_spill] sm:$0xff] %v13752_v10  ;;  %v13754_v13 = vpop.permute.xlu1 %6015 }
 0x878   :  { %17061 = vst [vmem:[#allocation80_spill] sm:$0xff] %v13754_v13  ;;  %7509 = vrot.lane.b32.xlu0 %v13440_v45, %s9058_s14 }
 0x879   :  { %7515 = vrot.lane.b32.xlu1 %v13528_v1, %s9058_s14 }
 0x87a   :  { %v13760_v23 = vpop.permute.xlu0 %6013 }
 0x87b   :  { %17062 = vst [vmem:[#allocation114_spill] sm:$0xff] %v13760_v23  ;;  %v13762_v2 = vpop.permute.xlu1 %6019 }
 0x87c   :  { %17063 = vst [vmem:[#allocation111_spill] sm:$0xff] %v13762_v2  ;;  %7513 = vrot.lane.b32.xlu0 %v13512_v27, %s9058_s14 }
 0x87d   :  { %7393 = vrot.lane.b32.xlu1 %v13440_v45, %s9057_s21 }
 0x87e   :  { %v13768_v38 = vpop.permute.xlu0 %6017 }
 0x87f   :  { %17064 = vst [vmem:[#allocation64_spill] sm:$0xff] %v13768_v38  ;;  %v13770_v10 = vpop.permute.xlu1 %6023 }
 0x880   :  { %17065 = vst [vmem:[#allocation65_spill] sm:$0xff] %v13770_v10  ;;  %7507 = vrot.lane.b32.xlu0 %v13424_v3, %s9058_s14 }
 0x881   :  { %7397 = vrot.lane.b32.xlu1 %v13512_v27, %s9057_s21 }
 0x882   :  { %v13776_v13 = vpop.permute.xlu0 %6021 }
 0x883   :  { %17066 = vst [vmem:[#allocation98_spill] sm:$0xff] %v13776_v13  ;;  %v13778_v23 = vpop.permute.xlu1 %6027 }
 0x884   :  { %17067 = vst [vmem:[#allocation99_spill] sm:$0xff] %v13778_v23  ;;  %7395 = vrot.lane.b32.xlu0 %v13434_v63, %s9057_s21 }
 0x885   :  { %7391 = vrot.lane.b32.xlu1 %v13424_v3, %s9057_s21 }
 0x886   :  { %v13784_v2 = vpop.permute.xlu0 %6025 }
 0x887   :  { %17068 = vst [vmem:[#allocation51_spill] sm:$0xff] %v13784_v2  ;;  %v13786_v38 = vpop.permute.xlu1 %6031 }
 0x888   :  { %17069 = vst [vmem:[#allocation48_spill] sm:$0xff] %v13786_v38  ;;  %7399 = vrot.lane.b32.xlu0 %v13528_v1, %s9057_s21 }
 0x889   :  { %7279 = vrot.lane.b32.xlu1 %v13434_v63, %s17070_s1 }
 0x88a   :  { %v13792_v10 = vpop.permute.xlu0 %6029 }
 0x88b   :  { %17071 = vst [vmem:[#allocation85_spill] sm:$0xff] %v13792_v10  ;;  %v13794_v13 = vpop.permute.xlu1 %6117 }
 0x88c   :  { %7277 = vrot.lane.b32.xlu0 %v13440_v45, %s17070_s1 }
 0x88d   :  { %7283 = vrot.lane.b32.xlu1 %v13528_v1, %s17070_s1 }
 0x88e   :  { %v13800_v23 = vpop.permute.xlu0 %6115 }
 0x88f   :  { %v13802_v2 = vpop.permute.xlu1 %6121 }
 0x890   :  { %7281 = vrot.lane.b32.xlu0 %v13512_v27, %s17070_s1 }
 0x891   :  { %7161 = vrot.lane.b32.xlu1 %v13440_v45, %s17072_s27 }
 0x892   :  { %v13808_v38 = vpop.permute.xlu0 %6119 }
 0x893   :  { %v13810_v10 = vpop.permute.xlu1 %6125 }
 0x894   :  { %17073 = vst [vmem:[#allocation82_spill] sm:$0xff] %v13810_v10  ;;  %7275 = vrot.lane.b32.xlu0 %v13424_v3, %s17070_s1 }
 0x895   :  { %7165 = vrot.lane.b32.xlu1 %v13512_v27, %s17072_s27 }
 0x896   :  { %v13816_v29 = vpop.permute.xlu0 %6123 }
 0x897   :  { %v13818_v48 = vpop.permute.xlu1 %6129 }
 0x898   :  { %17074 = vst [vmem:[#allocation34_spill] sm:$0xff] %v13818_v48  ;;  %7163 = vrot.lane.b32.xlu0 %v13434_v63, %s17072_s27 }
 0x899   :  { %7159 = vrot.lane.b32.xlu1 %v13424_v3, %s17072_s27 }
 0x89a   :  { %v13824_v54 = vpop.permute.xlu0 %6127 }
 0x89b   :  { %17075 = vst [vmem:[#allocation35_spill] sm:$0xff] %v13824_v54  ;;  %v13826_v16 = vpop.permute.xlu1 %6133 }
 0x89c   :  { %17076 = vst [vmem:[#allocation66_spill] sm:$0xff] %v13826_v16  ;;  %7167 = vrot.lane.b32.xlu0 %v13528_v1, %s17072_s27 }
 0x89d   :  { %7047 = vrot.lane.b32.xlu1 %v13434_v63, %s17077_s0 }
 0x89e   :  { %v13832_v10 = vpop.permute.xlu0 %6131 }
 0x89f   :  { %17078 = vst [vmem:[#allocation67_spill] sm:$0xff] %v13832_v10  ;;  %v13834_v59 = vpop.permute.xlu1 %6137 }
 0x8a0   :  { %17079 = vst [vmem:[#allocation21_spill] sm:$0xff] %v13834_v59  ;;  %7045 = vrot.lane.b32.xlu0 %v13440_v45, %s17077_s0 }
 0x8a1   :  { %7051 = vrot.lane.b32.xlu1 %v13528_v1, %s17077_s0 }
 0x8a2   :  { %v13840_v48 = vpop.permute.xlu0 %6135 }
 0x8a3   :  { %17080 = vst [vmem:[#allocation18_spill] sm:$0xff] %v13840_v48  ;;  %v13842_v54 = vpop.permute.xlu1 %6141 }
 0x8a4   :  { %17081 = vst [vmem:[#allocation53_spill] sm:$0xff] %v13842_v54  ;;  %7049 = vrot.lane.b32.xlu0 %v13512_v27, %s17077_s0 }
 0x8a5   :  { %6929 = vrot.lane.b32.xlu1 %v13440_v45, %s17082_s22 }
 0x8a6   :  { %v13848_v16 = vpop.permute.xlu0 %6139 }
 0x8a7   :  { %17083 = vst [vmem:[#allocation50_spill] sm:$0xff] %v13848_v16  ;;  %v13850_v10 = vpop.permute.xlu1 %6145 }
 0x8a8   :  { %17084 = vst [vmem:[#allocation36_spill] sm:$0xff] %v13850_v10  ;;  %7043 = vrot.lane.b32.xlu0 %v13424_v3, %s17077_s0 }
 0x8a9   :  { %6933 = vrot.lane.b32.xlu1 %v13512_v27, %s17082_s22 }
 0x8aa   :  { %v13856_v59 = vpop.permute.xlu0 %6143 }
 0x8ab   :  { %17085 = vst [vmem:[#allocation37_spill] sm:$0xff] %v13856_v59  ;;  %v6232_v48 = vpop.permute.xlu1 %6231 }
 0x8ac   :  { %6931 = vrot.lane.b32.xlu0 %v13434_v63, %s17082_s22 }
 0x8ad   :  { %6927 = vrot.lane.b32.xlu1 %v13424_v3, %s17082_s22 }
 0x8ae   :  { %v13862_v54 = vpop.permute.xlu0 %6147 }
 0x8af   :  { %17086 = vst [vmem:[#allocation322_spill] sm:$0xff] %v13862_v54  ;;  %v6236_v16 = vpop.permute.xlu1 %6235 }
 0x8b0   :  { %6935 = vrot.lane.b32.xlu0 %v13528_v1, %s17082_s22 }
 0x8b1   :  { %6815 = vrot.lane.b32.xlu1 %v13434_v63, %s17087_s23 }
 0x8b2   :  { %v6234_v10 = vpop.permute.xlu0 %6233 }
 0x8b3   :  { %v6468_v7 = vpop.permute.xlu1 %6467 }
 0x8b4   :  { %6813 = vrot.lane.b32.xlu0 %v13440_v45, %s17087_s23 }
 0x8b5   :  { %6819 = vrot.lane.b32.xlu1 %v13528_v1, %s17087_s23 }
 0x8b6   :  { %v6466_v59 = vpop.permute.xlu0 %6465 }
 0x8b7   :  { %v6498_v58 = vsel %vm2212_vm3, %v6466_v59, %v6468_v7  ;;  %v13873_v43 = vpop.permute.xlu1 %6471 }
 0x8b8   :  { %17088 = vst [vmem:[#allocation323_spill] sm:$0xff] %v13873_v43  ;;  %6817 = vrot.lane.b32.xlu0 %v13512_v27, %s17087_s23  ;;  %8264 = vmatprep.subr.mxu0 %v6498_v58 }
 0x8b9   :  { %6697 = vrot.lane.b32.xlu1 %v13424_v3, %s17089_s24 }
 0x8ba   :  { %v6470_v54 = vpop.permute.xlu0 %6469 }
 0x8bb   :  { %v6500_v12 = vsel %vm2212_vm3, %v6470_v54, %v13873_v43  ;;  %v6499_v35 = vsel %vm2212_vm3, %v6468_v7, %v6470_v54  ;;  %v6350_v15 = vpop.permute.xlu1 %6349 }
 0x8bc   :  { %6811 = vrot.lane.b32.xlu0 %v13424_v3, %s17087_s23  ;;  %8335 = vmatprep.subr.mxu1 %v6500_v12 }
 0x8bd   :  { %8336 = vmatpush1.msra.mxu1 %v6499_v35  ;;  %6701 = vrot.lane.b32.xlu1 %v13434_v63, %s17089_s24 }
 0x8be   :  { %v6464_v8 = vpop.permute.xlu0 %6463 }
 0x8bf   :  { %v6497_v58 = vsel %vm2212_vm3, %v6464_v8, %v6466_v59  ;;  %v6354_v6 = vpop.permute.xlu1 %6353  ;;  %v6266_v8 = vsel %vm1978_vm5, %v6234_v10, %v6236_v16  ;;  %v6265_v59 = vsel %vm1978_vm5, %v6232_v48, %v6234_v10  ;;  %v6149_v10 = vsel %vm1861_vm6, %v13800_v23, %v13794_v13 }
 0x8c0   :  { %6699 = vrot.lane.b32.xlu0 %v13440_v45, %s17089_s24  ;;  %8265 = vmatpush1.msra.mxu0 %v6497_v58  ;;  %v6152_v23 = vsel %vm1861_vm6, %v13802_v2, %v13816_v29 }
 0x8c1   :  { %6695 = vrot.lane.b32.xlu1 %v13494_v25, %s17089_s24 }
 0x8c2   :  { %v6352_v54 = vpop.permute.xlu0 %6351 }
 0x8c3   :  { %v6382_v7 = vsel %vm2095_vm4, %v6350_v15, %v6352_v54  ;;  %v6348_v43 = vpop.permute.xlu1 %6347 }
 0x8c4   :  { %6703 = vrot.lane.b32.xlu0 %v13512_v27, %s17089_s24  ;;  %8266 = vmatprep.subr.mxu0 %v6382_v7  ;;  %v6381_v12 = vsel %vm2095_vm4, %v6348_v43, %v6350_v15  ;;  %v6383_v43 = vsel %vm2095_vm4, %v6352_v54, %v6354_v6  ;;  %v6150_v15 = vsel %vm1861_vm6, %v13794_v13, %v13808_v38 }
 0x8c5   :  { %6583 = vrot.lane.b32.xlu1 %v13440_v45, %s17090_s25  ;;  %8267 = vmatpush1.msra.mxu0 %v6381_v12  ;;  %v6033_v13 = vsel %vm1744_vm7, %v13722_v33, %v13736_v9  ;;  %v6036_v7 = vsel %vm1744_vm7, %v13744_v44, %v13738_v31 }
 0x8c6   :  { %v13898_v35 = vpop.permute.xlu0 %6355  ;;  %8268 = vmatprep.subr.mxu0 %v6266_v8 }
 0x8c7   :  { %v6384_v58 = vsel %vm2095_vm4, %v6354_v6, %v13898_v35  ;;  %v13903_v49 = vpop.permute.xlu1 %6239  ;;  %8269 = vmatpush1.msra.mxu0 %v6265_v59 }
 0x8c8   :  { %6581 = vrot.lane.b32.xlu0 %v13424_v3, %s17090_s25  ;;  %8337 = vmatprep.subr.mxu1 %v6384_v58  ;;  %v6034_v3 = vsel %vm1744_vm7, %v13736_v9, %v13730_v51  ;;  %v5917_v9 = vsel %vm17092_vm10, %v13664_v36, %v13658_v37  ;;  %v5920_v36 = vsel %vm17095_vm8, %v13666_v19, %v13680_v57  ;;  %vm17097_vm10 = vmmov %vm17095_vm8  ;;  %vm17099_vm8 = vcmask 867328  }
 0x8c9   :  { %8338 = vmatpush1.msra.mxu1 %v6383_v43  ;;  %8270 = vmatprep.subr.mxu0 %v6150_v15  ;;  %v17111_v43 = vld [vmem:[#allocation295_spill] sm:$0xff]  ;;  %v17112_v15 = vld [vmem:[#allocation320_spill] sm:$0xff] }
 0x8ca   :  { %v6238_v48 = vpop.permute.xlu0 %6237  ;;  %6587 = vrot.lane.b32.xlu1 %v13512_v27, %s17090_s25  ;;  %8271 = vmatpush1.msra.mxu0 %v6149_v10 }
 0x8cb   :  { %v6268_v6 = vsel %vm1978_vm5, %v6238_v48, %v13903_v49  ;;  %8272 = vmatprep.subr.mxu0 %v6034_v3  ;;  %v6267_v45 = vsel %vm1978_vm5, %v6236_v16, %v6238_v48  ;;  %v13922_v54 = vpop.permute.xlu1 %6243  ;;  %v5918_v16 = vsel %vm17091_vm11, %v13658_v37, %v13672_v56  ;;  %v5801_v37 = vsel %vm17094_vm9, %v13593_v26, %v13607_v47  ;;  %v17113_v48 = vld [vmem:[#allocation77_spill] sm:$0xff]  ;;  %v17114_v3 = vld [vmem:[#allocation60_spill] sm:$0xff] }
 0x8cc   :  { %6585 = vrot.lane.b32.xlu0 %v13434_v63, %s17090_s25  ;;  %8339 = vmatprep.subr.mxu1 %v6268_v6  ;;  %v6151_v63 = vsel %vm1861_vm6, %v13808_v38, %v13802_v2  ;;  %v5802_v2 = vsel %vm17093_vm12, %v13607_v47, %v13601_v32  ;;  %v6035_v38 = vsel %vm1744_vm7, %v13730_v51, %v13744_v44  ;;  %vm17096_vm11 = vcmask 859136  }
 0x8cd   :  { %8340 = vmatpush1.msra.mxu1 %v6267_v45  ;;  %8273 = vmatpush1.msra.mxu0 %v6033_v13  ;;  %v5686_v12 = vsel %vm17096_vm11, %v13530_v61, %v13547_v34  ;;  %v5919_v51 = vsel %vm17097_vm10, %v13672_v56, %v13666_v19  ;;  %vm17098_vm12 = vmmov %vm17096_vm11  ;;  %v5804_v26 = vsel %vm17094_vm9, %v13614_v17, %v13609_v14  ;;  %v17119_v45 = vld [vmem:[#allocation49_spill] sm:$0xff] }
 0x8ce   :  { %v13935_v27 = vpop.permute.xlu0 %6241  ;;  %8341 = vmatprep.subr.mxu1 %v6152_v23  ;;  %8274 = vmatprep.subr.mxu0 %v5918_v16  ;;  %v5685_v47 = vsel %vm17098_vm12, %v13538_v20, %v13530_v61  ;;  %v5570_v19 = vsel %vm17099_vm8, %v13464_v5, %v13458_v50  ;;  %vm17100_vm11 = vmmov %vm17094_vm9  ;;  %v5688_v8 = vsel %vm17098_vm12, %v13542_v24, %v13556_v41  ;;  %vm17102_vm9 = vcmask 875520   ;;  %v17120_v13 = vld [vmem:[#allocation17_spill] sm:$0xff]  ;;  %v17121_v16 = vld [vmem:[#allocation118_spill] sm:$0xff] }
 0x8cf   :  { %8342 = vmatpush1.msra.mxu1 %v6151_v63  ;;  %6473 = vrot.lane.b32.xlu1 %v13528_v1, %s9049_s13  ;;  %v13945_v33 = vpop.permute.xlu1 %6247  ;;  %v5803_v20 = vsel %vm17100_vm11, %v13601_v32, %v13614_v17  ;;  %vm17101_vm10 = vmmov %vm17099_vm8  ;;  %v5454_v17 = vsel %vm17102_vm9, %v13380_v53, %v13394_v40  ;;  %v17122_v63 = vld [vmem:[#allocation121_spill] sm:$0xff] }
 0x8d0   :  { %6579 = vrot.lane.b32.xlu0 %v13494_v25, %s17090_s25  ;;  %8275 = vmatpush1.msra.mxu0 %v5917_v9  ;;  %v5569_v61 = vsel %vm17101_vm10, %v13450_v42, %v13464_v5  ;;  %vm17103_vm8 = vmmov %vm17098_vm12  ;;  %v5572_v32 = vsel %vm17101_vm10, %v13472_v0, %v13466_v30  ;;  %vm17105_vm12 = vcmask 941056  }
 0x8d1   :  { %8343 = vmatprep.subr.mxu1 %v6036_v7  ;;  %8276 = vmatprep.subr.mxu0 %v5802_v2  ;;  %v5687_v42 = vsel %vm17103_vm8, %v13547_v34, %v13542_v24  ;;  %vm17104_vm11 = vmmov %vm17102_vm9  ;;  %v5338_v24 = vsel %vm17105_vm12, %v13322_v62, %v13316_v60  ;;  %v17125_v2 = vld [vmem:[#allocation148_spill] sm:$0xff] }
 0x8d2   :  { %v13961_v25 = vpop.permute.xlu0 %6245  ;;  %8344 = vmatpush1.msra.mxu1 %v6035_v38  ;;  %8277 = vmatpush1.msra.mxu0 %v5801_v37  ;;  %v5453_v5 = vsel %vm17104_vm11, %v13386_v52, %v13380_v53  ;;  %vm17106_vm9 = vmmov %vm17101_vm10  ;;  %vm17108_vm10 = vcmask 949248  }
 0x8d3   :  { %8345 = vmatprep.subr.mxu1 %v5920_v36  ;;  %8278 = vmatprep.subr.mxu0 %v5686_v12  ;;  %v13972_v44 = vpop.permute.xlu1 %7743  ;;  %v5571_v53 = vsel %vm17106_vm9, %v13458_v50, %v13472_v0  ;;  %vm17107_vm8 = vmmov %vm17105_vm12  ;;  %v5222_v50 = vsel %vm17108_vm10, %v13244_v46, %v13258_v4  ;;  %v17127_v36 = vld [vmem:[#allocation61_spill] sm:$0xff]  ;;  %v17128_v12 = vld [vmem:[#allocation94_spill] sm:$0xff] }
 0x8d4   :  { %6475 = vrot.lane.b32.xlu0 %v13522_v55, %s9049_s13  ;;  %8346 = vmatpush1.msra.mxu1 %v5919_v51  ;;  %v5337_v52 = vsel %vm17107_vm8, %v13308_v39, %v13322_v62  ;;  %vm17109_vm12 = vmmov %vm17104_vm11  ;;  %v5340_v10 = vsel %vm17107_vm8, %v17112_v15, %v17111_v43 }
 0x8d5   :  { %6477 = vrot.lane.b32.xlu1 %v13540_v18, %s9049_s13  ;;  %8279 = vmatpush1.msra.mxu0 %v5685_v47  ;;  %v5455_v0 = vsel %vm17109_vm12, %v13394_v40, %v13388_v22  ;;  %vm17110_vm9 = vmmov %vm17108_vm10  ;;  %v17129_v47 = vld [vmem:[#allocation161_spill] sm:$0xff] }
 0x8d6   :  { %8347 = vmatprep.subr.mxu1 %v5804_v26  ;;  %v13987_v56 = vpop.permute.xlu0 %7741  ;;  %8280 = vmatprep.subr.mxu0 %v5570_v19  ;;  %v5221_v39 = vsel %vm17110_vm9, %v13250_v11, %v13244_v46  ;;  %vm17116_vm10 = vmmov %vm17107_vm8  ;;  %v17117_v46 = vld [vmem:[#allocation110_spill] sm:$0xff]  ;;  %v5224_v23 = vsel %vm17110_vm9, %v17120_v13, %v17119_v45  ;;  %vm17123_vm8 = vcmask 1022976  }
 0x8d7   :  { %8348 = vmatpush1.msra.mxu1 %v5803_v20  ;;  %8281 = vmatpush1.msra.mxu0 %v5569_v61  ;;  %v13998_v59 = vpop.permute.xlu1 %7747  ;;  %v5339_v11 = vsel %vm17116_vm10, %v13316_v60, %v17112_v15  ;;  %v4990_v9 = vsel %vm17123_vm8, %v17122_v63, %v17121_v16  ;;  %vm17126_vm10 = vmmov %vm17123_vm8  ;;  %v17130_v26 = vld [vmem:[#allocation158_spill] sm:$0xff]  ;;  %v17133_v20 = vld [vmem:[#allocation201_spill] sm:$0xff] }
 0x8d8   :  { %6479 = vrot.lane.b32.xlu0 %v13534_v21, %s9049_s13  ;;  %8349 = vmatprep.subr.mxu1 %v5688_v8  ;;  %v4989_v38 = vsel %vm17126_vm10, %v17125_v2, %v17122_v63  ;;  %v17135_v8 = vld [vmem:[#allocation105_spill] sm:$0xff]  ;;  %v17144_v15 = vld [vmem:[#allocation186_spill] sm:$0xff]  ;;  %v14139_v2 = vld [vmem:[%s15493_s3 + $0x8] sm:$0xff] }
 0x8d9   :  { %8282 = vmatprep.subr.mxu0 %v5454_v17  ;;  %8350 = vmatpush1.msra.mxu1 %v5687_v42  ;;  %v17136_v17 = vld [vmem:[#allocation149_spill] sm:$0xff] }
 0x8da   :  { %6357 = vrot.lane.b32.xlu1 %v13528_v1, %s9048_s12  ;;  %8283 = vmatpush1.msra.mxu0 %v5453_v5  ;;  %v14016_v58 = vpop.permute.xlu0 %7745  ;;  %v5456_v1 = vsel %vm17104_vm11, %v13388_v22, %v13402_v28  ;;  %vm17115_vm11 = vcmask 957440   ;;  %v4992_v42 = vsel %vm17126_vm10, %v17136_v17, %v17135_v8 }
 0x8db   :  { %8351 = vmatprep.subr.mxu1 %v5572_v32  ;;  %8284 = vmatprep.subr.mxu0 %v5338_v24  ;;  %v14024_v34 = vpop.permute.xlu1 %7625  ;;  %v5106_v6 = vsel %vm17115_vm11, %v17114_v3, %v17113_v48  ;;  %vm17118_vm12 = vmmov %vm17115_vm11  ;;  %v17137_v32 = vld [vmem:[#allocation198_spill] sm:$0xff]  ;;  %v17138_v24 = vld [vmem:[#allocation213_spill] sm:$0xff] }
 0x8dc   :  { %8352 = vmatpush1.msra.mxu1 %v5571_v53  ;;  %6359 = vrot.lane.b32.xlu0 %v13522_v55, %s9048_s12  ;;  %v5105_v40 = vsel %vm17118_vm12, %v17117_v46, %v17114_v3  ;;  %vm17124_vm11 = vmmov %vm17110_vm9  ;;  %v5108_v51 = vsel %vm17118_vm12, %v17128_v12, %v17127_v36  ;;  %vm17131_vm9 = vcmask 1031168  }
 0x8dd   :  { %8285 = vmatpush1.msra.mxu0 %v5337_v52  ;;  %8353 = vmatprep.subr.mxu1 %v5456_v1  ;;  %v5223_v60 = vsel %vm17124_vm11, %v13258_v4, %v17120_v13  ;;  %v4874_v4 = vsel %vm17131_vm9, %v17130_v26, %v17129_v47  ;;  %vm17132_vm8 = vmmov %vm17118_vm12  ;;  %vm17139_vm12 = vcmask 1039360   ;;  %v17148_v13 = vld [vmem:[#allocation217_spill] sm:$0xff] }
 0x8de   :  { %8286 = vmatprep.subr.mxu0 %v5222_v50  ;;  %8354 = vmatpush1.msra.mxu1 %v5455_v0  ;;  %v7740_v62 = vpop.permute.xlu0 %7739  ;;  %v5107_v19 = vsel %vm17132_vm8, %v17113_v48, %v17128_v12  ;;  %vm17134_vm11 = vmmov %vm17131_vm9  ;;  %v4758_v53 = vsel %vm17139_vm12, %v17138_v24, %v17137_v32  ;;  %v17141_v50 = vld [vmem:[#allocation210_spill] sm:$0xff]  ;;  %v7774_v48 = vsel %vm3499_vm1, %v13987_v56, %v13972_v44 }
 0x8df   :  { %6361 = vrot.lane.b32.xlu1 %v13540_v18, %s9048_s12  ;;  %8287 = vmatpush1.msra.mxu0 %v5221_v39  ;;  %v14051_v22 = vpop.permute.xlu1 %7629  ;;  %v4873_v61 = vsel %vm17134_vm11, %v17133_v20, %v17130_v26  ;;  %vm17140_vm9 = vmmov %vm17126_vm10  ;;  %v17143_v39 = vld [vmem:[#allocation189_spill] sm:$0xff]  ;;  %v7773_v46 = vsel %vm3499_vm1, %v7740_v62, %v13987_v56 }
 0x8e0   :  { %8355 = vmatprep.subr.mxu1 %v5340_v10  ;;  %8288 = vmatprep.subr.mxu0 %v5106_v6  ;;  %v4991_v52 = vsel %vm17140_vm9, %v17121_v16, %v17136_v17  ;;  %vm17142_vm8 = vmmov %vm17139_vm12  ;;  %v4876_v10 = vsel %vm17134_vm11, %v17144_v15, %v17143_v39  ;;  %vm17146_vm12 = vcmask 277504   ;;  %v17150_v16 = vld [vmem:[#allocation211_spill] sm:$0xff] }
 0x8e1   :  { %8356 = vmatpush1.msra.mxu1 %v5339_v11  ;;  %6363 = vrot.lane.b32.xlu0 %v13534_v21, %s9048_s12  ;;  %v4757_v0 = vsel %vm17142_vm8, %v17141_v50, %v17138_v24  ;;  %vm17145_vm10 = vmmov %vm17134_vm11 }
 0x8e2   :  { %8289 = vmatpush1.msra.mxu0 %v5105_v40  ;;  %8357 = vmatprep.subr.mxu1 %v5224_v23  ;;  %v7628_v7 = vpop.permute.xlu0 %7627  ;;  %v4875_v3 = vsel %vm17145_vm10, %v17129_v47, %v17144_v15  ;;  %vm17147_vm9 = vmmov %vm17146_vm12  ;;  %v17149_v23 = vld [vmem:[#allocation223_spill] sm:$0xff]  ;;  %vm17152_vm10 = vcmask 285696  }
 0x8e3   :  { %8290 = vmatprep.subr.mxu0 %v4990_v9  ;;  %8358 = vmatpush1.msra.mxu1 %v5223_v60  ;;  %v7624_v37 = vpop.permute.xlu1 %7623  ;;  %v7658_v6 = vsel %vm17146_vm12, %v14024_v34, %v7628_v7  ;;  %v4760_v63 = vsel %vm17142_vm8, %v17150_v16, %v17149_v23  ;;  %vm17151_vm11 = vmmov %vm17142_vm8 }
 0x8e4   :  { %7749 = vrot.lane.b32.xlu1 %v13522_v55, %s9060_s16  ;;  %8291 = vmatpush1.msra.mxu0 %v4989_v38  ;;  %v7657_v40 = vsel %vm17147_vm9, %v7624_v37, %v14024_v34  ;;  %v4759_v60 = vsel %vm17151_vm11, %v17137_v32, %v17150_v16  ;;  %v7776_v34 = vsel %vm3499_vm1, %v14016_v58, %v13998_v59  ;;  %vm17153_vm12 = vmmov %vm17147_vm9  ;;  %v14182_v32 = vld [vmem:[#allocation2 + $0x38] sm:$0xff] }
 0x8e5   :  { %8359 = vmatprep.subr.mxu1 %v5108_v51  ;;  %8292 = vmatprep.subr.mxu0 %v4874_v4  ;;  %v7775_v38 = vsel %vm3499_vm1, %v13972_v44, %v14016_v58  ;;  %vm17154_vm9 = vmmov %vm17152_vm10 }
 0x8e6   :  { %8360 = vmatpush1.msra.mxu1 %v5107_v19  ;;  %7751 = vrot.lane.b32.xlu0 %v13540_v18, %s9060_s16  ;;  %v14092_v5 = vpop.permute.xlu0 %7631  ;;  %vm17155_vm8 = vmmov %vm17153_vm12 }
 0x8e7   :  { %8293 = vmatpush1.msra.mxu0 %v4873_v61  ;;  %8361 = vmatprep.subr.mxu1 %v4992_v42  ;;  %v7512_v1 = vpop.permute.xlu1 %7511  ;;  %v7660_v12 = vsel %vm17153_vm12, %v14051_v22, %v14092_v5  ;;  %v7659_v47 = vsel %vm17155_vm8, %v7628_v7, %v14051_v22  ;;  %vm17156_vm11 = vmmov %vm17154_vm9  ;;  %vm17160_vm8 = vcmask 351232   ;;  %v14178_v42 = vld [vmem:[#allocation2 + $0x30] sm:$0xff] }
 0x8e8   :  { %8294 = vmatprep.subr.mxu0 %v4758_v53  ;;  %8362 = vmatpush1.msra.mxu1 %v4991_v52  ;;  %vm17158_vm12 = vmmov %vm17154_vm9  ;;  %v14189_v52 = vld [vmem:[#allocation2 + $0x40] sm:$0xff] }
 0x8e9   :  { %7753 = vrot.lane.b32.xlu1 %v13534_v21, %s9060_s16  ;;  %8295 = vmatpush1.msra.mxu0 %v4757_v0 }
 0x8ea   :  { %8363 = vmatprep.subr.mxu1 %v4876_v10  ;;  %8306 = vmatprep.subr.mxu0 %v7774_v48  ;;  %v7510_v11 = vpop.permute.xlu0 %7509 }
 0x8eb   :  { %8364 = vmatpush1.msra.mxu1 %v4875_v3  ;;  %7755 = vrot.lane.b32.xlu0 %v17148_v13, %s9060_s16  ;;  %v14125_v9 = vpop.permute.xlu1 %7515  ;;  %v7542_v56 = vsel %vm17152_vm10, %v7510_v11, %v7512_v1  ;;  %vm17157_vm10 = vcmask 719872  }
 0x8ec   :  { %8307 = vmatpush2.msra.mxu0 %v7773_v46  ;;  %8365 = vmatprep.subr.mxu1 %v4760_v63 }
 0x8ed   :  { %8308 = vmatprep.subr.mxu0 %v7658_v6  ;;  %8366 = vmatpush1.msra.mxu1 %v4759_v60 }
 0x8ee   :  { %7633 = vrot.lane.b32.xlu1 %v13522_v55, %s9059_s15  ;;  %8309 = vmatpush2.msra.mxu0 %v7657_v40  ;;  %v7514_v62 = vpop.permute.xlu0 %7513 }
 0x8ef   :  { %8377 = vmatprep.subr.mxu1 %v7776_v34  ;;  %7635 = vrot.lane.b32.xlu0 %v13540_v18, %s9059_s15  ;;  %v7394_v37 = vpop.permute.xlu1 %7393  ;;  %v7544_v51 = vsel %vm17154_vm9, %v7514_v62, %v14125_v9  ;;  %v7543_v26 = vsel %vm17156_vm11, %v7512_v1, %v7514_v62  ;;  %vm17159_vm9 = vmmov %vm17157_vm10  ;;  %v14193_v1 = vld [vmem:[#allocation2 + $0x48] sm:$0xff] }
 0x8f0   :  { %8378 = vmatpush2.msra.mxu1 %v7775_v38  ;;  %8310 = vmatprep.subr.mxu0 %v7542_v56  ;;  %vm17161_vm11 = vmmov %vm17160_vm8 }
 0x8f1   :  { %8379 = vmatprep.subr.mxu1 %v7660_v12  ;;  %8988 = vmatprep.mubr.msk.f32.mxu0 %vm17157_vm10, %v14139_v2  ;;  %vm17162_vm10 = vmmov %vm17160_vm8 }
 0x8f2   :  { %8380 = vmatpush2.msra.mxu1 %v7659_v47  ;;  %7637 = vrot.lane.b32.xlu1 %v13534_v21, %s9059_s15  ;;  %v7508_v44 = vpop.permute.xlu0 %7507 }
 0x8f3   :  { %7639 = vrot.lane.b32.xlu0 %v17148_v13, %s9059_s15  ;;  %8381 = vmatprep.subr.mxu1 %v7544_v51  ;;  %v7541_v58 = vsel %vm17158_vm12, %v7508_v44, %v7510_v11  ;;  %v7398_v4 = vpop.permute.xlu1 %7397  ;;  %vm17163_vm12 = vmmov %vm17160_vm8 }
 0x8f4   :  { %8382 = vmatpush2.msra.mxu1 %v7543_v26  ;;  %8311 = vmatpush2.msra.mxu0 %v7541_v58 }
 0x8f5   :  { %8989 = vmatprep.mubr.msk.f32.mxu1 %vm17159_vm9, %v14139_v2  ;;  %vm17164_vm9 = vcmask 359424  }
 0x8f6   :  { %7517 = vrot.lane.b32.xlu1 %v13522_v55, %s9058_s14  ;;  %v7396_v22 = vpop.permute.xlu0 %7395 }
 0x8f7   :  { %7519 = vrot.lane.b32.xlu0 %v13540_v18, %s9058_s14  ;;  %v7426_v7 = vsel %vm17160_vm8, %v7394_v37, %v7396_v22  ;;  %v7392_v19 = vpop.permute.xlu1 %7391  ;;  %v7427_v18 = vsel %vm17163_vm12, %v7396_v22, %v7398_v4  ;;  %vm17165_vm8 = vmmov %vm17164_vm9  ;;  %vm17168_vm12 = vcmask 367616  }
 0x8f8   :  { %8312 = vmatprep.subr.mxu0 %v7426_v7  ;;  %v7425_v20 = vsel %vm17161_vm11, %v7392_v19, %v7394_v37  ;;  %vm17166_vm11 = vmmov %vm17165_vm8 }
 0x8f9   :  { %8313 = vmatpush2.msra.mxu0 %v7425_v20 }
 0x8fa   :  { %7521 = vrot.lane.b32.xlu1 %v13534_v21, %s9058_s14  ;;  %v14171_v61 = vpop.permute.xlu0 %7399 }
 0x8fb   :  { %7523 = vrot.lane.b32.xlu0 %v17148_v13, %s9058_s14  ;;  %v7428_v55 = vsel %vm17162_vm10, %v7398_v4, %v14171_v61  ;;  %v7280_v17 = vpop.permute.xlu1 %7279  ;;  %vm17167_vm10 = vmmov %vm17165_vm8 }
 0x8fc   :  { %8383 = vmatprep.subr.mxu1 %v7428_v55 }
 0x8fd   :  { %8384 = vmatpush2.msra.mxu1 %v7427_v18 }
 0x8fe   :  { %7401 = vrot.lane.b32.xlu1 %v14178_v42, %s9057_s21  ;;  %v7278_v21 = vpop.permute.xlu0 %7277 }
 0x8ff   :  { %7403 = vrot.lane.b32.xlu0 %v14182_v32, %s9057_s21  ;;  %v7310_v24 = vsel %vm17164_vm9, %v7278_v21, %v7280_v17  ;;  %v14187_v53 = vpop.permute.xlu1 %7283  ;;  %vm17169_vm9 = vmmov %vm17168_vm12 }
 0x900   :  { %8314 = vmatprep.subr.mxu0 %v7310_v24 }
 0x902   :  { %7405 = vrot.lane.b32.xlu1 %v14189_v52, %s9057_s21  ;;  %v7282_v50 = vpop.permute.xlu0 %7281 }
 0x903   :  { %7407 = vrot.lane.b32.xlu0 %v14193_v1, %s9057_s21  ;;  %v7312_v0 = vsel %vm17165_vm8, %v7282_v50, %v14187_v53  ;;  %v7311_v15 = vsel %vm17166_vm11, %v7280_v17, %v7282_v50  ;;  %v7162_v10 = vpop.permute.xlu1 %7161  ;;  %vm17170_vm8 = vmmov %vm17169_vm9 }
 0x904   :  { %8385 = vmatprep.subr.mxu1 %v7312_v0  ;;  %vm17171_vm11 = vmmov %vm17170_vm8 }
 0x905   :  { %8386 = vmatpush2.msra.mxu1 %v7311_v15 }
 0x906   :  { %7285 = vrot.lane.b32.xlu1 %v14178_v42, %s17070_s1  ;;  %v7276_v48 = vpop.permute.xlu0 %7275 }
 0x907   :  { %7287 = vrot.lane.b32.xlu0 %v14182_v32, %s17070_s1  ;;  %v7309_v3 = vsel %vm17167_vm10, %v7276_v48, %v7278_v21  ;;  %v7166_v6 = vpop.permute.xlu1 %7165  ;;  %vm17172_vm10 = vcmask 719872  }
 0x908   :  { %8315 = vmatpush2.msra.mxu0 %v7309_v3  ;;  %v6666_v3 = vld [vmem:[#allocation2 + $0x28] sm:$0xff] }
 0x90a   :  { %7289 = vrot.lane.b32.xlu1 %v14189_v52, %s17070_s1  ;;  %v7164_v11 = vpop.permute.xlu0 %7163 }
 0x90b   :  { %7291 = vrot.lane.b32.xlu0 %v14193_v1, %s17070_s1  ;;  %v7194_v46 = vsel %vm17168_vm12, %v7162_v10, %v7164_v11  ;;  %v7160_v40 = vpop.permute.xlu1 %7159  ;;  %v7195_v56 = vsel %vm17171_vm11, %v7164_v11, %v7166_v6  ;;  %vm17173_vm12 = vmmov %vm17172_vm10  ;;  %vm17187_vm11 = vcmask 220160  }
 0x90c   :  { %8316 = vmatprep.subr.mxu0 %v7194_v46  ;;  %v7193_v13 = vsel %vm17169_vm9, %v7160_v40, %v7162_v10  ;;  %vm17181_vm9 = vcmask 211968  }
 0x90d   :  { %8317 = vmatpush2.msra.mxu0 %v7193_v13 }
 0x90e   :  { %7169 = vrot.lane.b32.xlu1 %v14178_v42, %s17072_s27  ;;  %v14213_v16 = vpop.permute.xlu0 %7167 }
 0x90f   :  { %7171 = vrot.lane.b32.xlu0 %v14182_v32, %s17072_s27  ;;  %v7196_v63 = vsel %vm17170_vm8, %v7166_v6, %v14213_v16  ;;  %v7048_v60 = vpop.permute.xlu1 %7047  ;;  %vm17184_vm8 = vmmov %vm17181_vm9 }
 0x910   :  { %8387 = vmatprep.subr.mxu1 %v7196_v63 }
 0x911   :  { %8388 = vmatpush2.msra.mxu1 %v7195_v56 }
 0x912   :  { %7173 = vrot.lane.b32.xlu1 %v14189_v52, %s17072_s27  ;;  %v7046_v34 = vpop.permute.xlu0 %7045 }
 0x913   :  { %7175 = vrot.lane.b32.xlu0 %v14193_v1, %s17072_s27  ;;  %v7078_v62 = vsel %vm2797_vm0, %v7046_v34, %v7048_v60  ;;  %v14225_v38 = vpop.permute.xlu1 %7051 }
 0x914   :  { %8318 = vmatprep.subr.mxu0 %v7078_v62 }
 0x916   :  { %7053 = vrot.lane.b32.xlu1 %v14178_v42, %s17077_s0  ;;  %v7050_v37 = vpop.permute.xlu0 %7049 }
 0x917   :  { %7055 = vrot.lane.b32.xlu0 %v14182_v32, %s17077_s0  ;;  %v7080_v12 = vsel %vm2797_vm0, %v7050_v37, %v14225_v38  ;;  %v7079_v51 = vsel %vm2797_vm0, %v7048_v60, %v7050_v37  ;;  %v6930_v47 = vpop.permute.xlu1 %6929 }
 0x918   :  { %8389 = vmatprep.subr.mxu1 %v7080_v12 }
 0x919   :  { %8390 = vmatpush2.msra.mxu1 %v7079_v51 }
 0x91a   :  { %7057 = vrot.lane.b32.xlu1 %v14189_v52, %s17077_s0  ;;  %v7044_v26 = vpop.permute.xlu0 %7043 }
 0x91b   :  { %7059 = vrot.lane.b32.xlu0 %v14193_v1, %s17077_s0  ;;  %v7077_v44 = vsel %vm2797_vm0, %v7044_v26, %v7046_v34  ;;  %v6934_v58 = vpop.permute.xlu1 %6933 }
 0x91c   :  { %8319 = vmatpush2.msra.mxu0 %v7077_v44 }
 0x91e   :  { %6937 = vrot.lane.b32.xlu1 %v14178_v42, %s17082_s22  ;;  %v6932_v4 = vpop.permute.xlu0 %6931 }
 0x91f   :  { %6939 = vrot.lane.b32.xlu0 %v14182_v32, %s17082_s22  ;;  %v6962_v22 = vsel %vm2680_vm2, %v6930_v47, %v6932_v4  ;;  %v6928_v7 = vpop.permute.xlu1 %6927  ;;  %v6963_v18 = vsel %vm2680_vm2, %v6932_v4, %v6934_v58  ;;  %v14307_v4 = vld [vmem:[%s15493_s3] sm:$0xff] }
 0x920   :  { %8320 = vmatprep.subr.mxu0 %v6962_v22  ;;  %v6961_v19 = vsel %vm2680_vm2, %v6928_v7, %v6930_v47  ;;  %v14311_v22 = vld [vmem:[#allocation2 + $0x60] sm:$0xff] }
 0x921   :  { %8321 = vmatpush2.msra.mxu0 %v6961_v19 }
 0x922   :  { %6941 = vrot.lane.b32.xlu1 %v14189_v52, %s17082_s22  ;;  %v14247_v20 = vpop.permute.xlu0 %6935 }
 0x923   :  { %6943 = vrot.lane.b32.xlu0 %v14193_v1, %s17082_s22  ;;  %v6964_v55 = vsel %vm2680_vm2, %v6934_v58, %v14247_v20  ;;  %v6816_v17 = vpop.permute.xlu1 %6815 }
 0x924   :  { %8391 = vmatprep.subr.mxu1 %v6964_v55 }
 0x925   :  { %8392 = vmatpush2.msra.mxu1 %v6963_v18 }
 0x926   :  { %6821 = vrot.lane.b32.xlu1 %v14178_v42, %s17087_s23  ;;  %v6814_v21 = vpop.permute.xlu0 %6813 }
 0x927   :  { %6823 = vrot.lane.b32.xlu0 %v14182_v32, %s17087_s23  ;;  %v6846_v24 = vsel %vm2563_vm15, %v6814_v21, %v6816_v17  ;;  %v14259_v50 = vpop.permute.xlu1 %6819 }
 0x928   :  { %8322 = vmatprep.subr.mxu0 %v6846_v24 }
 0x92a   :  { %6825 = vrot.lane.b32.xlu1 %v14189_v52, %s17087_s23  ;;  %v6818_v0 = vpop.permute.xlu0 %6817 }
 0x92b   :  { %6827 = vrot.lane.b32.xlu0 %v14193_v1, %s17087_s23  ;;  %v6848_v15 = vsel %vm2563_vm15, %v6818_v0, %v14259_v50  ;;  %v6847_v10 = vsel %vm2563_vm15, %v6816_v17, %v6818_v0  ;;  %v6698_v48 = vpop.permute.xlu1 %6697 }
 0x92c   :  { %8393 = vmatprep.subr.mxu1 %v6848_v15 }
 0x92d   :  { %8394 = vmatpush2.msra.mxu1 %v6847_v10 }
 0x92e   :  { %6705 = vrot.lane.b32.xlu1 %v6666_v3, %s17089_s24  ;;  %v6812_v6 = vpop.permute.xlu0 %6811 }
 0x92f   :  { %6707 = vrot.lane.b32.xlu0 %v14178_v42, %s17089_s24  ;;  %v6845_v11 = vsel %vm2563_vm15, %v6812_v6, %v6814_v21  ;;  %v6702_v46 = vpop.permute.xlu1 %6701  ;;  %v17174_v21 = vld [vmem:[#allocation323_spill] sm:$0xff] }
 0x930   :  { %8323 = vmatpush2.msra.mxu0 %v6845_v11 }
 0x932   :  { %6709 = vrot.lane.b32.xlu1 %v14182_v32, %s17089_s24  ;;  %v6700_v40 = vpop.permute.xlu0 %6699 }
 0x933   :  { %6711 = vrot.lane.b32.xlu0 %v14189_v52, %s17089_s24  ;;  %v6730_v13 = vsel %vm2446_vm14, %v6698_v48, %v6700_v40  ;;  %v6696_v63 = vpop.permute.xlu1 %6695  ;;  %v6731_v37 = vsel %vm2446_vm14, %v6700_v40, %v6702_v46  ;;  %v6270_v40 = vsel %vm1978_vm5, %v13935_v27, %v13922_v54 }
 0x934   :  { %8324 = vmatprep.subr.mxu0 %v6730_v13  ;;  %v6729_v60 = vsel %vm2446_vm14, %v6696_v63, %v6698_v48  ;;  %v6269_v13 = vsel %vm1978_vm5, %v13903_v49, %v13935_v27 }
 0x935   :  { %8325 = vmatpush2.msra.mxu0 %v6729_v60  ;;  %v17176_v60 = vld [vmem:[#allocation82_spill] sm:$0xff] }
 0x936   :  { %6589 = vrot.lane.b32.xlu1 %v6666_v3, %s17090_s25  ;;  %v14279_v56 = vpop.permute.xlu0 %6703 }
 0x937   :  { %6591 = vrot.lane.b32.xlu0 %v14178_v42, %s17090_s25  ;;  %v6732_v34 = vsel %vm2446_vm14, %v6702_v46, %v14279_v56  ;;  %v6584_v62 = vpop.permute.xlu1 %6583  ;;  %v14295_v42 = vld [vmem:[#allocation2 + $0x50] sm:$0xff] }
 0x938   :  { %8395 = vmatprep.subr.mxu1 %v6732_v34 }
 0x939   :  { %8396 = vmatpush2.msra.mxu1 %v6731_v37  ;;  %v6153_v37 = vsel %vm1861_vm6, %v13816_v29, %v17176_v60  ;;  %v6272_v29 = vsel %vm1978_vm5, %v13961_v25, %v13945_v33 }
 0x93a   :  { %6593 = vrot.lane.b32.xlu1 %v14182_v32, %s17090_s25  ;;  %v6582_v12 = vpop.permute.xlu0 %6581 }
 0x93b   :  { %6595 = vrot.lane.b32.xlu0 %v14189_v52, %s17090_s25  ;;  %v6614_v51 = vsel %vm2329_vm13, %v6582_v12, %v6584_v62  ;;  %v14302_v52 = vld [vmem:[#allocation2 + $0x58] sm:$0xff] }
 0x93c   :  { %8326 = vmatprep.subr.mxu0 %v6614_v51  ;;  %v14291_v47 = vpop.permute.xlu1 %6587  ;;  %v17178_v51 = vld [vmem:[#allocation83_spill] sm:$0xff] }
 0x93e   :  { %6481 = vrot.lane.b32.xlu1 %v14193_v1, %s9049_s13  ;;  %v6586_v26 = vpop.permute.xlu0 %6585 }
 0x93f   :  { %6483 = vrot.lane.b32.xlu0 %v14295_v42, %s9049_s13  ;;  %v6616_v32 = vsel %vm2329_vm13, %v6586_v26, %v14291_v47  ;;  %v6615_v44 = vsel %vm2329_vm13, %v6584_v62, %v6586_v26 }
 0x940   :  { %8397 = vmatprep.subr.mxu1 %v6616_v32  ;;  %v6037_v32 = vsel %vm1744_vm7, %v13738_v31, %v17178_v51  ;;  %v14394_v31 = vld [vmem:[#allocation2 + $0x68] sm:$0xff] }
 0x941   :  { %8398 = vmatpush2.msra.mxu1 %v6615_v44  ;;  %v6474_v58 = vpop.permute.xlu1 %6473 }
 0x942   :  { %6485 = vrot.lane.b32.xlu1 %v14302_v52, %s9049_s13  ;;  %v6580_v7 = vpop.permute.xlu0 %6579  ;;  %8400 = vmatmul.mubr.f32.vlgmr.msra.gmra.mxu1 %v14307_v4  ;;  %v6501_v24 = vsel %vm2212_vm3, %v17174_v21, %v6474_v58 }
 0x943   :  { %6487 = vrot.lane.b32.xlu0 %v14311_v22, %s9049_s13  ;;  %v6613_v19 = vsel %vm2329_vm13, %v6580_v7, %v6582_v12  ;;  %8991 = vmatprep.mubr.msk.f32.mxu1 %vm17172_vm10, %v14139_v2  ;;  %v17177_v12 = vld [vmem:[#allocation127_spill] sm:$0xff]  ;;  %v17179_v7 = vld [vmem:[#allocation125_spill] sm:$0xff]  ;;  %vm17190_vm10 = vmmov %vm17187_vm11 }
 0x944   :  { %8327 = vmatpush2.msra.mxu0 %v6613_v19  ;;  %v6038_v26 = vsel %vm1744_vm7, %v17178_v51, %v17177_v12  ;;  %v17180_v19 = vld [vmem:[#allocation164_spill] sm:$0xff] }
 0x945   :  { %8329 = vmatmul.mubr.f32.vlgmr.msra.gmra.mxu0 %v14307_v4  ;;  %v17199_v51 = vld [vmem:[#allocation248_spill] sm:$0xff] }
 0x946   :  { %6365 = vrot.lane.b32.xlu1 %v14193_v1, %s9048_s12  ;;  %v6476_v55 = vpop.permute.xlu0 %6475  ;;  %8990 = vmatprep.mubr.msk.f32.mxu0 %vm17173_vm12, %v14139_v2  ;;  %vm17193_vm12 = vcmask 859136  }
 0x947   :  { %6367 = vrot.lane.b32.xlu0 %v14295_v42, %s9048_s12  ;;  %v6478_v17 = vpop.permute.xlu1 %6477  ;;  %v6502_v18 = vsel %vm2212_vm3, %v6474_v58, %v6476_v55  ;;  %v6271_v58 = vsel %vm1978_vm5, %v13922_v54, %v13961_v25  ;;  %v5921_v54 = vsel %vm17184_vm8, %v13680_v57, %v17180_v19 }
 0x948   :  { %8406 = vmatprep.subr.mxu0 %v6502_v18  ;;  %v6503_v48 = vsel %vm2212_vm3, %v6476_v55, %v6478_v17  ;;  %v5922_v55 = vsel %vm17181_vm9, %v17180_v19, %v17179_v7  ;;  %v17183_v18 = vld [vmem:[#allocation34_spill] sm:$0xff]  ;;  %vm17196_vm9 = vmmov %vm17184_vm8 }
 0x949   :  { %8407 = vmatpush1.msra.mxu0 %v6501_v24  ;;  %vm17197_vm8 = vmmov %vm17193_vm12 }
 0x94a   :  { %6369 = vrot.lane.b32.xlu1 %v14302_v52, %s9048_s12  ;;  %v14331_v0 = vpop.permute.xlu0 %6479 }
 0x94b   :  { %6371 = vrot.lane.b32.xlu0 %v14311_v22, %s9048_s12  ;;  %v6504_v15 = vsel %vm2212_vm3, %v6478_v17, %v14331_v0  ;;  %v17182_v17 = vld [vmem:[#allocation67_spill] sm:$0xff] }
 0x94c   :  { %v6358_v10 = vpop.permute.xlu1 %6357  ;;  %8477 = vmatprep.subr.mxu1 %v6504_v15  ;;  %v6156_v21 = vsel %vm1861_vm6, %v17183_v18, %v17182_v17  ;;  %v17185_v15 = vld [vmem:[#allocation205_spill] sm:$0xff] }
 0x94d   :  { %8478 = vmatpush1.msra.mxu1 %v6503_v48  ;;  %v6385_v11 = vsel %vm2095_vm4, %v13898_v35, %v6358_v10  ;;  %v17175_v35 = vld [vmem:[#allocation35_spill] sm:$0xff] }
 0x94e   :  { %6249 = vrot.lane.b32.xlu1 %v14193_v1, %s9047_s11  ;;  %v6360_v3 = vpop.permute.xlu0 %6359  ;;  %v6154_v34 = vsel %vm1861_vm6, %v17176_v60, %v17175_v35  ;;  %v6155_v24 = vsel %vm1861_vm6, %v17175_v35, %v17183_v18  ;;  %v17192_v35 = vld [vmem:[#allocation214_spill] sm:$0xff] }
 0x94f   :  { %6251 = vrot.lane.b32.xlu0 %v14295_v42, %s9047_s11  ;;  %v6386_v6 = vsel %vm2095_vm4, %v6358_v10, %v6360_v3  ;;  %v17186_v10 = vld [vmem:[#allocation165_spill] sm:$0xff]  ;;  %v17207_v18 = vld [vmem:[#allocation246_spill] sm:$0xff] }
 0x950   :  { %8408 = vmatprep.subr.mxu0 %v6386_v6  ;;  %v5806_v48 = vsel %vm17187_vm11, %v17186_v10, %v17185_v15  ;;  %v17189_v6 = vld [vmem:[#allocation114_spill] sm:$0xff]  ;;  %vm17198_vm11 = vmmov %vm17196_vm9 }
 0x951   :  { %v6362_v46 = vpop.permute.xlu1 %6361  ;;  %8409 = vmatpush1.msra.mxu0 %v6385_v11  ;;  %v5805_v11 = vsel %vm17190_vm10, %v13609_v14, %v17186_v10  ;;  %v17194_v14 = vld [vmem:[#allocation153_spill] sm:$0xff]  ;;  %vm17201_vm10 = vcmask 867328   ;;  %v17210_v10 = vld [vmem:[#allocation228_spill] sm:$0xff] }
 0x952   :  { %6253 = vrot.lane.b32.xlu1 %v14302_v52, %s9047_s11  ;;  %8410 = vmatprep.subr.mxu0 %v6270_v40  ;;  %v6387_v49 = vsel %vm2095_vm4, %v6360_v3, %v6362_v46  ;;  %v17188_v3 = vld [vmem:[#allocation80_spill] sm:$0xff]  ;;  %v6039_v40 = vsel %vm1744_vm7, %v17177_v12, %v17189_v6 }
 0x953   :  { %6255 = vrot.lane.b32.xlu0 %v14311_v22, %s9047_s11  ;;  %v14355_v63 = vpop.permute.xlu0 %6363  ;;  %8411 = vmatpush1.msra.mxu0 %v6269_v13  ;;  %v6040_v57 = vsel %vm1744_vm7, %v17189_v6, %v17188_v3  ;;  %v17191_v13 = vld [vmem:[#allocation203_spill] sm:$0xff] }
 0x954   :  { %8412 = vmatprep.subr.mxu0 %v6154_v34  ;;  %v6388_v62 = vsel %vm2095_vm4, %v6362_v46, %v14355_v63  ;;  %v5690_v60 = vsel %vm17193_vm12, %v17192_v35, %v17191_v13  ;;  %v17195_v34 = vld [vmem:[#allocation124_spill] sm:$0xff]  ;;  %vm17204_vm12 = vcmask 220160  }
 0x955   :  { %8479 = vmatprep.subr.mxu1 %v6388_v62  ;;  %8413 = vmatpush1.msra.mxu0 %v6153_v37  ;;  %v5924_v62 = vsel %vm17196_vm9, %v17195_v34, %v17194_v14  ;;  %v5689_v37 = vsel %vm17197_vm8, %v13556_v41, %v17192_v35  ;;  %v5923_v12 = vsel %vm17198_vm11, %v17179_v7, %v17195_v34  ;;  %vm17205_vm9 = vmmov %vm17201_vm10  ;;  %vm17209_vm11 = vcmask 875520   ;;  %v17219_v34 = vld [vmem:[#allocation237_spill] sm:$0xff] }
 0x956   :  { %7757 = vrot.lane.b32.xlu1 %v14295_v42, %s9060_s16  ;;  %v14368_v27 = vpop.permute.xlu1 %7749  ;;  %8480 = vmatpush1.msra.mxu1 %v6387_v49  ;;  %vm17206_vm8 = vmmov %vm17204_vm12 }
 0x957   :  { %7759 = vrot.lane.b32.xlu0 %v14302_v52, %s9060_s16  ;;  %8414 = vmatprep.subr.mxu0 %v6038_v26  ;;  %v17200_v26 = vld [vmem:[#allocation104_spill] sm:$0xff] }
 0x958   :  { %8481 = vmatprep.subr.mxu1 %v6272_v29  ;;  %v14381_v44 = vpop.permute.xlu0 %7751  ;;  %8415 = vmatpush1.msra.mxu0 %v6037_v32  ;;  %v5574_v29 = vsel %vm17201_vm10, %v17200_v26, %v17199_v51  ;;  %v17202_v32 = vld [vmem:[#allocation162_spill] sm:$0xff]  ;;  %v5573_v41 = vsel %vm17205_vm9, %v13466_v30, %v17200_v26  ;;  %vm17212_vm10 = vcmask 859136  }
 0x959   :  { %8482 = vmatpush1.msra.mxu1 %v6271_v58  ;;  %8416 = vmatprep.subr.mxu0 %v5922_v55  ;;  %v17203_v58 = vld [vmem:[#allocation193_spill] sm:$0xff]  ;;  %vm17214_vm9 = vmmov %vm17212_vm10  ;;  %v17224_v26 = vld [vmem:[#allocation14_spill] sm:$0xff] }
 0x95a   :  { %7761 = vrot.lane.b32.xlu1 %v14311_v22, %s9060_s16  ;;  %8483 = vmatprep.subr.mxu1 %v6156_v21  ;;  %v5808_v19 = vsel %vm17204_vm12, %v17203_v58, %v17202_v32  ;;  %v5807_v7 = vsel %vm17206_vm8, %v17185_v15, %v17203_v58  ;;  %v17208_v21 = vld [vmem:[#allocation282_spill] sm:$0xff]  ;;  %vm17213_vm12 = vmmov %vm17209_vm11  ;;  %vm17217_vm8 = vcmask 941056   ;;  %v17226_v58 = vld [vmem:[#allocation272_spill] sm:$0xff] }
 0x95b   :  { %v14399_v25 = vpop.permute.xlu1 %7753  ;;  %7763 = vrot.lane.b32.xlu0 %v14394_v31, %s9060_s16  ;;  %8417 = vmatpush1.msra.mxu0 %v5921_v54  ;;  %v5458_v54 = vsel %vm17209_vm11, %v17208_v21, %v17207_v18  ;;  %v5457_v15 = vsel %vm17213_vm12, %v13402_v28, %v17208_v21  ;;  %vm17220_vm11 = vcmask 867328   ;;  %v17231_v21 = vld [vmem:[#allocation95_spill] sm:$0xff] }
 0x95c   :  { %8484 = vmatpush1.msra.mxu1 %v6155_v24  ;;  %8418 = vmatprep.subr.mxu0 %v5806_v48  ;;  %v17211_v48 = vld [vmem:[#allocation202_spill] sm:$0xff]  ;;  %vm17222_vm12 = vmmov %vm17220_vm11 }
 0x95d   :  { %8485 = vmatprep.subr.mxu1 %v6040_v57  ;;  %v14415_v46 = vpop.permute.xlu0 %7755  ;;  %8419 = vmatpush1.msra.mxu0 %v5805_v11  ;;  %v5692_v30 = vsel %vm17212_vm10, %v17211_v48, %v17210_v10  ;;  %v5691_v6 = vsel %vm17214_vm9, %v17191_v13, %v17211_v48  ;;  %v17215_v11 = vld [vmem:[#allocation321_spill] sm:$0xff]  ;;  %vm17221_vm10 = vmmov %vm17217_vm8  ;;  %vm17225_vm9 = vcmask 949248  }
 0x95e   :  { %7641 = vrot.lane.b32.xlu1 %v14295_v42, %s9059_s15  ;;  %8486 = vmatpush1.msra.mxu1 %v6039_v40  ;;  %v17216_v40 = vld [vmem:[#allocation283_spill] sm:$0xff] }
 0x95f   :  { %7643 = vrot.lane.b32.xlu0 %v14302_v52, %s9059_s15  ;;  %8420 = vmatprep.subr.mxu0 %v5690_v60  ;;  %v5342_v35 = vsel %vm17217_vm8, %v17216_v40, %v17215_v11  ;;  %v17218_v60 = vld [vmem:[#allocation75_spill] sm:$0xff]  ;;  %v5341_v13 = vsel %vm17221_vm10, %v17111_v43, %v17216_v40  ;;  %vm17228_vm8 = vcmask 875520  }
 0x960   :  { %v14433_v49 = vpop.permute.xlu1 %7633  ;;  %8487 = vmatprep.subr.mxu1 %v5924_v62  ;;  %8421 = vmatpush1.msra.mxu0 %v5689_v37  ;;  %v5576_v28 = vsel %vm17220_vm11, %v17219_v34, %v17218_v60  ;;  %v5575_v62 = vsel %vm17222_vm12, %v17199_v51, %v17219_v34  ;;  %vm17229_vm11 = vmmov %vm17225_vm9  ;;  %vm17233_vm12 = vcmask 957440   ;;  %v17240_v34 = vld [vmem:[#allocation108_spill] sm:$0xff] }
 0x961   :  { %8488 = vmatpush1.msra.mxu1 %v5923_v12  ;;  %8422 = vmatprep.subr.mxu0 %v5574_v29  ;;  %v14444_v55 = vpop.permute.xlu0 %7635  ;;  %v17223_v12 = vld [vmem:[#allocation15_spill] sm:$0xff]  ;;  %v5225_v51 = vsel %vm17229_vm11, %v17119_v45, %v17224_v26  ;;  %vm17230_vm10 = vmmov %vm17228_vm8 }
 0x962   :  { %7645 = vrot.lane.b32.xlu1 %v14311_v22, %s9059_s15  ;;  %8489 = vmatprep.subr.mxu1 %v5808_v19  ;;  %v5226_v29 = vsel %vm17225_vm9, %v17224_v26, %v17223_v12  ;;  %v17227_v19 = vld [vmem:[#allocation245_spill] sm:$0xff]  ;;  %vm17236_vm9 = vcmask 941056  }
 0x963   :  { %8423 = vmatpush1.msra.mxu0 %v5573_v41  ;;  %8490 = vmatpush1.msra.mxu1 %v5807_v7  ;;  %v5460_v43 = vsel %vm17228_vm8, %v17227_v19, %v17226_v58  ;;  %v5459_v7 = vsel %vm17230_vm10, %v17207_v18, %v17227_v19  ;;  %vm17237_vm8 = vmmov %vm17233_vm12  ;;  %vm17241_vm10 = vcmask 1022976   ;;  %v17247_v19 = vld [vmem:[#allocation159_spill] sm:$0xff] }
 0x964   :  { %v14457_v24 = vpop.permute.xlu1 %7637  ;;  %7647 = vrot.lane.b32.xlu0 %v14394_v31, %s9059_s15  ;;  %8424 = vmatprep.subr.mxu0 %v5458_v54  ;;  %v17232_v54 = vld [vmem:[#allocation58_spill] sm:$0xff]  ;;  %vm17238_vm11 = vmmov %vm17236_vm9 }
 0x965   :  { %8491 = vmatprep.subr.mxu1 %v5692_v30  ;;  %8425 = vmatpush1.msra.mxu0 %v5457_v15  ;;  %v14470_v57 = vpop.permute.xlu0 %7639  ;;  %v5110_v48 = vsel %vm17233_vm12, %v17232_v54, %v17231_v21  ;;  %v17234_v30 = vld [vmem:[#allocation281_spill] sm:$0xff]  ;;  %v17235_v15 = vld [vmem:[#allocation310_spill] sm:$0xff]  ;;  %vm17244_vm12 = vcmask 949248  }
 0x966   :  { %8492 = vmatpush1.msra.mxu1 %v5691_v6  ;;  %7525 = vrot.lane.b32.xlu1 %v14295_v42, %s9058_s14  ;;  %v5344_v45 = vsel %vm17236_vm9, %v17235_v15, %v17234_v30  ;;  %v5109_v6 = vsel %vm17237_vm8, %v17127_v36, %v17232_v54  ;;  %v5343_v18 = vsel %vm17238_vm11, %v17215_v11, %v17235_v15  ;;  %v17243_v36 = vld [vmem:[#allocation46_spill] sm:$0xff]  ;;  %vm17245_vm9 = vmmov %vm17241_vm10  ;;  %vm17249_vm11 = vcmask 1031168   ;;  %v17251_v54 = vld [vmem:[#allocation44_spill] sm:$0xff] }
 0x967   :  { %8426 = vmatprep.subr.mxu0 %v5342_v35  ;;  %8493 = vmatprep.subr.mxu1 %v5576_v28  ;;  %v17239_v35 = vld [vmem:[#allocation134_spill] sm:$0xff]  ;;  %v4993_v11 = vsel %vm17245_vm9, %v17135_v8, %v17240_v34  ;;  %vm17246_vm8 = vmmov %vm17244_vm12 }
 0x968   :  { %8427 = vmatpush1.msra.mxu0 %v5341_v13  ;;  %8494 = vmatpush1.msra.mxu1 %v5575_v62  ;;  %v14486_v37 = vpop.permute.xlu1 %7517  ;;  %v4994_v28 = vsel %vm17241_vm10, %v17240_v34, %v17239_v35  ;;  %v17242_v62 = vld [vmem:[#allocation33_spill] sm:$0xff]  ;;  %vm17252_vm10 = vcmask 957440  }
 0x969   :  { %7527 = vrot.lane.b32.xlu0 %v14302_v52, %s9058_s14  ;;  %8428 = vmatprep.subr.mxu0 %v5226_v29  ;;  %v14499_v41 = vpop.permute.xlu0 %7519  ;;  %v5228_v26 = vsel %vm17244_vm12, %v17243_v36, %v17242_v62  ;;  %v5227_v29 = vsel %vm17246_vm8, %v17223_v12, %v17243_v36  ;;  %vm17253_vm12 = vmmov %vm17249_vm11  ;;  %vm17257_vm8 = vcmask 1039360   ;;  %v17259_v36 = vld [vmem:[#allocation137_spill] sm:$0xff] }
 0x96a   :  { %8495 = vmatprep.subr.mxu1 %v5460_v43  ;;  %8429 = vmatpush1.msra.mxu0 %v5225_v51  ;;  %v17248_v43 = vld [vmem:[#allocation146_spill] sm:$0xff]  ;;  %vm17254_vm9 = vmmov %vm17252_vm10 }
 0x96b   :  { %8496 = vmatpush1.msra.mxu1 %v5459_v7  ;;  %7529 = vrot.lane.b32.xlu1 %v14311_v22, %s9058_s14  ;;  %v4878_v51 = vsel %vm17249_vm11, %v17248_v43, %v17247_v19  ;;  %v17250_v7 = vld [vmem:[#allocation47_spill] sm:$0xff]  ;;  %v4877_v8 = vsel %vm17253_vm12, %v17143_v39, %v17248_v43  ;;  %v5111_v12 = vsel %vm17254_vm9, %v17231_v21, %v17251_v54  ;;  %vm17260_vm11 = vcmask 1022976  }
 0x96c   :  { %8430 = vmatprep.subr.mxu0 %v5110_v48  ;;  %8497 = vmatprep.subr.mxu1 %v5344_v45  ;;  %v14518_v40 = vpop.permute.xlu1 %7521  ;;  %v5112_v48 = vsel %vm17252_vm10, %v17251_v54, %v17250_v7  ;;  %vm17261_vm10 = vmmov %vm17257_vm8  ;;  %v17263_v43 = vld [vmem:[#allocation147_spill] sm:$0xff]  ;;  %vm17265_vm9 = vcmask 1031168  }
 0x96d   :  { %8431 = vmatpush1.msra.mxu0 %v5109_v6  ;;  %8498 = vmatpush1.msra.mxu1 %v5343_v18  ;;  %v14523_v13 = vpop.permute.xlu0 %7523  ;;  %v17255_v6 = vld [vmem:[#allocation197_spill] sm:$0xff]  ;;  %v17256_v18 = vld [vmem:[#allocation199_spill] sm:$0xff]  ;;  %vm17262_vm12 = vmmov %vm17260_vm11 }
 0x96e   :  { %7531 = vrot.lane.b32.xlu0 %v14394_v31, %s9058_s14  ;;  %8432 = vmatprep.subr.mxu0 %v4994_v28  ;;  %v4762_v34 = vsel %vm17257_vm8, %v17256_v18, %v17255_v6  ;;  %v17258_v28 = vld [vmem:[#allocation92_spill] sm:$0xff]  ;;  %v4761_v21 = vsel %vm17261_vm10, %v17149_v23, %v17256_v18  ;;  %vm17266_vm8 = vmmov %vm17265_vm9 }
 0x96f   :  { %8499 = vmatprep.subr.mxu1 %v5228_v26  ;;  %8433 = vmatpush1.msra.mxu0 %v4993_v11  ;;  %v4996_v39 = vsel %vm17260_vm11, %v17259_v36, %v17258_v28  ;;  %v4995_v26 = vsel %vm17262_vm12, %v17239_v35, %v17259_v36  ;;  %v7777_v35 = vsel %vm3499_vm1, %v13998_v59, %v14368_v27  ;;  %vm17267_vm11 = vcmask 277504   ;;  %v17269_v18 = vld [vmem:[#allocation224_spill] sm:$0xff] }
 0x970   :  { %8500 = vmatpush1.msra.mxu1 %v5227_v29  ;;  %7409 = vrot.lane.b32.xlu1 %v14295_v42, %s9057_s21  ;;  %v7402_v15 = vpop.permute.xlu1 %7401  ;;  %v7778_v29 = vsel %vm3499_vm1, %v14368_v27, %v14381_v44  ;;  %vm17270_vm12 = vmmov %vm17267_vm11 }
 0x971   :  { %8434 = vmatprep.subr.mxu0 %v4878_v51  ;;  %8501 = vmatprep.subr.mxu1 %v5112_v48  ;;  %v14550_v45 = vpop.permute.xlu0 %7403  ;;  %v17264_v51 = vld [vmem:[#allocation174_spill] sm:$0xff]  ;;  %v7661_v59 = vsel %vm17270_vm12, %v14092_v5, %v14433_v49  ;;  %v7780_v5 = vsel %vm3499_vm1, %v14399_v25, %v14415_v46 }
 0x972   :  { %8435 = vmatpush1.msra.mxu0 %v4877_v8  ;;  %8502 = vmatpush1.msra.mxu1 %v5111_v12  ;;  %v4880_v54 = vsel %vm17265_vm9, %v17264_v51, %v17263_v43  ;;  %v4879_v48 = vsel %vm17266_vm8, %v17247_v19, %v17264_v51  ;;  %v7662_v8 = vsel %vm17267_vm11, %v14433_v49, %v14444_v55  ;;  %v17268_v12 = vld [vmem:[#allocation184_spill] sm:$0xff]  ;;  %vm17271_vm9 = vmmov %vm17261_vm10  ;;  %vm17272_vm8 = vcmask 285696  }
 0x973   :  { %7411 = vrot.lane.b32.xlu0 %v14302_v52, %s9057_s21  ;;  %8436 = vmatprep.subr.mxu0 %v4762_v34  ;;  %v4764_v34 = vsel %vm17261_vm10, %v17269_v18, %v17268_v12  ;;  %v4763_v19 = vsel %vm17271_vm9, %v17255_v6, %v17269_v18  ;;  %vm17273_vm11 = vmmov %vm17272_vm8  ;;  %v7779_v6 = vsel %vm3499_vm1, %v14381_v44, %v14399_v25  ;;  %vm17274_vm10 = vcmask 351232  }
 0x974   :  { %8503 = vmatprep.subr.mxu1 %v4996_v39  ;;  %8437 = vmatpush1.msra.mxu0 %v4761_v21  ;;  %v7406_v11 = vpop.permute.xlu1 %7405  ;;  %v7546_v39 = vsel %vm17272_vm8, %v14486_v37, %v14499_v41  ;;  %v7545_v49 = vsel %vm17273_vm11, %v14125_v9, %v14486_v37  ;;  %v7430_v21 = vsel %vm17274_vm10, %v7402_v15, %v14550_v45  ;;  %vm17275_vm9 = vmmov %vm17274_vm10  ;;  %vm17276_vm8 = vcmask 359424  }
 0x975   :  { %8504 = vmatpush1.msra.mxu1 %v4995_v26  ;;  %7413 = vrot.lane.b32.xlu1 %v14311_v22, %s9057_s21  ;;  %v14574_v23 = vpop.permute.xlu0 %7407  ;;  %v7429_v9 = vsel %vm17275_vm9, %v14171_v61, %v7402_v15  ;;  %vm17277_vm11 = vmmov %vm17270_vm12  ;;  %vm17278_vm10 = vcmask 285696  }
 0x976   :  { %8448 = vmatprep.subr.mxu0 %v7778_v29  ;;  %8505 = vmatprep.subr.mxu1 %v4880_v54  ;;  %v7664_v29 = vsel %vm17270_vm12, %v14457_v24, %v14470_v57  ;;  %v7663_v25 = vsel %vm17277_vm11, %v14444_v55, %v14457_v24  ;;  %v7548_v51 = vsel %vm17278_vm10, %v14518_v40, %v14523_v13  ;;  %vm17279_vm12 = vmmov %vm17278_vm10 }
 0x977   :  { %8449 = vmatpush2.msra.mxu0 %v7777_v35  ;;  %8506 = vmatpush1.msra.mxu1 %v4879_v48  ;;  %v7547_v61 = vsel %vm17279_vm12, %v14499_v41, %v14518_v40  ;;  %v7432_v55 = vsel %vm17275_vm9, %v7406_v11, %v14574_v23  ;;  %vm17280_vm11 = vmmov %vm17276_vm8  ;;  %vm17282_vm12 = vcmask 367616  }
 0x978   :  { %7415 = vrot.lane.b32.xlu0 %v14394_v31, %s9057_s21  ;;  %8450 = vmatprep.subr.mxu0 %v7662_v8  ;;  %v7286_v27 = vpop.permute.xlu1 %7285  ;;  %vm17281_vm10 = vmmov %vm17275_vm9 }
 0x979   :  { %8507 = vmatprep.subr.mxu1 %v4764_v34  ;;  %8451 = vmatpush2.msra.mxu0 %v7661_v59  ;;  %v7288_v36 = vpop.permute.xlu0 %7287  ;;  %v7313_v24 = vsel %vm17276_vm8, %v14187_v53, %v7286_v27  ;;  %v7431_v41 = vsel %vm17281_vm10, %v14550_v45, %v7406_v11  ;;  %vm17283_vm9 = vmmov %vm17276_vm8 }
 0x97a   :  { %8508 = vmatpush1.msra.mxu1 %v4763_v19  ;;  %7293 = vrot.lane.b32.xlu1 %v14295_v42, %s17070_s1  ;;  %v7314_v37 = vsel %vm17276_vm8, %v7286_v27, %v7288_v36  ;;  %vm17284_vm8 = vmmov %vm17282_vm12 }
 0x97b   :  { %8452 = vmatprep.subr.mxu0 %v7546_v39  ;;  %8519 = vmatprep.subr.mxu1 %v7780_v5  ;;  %vm17286_vm10 = vmmov %vm17284_vm8 }
 0x97c   :  { %8453 = vmatpush2.msra.mxu0 %v7545_v49  ;;  %8520 = vmatpush2.msra.mxu1 %v7779_v6  ;;  %v7290_v26 = vpop.permute.xlu1 %7289 }
 0x97d   :  { %7295 = vrot.lane.b32.xlu0 %v14302_v52, %s17070_s1  ;;  %8454 = vmatprep.subr.mxu0 %v7430_v21  ;;  %v14620_v44 = vpop.permute.xlu0 %7291  ;;  %v7315_v48 = vsel %vm17283_vm9, %v7288_v36, %v7290_v26 }
 0x97e   :  { %8521 = vmatprep.subr.mxu1 %v7664_v29  ;;  %8455 = vmatpush2.msra.mxu0 %v7429_v9  ;;  %v7316_v54 = vsel %vm17280_vm11, %v7290_v26, %v14620_v44  ;;  %vm17285_vm11 = vmmov %vm17284_vm8 }
 0x97f   :  { %8522 = vmatpush2.msra.mxu1 %v7663_v25  ;;  %7297 = vrot.lane.b32.xlu1 %v14311_v22, %s17070_s1 }
 0x980   :  { %8523 = vmatprep.subr.mxu1 %v7548_v51  ;;  %8456 = vmatprep.subr.mxu0 %v7314_v37  ;;  %v7170_v15 = vpop.permute.xlu1 %7169 }
 0x981   :  { %8524 = vmatpush2.msra.mxu1 %v7547_v61  ;;  %7299 = vrot.lane.b32.xlu0 %v14394_v31, %s17070_s1  ;;  %v7172_v35 = vpop.permute.xlu0 %7171  ;;  %v7197_v53 = vsel %vm17284_vm8, %v14213_v16, %v7170_v15  ;;  %vm17295_vm8 = vcmask 211968  }
 0x982   :  { %8525 = vmatprep.subr.mxu1 %v7432_v55  ;;  %8457 = vmatpush2.msra.mxu0 %v7313_v24  ;;  %v7198_v40 = vsel %vm17282_vm12, %v7170_v15, %v7172_v35  ;;  %vm17287_vm12 = vcmask 719872  }
 0x983   :  { %8526 = vmatpush2.msra.mxu1 %v7431_v41  ;;  %7177 = vrot.lane.b32.xlu1 %v14295_v42, %s17072_s27  ;;  %vm17288_vm9 = vmmov %vm17287_vm12 }
 0x984   :  { %8527 = vmatprep.subr.mxu1 %v7316_v54  ;;  %v7174_v8 = vpop.permute.xlu1 %7173  ;;  %8458 = vmatprep.subr.mxu0 %v7198_v40 }
 0x985   :  { %7179 = vrot.lane.b32.xlu0 %v14302_v52, %s17072_s27  ;;  %8528 = vmatpush2.msra.mxu1 %v7315_v48  ;;  %v14651_v18 = vpop.permute.xlu0 %7175  ;;  %v7199_v11 = vsel %vm17286_vm10, %v7172_v35, %v7174_v8  ;;  %vm17301_vm10 = vcmask 220160  }
 0x986   :  { %8459 = vmatpush2.msra.mxu0 %v7197_v53  ;;  %v7200_v45 = vsel %vm17285_vm11, %v7174_v8, %v14651_v18  ;;  %vm17298_vm11 = vmmov %vm17295_vm8 }
 0x987   :  { %7181 = vrot.lane.b32.xlu1 %v14311_v22, %s17072_s27  ;;  %8529 = vmatprep.subr.mxu1 %v7200_v45 }
 0x988   :  { %v7054_v34 = vpop.permute.xlu1 %7053  ;;  %8530 = vmatpush2.msra.mxu1 %v7199_v11 }
 0x989   :  { %7183 = vrot.lane.b32.xlu0 %v14394_v31, %s17072_s27  ;;  %v7056_v59 = vpop.permute.xlu0 %7055  ;;  %v7081_v27 = vsel %vm2797_vm0, %v14225_v38, %v7054_v34 }
 0x98a   :  { %v7082_v16 = vsel %vm2797_vm0, %v7054_v34, %v7056_v59 }
 0x98b   :  { %7061 = vrot.lane.b32.xlu1 %v14295_v42, %s17077_s0  ;;  %8460 = vmatprep.subr.mxu0 %v7082_v16 }
 0x98c   :  { %v7058_v19 = vpop.permute.xlu1 %7057  ;;  %8461 = vmatpush2.msra.mxu0 %v7081_v27 }
 0x98d   :  { %7063 = vrot.lane.b32.xlu0 %v14302_v52, %s17077_s0  ;;  %v14667_v36 = vpop.permute.xlu0 %7059  ;;  %v7083_v5 = vsel %vm2797_vm0, %v7056_v59, %v7058_v19 }
 0x98e   :  { %v7084_v39 = vsel %vm2797_vm0, %v7058_v19, %v14667_v36 }
 0x98f   :  { %7065 = vrot.lane.b32.xlu1 %v14311_v22, %s17077_s0  ;;  %8531 = vmatprep.subr.mxu1 %v7084_v39 }
 0x990   :  { %v6938_v49 = vpop.permute.xlu1 %6937  ;;  %8532 = vmatpush2.msra.mxu1 %v7083_v5  ;;  %v14751_v5 = vld [vmem:[#allocation2 + $0x70] sm:$0xff] }
 0x991   :  { %7067 = vrot.lane.b32.xlu0 %v14394_v31, %s17077_s0  ;;  %v6940_v38 = vpop.permute.xlu0 %6939  ;;  %v6965_v21 = vsel %vm2680_vm2, %v14247_v20, %v6938_v49 }
 0x992   :  { %v6966_v6 = vsel %vm2680_vm2, %v6938_v49, %v6940_v38 }
 0x993   :  { %6945 = vrot.lane.b32.xlu1 %v14295_v42, %s17082_s22  ;;  %8462 = vmatprep.subr.mxu0 %v6966_v6 }
 0x994   :  { %v6942_v26 = vpop.permute.xlu1 %6941  ;;  %8463 = vmatpush2.msra.mxu0 %v6965_v21 }
 0x995   :  { %6947 = vrot.lane.b32.xlu0 %v14302_v52, %s17082_s22  ;;  %v14683_v29 = vpop.permute.xlu0 %6943  ;;  %v6967_v37 = vsel %vm2680_vm2, %v6940_v38, %v6942_v26  ;;  %v14764_v38 = vld [vmem:[#allocation2 + $0x80] sm:$0xff] }
 0x996   :  { %v6968_v9 = vsel %vm2680_vm2, %v6942_v26, %v14683_v29 }
 0x997   :  { %6949 = vrot.lane.b32.xlu1 %v14311_v22, %s17082_s22  ;;  %8533 = vmatprep.subr.mxu1 %v6968_v9 }
 0x998   :  { %v6822_v25 = vpop.permute.xlu1 %6821  ;;  %8534 = vmatpush2.msra.mxu1 %v6967_v37 }
 0x999   :  { %6951 = vrot.lane.b32.xlu0 %v14394_v31, %s17082_s22  ;;  %v6824_v20 = vpop.permute.xlu0 %6823  ;;  %v6849_v61 = vsel %vm2563_vm15, %v14259_v50, %v6822_v25 }
 0x99a   :  { %v6850_v51 = vsel %vm2563_vm15, %v6822_v25, %v6824_v20 }
 0x99b   :  { %6829 = vrot.lane.b32.xlu1 %v14295_v42, %s17087_s23  ;;  %8464 = vmatprep.subr.mxu0 %v6850_v51 }
 0x99c   :  { %v6826_v15 = vpop.permute.xlu1 %6825  ;;  %8465 = vmatpush2.msra.mxu0 %v6849_v61 }
 0x99d   :  { %6831 = vrot.lane.b32.xlu0 %v14302_v52, %s17087_s23  ;;  %v14699_v55 = vpop.permute.xlu0 %6827  ;;  %v6851_v54 = vsel %vm2563_vm15, %v6824_v20, %v6826_v15 }
 0x99e   :  { %v6852_v24 = vsel %vm2563_vm15, %v6826_v15, %v14699_v55 }
 0x99f   :  { %6833 = vrot.lane.b32.xlu1 %v14311_v22, %s17087_s23  ;;  %8535 = vmatprep.subr.mxu1 %v6852_v24 }
 0x9a0   :  { %v6706_v35 = vpop.permute.xlu1 %6705  ;;  %8536 = vmatpush2.msra.mxu1 %v6851_v54 }
 0x9a1   :  { %6835 = vrot.lane.b32.xlu0 %v14394_v31, %s17087_s23  ;;  %v6708_v50 = vpop.permute.xlu0 %6707  ;;  %v6733_v40 = vsel %vm2446_vm14, %v14279_v56, %v6706_v35 }
 0x9a2   :  { %v6734_v41 = vsel %vm2446_vm14, %v6706_v35, %v6708_v50  ;;  %v17289_v35 = vld [vmem:[#allocation18_spill] sm:$0xff] }
 0x9a3   :  { %6713 = vrot.lane.b32.xlu1 %v14193_v1, %s17089_s24  ;;  %8466 = vmatprep.subr.mxu0 %v6734_v41 }
 0x9a4   :  { %v6710_v48 = vpop.permute.xlu1 %6709  ;;  %8467 = vmatpush2.msra.mxu0 %v6733_v40 }
 0x9a5   :  { %6715 = vrot.lane.b32.xlu0 %v14295_v42, %s17089_s24  ;;  %v14715_v8 = vpop.permute.xlu0 %6711  ;;  %v6735_v45 = vsel %vm2446_vm14, %v6708_v50, %v6710_v48  ;;  %v17290_v50 = vld [vmem:[#allocation66_spill] sm:$0xff] }
 0x9a6   :  { %v6736_v53 = vsel %vm2446_vm14, %v6710_v48, %v14715_v8  ;;  %v6158_v41 = vsel %vm1861_vm6, %v17290_v50, %v17289_v35  ;;  %v17291_v48 = vld [vmem:[#allocation111_spill] sm:$0xff] }
 0x9a7   :  { %6717 = vrot.lane.b32.xlu1 %v14302_v52, %s17089_s24  ;;  %8537 = vmatprep.subr.mxu1 %v6736_v53  ;;  %v17292_v53 = vld [vmem:[#allocation64_spill] sm:$0xff] }
 0x9a8   :  { %v6590_v11 = vpop.permute.xlu1 %6589  ;;  %8538 = vmatpush2.msra.mxu1 %v6735_v45 }
 0x9a9   :  { %6719 = vrot.lane.b32.xlu0 %v14311_v22, %s17089_s24  ;;  %v6592_v56 = vpop.permute.xlu0 %6591  ;;  %v6617_v59 = vsel %vm2329_vm13, %v14291_v47, %v6590_v11 }
 0x9aa   :  { %v6618_v34 = vsel %vm2329_vm13, %v6590_v11, %v6592_v56  ;;  %v6041_v11 = vsel %vm1744_vm7, %v17188_v3, %v17292_v53 }
 0x9ab   :  { %6597 = vrot.lane.b32.xlu1 %v14193_v1, %s17090_s25  ;;  %8468 = vmatprep.subr.mxu0 %v6618_v34  ;;  %v17293_v34 = vld [vmem:[#allocation109_spill] sm:$0xff] }
 0x9ac   :  { %v6594_v16 = vpop.permute.xlu1 %6593  ;;  %8469 = vmatpush2.msra.mxu0 %v6617_v59  ;;  %v17294_v59 = vld [vmem:[#allocation152_spill] sm:$0xff] }
 0x9ad   :  { %6599 = vrot.lane.b32.xlu0 %v14295_v42, %s17090_s25  ;;  %v14731_v27 = vpop.permute.xlu0 %6595  ;;  %8471 = vmatmul.mubr.f32.vlgmr.msra.gmra.mxu0 %v14307_v4  ;;  %v6619_v1 = vsel %vm2329_vm13, %v6592_v56, %v6594_v16  ;;  %v5925_v3 = vsel %vm17298_vm11, %v17194_v14, %v17294_v59 }
 0x9ae   :  { %v6620_v19 = vsel %vm2329_vm13, %v6594_v16, %v14731_v27  ;;  %8992 = vmatprep.mubr.msk.f32.mxu0 %vm17287_vm12, %v14139_v2  ;;  %v5926_v16 = vsel %vm17295_vm8, %v17294_v59, %v17293_v34  ;;  %vm17304_vm12 = vmmov %vm17301_vm10  ;;  %v17321_v59 = vld [vmem:[#allocation271_spill] sm:$0xff] }
 0x9af   :  { %6601 = vrot.lane.b32.xlu1 %v14302_v52, %s17090_s25  ;;  %8539 = vmatprep.subr.mxu1 %v6620_v19  ;;  %v17296_v19 = vld [vmem:[#allocation50_spill] sm:$0xff] }
 0x9b0   :  { %v6482_v47 = vpop.permute.xlu1 %6481  ;;  %8540 = vmatpush2.msra.mxu1 %v6619_v1  ;;  %v17297_v1 = vld [vmem:[#allocation21_spill] sm:$0xff] }
 0x9b1   :  { %6603 = vrot.lane.b32.xlu0 %v14311_v22, %s17090_s25  ;;  %v6484_v42 = vpop.permute.xlu0 %6483  ;;  %8542 = vmatmul.mubr.f32.vlgmr.msra.gmra.mxu1 %v14307_v4  ;;  %v6505_v52 = vsel %vm2212_vm3, %v14331_v0, %v6482_v47  ;;  %v14757_v22 = vld [vmem:[#allocation2 + $0x78] sm:$0xff] }
 0x9b2   :  { %v6506_v39 = vsel %vm2212_vm3, %v6482_v47, %v6484_v42  ;;  %8993 = vmatprep.mubr.msk.f32.mxu1 %vm17288_vm9, %v14139_v2  ;;  %v6160_v47 = vsel %vm1861_vm6, %v17297_v1, %v17296_v19  ;;  %vm17307_vm9 = vcmask 859136  }
 0x9b3   :  { %6489 = vrot.lane.b32.xlu1 %v14394_v31, %s9049_s13  ;;  %8548 = vmatprep.subr.mxu0 %v6506_v39  ;;  %v6159_v39 = vsel %vm1861_vm6, %v17289_v35, %v17297_v1  ;;  %vm17310_vm11 = vmmov %vm17307_vm9  ;;  %v17323_v1 = vld [vmem:[#allocation216_spill] sm:$0xff] }
 0x9b4   :  { %v6486_v49 = vpop.permute.xlu1 %6485  ;;  %8549 = vmatpush1.msra.mxu0 %v6505_v52  ;;  %v17299_v52 = vld [vmem:[#allocation190_spill] sm:$0xff] }
 0x9b5   :  { %6491 = vrot.lane.b32.xlu0 %v14751_v5, %s9049_s13  ;;  %v14755_v4 = vpop.permute.xlu0 %6487  ;;  %v6507_v0 = vsel %vm2212_vm3, %v6484_v42, %v6486_v49 }
 0x9b6   :  { %v6508_v2 = vsel %vm2212_vm3, %v6486_v49, %v14755_v4  ;;  %v17300_v49 = vld [vmem:[#allocation150_spill] sm:$0xff] }
 0x9b7   :  { %6493 = vrot.lane.b32.xlu1 %v14757_v22, %s9049_s13  ;;  %8619 = vmatprep.subr.mxu1 %v6508_v2  ;;  %v5810_v2 = vsel %vm17301_vm10, %v17300_v49, %v17299_v52  ;;  %vm17311_vm10 = vmmov %vm17295_vm8 }
 0x9b8   :  { %v6366_v6 = vpop.permute.xlu1 %6365  ;;  %8620 = vmatpush1.msra.mxu1 %v6507_v0 }
 0x9b9   :  { %6495 = vrot.lane.b32.xlu0 %v14764_v38, %s9049_s13  ;;  %v6368_v21 = vpop.permute.xlu0 %6367  ;;  %v6389_v9 = vsel %vm2095_vm4, %v14355_v63, %v6366_v6 }
 0x9ba   :  { %v6390_v26 = vsel %vm2095_vm4, %v6366_v6, %v6368_v21  ;;  %v17302_v6 = vld [vmem:[#allocation65_spill] sm:$0xff] }
 0x9bb   :  { %6373 = vrot.lane.b32.xlu1 %v14394_v31, %s9048_s12  ;;  %8550 = vmatprep.subr.mxu0 %v6390_v26  ;;  %v5809_v26 = vsel %vm17304_vm12, %v17202_v32, %v17300_v49  ;;  %v17309_v32 = vld [vmem:[#allocation112_spill] sm:$0xff]  ;;  %vm17314_vm12 = vcmask 867328   ;;  %v17328_v49 = vld [vmem:[#allocation307_spill] sm:$0xff] }
 0x9bc   :  { %v6370_v37 = vpop.permute.xlu1 %6369  ;;  %8551 = vmatpush1.msra.mxu0 %v6389_v9  ;;  %v5927_v35 = vsel %vm17311_vm10, %v17293_v34, %v17309_v32  ;;  %v17320_v34 = vld [vmem:[#allocation233_spill] sm:$0xff]  ;;  %vm17322_vm10 = vcmask 875520  }
 0x9bd   :  { %6375 = vrot.lane.b32.xlu0 %v14751_v5, %s9048_s12  ;;  %v14775_v25 = vpop.permute.xlu0 %6371  ;;  %v6391_v51 = vsel %vm2095_vm4, %v6368_v21, %v6370_v37  ;;  %v17303_v21 = vld [vmem:[#allocation98_spill] sm:$0xff] }
 0x9be   :  { %v6392_v20 = vsel %vm2095_vm4, %v6370_v37, %v14775_v25  ;;  %v6044_v14 = vsel %vm1744_vm7, %v17303_v21, %v17302_v6  ;;  %v6043_v9 = vsel %vm1744_vm7, %v17291_v48, %v17303_v21 }
 0x9bf   :  { %6377 = vrot.lane.b32.xlu1 %v14757_v22, %s9048_s12  ;;  %8621 = vmatprep.subr.mxu1 %v6392_v20  ;;  %v14848_v20 = vld [vmem:[#allocation2 + $0x88] sm:$0xff] }
 0x9c0   :  { %v6250_v61 = vpop.permute.xlu1 %6249  ;;  %8622 = vmatpush1.msra.mxu1 %v6391_v51  ;;  %v17305_v51 = vld [vmem:[#allocation188_spill] sm:$0xff] }
 0x9c1   :  { %6379 = vrot.lane.b32.xlu0 %v14764_v38, %s9048_s12  ;;  %v6252_v63 = vpop.permute.xlu0 %6251  ;;  %v6273_v24 = vsel %vm1978_vm5, %v13945_v33, %v6250_v61  ;;  %v6042_v33 = vsel %vm1744_vm7, %v17292_v53, %v17291_v48  ;;  %v17315_v53 = vld [vmem:[#allocation151_spill] sm:$0xff] }
 0x9c2   :  { %v6274_v15 = vsel %vm1978_vm5, %v6250_v61, %v6252_v63  ;;  %v17306_v61 = vld [vmem:[#allocation227_spill] sm:$0xff] }
 0x9c3   :  { %6257 = vrot.lane.b32.xlu1 %v14394_v31, %s9047_s11  ;;  %8552 = vmatprep.subr.mxu0 %v6274_v15  ;;  %v6157_v31 = vsel %vm1861_vm6, %v17182_v17, %v17290_v50  ;;  %v17308_v15 = vld [vmem:[#allocation138_spill] sm:$0xff] }
 0x9c4   :  { %v6254_v54 = vpop.permute.xlu1 %6253  ;;  %8553 = vmatpush1.msra.mxu0 %v6273_v24  ;;  %v5928_v24 = vsel %vm17295_vm8, %v17309_v32, %v17308_v15  ;;  %vm17318_vm8 = vmmov %vm17314_vm12  ;;  %v17336_v32 = vld [vmem:[#allocation319_spill] sm:$0xff] }
 0x9c5   :  { %6259 = vrot.lane.b32.xlu0 %v14751_v5, %s9047_s11  ;;  %8554 = vmatprep.subr.mxu0 %v6158_v41  ;;  %v14794_v40 = vpop.permute.xlu0 %6255  ;;  %v6275_v17 = vsel %vm1978_vm5, %v6252_v63, %v6254_v54  ;;  %v5694_v63 = vsel %vm17307_vm9, %v17306_v61, %v17305_v51  ;;  %v17312_v41 = vld [vmem:[#allocation234_spill] sm:$0xff]  ;;  %vm17317_vm9 = vcmask 220160  }
 0x9c6   :  { %8555 = vmatpush1.msra.mxu0 %v6157_v31  ;;  %v6276_v45 = vsel %vm1978_vm5, %v6254_v54, %v14794_v40  ;;  %v5693_v54 = vsel %vm17310_vm11, %v17210_v10, %v17306_v61  ;;  %v17313_v31 = vld [vmem:[#allocation293_spill] sm:$0xff]  ;;  %vm17319_vm11 = vmmov %vm17317_vm9 }
 0x9c7   :  { %6261 = vrot.lane.b32.xlu1 %v14757_v22, %s9047_s11  ;;  %8556 = vmatprep.subr.mxu0 %v6042_v33  ;;  %v5578_v48 = vsel %vm17314_vm12, %v17313_v31, %v17312_v41  ;;  %v17316_v33 = vld [vmem:[#allocation178_spill] sm:$0xff]  ;;  %vm17325_vm12 = vcmask 859136  }
 0x9c8   :  { %v14809_v56 = vpop.permute.xlu1 %7757  ;;  %8623 = vmatprep.subr.mxu1 %v6276_v45  ;;  %8557 = vmatpush1.msra.mxu0 %v6041_v11  ;;  %v5812_v10 = vsel %vm17317_vm9, %v17316_v33, %v17315_v53  ;;  %v5577_v11 = vsel %vm17318_vm8, %v17218_v60, %v17313_v31  ;;  %vm17326_vm9 = vmmov %vm17322_vm10  ;;  %v17340_v31 = vld [vmem:[#allocation235_spill] sm:$0xff] }
 0x9c9   :  { %6263 = vrot.lane.b32.xlu0 %v14764_v38, %s9047_s11  ;;  %8624 = vmatpush1.msra.mxu1 %v6275_v17  ;;  %v14820_v42 = vpop.permute.xlu0 %7759  ;;  %v5811_v17 = vsel %vm17319_vm11, %v17299_v52, %v17316_v33  ;;  %v5461_v60 = vsel %vm17326_vm9, %v17226_v58, %v17321_v59  ;;  %vm17327_vm8 = vmmov %vm17325_vm12  ;;  %vm17330_vm11 = vcmask 941056   ;;  %v17344_v33 = vld [vmem:[#allocation81_spill] sm:$0xff] }
 0x9ca   :  { %8558 = vmatprep.subr.mxu0 %v5926_v16  ;;  %8625 = vmatprep.subr.mxu1 %v6160_v47  ;;  %v5462_v16 = vsel %vm17322_vm10, %v17321_v59, %v17320_v34  ;;  %v17324_v47 = vld [vmem:[#allocation191_spill] sm:$0xff]  ;;  %vm17333_vm10 = vcmask 867328   ;;  %v17347_v59 = vld [vmem:[#allocation270_spill] sm:$0xff] }
 0x9cb   :  { %7765 = vrot.lane.b32.xlu1 %v14751_v5, %s9060_s16  ;;  %8559 = vmatpush1.msra.mxu0 %v5925_v3  ;;  %v5696_v3 = vsel %vm17325_vm12, %v17324_v47, %v17323_v1  ;;  %v5695_v52 = vsel %vm17327_vm8, %v17305_v51, %v17324_v47  ;;  %vm17334_vm12 = vmmov %vm17330_vm11  ;;  %vm17338_vm8 = vcmask 949248  }
 0x9cc   :  { %8626 = vmatpush1.msra.mxu1 %v6159_v39  ;;  %v14833_v0 = vpop.permute.xlu1 %7761  ;;  %8560 = vmatprep.subr.mxu0 %v5810_v2  ;;  %v17329_v2 = vld [vmem:[#allocation269_spill] sm:$0xff]  ;;  %vm17335_vm9 = vmmov %vm17333_vm10 }
 0x9cd   :  { %7767 = vrot.lane.b32.xlu0 %v14757_v22, %s9060_s16  ;;  %8627 = vmatprep.subr.mxu1 %v6044_v14  ;;  %v14846_v37 = vpop.permute.xlu0 %7763  ;;  %v5346_v21 = vsel %vm17330_vm11, %v17329_v2, %v17328_v49  ;;  %v5345_v51 = vsel %vm17334_vm12, %v17234_v30, %v17329_v2  ;;  %vm17341_vm11 = vcmask 875520  }
 0x9ce   :  { %8561 = vmatpush1.msra.mxu0 %v5809_v26  ;;  %8628 = vmatpush1.msra.mxu1 %v6043_v9  ;;  %v17331_v26 = vld [vmem:[#allocation59_spill] sm:$0xff]  ;;  %v17332_v9 = vld [vmem:[#allocation4_spill] sm:$0xff]  ;;  %vm17343_vm12 = vmmov %vm17341_vm11 }
 0x9cf   :  { %7769 = vrot.lane.b32.xlu1 %v14764_v38, %s9060_s16  ;;  %8562 = vmatprep.subr.mxu0 %v5694_v63  ;;  %v5580_v58 = vsel %vm17333_vm10, %v17332_v9, %v17331_v26  ;;  %v5579_v61 = vsel %vm17335_vm9, %v17312_v41, %v17332_v9  ;;  %vm17342_vm10 = vmmov %vm17338_vm8  ;;  %vm17346_vm9 = vcmask 957440   ;;  %v17356_v9 = vld [vmem:[#allocation318_spill] sm:$0xff] }
 0x9d0   :  { %8629 = vmatprep.subr.mxu1 %v5928_v24  ;;  %8563 = vmatpush1.msra.mxu0 %v5693_v54  ;;  %v14864_v50 = vpop.permute.xlu1 %7641  ;;  %v17337_v24 = vld [vmem:[#allocation32_spill] sm:$0xff] }
 0x9d1   :  { %7771 = vrot.lane.b32.xlu0 %v14848_v20, %s9060_s16  ;;  %8630 = vmatpush1.msra.mxu1 %v5927_v35  ;;  %v14874_v45 = vpop.permute.xlu0 %7643  ;;  %v5230_v54 = vsel %vm17338_vm8, %v17337_v24, %v17336_v32  ;;  %v17339_v35 = vld [vmem:[#allocation258_spill] sm:$0xff]  ;;  %v5229_v41 = vsel %vm17342_vm10, %v17242_v62, %v17337_v24  ;;  %vm17349_vm8 = vcmask 941056   ;;  %v17361_v24 = vld [vmem:[#allocation145_spill] sm:$0xff] }
 0x9d2   :  { %8564 = vmatprep.subr.mxu0 %v5578_v48  ;;  %8631 = vmatprep.subr.mxu1 %v5812_v10  ;;  %v5464_v30 = vsel %vm17341_vm11, %v17340_v31, %v17339_v35  ;;  %v5463_v48 = vsel %vm17343_vm12, %v17320_v34, %v17340_v31  ;;  %v17345_v10 = vld [vmem:[#allocation78_spill] sm:$0xff]  ;;  %vm17350_vm11 = vmmov %vm17346_vm9  ;;  %vm17354_vm12 = vcmask 1022976   ;;  %v17363_v31 = vld [vmem:[#allocation45_spill] sm:$0xff] }
 0x9d3   :  { %7649 = vrot.lane.b32.xlu1 %v14751_v5, %s9059_s15  ;;  %8565 = vmatpush1.msra.mxu0 %v5577_v11  ;;  %v5114_v11 = vsel %vm17346_vm9, %v17345_v10, %v17344_v33  ;;  %v5113_v34 = vsel %vm17350_vm11, %v17250_v7, %v17345_v10  ;;  %vm17351_vm10 = vmmov %vm17349_vm8  ;;  %vm17357_vm9 = vcmask 949248   ;;  %v17368_v10 = vld [vmem:[#allocation212_spill] sm:$0xff] }
 0x9d4   :  { %8632 = vmatpush1.msra.mxu1 %v5811_v17  ;;  %8566 = vmatprep.subr.mxu0 %v5462_v16  ;;  %v14890_v39 = vpop.permute.xlu1 %7645  ;;  %v17348_v16 = vld [vmem:[#allocation296_spill] sm:$0xff]  ;;  %vm17359_vm11 = vmmov %vm17357_vm9 }
 0x9d5   :  { %7651 = vrot.lane.b32.xlu0 %v14757_v22, %s9059_s15  ;;  %8633 = vmatprep.subr.mxu1 %v5696_v3  ;;  %v5348_v62 = vsel %vm17349_vm8, %v17348_v16, %v17347_v59  ;;  %v5347_v47 = vsel %vm17351_vm10, %v17328_v49, %v17348_v16  ;;  %vm17358_vm8 = vmmov %vm17354_vm12  ;;  %vm17362_vm10 = vcmask 1031168  }
 0x9d6   :  { %8567 = vmatpush1.msra.mxu0 %v5461_v60  ;;  %8634 = vmatpush1.msra.mxu1 %v5695_v52  ;;  %v14903_v14 = vpop.permute.xlu0 %7647  ;;  %v17352_v60 = vld [vmem:[#allocation122_spill] sm:$0xff] }
 0x9d7   :  { %7653 = vrot.lane.b32.xlu1 %v14764_v38, %s9059_s15  ;;  %8568 = vmatprep.subr.mxu0 %v5346_v21  ;;  %v17353_v52 = vld [vmem:[#allocation106_spill] sm:$0xff]  ;;  %v17355_v21 = vld [vmem:[#allocation16_spill] sm:$0xff] }
 0x9d8   :  { %8635 = vmatprep.subr.mxu1 %v5580_v58  ;;  %8569 = vmatpush1.msra.mxu0 %v5345_v51  ;;  %v14916_v63 = vpop.permute.xlu1 %7525  ;;  %v4998_v2 = vsel %vm17354_vm12, %v17353_v52, %v17352_v60  ;;  %v5232_v7 = vsel %vm17357_vm9, %v17356_v9, %v17355_v21  ;;  %v4997_v49 = vsel %vm17358_vm8, %v17258_v28, %v17353_v52  ;;  %vm17365_vm12 = vcmask 957440   ;;  %vm17366_vm9 = vmmov %vm17362_vm10 }
 0x9d9   :  { %7655 = vrot.lane.b32.xlu0 %v14848_v20, %s9059_s15  ;;  %8636 = vmatpush1.msra.mxu1 %v5579_v61  ;;  %v5231_v58 = vsel %vm17359_vm11, %v17336_v32, %v17356_v9  ;;  %v17360_v61 = vld [vmem:[#allocation175_spill] sm:$0xff]  ;;  %v4881_v32 = vsel %vm17366_vm9, %v17263_v43, %v17361_v24  ;;  %vm17367_vm8 = vmmov %vm17365_vm12  ;;  %vm17370_vm11 = vcmask 1039360  }
 0x9da   :  { %8570 = vmatprep.subr.mxu0 %v5230_v54  ;;  %8637 = vmatprep.subr.mxu1 %v5464_v30  ;;  %v4882_v54 = vsel %vm17362_vm10, %v17361_v24, %v17360_v61  ;;  %v17364_v30 = vld [vmem:[#allocation30_spill] sm:$0xff]  ;;  %vm17373_vm10 = vcmask 1022976   ;;  %v17376_v9 = vld [vmem:[#allocation135_spill] sm:$0xff] }
 0x9db   :  { %7533 = vrot.lane.b32.xlu1 %v14751_v5, %s9058_s14  ;;  %8571 = vmatpush1.msra.mxu0 %v5229_v41  ;;  %v14937_v17 = vpop.permute.xlu0 %7527  ;;  %v5116_v28 = vsel %vm17365_vm12, %v17364_v30, %v17363_v31  ;;  %v5115_v41 = vsel %vm17367_vm8, %v17344_v33, %v17364_v30  ;;  %vm17374_vm12 = vmmov %vm17370_vm11  ;;  %vm17378_vm8 = vcmask 1031168  }
 0x9dc   :  { %8638 = vmatpush1.msra.mxu1 %v5463_v48  ;;  %8572 = vmatprep.subr.mxu0 %v5114_v11  ;;  %v17369_v11 = vld [vmem:[#allocation187_spill] sm:$0xff]  ;;  %vm17375_vm9 = vmmov %vm17373_vm10 }
 0x9dd   :  { %7535 = vrot.lane.b32.xlu0 %v14757_v22, %s9058_s14  ;;  %8639 = vmatprep.subr.mxu1 %v5348_v62  ;;  %v14950_v3 = vpop.permute.xlu1 %7529  ;;  %v4766_v16 = vsel %vm17370_vm11, %v17369_v11, %v17368_v10  ;;  %v17371_v62 = vld [vmem:[#allocation90_spill] sm:$0xff]  ;;  %v4765_v43 = vsel %vm17374_vm12, %v17268_v12, %v17369_v11  ;;  %v7781_v12 = vsel %vm3499_vm1, %v14415_v46, %v14809_v56  ;;  %vm17379_vm11 = vmmov %vm17378_vm8  ;;  %v17382_v46 = vld [vmem:[#allocation172_spill] sm:$0xff] }
 0x9de   :  { %8573 = vmatpush1.msra.mxu0 %v5113_v34  ;;  %8640 = vmatpush1.msra.mxu1 %v5347_v47  ;;  %v17372_v34 = vld [vmem:[#allocation93_spill] sm:$0xff] }
 0x9df   :  { %7537 = vrot.lane.b32.xlu1 %v14764_v38, %s9058_s14  ;;  %8574 = vmatprep.subr.mxu0 %v4998_v2  ;;  %v5000_v47 = vsel %vm17373_vm10, %v17372_v34, %v17371_v62  ;;  %v4999_v33 = vsel %vm17375_vm9, %v17352_v60, %v17372_v34  ;;  %v7782_v2 = vsel %vm3499_vm1, %v14809_v56, %v14820_v42  ;;  %vm17380_vm10 = vcmask 277504   ;;  %v17383_v56 = vld [vmem:[#allocation215_spill] sm:$0xff] }
 0x9e0   :  { %8641 = vmatprep.subr.mxu1 %v5232_v7  ;;  %8575 = vmatpush1.msra.mxu0 %v4997_v49  ;;  %v14966_v51 = vpop.permute.xlu0 %7531  ;;  %v17377_v7 = vld [vmem:[#allocation132_spill] sm:$0xff]  ;;  %v7666_v24 = vsel %vm17380_vm10, %v14864_v50, %v14874_v45  ;;  %vm17381_vm12 = vmmov %vm17380_vm10  ;;  %vm17384_vm9 = vcmask 1039360  }
 0x9e1   :  { %8642 = vmatpush1.msra.mxu1 %v5231_v58  ;;  %7539 = vrot.lane.b32.xlu0 %v14848_v20, %s9058_s14  ;;  %v4884_v49 = vsel %vm17378_vm8, %v17377_v7, %v17376_v9  ;;  %v4883_v60 = vsel %vm17379_vm11, %v17360_v61, %v17377_v7  ;;  %v4768_v30 = vsel %vm17384_vm9, %v17383_v56, %v17382_v46  ;;  %vm17385_vm8 = vmmov %vm17384_vm9  ;;  %vm17386_vm11 = vcmask 285696  }
 0x9e2   :  { %8576 = vmatprep.subr.mxu0 %v4882_v54  ;;  %8643 = vmatprep.subr.mxu1 %v5116_v28  ;;  %v7410_v48 = vpop.permute.xlu1 %7409  ;;  %v7665_v54 = vsel %vm17381_vm12, %v14470_v57, %v14864_v50  ;;  %v4767_v61 = vsel %vm17385_vm8, %v17368_v10, %v17383_v56  ;;  %v7550_v57 = vsel %vm17386_vm11, %v14916_v63, %v14937_v17  ;;  %vm17387_vm10 = vmmov %vm17386_vm11  ;;  %vm17388_vm12 = vcmask 351232  }
 0x9e3   :  { %8577 = vmatpush1.msra.mxu0 %v4881_v32  ;;  %8644 = vmatpush1.msra.mxu1 %v5115_v41  ;;  %v7784_v50 = vsel %vm3499_vm1, %v14833_v0, %v14846_v37  ;;  %v7549_v32 = vsel %vm17387_vm10, %v14523_v13, %v14916_v63  ;;  %v7783_v41 = vsel %vm3499_vm1, %v14820_v42, %v14833_v0  ;;  %vm17389_vm9 = vmmov %vm17388_vm12  ;;  %vm17390_vm8 = vcmask 277504  }
 0x9e4   :  { %7417 = vrot.lane.b32.xlu1 %v14751_v5, %s9057_s21  ;;  %8578 = vmatprep.subr.mxu0 %v4766_v16  ;;  %v7433_v16 = vsel %vm17389_vm9, %v14574_v23, %v7410_v48  ;;  %v7668_v13 = vsel %vm17390_vm8, %v14890_v39, %v14903_v14  ;;  %vm17391_vm11 = vmmov %vm17390_vm8  ;;  %v7552_v23 = vsel %vm17387_vm10, %v14950_v3, %v14966_v51 }
 0x9e5   :  { %8645 = vmatprep.subr.mxu1 %v5000_v47  ;;  %8579 = vmatpush1.msra.mxu0 %v4765_v43  ;;  %v7412_v52 = vpop.permute.xlu0 %7411  ;;  %v7667_v42 = vsel %vm17391_vm11, %v14874_v45, %v14890_v39  ;;  %vm17393_vm9 = vmmov %vm17387_vm10  ;;  %vm17395_vm11 = vcmask 351232  }
 0x9e6   :  { %8646 = vmatpush1.msra.mxu1 %v4999_v33  ;;  %7419 = vrot.lane.b32.xlu0 %v14757_v22, %s9057_s21  ;;  %v7434_v11 = vsel %vm17388_vm12, %v7410_v48, %v7412_v52  ;;  %vm17392_vm12 = vcmask 359424   ;;  %v7551_v48 = vsel %vm17393_vm9, %v14937_v17, %v14950_v3  ;;  %vm17396_vm10 = vmmov %vm17395_vm11 }
 0x9e7   :  { %8590 = vmatprep.subr.mxu0 %v7782_v2  ;;  %8647 = vmatprep.subr.mxu1 %v4884_v49  ;;  %v7414_v58 = vpop.permute.xlu1 %7413  ;;  %vm17394_vm8 = vmmov %vm17392_vm12 }
 0x9e8   :  { %8591 = vmatpush2.msra.mxu0 %v7781_v12  ;;  %8648 = vmatpush1.msra.mxu1 %v4883_v60  ;;  %v7435_v47 = vsel %vm17396_vm10, %v7412_v52, %v7414_v58  ;;  %vm17398_vm9 = vmmov %vm17394_vm8 }
 0x9e9   :  { %7421 = vrot.lane.b32.xlu1 %v14764_v38, %s9057_s21  ;;  %8592 = vmatprep.subr.mxu0 %v7666_v24 }
 0x9ea   :  { %8649 = vmatprep.subr.mxu1 %v4768_v30  ;;  %8593 = vmatpush2.msra.mxu0 %v7665_v54  ;;  %v15024_v28 = vpop.permute.xlu0 %7415 }
 0x9eb   :  { %8650 = vmatpush1.msra.mxu1 %v4767_v61  ;;  %7423 = vrot.lane.b32.xlu0 %v14848_v20, %s9057_s21  ;;  %v7436_v39 = vsel %vm17395_vm11, %v7414_v58, %v15024_v28 }
 0x9ec   :  { %8594 = vmatprep.subr.mxu0 %v7550_v57  ;;  %8661 = vmatprep.subr.mxu1 %v7784_v50  ;;  %v7294_v10 = vpop.permute.xlu1 %7293 }
 0x9ed   :  { %8595 = vmatpush2.msra.mxu0 %v7549_v32  ;;  %8662 = vmatpush2.msra.mxu1 %v7783_v41  ;;  %v7317_v45 = vsel %vm17394_vm8, %v14620_v44, %v7294_v10 }
 0x9ee   :  { %7301 = vrot.lane.b32.xlu1 %v14751_v5, %s17070_s1  ;;  %8596 = vmatprep.subr.mxu0 %v7434_v11 }
 0x9ef   :  { %8663 = vmatprep.subr.mxu1 %v7668_v13  ;;  %8597 = vmatpush2.msra.mxu0 %v7433_v16  ;;  %v7296_v0 = vpop.permute.xlu0 %7295 }
 0x9f0   :  { %8664 = vmatpush2.msra.mxu1 %v7667_v42  ;;  %7303 = vrot.lane.b32.xlu0 %v14757_v22, %s17070_s1  ;;  %v7318_v63 = vsel %vm17392_vm12, %v7294_v10, %v7296_v0  ;;  %vm17397_vm12 = vmmov %vm17394_vm8  ;;  %vm17399_vm8 = vcmask 367616  }
 0x9f1   :  { %8665 = vmatprep.subr.mxu1 %v7552_v23  ;;  %v7298_v34 = vpop.permute.xlu1 %7297  ;;  %8598 = vmatprep.subr.mxu0 %v7318_v63  ;;  %vm17400_vm11 = vmmov %vm17399_vm8 }
 0x9f2   :  { %8666 = vmatpush2.msra.mxu1 %v7551_v48  ;;  %7305 = vrot.lane.b32.xlu1 %v14764_v38, %s17070_s1  ;;  %v7319_v17 = vsel %vm17398_vm9, %v7296_v0, %v7298_v34  ;;  %vm17401_vm10 = vmmov %vm17399_vm8  ;;  %vm17403_vm9 = vcmask 719872  }
 0x9f3   :  { %8667 = vmatprep.subr.mxu1 %v7436_v39  ;;  %8599 = vmatpush2.msra.mxu0 %v7317_v45  ;;  %v15067_v43 = vpop.permute.xlu0 %7299  ;;  %v6674_v39 = vld [vmem:[#allocation2 + $0x68] sm:$0xff] }
 0x9f4   :  { %8668 = vmatpush2.msra.mxu1 %v7435_v47  ;;  %7307 = vrot.lane.b32.xlu0 %v14848_v20, %s17070_s1  ;;  %v7320_v44 = vsel %vm17397_vm12, %v7298_v34, %v15067_v43  ;;  %vm17402_vm12 = vmmov %vm17399_vm8 }
 0x9f5   :  { %v7178_v3 = vpop.permute.xlu1 %7177  ;;  %8669 = vmatprep.subr.mxu1 %v7320_v44 }
 0x9f6   :  { %7185 = vrot.lane.b32.xlu1 %v14751_v5, %s17072_s27  ;;  %8670 = vmatpush2.msra.mxu1 %v7319_v17  ;;  %v7201_v2 = vsel %vm17400_vm11, %v14651_v18, %v7178_v3 }
 0x9f7   :  { %v7180_v33 = vpop.permute.xlu0 %7179 }
 0x9f8   :  { %7187 = vrot.lane.b32.xlu0 %v14757_v22, %s17072_s27  ;;  %v7202_v52 = vsel %vm17399_vm8, %v7178_v3, %v7180_v33  ;;  %vm17404_vm8 = vmmov %vm17403_vm9 }
 0x9f9   :  { %v7182_v7 = vpop.permute.xlu1 %7181  ;;  %8600 = vmatprep.subr.mxu0 %v7202_v52 }
 0x9fa   :  { %7189 = vrot.lane.b32.xlu1 %v14764_v38, %s17072_s27  ;;  %8601 = vmatpush2.msra.mxu0 %v7201_v2  ;;  %v7203_v60 = vsel %vm17402_vm12, %v7180_v33, %v7182_v7 }
 0x9fb   :  { %v15083_v49 = vpop.permute.xlu0 %7183 }
 0x9fc   :  { %7191 = vrot.lane.b32.xlu0 %v14848_v20, %s17072_s27  ;;  %v7204_v12 = vsel %vm17401_vm10, %v7182_v7, %v15083_v49 }
 0x9fd   :  { %v7062_v58 = vpop.permute.xlu1 %7061  ;;  %8671 = vmatprep.subr.mxu1 %v7204_v12 }
 0x9fe   :  { %7069 = vrot.lane.b32.xlu1 %v14751_v5, %s17077_s0  ;;  %8672 = vmatpush2.msra.mxu1 %v7203_v60  ;;  %v7085_v54 = vsel %vm2797_vm0, %v14667_v36, %v7062_v58 }
 0x9ff   :  { %v7064_v18 = vpop.permute.xlu0 %7063 }
 0xa00   :  { %7071 = vrot.lane.b32.xlu0 %v14757_v22, %s17077_s0  ;;  %v7086_v24 = vsel %vm2797_vm0, %v7062_v58, %v7064_v18  ;;  %v8255_v58 = vld [vmem:[%s15494_s5] sm:$0xff] }
 0xa01   :  { %v7066_v56 = vpop.permute.xlu1 %7065  ;;  %8602 = vmatprep.subr.mxu0 %v7086_v24 }
 0xa02   :  { %7073 = vrot.lane.b32.xlu1 %v14764_v38, %s17077_s0  ;;  %8603 = vmatpush2.msra.mxu0 %v7085_v54  ;;  %v7087_v57 = vsel %vm2797_vm0, %v7064_v18, %v7066_v56  ;;  %v15167_v18 = vld [vmem:[%s15493_s3] sm:$0xff] }
 0xa03   :  { %v15099_v30 = vpop.permute.xlu0 %7067 }
 0xa04   :  { %7075 = vrot.lane.b32.xlu0 %v14848_v20, %s17077_s0  ;;  %v7088_v61 = vsel %vm2797_vm0, %v7066_v56, %v15099_v30 }
 0xa05   :  { %v6946_v50 = vpop.permute.xlu1 %6945  ;;  %8673 = vmatprep.subr.mxu1 %v7088_v61 }
 0xa06   :  { %6953 = vrot.lane.b32.xlu1 %v14751_v5, %s17082_s22  ;;  %8674 = vmatpush2.msra.mxu1 %v7087_v57  ;;  %v6969_v41 = vsel %vm2680_vm2, %v14683_v29, %v6946_v50 }
 0xa07   :  { %v6948_v36 = vpop.permute.xlu0 %6947 }
 0xa08   :  { %6955 = vrot.lane.b32.xlu0 %v14757_v22, %s17082_s22  ;;  %v6970_v32 = vsel %vm2680_vm2, %v6946_v50, %v6948_v36 }
 0xa09   :  { %v6950_v10 = vpop.permute.xlu1 %6949  ;;  %8604 = vmatprep.subr.mxu0 %v6970_v32 }
 0xa0a   :  { %6957 = vrot.lane.b32.xlu1 %v14764_v38, %s17082_s22  ;;  %8605 = vmatpush2.msra.mxu0 %v6969_v41  ;;  %v6971_v13 = vsel %vm2680_vm2, %v6948_v36, %v6950_v10 }
 0xa0b   :  { %v15115_v11 = vpop.permute.xlu0 %6951 }
 0xa0c   :  { %6959 = vrot.lane.b32.xlu0 %v14848_v20, %s17082_s22  ;;  %v6972_v16 = vsel %vm2680_vm2, %v6950_v10, %v15115_v11 }
 0xa0d   :  { %v6830_v42 = vpop.permute.xlu1 %6829  ;;  %8675 = vmatprep.subr.mxu1 %v6972_v16 }
 0xa0e   :  { %6837 = vrot.lane.b32.xlu1 %v14751_v5, %s17087_s23  ;;  %8676 = vmatpush2.msra.mxu1 %v6971_v13  ;;  %v6853_v23 = vsel %vm2563_vm15, %v14699_v55, %v6830_v42 }
 0xa0f   :  { %v6832_v29 = vpop.permute.xlu0 %6831 }
 0xa10   :  { %6839 = vrot.lane.b32.xlu0 %v14757_v22, %s17087_s23  ;;  %v6854_v0 = vsel %vm2563_vm15, %v6830_v42, %v6832_v29 }
 0xa11   :  { %v6834_v63 = vpop.permute.xlu1 %6833  ;;  %8606 = vmatprep.subr.mxu0 %v6854_v0 }
 0xa12   :  { %6841 = vrot.lane.b32.xlu1 %v14764_v38, %s17087_s23  ;;  %8607 = vmatpush2.msra.mxu0 %v6853_v23  ;;  %v6855_v45 = vsel %vm2563_vm15, %v6832_v29, %v6834_v63 }
 0xa13   :  { %v15131_v48 = vpop.permute.xlu0 %6835 }
 0xa14   :  { %6843 = vrot.lane.b32.xlu0 %v14848_v20, %s17087_s23  ;;  %v6856_v34 = vsel %vm2563_vm15, %v6834_v63, %v15131_v48 }
 0xa15   :  { %v6714_v47 = vpop.permute.xlu1 %6713  ;;  %8677 = vmatprep.subr.mxu1 %v6856_v34 }
 0xa16   :  { %6721 = vrot.lane.b32.xlu1 %v6674_v39, %s17089_s24  ;;  %8678 = vmatpush2.msra.mxu1 %v6855_v45  ;;  %v6737_v20 = vsel %vm2446_vm14, %v14715_v8, %v6714_v47 }
 0xa17   :  { %v6716_v55 = vpop.permute.xlu0 %6715 }
 0xa18   :  { %6723 = vrot.lane.b32.xlu0 %v14751_v5, %s17089_s24  ;;  %v6738_v44 = vsel %vm2446_vm14, %v6714_v47, %v6716_v55  ;;  %v17406_v47 = vld [vmem:[#allocation53_spill] sm:$0xff] }
 0xa19   :  { %v6718_v17 = vpop.permute.xlu1 %6717  ;;  %8608 = vmatprep.subr.mxu0 %v6738_v44 }
 0xa1a   :  { %6725 = vrot.lane.b32.xlu1 %v14757_v22, %s17089_s24  ;;  %8609 = vmatpush2.msra.mxu0 %v6737_v20  ;;  %v6739_v52 = vsel %vm2446_vm14, %v6716_v55, %v6718_v17  ;;  %v6161_v20 = vsel %vm1861_vm6, %v17296_v19, %v17406_v47  ;;  %v17409_v19 = vld [vmem:[#allocation97_spill] sm:$0xff] }
 0xa1b   :  { %v15146_v3 = vpop.permute.xlu0 %6719 }
 0xa1c   :  { %6727 = vrot.lane.b32.xlu0 %v14764_v38, %s17089_s24  ;;  %v6740_v33 = vsel %vm2446_vm14, %v6718_v17, %v15146_v3  ;;  %v17407_v17 = vld [vmem:[#allocation99_spill] sm:$0xff] }
 0xa1d   :  { %v6598_v2 = vpop.permute.xlu1 %6597  ;;  %8679 = vmatprep.subr.mxu1 %v6740_v33  ;;  %v17408_v33 = vld [vmem:[#allocation51_spill] sm:$0xff] }
 0xa1e   :  { %6605 = vrot.lane.b32.xlu1 %v6674_v39, %s17090_s25  ;;  %8680 = vmatpush2.msra.mxu1 %v6739_v52  ;;  %v6621_v12 = vsel %vm2329_vm13, %v14731_v27, %v6598_v2  ;;  %v6046_v52 = vsel %vm1744_vm7, %v17408_v33, %v17407_v17 }
 0xa1f   :  { %v6600_v8 = vpop.permute.xlu0 %6599 }
 0xa20   :  { %6607 = vrot.lane.b32.xlu0 %v14751_v5, %s17090_s25  ;;  %v6622_v7 = vsel %vm2329_vm13, %v6598_v2, %v6600_v8 }
 0xa21   :  { %v6602_v60 = vpop.permute.xlu1 %6601  ;;  %8610 = vmatprep.subr.mxu0 %v6622_v7  ;;  %v6045_v7 = vsel %vm1744_vm7, %v17302_v6, %v17408_v33 }
 0xa22   :  { %6609 = vrot.lane.b32.xlu1 %v14757_v22, %s17090_s25  ;;  %8611 = vmatpush2.msra.mxu0 %v6621_v12  ;;  %v9031_v22 = vld [vmem:[%s15493_s3 + $0x8] sm:$0xff]  ;;  %v6623_v24 = vsel %vm2329_vm13, %v6600_v8, %v6602_v60  ;;  %v17410_v12 = vld [vmem:[#allocation141_spill] sm:$0xff] }
 0xa23   :  { %8613 = vmatmul.mubr.f32.vlgmr.msra.gmra.mxu0 %v15167_v18  ;;  %v15170_v5 = vpop.permute.xlu0 %6603 }
 0xa24   :  { %6611 = vrot.lane.b32.xlu0 %v14764_v38, %s17090_s25  ;;  %v6624_v27 = vsel %vm2329_vm13, %v6602_v60, %v15170_v5  ;;  %8994 = vmatprep.mubr.msk.f32.mxu0 %vm17403_vm9, %v9031_v22  ;;  %vm17431_vm9 = vcmask 867328  }
 0xa25   :  { %v6490_v54 = vpop.permute.xlu1 %6489  ;;  %8681 = vmatprep.subr.mxu1 %v6624_v27  ;;  %v17413_v27 = vld [vmem:[#allocation36_spill] sm:$0xff] }
 0xa26   :  { %8258 = vperm.xlu1 %9026, %v8255_v58   ;;  %8682 = vmatpush2.msra.mxu1 %v6623_v24  ;;  %v6509_v61 = vsel %vm2212_vm3, %v14755_v4, %v6490_v54  ;;  %v17412_v58 = vld [vmem:[#allocation322_spill] sm:$0xff] }
 0xa27   :  { %8684 = vmatmul.mubr.f32.vlgmr.msra.gmra.mxu1 %v15167_v18  ;;  %v6492_v56 = vpop.permute.xlu0 %6491 }
 0xa28   :  { %v6510_v38 = vsel %vm2212_vm3, %v6490_v54, %v6492_v56  ;;  %8995 = vmatprep.mubr.msk.f32.mxu1 %vm17404_vm8, %v9031_v22  ;;  %v6164_v22 = vsel %vm1861_vm6, %v17413_v27, %v17412_v58 }
 0xa29   :  { %v6494_v57 = vpop.permute.xlu1 %6493  ;;  %8690 = vmatprep.subr.mxu0 %v6510_v38  ;;  %v17416_v38 = vld [vmem:[#allocation139_spill] sm:$0xff] }
 0xa2a   :  { %8691 = vmatpush1.msra.mxu0 %v6509_v61  ;;  %v6511_v32 = vsel %vm2212_vm3, %v6492_v56, %v6494_v57  ;;  %v17415_v56 = vld [vmem:[#allocation179_spill] sm:$0xff] }
 0xa2b   :  { %v6496_v50 = vpop.permute.xlu0 %6495 }
 0xa2c   :  { %v6512_v36 = vsel %vm2212_vm3, %v6494_v57, %v6496_v50  ;;  %vm17411_vm3 = vcmask 211968   ;;  %v17418_v57 = vld [vmem:[#allocation48_spill] sm:$0xff]  ;;  %v17419_v50 = vld [vmem:[#allocation85_spill] sm:$0xff] }
 0xa2d   :  { %v6374_v41 = vpop.permute.xlu1 %6373  ;;  %8761 = vmatprep.subr.mxu1 %v6512_v36  ;;  %v5930_v60 = vsel %vm17411_vm3, %v17410_v12, %v17409_v19  ;;  %v6048_v36 = vsel %vm1744_vm7, %v17419_v50, %v17418_v57  ;;  %vm17426_vm10 = vmmov %vm17411_vm3 }
 0xa2e   :  { %8762 = vmatpush1.msra.mxu1 %v6511_v32  ;;  %v6393_v13 = vsel %vm2095_vm4, %v14775_v25, %v6374_v41  ;;  %v17405_v25 = vld [vmem:[#allocation37_spill] sm:$0xff] }
 0xa2f   :  { %v6376_v10 = vpop.permute.xlu0 %6375  ;;  %v6162_v55 = vsel %vm1861_vm6, %v17406_v47, %v17405_v25  ;;  %v6163_v6 = vsel %vm1861_vm6, %v17405_v25, %v17413_v27  ;;  %vm17423_vm6 = vcmask 859136   ;;  %v17433_v25 = vld [vmem:[#allocation167_spill] sm:$0xff]  ;;  %v17448_v27 = vld [vmem:[#allocation56_spill] sm:$0xff] }
 0xa30   :  { %v6394_v16 = vsel %vm2095_vm4, %v6374_v41, %v6376_v10  ;;  %v6047_v41 = vsel %vm1744_vm7, %v17407_v17, %v17419_v50  ;;  %vm17427_vm12 = vmmov %vm17423_vm6  ;;  %v17438_v17 = vld [vmem:[#allocation261_spill] sm:$0xff]  ;;  %v17456_v50 = vld [vmem:[#allocation247_spill] sm:$0xff] }
 0xa31   :  { %v6378_v42 = vpop.permute.xlu1 %6377  ;;  %8692 = vmatprep.subr.mxu0 %v6394_v16  ;;  %v17422_v16 = vld [vmem:[#allocation219_spill] sm:$0xff]  ;;  %vm17428_vm7 = vmmov %vm17411_vm3 }
 0xa32   :  { %8693 = vmatpush1.msra.mxu0 %v6393_v13  ;;  %v6395_v0 = vsel %vm2095_vm4, %v6376_v10, %v6378_v42  ;;  %v17421_v10 = vld [vmem:[#allocation177_spill] sm:$0xff] }
 0xa33   :  { %v6380_v4 = vpop.permute.xlu0 %6379  ;;  %v5698_v13 = vsel %vm17423_vm6, %v17422_v16, %v17421_v10 }
 0xa34   :  { %v6396_v29 = vsel %vm2095_vm4, %v6378_v42, %v6380_v4  ;;  %vm17414_vm4 = vmmov %vm17411_vm3  ;;  %v17424_v42 = vld [vmem:[#allocation126_spill] sm:$0xff]  ;;  %v17425_v4 = vld [vmem:[#allocation96_spill] sm:$0xff] }
 0xa35   :  { %v6258_v23 = vpop.permute.xlu1 %6257  ;;  %8763 = vmatprep.subr.mxu1 %v6396_v29  ;;  %v5929_v54 = vsel %vm17414_vm4, %v17308_v15, %v17410_v12  ;;  %v5932_v29 = vsel %vm17426_vm10, %v17425_v4, %v17424_v42  ;;  %vm17435_vm3 = vmmov %vm17431_vm9  ;;  %v17445_v12 = vld [vmem:[#allocation297_spill] sm:$0xff] }
 0xa36   :  { %8764 = vmatpush1.msra.mxu1 %v6395_v0  ;;  %v6277_v45 = vsel %vm1978_vm5, %v14794_v40, %v6258_v23 }
 0xa37   :  { %v6260_v63 = vpop.permute.xlu0 %6259 }
 0xa38   :  { %v6278_v34 = vsel %vm1978_vm5, %v6258_v23, %v6260_v63  ;;  %v5931_v23 = vsel %vm17428_vm7, %v17409_v19, %v17425_v4  ;;  %vm17450_vm7 = vmmov %vm17435_vm3  ;;  %v17464_v4 = vld [vmem:[#allocation257_spill] sm:$0xff] }
 0xa39   :  { %v6262_v39 = vpop.permute.xlu1 %6261  ;;  %8694 = vmatprep.subr.mxu0 %v6278_v34  ;;  %v17430_v34 = vld [vmem:[#allocation226_spill] sm:$0xff] }
 0xa3a   :  { %8695 = vmatpush1.msra.mxu0 %v6277_v45  ;;  %v6279_v2 = vsel %vm1978_vm5, %v6260_v63, %v6262_v39  ;;  %v17429_v63 = vld [vmem:[#allocation225_spill] sm:$0xff] }
 0xa3b   :  { %8696 = vmatprep.subr.mxu0 %v6162_v55  ;;  %v6264_v44 = vpop.permute.xlu0 %6263  ;;  %v5582_v45 = vsel %vm17431_vm9, %v17430_v34, %v17429_v63 }
 0xa3c   :  { %8697 = vmatpush1.msra.mxu0 %v6161_v20  ;;  %v6280_v40 = vsel %vm1978_vm5, %v6262_v39, %v6264_v44  ;;  %vm17417_vm5 = vcmask 220160   ;;  %v17432_v39 = vld [vmem:[#allocation136_spill] sm:$0xff]  ;;  %v17437_v20 = vld [vmem:[#allocation27_spill] sm:$0xff] }
 0xa3d   :  { %v15207_v8 = vpop.permute.xlu1 %7765  ;;  %8698 = vmatprep.subr.mxu0 %v6046_v52  ;;  %8765 = vmatprep.subr.mxu1 %v6280_v40  ;;  %v5814_v61 = vsel %vm17417_vm5, %v17416_v38, %v17415_v56  ;;  %vm17420_vm11 = vmmov %vm17417_vm5  ;;  %v17440_v52 = vld [vmem:[#allocation204_spill] sm:$0xff] }
 0xa3e   :  { %8699 = vmatpush1.msra.mxu0 %v6045_v7  ;;  %8766 = vmatpush1.msra.mxu1 %v6279_v2  ;;  %v5813_v15 = vsel %vm17420_vm11, %v17315_v53, %v17416_v38  ;;  %v5697_v53 = vsel %vm17427_vm12, %v17323_v1, %v17422_v16  ;;  %vm17434_vm8 = vmmov %vm17417_vm5  ;;  %v5581_v1 = vsel %vm17435_vm3, %v17331_v26, %v17430_v34  ;;  %v17441_v40 = vld [vmem:[#allocation176_spill] sm:$0xff]  ;;  %vm17447_vm12 = vcmask 941056   ;;  %v17453_v38 = vld [vmem:[#allocation306_spill] sm:$0xff] }
 0xa3f   :  { %8700 = vmatprep.subr.mxu0 %v5930_v60  ;;  %8767 = vmatprep.subr.mxu1 %v6164_v22  ;;  %v15218_v24 = vpop.permute.xlu0 %7767  ;;  %v5816_v47 = vsel %vm17434_vm8, %v17433_v25, %v17432_v39  ;;  %vm17436_vm4 = vmmov %vm17417_vm5  ;;  %vm17439_vm5 = vcmask 875520   ;;  %v17446_v60 = vld [vmem:[#allocation259_spill] sm:$0xff]  ;;  %v17449_v22 = vld [vmem:[#allocation72_spill] sm:$0xff] }
 0xa40   :  { %8701 = vmatpush1.msra.mxu0 %v5929_v54  ;;  %8768 = vmatpush1.msra.mxu1 %v6163_v6  ;;  %v5815_v44 = vsel %vm17436_vm4, %v17415_v56, %v17433_v25  ;;  %v5466_v33 = vsel %vm17439_vm5, %v17438_v17, %v17437_v20  ;;  %vm17442_vm11 = vmmov %vm17423_vm6  ;;  %v5350_v58 = vsel %vm17447_vm12, %v17446_v60, %v17445_v12  ;;  %v17461_v16 = vld [vmem:[#allocation31_spill] sm:$0xff]  ;;  %v17469_v34 = vld [vmem:[#allocation76_spill] sm:$0xff] }
 0xa41   :  { %v15232_v32 = vpop.permute.xlu1 %7769  ;;  %8702 = vmatprep.subr.mxu0 %v5814_v61  ;;  %8769 = vmatprep.subr.mxu1 %v6048_v36  ;;  %v5700_v2 = vsel %vm17442_vm11, %v17441_v40, %v17440_v52  ;;  %vm17443_vm6 = vmmov %vm17439_vm5  ;;  %v5584_v54 = vsel %vm17450_vm7, %v17449_v22, %v17448_v27  ;;  %v17454_v61 = vld [vmem:[#allocation19_spill] sm:$0xff]  ;;  %v17457_v36 = vld [vmem:[#allocation26_spill] sm:$0xff] }
 0xa42   :  { %8703 = vmatpush1.msra.mxu0 %v5813_v15  ;;  %8770 = vmatpush1.msra.mxu1 %v6047_v41  ;;  %v5465_v26 = vsel %vm17443_vm6, %v17339_v35, %v17438_v17  ;;  %vm17444_vm10 = vmmov %vm17442_vm11  ;;  %vm17463_vm6 = vcmask 957440   ;;  %v17472_v25 = vld [vmem:[#allocation294_spill] sm:$0xff]  ;;  %v17477_v17 = vld [vmem:[#allocation163_spill] sm:$0xff] }
 0xa43   :  { %8704 = vmatprep.subr.mxu0 %v5698_v13  ;;  %8771 = vmatprep.subr.mxu1 %v5932_v29  ;;  %v15246_v0 = vpop.permute.xlu0 %7771  ;;  %v5699_v19 = vsel %vm17444_vm10, %v17421_v10, %v17441_v40  ;;  %vm17451_vm9 = vmmov %vm17447_vm12  ;;  %v17462_v13 = vld [vmem:[#allocation62_spill] sm:$0xff]  ;;  %v17465_v29 = vld [vmem:[#allocation285_spill] sm:$0xff] }
 0xa44   :  { %8705 = vmatpush1.msra.mxu0 %v5697_v53  ;;  %8772 = vmatpush1.msra.mxu1 %v5931_v23  ;;  %v5349_v35 = vsel %vm17451_vm9, %v17347_v59, %v17446_v60  ;;  %vm17452_vm8 = vmmov %vm17435_vm3  ;;  %vm17455_vm3 = vcmask 949248   ;;  %v5118_v42 = vsel %vm17463_vm6, %v17462_v13, %v17461_v16  ;;  %v17480_v40 = vld [vmem:[#allocation63_spill] sm:$0xff]  ;;  %v17485_v60 = vld [vmem:[#allocation200_spill] sm:$0xff] }
 0xa45   :  { %v15260_v55 = vpop.permute.xlu1 %7649  ;;  %8706 = vmatprep.subr.mxu0 %v5582_v45  ;;  %8773 = vmatprep.subr.mxu1 %v5816_v47  ;;  %v5583_v56 = vsel %vm17452_vm8, %v17429_v63, %v17449_v22  ;;  %v5234_v57 = vsel %vm17455_vm3, %v17454_v61, %v17453_v38  ;;  %vm17458_vm4 = vmmov %vm17439_vm5  ;;  %v17470_v45 = vld [vmem:[#allocation123_spill] sm:$0xff]  ;;  %v17473_v47 = vld [vmem:[#allocation308_spill] sm:$0xff] }
 0xa46   :  { %8707 = vmatpush1.msra.mxu0 %v5581_v1  ;;  %8774 = vmatpush1.msra.mxu1 %v5815_v44  ;;  %v5468_v15 = vsel %vm17458_vm4, %v17457_v36, %v17456_v50  ;;  %vm17459_vm5 = vmmov %vm17455_vm3  ;;  %v17488_v22 = vld [vmem:[#allocation107_spill] sm:$0xff]  ;;  %v17494_v50 = vld [vmem:[#allocation120_spill] sm:$0xff] }
 0xa47   :  { %8708 = vmatprep.subr.mxu0 %v5466_v33  ;;  %8775 = vmatprep.subr.mxu1 %v5700_v2  ;;  %v15274_v7 = vpop.permute.xlu0 %7651  ;;  %v5233_v59 = vsel %vm17459_vm5, %v17355_v21, %v17454_v61  ;;  %vm17460_vm11 = vmmov %vm17458_vm4  ;;  %v17478_v33 = vld [vmem:[#allocation160_spill] sm:$0xff]  ;;  %v7786_v61 = vsel %vm3499_vm1, %v15207_v8, %v15218_v24 }
 0xa48   :  { %8709 = vmatpush1.msra.mxu0 %v5465_v26  ;;  %8776 = vmatpush1.msra.mxu1 %v5699_v19  ;;  %v5467_v10 = vsel %vm17460_vm11, %v17437_v20, %v17457_v36  ;;  %vm17466_vm10 = vmmov %vm17451_vm9  ;;  %v17481_v2 = vld [vmem:[#allocation28_spill] sm:$0xff] }
 0xa49   :  { %v15288_v6 = vpop.permute.xlu1 %7653  ;;  %8710 = vmatprep.subr.mxu0 %v5350_v58  ;;  %8777 = vmatprep.subr.mxu1 %v5584_v54  ;;  %v5352_v53 = vsel %vm17466_vm10, %v17465_v29, %v17464_v4  ;;  %vm17467_vm12 = vmmov %vm17463_vm6  ;;  %v17486_v58 = vld [vmem:[#allocation185_spill] sm:$0xff]  ;;  %v17489_v54 = vld [vmem:[#allocation79_spill] sm:$0xff] }
 0xa4a   :  { %8711 = vmatpush1.msra.mxu0 %v5349_v35  ;;  %8778 = vmatpush1.msra.mxu1 %v5583_v56  ;;  %v5117_v21 = vsel %vm17467_vm12, %v17363_v31, %v17462_v13  ;;  %vm17468_vm7 = vmmov %vm17451_vm9  ;;  %vm17471_vm9 = vcmask 1022976   ;;  %vm17487_vm12 = vcmask 1039360   ;;  %v17499_v13 = vld [vmem:[#allocation173_spill] sm:$0xff] }
 0xa4b   :  { %8712 = vmatprep.subr.mxu0 %v5234_v57  ;;  %8779 = vmatprep.subr.mxu1 %v5468_v15  ;;  %v15302_v41 = vpop.permute.xlu0 %7655  ;;  %v5351_v63 = vsel %vm17468_vm7, %v17445_v12, %v17465_v29  ;;  %v5002_v39 = vsel %vm17471_vm9, %v17470_v45, %v17469_v34  ;;  %vm17474_vm8 = vmmov %vm17455_vm3  ;;  %v4770_v27 = vsel %vm17487_vm12, %v17486_v58, %v17485_v60  ;;  %v17493_v57 = vld [vmem:[#allocation133_spill] sm:$0xff] }
 0xa4c   :  { %8713 = vmatpush1.msra.mxu0 %v5233_v59  ;;  %8780 = vmatpush1.msra.mxu1 %v5467_v10  ;;  %v5236_v1 = vsel %vm17474_vm8, %v17473_v47, %v17472_v25  ;;  %vm17475_vm3 = vmmov %vm17471_vm9  ;;  %v7785_v15 = vsel %vm3499_vm1, %v14846_v37, %v15207_v8 }
 0xa4d   :  { %v7534_v23 = vpop.permute.xlu1 %7533  ;;  %8714 = vmatprep.subr.mxu0 %v5118_v42  ;;  %8781 = vmatprep.subr.mxu1 %v5352_v53  ;;  %v5001_v31 = vsel %vm17475_vm3, %v17371_v62, %v17470_v45  ;;  %vm17476_vm4 = vmmov %vm17459_vm5  ;;  %vm17479_vm5 = vcmask 1031168   ;;  %v7788_v53 = vsel %vm3499_vm1, %v15232_v32, %v15246_v0 }
 0xa4e   :  { %8715 = vmatpush1.msra.mxu0 %v5117_v21  ;;  %8782 = vmatpush1.msra.mxu1 %v5351_v63  ;;  %v5235_v20 = vsel %vm17476_vm4, %v17453_v38, %v17473_v47  ;;  %v4886_v52 = vsel %vm17479_vm5, %v17478_v33, %v17477_v17  ;;  %vm17482_vm11 = vmmov %vm17463_vm6  ;;  %v7787_v21 = vsel %vm3499_vm1, %v15218_v24, %v15232_v32 }
 0xa4f   :  { %8716 = vmatprep.subr.mxu0 %v5002_v39  ;;  %8783 = vmatprep.subr.mxu1 %v5236_v1  ;;  %v7536_v44 = vpop.permute.xlu0 %7535  ;;  %v5120_v26 = vsel %vm17482_vm11, %v17481_v2, %v17480_v40  ;;  %vm17483_vm6 = vmmov %vm17479_vm5 }
 0xa50   :  { %8717 = vmatpush1.msra.mxu0 %v5001_v31  ;;  %8784 = vmatpush1.msra.mxu1 %v5235_v20  ;;  %v4885_v62 = vsel %vm17483_vm6, %v17376_v9, %v17478_v33  ;;  %vm17484_vm10 = vmmov %vm17482_vm11 }
 0xa51   :  { %v7538_v19 = vpop.permute.xlu1 %7537  ;;  %8718 = vmatprep.subr.mxu0 %v4886_v52  ;;  %8785 = vmatprep.subr.mxu1 %v5120_v26  ;;  %v5119_v12 = vsel %vm17484_vm10, %v17461_v16, %v17481_v2  ;;  %vm17490_vm7 = vmmov %vm17475_vm3  ;;  %v17498_v16 = vld [vmem:[#allocation171_spill] sm:$0xff] }
 0xa52   :  { %8719 = vmatpush1.msra.mxu0 %v4885_v62  ;;  %8786 = vmatpush1.msra.mxu1 %v5119_v12  ;;  %v5004_v35 = vsel %vm17490_vm7, %v17489_v54, %v17488_v22  ;;  %vm17491_vm9 = vmmov %vm17487_vm12  ;;  %vm17503_vm12 = vcmask 285696  }
 0xa53   :  { %8720 = vmatprep.subr.mxu0 %v4770_v27  ;;  %8787 = vmatprep.subr.mxu1 %v5004_v35  ;;  %v7540_v56 = vpop.permute.xlu0 %7539  ;;  %v4769_v9 = vsel %vm17491_vm9, %v17382_v46, %v17486_v58  ;;  %vm17492_vm8 = vmmov %vm17475_vm3  ;;  %v7554_v29 = vsel %vm17503_vm12, %v7534_v23, %v7536_v44 }
 0xa54   :  { %v5003_v38 = vsel %vm17492_vm8, %v17469_v34, %v17489_v54  ;;  %8721 = vmatpush1.msra.mxu0 %v4769_v9  ;;  %vm17495_vm3 = vmmov %vm17479_vm5  ;;  %vm17497_vm5 = vcmask 277504  }
 0xa55   :  { %8788 = vmatpush1.msra.mxu1 %v5003_v38  ;;  %v4888_v36 = vsel %vm17495_vm3, %v17494_v50, %v17493_v57  ;;  %8732 = vmatprep.subr.mxu0 %v7786_v61  ;;  %vm17496_vm4 = vmmov %vm17495_vm3  ;;  %v7670_v10 = vsel %vm17497_vm5, %v15260_v55, %v15274_v7 }
 0xa56   :  { %8789 = vmatprep.subr.mxu1 %v4888_v36  ;;  %v4887_v46 = vsel %vm17496_vm4, %v17477_v17, %v17494_v50  ;;  %v7418_v59 = vpop.permute.xlu1 %7417  ;;  %8733 = vmatpush2.msra.mxu0 %v7785_v15  ;;  %vm17500_vm11 = vmmov %vm17491_vm9 }
 0xa57   :  { %8790 = vmatpush1.msra.mxu1 %v4887_v46  ;;  %v4772_v42 = vsel %vm17500_vm11, %v17499_v13, %v17498_v16  ;;  %vm17501_vm6 = vmmov %vm17497_vm5  ;;  %8734 = vmatprep.subr.mxu0 %v7670_v10 }
 0xa58   :  { %v7669_v37 = vsel %vm17501_vm6, %v14903_v14, %v15260_v55  ;;  %8791 = vmatprep.subr.mxu1 %v4772_v42  ;;  %vm17502_vm10 = vmmov %vm17491_vm9  ;;  %v7420_v4 = vpop.permute.xlu0 %7419  ;;  %vm17505_vm9 = vcmask 351232  }
 0xa59   :  { %v4771_v8 = vsel %vm17502_vm10, %v17485_v60, %v17499_v13  ;;  %8735 = vmatpush2.msra.mxu0 %v7669_v37  ;;  %vm17504_vm7 = vmmov %vm17503_vm12  ;;  %v7438_v55 = vsel %vm17505_vm9, %v7418_v59, %v7420_v4  ;;  %vm17513_vm10 = vcmask 359424  }
 0xa5a   :  { %8792 = vmatpush1.msra.mxu1 %v4771_v8  ;;  %v7553_v14 = vsel %vm17504_vm7, %v14966_v51, %v7534_v23  ;;  %8736 = vmatprep.subr.mxu0 %v7554_v29  ;;  %vm17506_vm8 = vmmov %vm17497_vm5 }
 0xa5b   :  { %8803 = vmatprep.subr.mxu1 %v7788_v53  ;;  %8737 = vmatpush2.msra.mxu0 %v7553_v14  ;;  %v7672_v63 = vsel %vm17506_vm8, %v15288_v6, %v15302_v41  ;;  %vm17507_vm3 = vmmov %vm17497_vm5  ;;  %v7422_v32 = vpop.permute.xlu1 %7421  ;;  %vm17517_vm8 = vcmask 367616  }
 0xa5c   :  { %8804 = vmatpush2.msra.mxu1 %v7787_v21  ;;  %v7671_v0 = vsel %vm17507_vm3, %v15274_v7, %v15288_v6  ;;  %vm17508_vm4 = vmmov %vm17505_vm9  ;;  %8738 = vmatprep.subr.mxu0 %v7438_v55 }
 0xa5d   :  { %v7437_v24 = vsel %vm17508_vm4, %v15024_v28, %v7418_v59  ;;  %8805 = vmatprep.subr.mxu1 %v7672_v63  ;;  %vm17509_vm1 = vmmov %vm17504_vm7  ;;  %v7424_v34 = vpop.permute.xlu0 %7423  ;;  %v8330_v63 = vpop.f32.mrf.mxu0 }
 0xa5e   :  { %8739 = vmatpush2.msra.mxu0 %v7437_v24  ;;  %8806 = vmatpush2.msra.mxu1 %v7671_v0  ;;  %v7556_v51 = vsel %vm17509_vm1, %v7538_v19, %v7540_v56  ;;  %vm17510_vm5 = vmmov %vm17509_vm1 }
 0xa5f   :  { %v7555_v23 = vsel %vm17510_vm5, %v7536_v44, %v7538_v19  ;;  %8807 = vmatprep.subr.mxu1 %v7556_v51  ;;  %vm17511_vm11 = vmmov %vm17508_vm4 }
 0xa60   :  { %8808 = vmatpush2.msra.mxu1 %v7555_v23  ;;  %v7440_v41 = vsel %vm17511_vm11, %v7422_v32, %v7424_v34  ;;  %vm17512_vm6 = vmmov %vm17508_vm4  ;;  %v7302_v7 = vpop.permute.xlu1 %7301  ;;  %v8332_v23 = vpop.f32.mrf.mxu0 }
 0xa61   :  { %v7439_v45 = vsel %vm17512_vm6, %v7420_v4, %v7422_v32  ;;  %8809 = vmatprep.subr.mxu1 %v7440_v41  ;;  %vm17514_vm12 = vmmov %vm17513_vm10 }
 0xa62   :  { %8810 = vmatpush2.msra.mxu1 %v7439_v45  ;;  %v7304_v28 = vpop.permute.xlu0 %7303  ;;  %v7321_v39 = vsel %vm17514_vm12, %v15067_v43, %v7302_v7  ;;  %vm17515_vm7 = vmmov %vm17513_vm10 }
 0xa63   :  { %v7322_v6 = vsel %vm17513_vm10, %v7302_v7, %v7304_v28  ;;  %vm17516_vm9 = vmmov %vm17515_vm7 }
 0xa64   :  { %v7306_v25 = vpop.permute.xlu1 %7305  ;;  %8740 = vmatprep.subr.mxu0 %v7322_v6  ;;  %vm17518_vm3 = vmmov %vm17517_vm8 }
 0xa65   :  { %8741 = vmatpush2.msra.mxu0 %v7321_v39  ;;  %v7323_v44 = vsel %vm17516_vm9, %v7304_v28, %v7306_v25  ;;  %vm17519_vm4 = vmmov %vm17518_vm3 }
 0xa66   :  { %v7308_v47 = vpop.permute.xlu0 %7307  ;;  %vm17520_vm1 = vmmov %vm17518_vm3 }
 0xa67   :  { %v7324_v1 = vsel %vm17515_vm7, %v7306_v25, %v7308_v47 }
 0xa68   :  { %v7186_v31 = vpop.permute.xlu1 %7185  ;;  %8811 = vmatprep.subr.mxu1 %v7324_v1 }
 0xa69   :  { %8812 = vmatpush2.msra.mxu1 %v7323_v44  ;;  %v7205_v33 = vsel %vm17518_vm3, %v15083_v49, %v7186_v31 }
 0xa6a   :  { %v7188_v20 = vpop.permute.xlu0 %7187 }
 0xa6b   :  { %v7206_v17 = vsel %vm17517_vm8, %v7186_v31, %v7188_v20 }
 0xa6c   :  { %v7190_v52 = vpop.permute.xlu1 %7189  ;;  %8742 = vmatprep.subr.mxu0 %v7206_v17 }
 0xa6d   :  { %8743 = vmatpush2.msra.mxu0 %v7205_v33  ;;  %v7207_v2 = vsel %vm17520_vm1, %v7188_v20, %v7190_v52  ;;  %v8472_v41 = vpop.f32.mrf.mxu0 }
 0xa6e   :  { %v7192_v43 = vpop.permute.xlu0 %7191 }
 0xa6f   :  { %v7208_v40 = vsel %vm17519_vm4, %v7190_v52, %v7192_v43  ;;  %v8474_v45 = vpop.f32.mrf.mxu0 }
 0xa70   :  { %v7070_v26 = vpop.permute.xlu1 %7069  ;;  %8813 = vmatprep.subr.mxu1 %v7208_v40 }
 0xa71   :  { %8814 = vmatpush2.msra.mxu1 %v7207_v2  ;;  %v7089_v12 = vsel %vm2797_vm0, %v15099_v30, %v7070_v26 }
 0xa72   :  { %v7072_v19 = vpop.permute.xlu0 %7071 }
 0xa73   :  { %v7090_v62 = vsel %vm2797_vm0, %v7070_v26, %v7072_v19 }
 0xa74   :  { %v7074_v60 = vpop.permute.xlu1 %7073  ;;  %8744 = vmatprep.subr.mxu0 %v7090_v62 }
 0xa75   :  { %8745 = vmatpush2.msra.mxu0 %v7089_v12  ;;  %v7091_v27 = vsel %vm2797_vm0, %v7072_v19, %v7074_v60 }
 0xa76   :  { %v7076_v49 = vpop.permute.xlu0 %7075 }
 0xa77   :  { %v7092_v58 = vsel %vm2797_vm0, %v7074_v60, %v7076_v49 }
 0xa78   :  { %v6954_v22 = vpop.permute.xlu1 %6953  ;;  %8815 = vmatprep.subr.mxu1 %v7092_v58 }
 0xa79   :  { %8816 = vmatpush2.msra.mxu1 %v7091_v27  ;;  %v6973_v56 = vsel %vm2680_vm2, %v15115_v11, %v6954_v22 }
 0xa7a   :  { %v6956_v54 = vpop.permute.xlu0 %6955 }
 0xa7b   :  { %v6974_v35 = vsel %vm2680_vm2, %v6954_v22, %v6956_v54 }
 0xa7c   :  { %v6958_v9 = vpop.permute.xlu1 %6957  ;;  %8746 = vmatprep.subr.mxu0 %v6974_v35 }
 0xa7d   :  { %8747 = vmatpush2.msra.mxu0 %v6973_v56  ;;  %v6975_v61 = vsel %vm2680_vm2, %v6956_v54, %v6958_v9 }
 0xa7e   :  { %v6960_v30 = vpop.permute.xlu0 %6959 }
 0xa7f   :  { %v6976_v38 = vsel %vm2680_vm2, %v6958_v9, %v6960_v30 }
 0xa80   :  { %v6838_v57 = vpop.permute.xlu1 %6837  ;;  %8817 = vmatprep.subr.mxu1 %v6976_v38 }
 0xa81   :  { %8818 = vmatpush2.msra.mxu1 %v6975_v61  ;;  %v6857_v15 = vsel %vm2563_vm15, %v15131_v48, %v6838_v57 }
 0xa82   :  { %v6840_v50 = vpop.permute.xlu0 %6839 }
 0xa83   :  { %v6858_v36 = vsel %vm2563_vm15, %v6838_v57, %v6840_v50 }
 0xa84   :  { %v6842_v46 = vpop.permute.xlu1 %6841  ;;  %8748 = vmatprep.subr.mxu0 %v6858_v36 }
 0xa85   :  { %8749 = vmatpush2.msra.mxu0 %v6857_v15  ;;  %v6859_v10 = vsel %vm2563_vm15, %v6840_v50, %v6842_v46 }
 0xa86   :  { %v6844_v11 = vpop.permute.xlu0 %6843 }
 0xa87   :  { %v6860_v59 = vsel %vm2563_vm15, %v6842_v46, %v6844_v11 }
 0xa88   :  { %v6722_v16 = vpop.permute.xlu1 %6721  ;;  %8819 = vmatprep.subr.mxu1 %v6860_v59 }
 0xa89   :  { %8820 = vmatpush2.msra.mxu1 %v6859_v10  ;;  %v6741_v37 = vsel %vm2446_vm14, %v15146_v3, %v6722_v16  ;;  %v8401_v3 = vpop.f32.mrf.mxu1 }
 0xa8a   :  { %v6724_v13 = vpop.permute.xlu0 %6723 }
 0xa8b   :  { %v6742_v42 = vsel %vm2446_vm14, %v6722_v16, %v6724_v13  ;;  %v8403_v34 = vpop.f32.mrf.mxu1 }
 0xa8c   :  { %v6726_v8 = vpop.permute.xlu1 %6725  ;;  %8750 = vmatprep.subr.mxu0 %v6742_v42 }
 0xa8d   :  { %8751 = vmatpush2.msra.mxu0 %v6741_v37  ;;  %v6743_v29 = vsel %vm2446_vm14, %v6724_v13, %v6726_v8 }
 0xa8e   :  { %v6728_v48 = vpop.permute.xlu0 %6727 }
 0xa8f   :  { %v6744_v4 = vsel %vm2446_vm14, %v6726_v8, %v6728_v48 }
 0xa90   :  { %v6606_v53 = vpop.permute.xlu1 %6605  ;;  %8821 = vmatprep.subr.mxu1 %v6744_v4 }
 0xa91   :  { %8822 = vmatpush2.msra.mxu1 %v6743_v29  ;;  %v6625_v55 = vsel %vm2329_vm13, %v15170_v5, %v6606_v53  ;;  %v8543_v5 = vpop.f32.mrf.mxu1 }
 0xa92   :  { %v6608_v21 = vpop.permute.xlu0 %6607 }
 0xa93   :  { %v6626_v14 = vsel %vm2329_vm13, %v6606_v53, %v6608_v21  ;;  %v8545_v7 = vpop.f32.mrf.mxu1 }
 0xa94   :  { %8752 = vmatprep.subr.mxu0 %v6626_v14  ;;  %v6610_v0 = vpop.permute.xlu1 %6609 }
 0xa95   :  { %8753 = vmatpush2.msra.mxu0 %v6625_v55  ;;  %v6627_v51 = vsel %vm2329_vm13, %v6608_v21, %v6610_v0 }
 0xa96   :  { %8755 = vmatmul.mubr.f32.vlgmr.msra.gmra.mxu0 %v15167_v18  ;;  %v6612_v24 = vpop.permute.xlu0 %6611 }
 0xa97   :  { %v6628_v32 = vsel %vm2329_vm13, %v6610_v0, %v6612_v24 }
 0xa98   :  { %8823 = vmatprep.subr.mxu1 %v6628_v32 }
 0xa99   :  { %8824 = vmatpush2.msra.mxu1 %v6627_v51 }
 0xa9a   :  { %8826 = vmatmul.mubr.f32.vlgmr.msra.gmra.mxu1 %v15167_v18 }
 0xaa1   :  { %v8259_v28 = vpop.permute.xlu1 %8258 }
 0xaa2   :  { %v8331_v6 = vadd.f32 %v8330_v63, %v8259_v28  ;;  %v8333_v39 = vadd.f32 %v8332_v23, %v8259_v28  ;;  %v8402_v25 = vadd.f32 %v8401_v3, %v8259_v28  ;;  %v8404_v47 = vadd.f32 %v8403_v34, %v8259_v28 }
 0xaa3   :  { %v8473_v1 = vadd.f32 %v8472_v41, %v8259_v28  ;;  %v8544_v44 = vadd.f32 %v8543_v5, %v8259_v28  ;;  %v8475_v31 = vadd.f32 %v8474_v45, %v8259_v28  ;;  %v8546_v20 = vadd.f32 %v8545_v7, %v8259_v28 }
 0xaa4   :  { %v8832_v17 = vmax.f32 %v8331_v6, 0.0  ;;  %v8833_v33 = vmax.f32 %v8333_v39, 0.0  ;;  %v8834_v52 = vmax.f32 %v8402_v25, 0.0  ;;  %v8835_v43 = vmax.f32 %v8404_v47, 0.0 }
 0xaa5   :  { %v8836_v40 = vmax.f32 %v8473_v1, 0.0  ;;  %v8838_v2 = vmax.f32 %v8544_v44, 0.0  ;;  %v8837_v18 = vmax.f32 %v8475_v31, 0.0  ;;  %v8839_v26 = vmax.f32 %v8546_v20, 0.0 }
 0xaa6   :  { %8848 = vst [vmem:[%s15495_s6] sm:$0xff] %v8832_v17  ;;  %8849 = vst [vmem:[%s15495_s6 + $0x8] sm:$0xff] %v8833_v33 }
 0xaa7   :  { %8850 = vst [vmem:[%s15495_s6 + $0x10] sm:$0xff] %v8834_v52  ;;  %8851 = vst [vmem:[%s15495_s6 + $0x18] sm:$0xff] %v8835_v43 }
 0xaa8   :  { %8852 = vst [vmem:[%s15495_s6 + $0x20] sm:$0xff] %v8836_v40  ;;  %8854 = vst [vmem:[%s15495_s6 + $0x30] sm:$0xff] %v8838_v2 }
 0xaa9   :  { %8853 = vst [vmem:[%s15495_s6 + $0x28] sm:$0xff] %v8837_v18  ;;  %8855 = vst [vmem:[%s15495_s6 + $0x38] sm:$0xff] %v8839_v26 }
 0xae3   :  { %v8614_v19 = vpop.f32.mrf.mxu0 }
 0xae4   :  { %v8615_v62 = vadd.f32 %v8614_v19, %v8259_v28 }
 0xae5   :  { %v8616_v12 = vpop.f32.mrf.mxu0 }
 0xae6   :  { %v8840_v60 = vmax.f32 %v8615_v62, 0.0  ;;  %v8617_v49 = vadd.f32 %v8616_v12, %v8259_v28 }
 0xae7   :  { %v8685_v58 = vpop.f32.mrf.mxu1 }
 0xae8   :  { %8856 = vst [vmem:[%s15495_s6 + $0x40] sm:$0xff] %v8840_v60  ;;  %v8841_v27 = vmax.f32 %v8617_v49, 0.0  ;;  %v8686_v22 = vadd.f32 %v8685_v58, %v8259_v28 }
 0xae9   :  { %v8687_v54 = vpop.f32.mrf.mxu1 }
 0xaea   :  { %8857 = vst [vmem:[%s15495_s6 + $0x48] sm:$0xff] %v8841_v27  ;;  %v8842_v35 = vmax.f32 %v8686_v22, 0.0  ;;  %v8688_v56 = vadd.f32 %v8687_v54, %v8259_v28 }
 0xaec   :  { %8858 = vst [vmem:[%s15495_s6 + $0x50] sm:$0xff] %v8842_v35  ;;  %v8843_v9 = vmax.f32 %v8688_v56, 0.0 }
 0xaee   :  { %8859 = vst [vmem:[%s15495_s6 + $0x58] sm:$0xff] %v8843_v9 }
 0xb56   :  { %v8756_v30 = vpop.f32.mrf.mxu0 }
 0xb57   :  { %v8757_v38 = vadd.f32 %v8756_v30, %v8259_v28 }
 0xb58   :  { %v8758_v61 = vpop.f32.mrf.mxu0 }
 0xb59   :  { %v8844_v57 = vmax.f32 %v8757_v38, 0.0  ;;  %v8759_v50 = vadd.f32 %v8758_v61, %v8259_v28 }
 0xb5a   :  { %v8827_v36 = vpop.f32.mrf.mxu1 }
 0xb5b   :  { %8860 = vst [vmem:[%s15495_s6 + $0x60] sm:$0xff] %v8844_v57  ;;  %v8845_v15 = vmax.f32 %v8759_v50, 0.0  ;;  %v8828_v46 = vadd.f32 %v8827_v36, %v8259_v28 }
 0xb5c   :  { %v8829_v11 = vpop.f32.mrf.mxu1 }
 0xb5d   :  { %8861 = vst [vmem:[%s15495_s6 + $0x68] sm:$0xff] %v8845_v15  ;;  %v8846_v59 = vmax.f32 %v8828_v46, 0.0  ;;  %v8830_v10 = vadd.f32 %v8829_v11, %v8259_v28 }
 0xb5f   :  { %8862 = vst [vmem:[%s15495_s6 + $0x70] sm:$0xff] %v8846_v59  ;;  %v8847_v16 = vmax.f32 %v8830_v10, 0.0 }
 0xb61   :  { %8863 = vst [vmem:[%s15495_s6 + $0x78] sm:$0xff] %v8847_v16 }

</bundles_post_ra>
